<compile_context>
chip_gen: v5e
topology: v5e:2x2
jax: 0.10.0
libtpu: 0.0.40
codegen_flags: <defaults>
</compile_context>

<pallas_src>
import functools

import jax
import jax.numpy as jnp
import numpy as np
from jax.experimental import pallas as pl
from jax.experimental.pallas import tpu as pltpu


def _stage1_kernel(hi_ref, lo_ref, w0_ref, wc_ref,
                   comb_ref, stat_ref, pad1_ref, pad2_ref):
    """Per batch element:
      conv0 (1x1) on the high path, then ONE im2col matmul that fuses
      {conv1 3x3/d1 | conv2 3x3/d2 | up2_low 1x1} against a block-structured
      bf16 weight of shape (9*C + c_lo, 2C).  Emits pre-BatchNorm hi||lo
      activations (bf16) plus per-batch f32 (sum, sumsq) partial statistics.
    """
    H, W = hi_ref.shape[1], hi_ref.shape[2]
    c_hi, c_lo = hi_ref.shape[3], lo_ref.shape[3]
    n, n2 = pad1_ref.shape[2], pad2_ref.shape[2]
    C = n + n2

    x_hi = hi_ref[0].reshape(H * W, c_hi)
    x_lo = lo_ref[0].reshape(H * W, c_lo)

    # conv0 1x1 == channel matmul (bf16 operands, f32 accumulate on the MXU).
    in0 = jnp.dot(x_hi.astype(jnp.bfloat16), w0_ref[...],
                  preferred_element_type=jnp.float32)          # (H*W, C) f32
    in0_hw = in0.reshape(H, W, C)

    # Halo-only zeroing (interior is fully overwritten every step; must run
    # every step because the 'parallel' batch axis may be sharded across TCs).
    pad1_ref[0:1, :, :] = jnp.zeros((1, W + 2, n), jnp.float32)
    pad1_ref[H + 1:H + 2, :, :] = jnp.zeros((1, W + 2, n), jnp.float32)
    pad1_ref[:, 0:1, :] = jnp.zeros((H + 2, 1, n), jnp.float32)
    pad1_ref[:, W + 1:W + 2, :] = jnp.zeros((H + 2, 1, n), jnp.float32)
    pad2_ref[0:2, :, :] = jnp.zeros((2, W + 4, n2), jnp.float32)
    pad2_ref[H + 2:H + 4, :, :] = jnp.zeros((2, W + 4, n2), jnp.float32)
    pad2_ref[:, 0:2, :] = jnp.zeros((H + 4, 2, n2), jnp.float32)
    pad2_ref[:, W + 2:W + 4, :] = jnp.zeros((H + 4, 2, n2), jnp.float32)
    # Channel split happens once here (not per tap read).
    pad1_ref[1:1 + H, 1:1 + W, :] = in0_hw[:, :, 0:n]
    pad2_ref[2:2 + H, 2:2 + W, :] = in0_hw[:, :, n:C]

    # im2col with NO structurally-zero K rows:
    #   9 dilation-1 taps x n channels, 9 dilation-2 taps x n2 channels,
    #   then the raw low-path pixels (c_lo channels).
    views = []
    for ky in range(3):
        for kx in range(3):
            dy, dx = ky - 1, kx - 1
            views.append(pad1_ref[1 + dy:1 + dy + H, 1 + dx:1 + dx + W, :]
                         .reshape(H * W, n))
    for ky in range(3):
        for kx in range(3):
            dy, dx = 2 * (ky - 1), 2 * (kx - 1)
            views.append(pad2_ref[2 + dy:2 + dy + H, 2 + dx:2 + dx + W, :]
                         .reshape(H * W, n2))
    views.append(x_lo)
    cols = jnp.concatenate(views, axis=-1).astype(jnp.bfloat16)  # (H*W, 9C+c_lo)

    comb = jnp.dot(cols, wc_ref[...],
                   preferred_element_type=jnp.float32)           # (H*W, 2C) f32

    comb_ref[0] = comb.reshape(H, W, 2 * C).astype(jnp.bfloat16)
    # f32 partial BatchNorm statistics, computed before the bf16 store.
    stat_ref[0] = jnp.concatenate(
        [jnp.sum(comb, axis=0, keepdims=True),
         jnp.sum(comb * comb, axis=0, keepdims=True)], axis=0)   # (2, 2C)


def _stage2_kernel(x_ref, par_ref, wr_ref, out_ref, stat_ref, pad_ref):
    """Per batch element: fused BN affines (both halves of the 2C input) +
    hi/lo add + per-channel PReLU, then the 3x3 refine conv as ONE im2col
    matmul.  Emits the pre-BatchNorm refine output (bf16) plus f32 partial
    statistics."""
    H, W = x_ref.shape[1], x_ref.shape[2]
    C = wr_ref.shape[1]

    p = par_ref[...]                                   # (3, 2C) f32
    x = x_ref[0].astype(jnp.float32)                   # (H, W, 2C)
    scale = p[0:1].reshape(1, 1, 2 * C)
    bias = p[1:2].reshape(1, 1, 2 * C)
    alpha = p[2:3, 0:C].reshape(1, 1, C)
    xp = x * scale + bias
    act = xp[:, :, 0:C] + xp[:, :, C:2 * C]            # bn(hi) + bn(lo)
    act = jnp.where(act >= 0, act, alpha * act)        # per-channel PReLU

    # pad=1 halo for the 3x3 refine conv; border-only zeroing.
    pad_ref[0:1, :, :] = jnp.zeros((1, W + 2, C), jnp.float32)
    pad_ref[H + 1:H + 2, :, :] = jnp.zeros((1, W + 2, C), jnp.float32)
    pad_ref[:, 0:1, :] = jnp.zeros((H + 2, 1, C), jnp.float32)
    pad_ref[:, W + 1:W + 2, :] = jnp.zeros((H + 2, 1, C), jnp.float32)
    pad_ref[1:1 + H, 1:1 + W, :] = act

    views = []
    for ky in range(3):
        for kx in range(3):
            dy, dx = ky - 1, kx - 1
            views.append(pad_ref[1 + dy:1 + dy + H, 1 + dx:1 + dx + W, :]
                         .reshape(H * W, C))
    cols = jnp.concatenate(views, axis=-1).astype(jnp.bfloat16)  # (H*W, 9C)
    r = jnp.dot(cols, wr_ref[...], preferred_element_type=jnp.float32)

    out_ref[0] = r.reshape(H, W, C).astype(jnp.bfloat16)
    stat_ref[0] = jnp.concatenate(
        [jnp.sum(r, axis=0, keepdims=True),
         jnp.sum(r * r, axis=0, keepdims=True)], axis=0)         # (2, C)


def _bn_affine(stats, count, gamma, beta, eps):
    """Reduce per-batch (sum, sumsq) partials into a BatchNorm scale/bias."""
    total = jnp.sum(stats[:, 0, :], axis=0)
    total_sq = jnp.sum(stats[:, 1, :], axis=0)
    mean = total / count
    # NOTE: E[x^2]-E[x]^2 can cancel when |mean| >> std; switch to a centered
    # two-pass accumulation before relying on this regime in training.
    var = total_sq / count - mean * mean
    scale = gamma * jax.lax.rsqrt(var + eps)
    bias = beta - mean * scale
    return scale, bias


@functools.partial(jax.jit, static_argnames=("eps",))
def conbine_feature_forward(low_fea, high_fea, params, eps=1e-5):
    """low_fea: (N,H,W,c_in2) f32, high_fea: (N,H,W,c_in1) f32 (same H,W)."""
    N, H, W, c_hi = high_fea.shape
    c_lo = low_fea.shape[3]
    C = params["wr"].shape[1]
    n = int(np.ceil(C / 2.0))
    n2 = C - n
    count = N * H * W

    comb_pre, comb_st = pl.pallas_call(
        _stage1_kernel,
        out_shape=(jax.ShapeDtypeStruct((N, H, W, 2 * C), jnp.bfloat16),
                   jax.ShapeDtypeStruct((N, 2, 2 * C), jnp.float32)),
        grid_spec=pltpu.PrefetchScalarGridSpec(
            num_scalar_prefetch=0,
            grid=(N,),
            in_specs=[
                pl.BlockSpec((1, H, W, c_hi), lambda b: (b, 0, 0, 0)),
                pl.BlockSpec((1, H, W, c_lo), lambda b: (b, 0, 0, 0)),
                pl.BlockSpec((c_hi, C), lambda b: (0, 0)),
                pl.BlockSpec((9 * C + c_lo, 2 * C), lambda b: (0, 0)),
            ],
            out_specs=(
                pl.BlockSpec((1, H, W, 2 * C), lambda b: (b, 0, 0, 0)),
                pl.BlockSpec((1, 2, 2 * C), lambda b: (b, 0, 0)),
            ),
            scratch_shapes=[
                pltpu.VMEM((H + 2, W + 2, n), jnp.float32),   # d=1 pad buffer
                pltpu.VMEM((H + 4, W + 4, n2), jnp.float32),  # d=2 pad buffer
            ],
        ),
        compiler_params=pltpu.CompilerParams(
            dimension_semantics=("parallel",)),
    )(high_fea, low_fea, params["w0"], params["wcomb"])

    scale_hi, bias_hi = _bn_affine(comb_st[:, :, 0:C], count,
                                   params["gamma_hi"], params["beta_hi"], eps)
    scale_lo, bias_lo = _bn_affine(comb_st[:, :, C:2 * C], count,
                                   params["gamma_lo"], params["beta_lo"], eps)
    par = jnp.stack([
        jnp.concatenate([scale_hi, scale_lo]),
        jnp.concatenate([bias_hi, bias_lo]),
        jnp.concatenate([params["alpha_act"], jnp.zeros((C,), jnp.float32)]),
    ], axis=0)                                                   # (3, 2C)

    r_pre, r_st = pl.pallas_call(
        _stage2_kernel,
        out_shape=(jax.ShapeDtypeStruct((N, H, W, C), jnp.bfloat16),
                   jax.ShapeDtypeStruct((N, 2, C), jnp.float32)),
        grid_spec=pltpu.PrefetchScalarGridSpec(
            num_scalar_prefetch=0,
            grid=(N,),
            in_specs=[
                pl.BlockSpec((1, H, W, 2 * C), lambda b: (b, 0, 0, 0)),
                pl.BlockSpec((3, 2 * C), lambda b: (0, 0)),
                pl.BlockSpec((9 * C, C), lambda b: (0, 0)),
            ],
            out_specs=(
                pl.BlockSpec((1, H, W, C), lambda b: (b, 0, 0, 0)),
                pl.BlockSpec((1, 2, C), lambda b: (b, 0, 0)),
            ),
            scratch_shapes=[pltpu.VMEM((H + 2, W + 2, C), jnp.float32)],
        ),
        compiler_params=pltpu.CompilerParams(
            dimension_semantics=("parallel",)),
    )(comb_pre, par, params["wr"])

    scale_r, bias_r = _bn_affine(r_st, count, params["gamma_r"],
                                 params["beta_r"], eps)
    # Final BN affine + shared-alpha PReLU are purely elementwise: leave them
    # to XLA rather than paying another pallas_call HBM round trip.
    z = r_pre.astype(jnp.float32) * scale_r + bias_r
    return jnp.where(z >= 0, z, params["alpha_refine"] * z)


def pack_params(w0_oihw, wlow_oihw, w1_oihw, w2_oihw, wr_oihw,
                gamma_hi, beta_hi, gamma_lo, beta_lo, gamma_r, beta_r,
                alpha_act, alpha_refine):
    """Convert PyTorch-convention (OIHW) weights into packed bf16 MXU layouts."""
    C = w0_oihw.shape[0]
    c_lo = wlow_oihw.shape[1]
    n = w1_oihw.shape[0]
    n2 = w2_oihw.shape[0]
    assert n + n2 == C

    w0 = np.transpose(np.asarray(w0_oihw)[:, :, 0, 0], (1, 0))      # (c_hi, C)
    wlow = np.transpose(np.asarray(wlow_oihw)[:, :, 0, 0], (1, 0))  # (c_lo, C)
    w1 = np.transpose(np.asarray(w1_oihw), (2, 3, 1, 0))            # (3,3,n,n)
    w2 = np.transpose(np.asarray(w2_oihw), (2, 3, 1, 0))            # (3,3,n2,n2)
    wr = np.transpose(np.asarray(wr_oihw), (2, 3, 1, 0))            # (3,3,C,C)

    # Combined stage-1 weight (no zero K rows):
    #   rows [0        : 9n      )  -> d=1 taps, output cols [0:n)
    #   rows [9n       : 9n+9n2  )  -> d=2 taps, output cols [n:C)
    #   rows [9C       : 9C+c_lo )  -> up2_low 1x1, output cols [C:2C)
    K1 = 9 * n + 9 * n2 + c_lo
    wcomb = np.zeros((K1, 2 * C), np.float32)
    t = 0
    for ky in range(3):
        for kx in range(3):
            wcomb[t * n:(t + 1) * n, 0:n] = w1[ky, kx]
            wcomb[9 * n + t * n2:9 * n + (t + 1) * n2, n:C] = w2[ky, kx]
            t += 1
    wcomb[9 * C:, C:2 * C] = wlow

    # Refine 3x3 weight, straight im2col packing (9*C, C).
    wrp = np.zeros((9 * C, C), np.float32)
    t = 0
    for ky in range(3):
        for kx in range(3):
            wrp[t * C:(t + 1) * C, :] = wr[ky, kx]
            t += 1

    f32, bf16 = jnp.float32, jnp.bfloat16
    return dict(
        w0=jnp.asarray(w0, bf16),
        wcomb=jnp.asarray(wcomb, bf16),
        wr=jnp.asarray(wrp, bf16),
        gamma_hi=jnp.asarray(gamma_hi, f32), beta_hi=jnp.asarray(beta_hi, f32),
        gamma_lo=jnp.asarray(gamma_lo, f32), beta_lo=jnp.asarray(beta_lo, f32),
        gamma_r=jnp.asarray(gamma_r, f32), beta_r=jnp.asarray(beta_r, f32),
        alpha_act=jnp.asarray(alpha_act, f32),
        alpha_refine=jnp.asarray(alpha_refine, f32))


def _reference(low, high, raw, eps=1e-5):
    """Pure-JAX NHWC reference equal to the PyTorch conbine_feature forward."""
    (w0_oihw, wlow_oihw, w1_oihw, w2_oihw, wr_oihw,
     gamma_hi, beta_hi, gamma_lo, beta_lo, gamma_r, beta_r,
     alpha_act, alpha_refine) = raw
    dn = ("NHWC", "HWIO", "NHWC")
    hp = jax.lax.Precision.HIGHEST

    def conv(x, w_oihw, pad, dil=1):
        w = jnp.transpose(w_oihw, (2, 3, 1, 0))
        return jax.lax.conv_general_dilated(
            x, w, (1, 1), [(pad, pad), (pad, pad)], rhs_dilation=(dil, dil),
            dimension_numbers=dn, precision=hp)

    def bn(x, g, b):
        m = x.mean(axis=(0, 1, 2))
        v = ((x - m) ** 2).mean(axis=(0, 1, 2))
        return (x - m) * jax.lax.rsqrt(v + eps) * g + b

    def prelu(x, a):
        return jnp.where(x >= 0, x, a * x)

    n = w1_oihw.shape[0]
    in0 = conv(high, w0_oihw, 0)
    b1 = conv(in0[..., :n], w1_oihw, 1)
    b2 = conv(in0[..., n:], w2_oihw, 2, dil=2)
    hi = bn(jnp.concatenate([b1, b2], axis=-1), gamma_hi, beta_hi)
    lo = bn(conv(low, wlow_oihw, 0), gamma_lo, beta_lo)
    act = prelu(hi + lo, alpha_act)
    r = conv(act, wr_oihw, 1)
    return prelu(bn(r, gamma_r, beta_r), alpha_refine)


if __name__ == "__main__":
    N, H, W = 2, 16, 16
    c_in1, c_in2, c_out = 32, 24, 16            # conbine_feature defaults
    n = int(np.ceil(c_out / 2.0))
    n2 = c_out - n

    key = jax.random.PRNGKey(0)
    ks = jax.random.split(key, 7)
    # PyTorch-convention tensors (NCHW inputs, OIHW weights), deterministic.
    high_nchw = jax.random.normal(ks[0], (N, c_in1, H, W), jnp.float32)
    low_nchw = jax.random.normal(ks[1], (N, c_in2, H, W), jnp.float32)
    w0_oihw = 0.1 * jax.random.normal(ks[2], (c_out, c_in1, 1, 1), jnp.float32)
    wlow_oihw = 0.1 * jax.random.normal(ks[3], (c_out, c_in2, 1, 1), jnp.float32)
    w1_oihw = 0.1 * jax.random.normal(ks[4], (n, n, 3, 3), jnp.float32)
    w2_oihw = 0.1 * jax.random.normal(ks[5], (n2, n2, 3, 3), jnp.float32)
    wr_oihw = 0.1 * jax.random.normal(ks[6], (c_out, c_out, 3, 3), jnp.float32)
    gamma_hi = jnp.linspace(0.5, 1.5, c_out, dtype=jnp.float32)
    beta_hi = jnp.linspace(-0.2, 0.2, c_out, dtype=jnp.float32)
    gamma_lo = jnp.linspace(1.2, 0.8, c_out, dtype=jnp.float32)
    beta_lo = jnp.linspace(0.1, -0.1, c_out, dtype=jnp.float32)
    gamma_r = jnp.linspace(0.9, 1.1, c_out, dtype=jnp.float32)
    beta_r = jnp.linspace(-0.05, 0.05, c_out, dtype=jnp.float32)
    alpha_act = jnp.linspace(0.1, 0.4, c_out, dtype=jnp.float32)   # PReLU(C)
    alpha_refine = jnp.float32(0.25)                               # PReLU()

    # Layout conversion at the edge: NCHW -> NHWC (channels on the lane axis).
    high = jnp.transpose(high_nchw, (0, 2, 3, 1))
    low = jnp.transpose(low_nchw, (0, 2, 3, 1))

    params = pack_params(w0_oihw, wlow_oihw, w1_oihw, w2_oihw, wr_oihw,
                         gamma_hi, beta_hi, gamma_lo, beta_lo, gamma_r, beta_r,
                         alpha_act, alpha_refine)

    y = conbine_feature_forward(low, high, params)
    y = jax.block_until_ready(y)

    y_ref = _reference(low, high,
                       (w0_oihw, wlow_oihw, w1_oihw, w2_oihw, wr_oihw,
                        gamma_hi, beta_hi, gamma_lo, beta_lo, gamma_r, beta_r,
                        alpha_act, alpha_refine))
    # Mixed tolerance: bf16 MXU operands + bf16 inter-stage activations vs a
    # HIGHEST-precision f32 XLA-conv reference (values are BN-normalized, so a
    # small relative term covers the error scaling with |x|).
    abs_err = jnp.abs(y - y_ref)
    tol = 0.08 + 0.05 * jnp.abs(y_ref)
    max_err = float(jnp.max(abs_err))
    assert bool(jnp.all(abs_err <= tol)), f"max abs error vs reference: {max_err}"
    print("KERNEL_OK")
</pallas_src>

<mosaic_0001>
module attributes {stable_mosaic.version = 11 : i64} {
  func.func @_stage1_kernel(%arg0: i32, %arg1: memref<1x16x16x32xf32, #tpu.memory_space<vmem>>, %arg2: memref<1x16x16x24xf32, #tpu.memory_space<vmem>>, %arg3: memref<32x16xbf16, #tpu.memory_space<vmem>>, %arg4: memref<168x32xbf16, #tpu.memory_space<vmem>>, %arg5: memref<1x16x16x32xbf16, #tpu.memory_space<vmem>>, %arg6: memref<1x2x32xf32, #tpu.memory_space<vmem>>, %arg7: memref<18x18x8xf32, #tpu.memory_space<vmem>>, %arg8: memref<20x20x8xf32, #tpu.memory_space<vmem>>) attributes {dimension_semantics = [#tpu.dimension_semantics<parallel>], iteration_bounds = array<i64: 2>, scalar_prefetch = 0 : i64, scratch_operands = 2 : i64, tpu.core_type = #tpu.core_type<tc>, window_params = [{transform_indices = @transform_0, window_bounds = array<i64: 1, 16, 16, 32>}, {transform_indices = @transform_1, window_bounds = array<i64: 1, 16, 16, 24>}, {pipeline_mode = #tpu.pipeline_mode<synchronous>, transform_indices = @transform_2, window_bounds = array<i64: 32, 16>}, {pipeline_mode = #tpu.pipeline_mode<synchronous>, transform_indices = @transform_3, window_bounds = array<i64: 168, 32>}, {transform_indices = @transform_4, window_bounds = array<i64: 1, 16, 16, 32>}, {transform_indices = @transform_5, window_bounds = array<i64: 1, 2, 32>}]} {
    %c0 = arith.constant 0 : index
    %c0_0 = arith.constant 0 : index
    %c0_1 = arith.constant 0 : index
    %c0_2 = arith.constant 0 : index
    %0 = vector.load %arg1[%c0, %c0_0, %c0_1, %c0_2] : memref<1x16x16x32xf32, #tpu.memory_space<vmem>>, vector<1x16x16x32xf32>
    %1 = vector.shape_cast %0 : vector<1x16x16x32xf32> to vector<16x16x32xf32>
    %2 = vector.shape_cast %1 : vector<16x16x32xf32> to vector<256x32xf32>
    %c0_3 = arith.constant 0 : index
    %c0_4 = arith.constant 0 : index
    %c0_5 = arith.constant 0 : index
    %c0_6 = arith.constant 0 : index
    %3 = vector.load %arg2[%c0_3, %c0_4, %c0_5, %c0_6] : memref<1x16x16x24xf32, #tpu.memory_space<vmem>>, vector<1x16x16x24xf32>
    %4 = vector.shape_cast %3 : vector<1x16x16x24xf32> to vector<16x16x24xf32>
    %5 = vector.shape_cast %4 : vector<16x16x24xf32> to vector<256x24xf32>
    %6 = arith.truncf %2 : vector<256x32xf32> to vector<256x32xbf16>
    %c0_7 = arith.constant 0 : index
    %c0_8 = arith.constant 0 : index
    %7 = vector.load %arg3[%c0_7, %c0_8] : memref<32x16xbf16, #tpu.memory_space<vmem>>, vector<32x16xbf16>
    %cst = arith.constant dense<0.000000e+00> : vector<256x16xf32>
    %8 = tpu.matmul %6, %7, %cst {dimension_numbers = #tpu.dot_dimension_numbers<[1], [0], [0], [1], [0, 0, 1, 1], [], []>} : vector<256x32xbf16>, vector<32x16xbf16>, vector<256x16xf32> -> vector<256x16xf32>
    %9 = vector.shape_cast %8 : vector<256x16xf32> to vector<16x16x16xf32>
    %cst_9 = arith.constant 0.000000e+00 : f32
    %10 = vector.broadcast %cst_9 : f32 to vector<1x18x8xf32>
    %c0_10 = arith.constant 0 : index
    %c0_11 = arith.constant 0 : index
    %c0_12 = arith.constant 0 : index
    %11 = vector.load %arg7[%c0_10, %c0_11, %c0_12] : memref<18x18x8xf32, #tpu.memory_space<vmem>>, vector<1x18x8xf32>
    tpu.vector_store %arg7[%c0_10, %c0_11, %c0_12], %10 {strides = array<i32>} : memref<18x18x8xf32, #tpu.memory_space<vmem>>, vector<1x18x8xf32>,
    %cst_13 = arith.constant 0.000000e+00 : f32
    %12 = vector.broadcast %cst_13 : f32 to vector<1x18x8xf32>
    %c17 = arith.constant 17 : index
    %c0_14 = arith.constant 0 : index
    %c0_15 = arith.constant 0 : index
    %13 = vector.load %arg7[%c17, %c0_14, %c0_15] : memref<18x18x8xf32, #tpu.memory_space<vmem>>, vector<1x18x8xf32>
    tpu.vector_store %arg7[%c17, %c0_14, %c0_15], %12 {strides = array<i32>} : memref<18x18x8xf32, #tpu.memory_space<vmem>>, vector<1x18x8xf32>,
    %cst_16 = arith.constant 0.000000e+00 : f32
    %14 = vector.broadcast %cst_16 : f32 to vector<18x1x8xf32>
    %c0_17 = arith.constant 0 : index
    %c0_18 = arith.constant 0 : index
    %c0_19 = arith.constant 0 : index
    %15 = vector.load %arg7[%c0_17, %c0_18, %c0_19] : memref<18x18x8xf32, #tpu.memory_space<vmem>>, vector<18x1x8xf32>
    tpu.vector_store %arg7[%c0_17, %c0_18, %c0_19], %14 {strides = array<i32>} : memref<18x18x8xf32, #tpu.memory_space<vmem>>, vector<18x1x8xf32>,
    %cst_20 = arith.constant 0.000000e+00 : f32
    %16 = vector.broadcast %cst_20 : f32 to vector<18x1x8xf32>
    %c0_21 = arith.constant 0 : index
    %c17_22 = arith.constant 17 : index
    %c0_23 = arith.constant 0 : index
    %17 = vector.load %arg7[%c0_21, %c17_22, %c0_23] : memref<18x18x8xf32, #tpu.memory_space<vmem>>, vector<18x1x8xf32>
    tpu.vector_store %arg7[%c0_21, %c17_22, %c0_23], %16 {strides = array<i32>} : memref<18x18x8xf32, #tpu.memory_space<vmem>>, vector<18x1x8xf32>,
    %cst_24 = arith.constant 0.000000e+00 : f32
    %18 = vector.broadcast %cst_24 : f32 to vector<2x20x8xf32>
    %c0_25 = arith.constant 0 : index
    %c0_26 = arith.constant 0 : index
    %c0_27 = arith.constant 0 : index
    %19 = vector.load %arg8[%c0_25, %c0_26, %c0_27] : memref<20x20x8xf32, #tpu.memory_space<vmem>>, vector<2x20x8xf32>
    tpu.vector_store %arg8[%c0_25, %c0_26, %c0_27], %18 {strides = array<i32>} : memref<20x20x8xf32, #tpu.memory_space<vmem>>, vector<2x20x8xf32>,
    %cst_28 = arith.constant 0.000000e+00 : f32
    %20 = vector.broadcast %cst_28 : f32 to vector<2x20x8xf32>
    %c18 = arith.constant 18 : index
    %c0_29 = arith.constant 0 : index
    %c0_30 = arith.constant 0 : index
    %21 = vector.load %arg8[%c18, %c0_29, %c0_30] : memref<20x20x8xf32, #tpu.memory_space<vmem>>, vector<2x20x8xf32>
    tpu.vector_store %arg8[%c18, %c0_29, %c0_30], %20 {strides = array<i32>} : memref<20x20x8xf32, #tpu.memory_space<vmem>>, vector<2x20x8xf32>,
    %cst_31 = arith.constant 0.000000e+00 : f32
    %22 = vector.broadcast %cst_31 : f32 to vector<20x2x8xf32>
    %c0_32 = arith.constant 0 : index
    %c0_33 = arith.constant 0 : index
    %c0_34 = arith.constant 0 : index
    %23 = vector.load %arg8[%c0_32, %c0_33, %c0_34] : memref<20x20x8xf32, #tpu.memory_space<vmem>>, vector<20x2x8xf32>
    tpu.vector_store %arg8[%c0_32, %c0_33, %c0_34], %22 {strides = array<i32>} : memref<20x20x8xf32, #tpu.memory_space<vmem>>, vector<20x2x8xf32>,
    %cst_35 = arith.constant 0.000000e+00 : f32
    %24 = vector.broadcast %cst_35 : f32 to vector<20x2x8xf32>
    %c0_36 = arith.constant 0 : index
    %c18_37 = arith.constant 18 : index
    %c0_38 = arith.constant 0 : index
    %25 = vector.load %arg8[%c0_36, %c18_37, %c0_38] : memref<20x20x8xf32, #tpu.memory_space<vmem>>, vector<20x2x8xf32>
    tpu.vector_store %arg8[%c0_36, %c18_37, %c0_38], %24 {strides = array<i32>} : memref<20x20x8xf32, #tpu.memory_space<vmem>>, vector<20x2x8xf32>,
    %26 = vector.extract_strided_slice %9 {offsets = [0, 0, 0], sizes = [16, 16, 8], strides = [1, 1, 1]} : vector<16x16x16xf32> to vector<16x16x8xf32>
    %c1 = arith.constant 1 : index
    %c1_39 = arith.constant 1 : index
    %c0_40 = arith.constant 0 : index
    %27 = vector.load %arg7[%c1, %c1_39, %c0_40] : memref<18x18x8xf32, #tpu.memory_space<vmem>>, vector<16x16x8xf32>
    tpu.vector_store %arg7[%c1, %c1_39, %c0_40], %26 {strides = array<i32>} : memref<18x18x8xf32, #tpu.memory_space<vmem>>, vector<16x16x8xf32>,
    %28 = vector.extract_strided_slice %9 {offsets = [0, 0, 8], sizes = [16, 16, 8], strides = [1, 1, 1]} : vector<16x16x16xf32> to vector<16x16x8xf32>
    %c2 = arith.constant 2 : index
    %c2_41 = arith.constant 2 : index
    %c0_42 = arith.constant 0 : index
    %29 = vector.load %arg8[%c2, %c2_41, %c0_42] : memref<20x20x8xf32, #tpu.memory_space<vmem>>, vector<16x16x8xf32>
    tpu.vector_store %arg8[%c2, %c2_41, %c0_42], %28 {strides = array<i32>} : memref<20x20x8xf32, #tpu.memory_space<vmem>>, vector<16x16x8xf32>,
    %c0_43 = arith.constant 0 : index
    %c0_44 = arith.constant 0 : index
    %c0_45 = arith.constant 0 : index
    %30 = vector.load %arg7[%c0_43, %c0_44, %c0_45] : memref<18x18x8xf32, #tpu.memory_space<vmem>>, vector<16x16x8xf32>
    %31 = vector.shape_cast %30 : vector<16x16x8xf32> to vector<256x8xf32>
    %c0_46 = arith.constant 0 : index
    %c1_47 = arith.constant 1 : index
    %c0_48 = arith.constant 0 : index
    %32 = vector.load %arg7[%c0_46, %c1_47, %c0_48] : memref<18x18x8xf32, #tpu.memory_space<vmem>>, vector<16x16x8xf32>
    %33 = vector.shape_cast %32 : vector<16x16x8xf32> to vector<256x8xf32>
    %c0_49 = arith.constant 0 : index
    %c2_50 = arith.constant 2 : index
    %c0_51 = arith.constant 0 : index
    %34 = vector.load %arg7[%c0_49, %c2_50, %c0_51] : memref<18x18x8xf32, #tpu.memory_space<vmem>>, vector<16x16x8xf32>
    %35 = vector.shape_cast %34 : vector<16x16x8xf32> to vector<256x8xf32>
    %c1_52 = arith.constant 1 : index
    %c0_53 = arith.constant 0 : index
    %c0_54 = arith.constant 0 : index
    %36 = vector.load %arg7[%c1_52, %c0_53, %c0_54] : memref<18x18x8xf32, #tpu.memory_space<vmem>>, vector<16x16x8xf32>
    %37 = vector.shape_cast %36 : vector<16x16x8xf32> to vector<256x8xf32>
    %c1_55 = arith.constant 1 : index
    %c1_56 = arith.constant 1 : index
    %c0_57 = arith.constant 0 : index
    %38 = vector.load %arg7[%c1_55, %c1_56, %c0_57] : memref<18x18x8xf32, #tpu.memory_space<vmem>>, vector<16x16x8xf32>
    %39 = vector.shape_cast %38 : vector<16x16x8xf32> to vector<256x8xf32>
    %c1_58 = arith.constant 1 : index
    %c2_59 = arith.constant 2 : index
    %c0_60 = arith.constant 0 : index
    %40 = vector.load %arg7[%c1_58, %c2_59, %c0_60] : memref<18x18x8xf32, #tpu.memory_space<vmem>>, vector<16x16x8xf32>
    %41 = vector.shape_cast %40 : vector<16x16x8xf32> to vector<256x8xf32>
    %c2_61 = arith.constant 2 : index
    %c0_62 = arith.constant 0 : index
    %c0_63 = arith.constant 0 : index
    %42 = vector.load %arg7[%c2_61, %c0_62, %c0_63] : memref<18x18x8xf32, #tpu.memory_space<vmem>>, vector<16x16x8xf32>
    %43 = vector.shape_cast %42 : vector<16x16x8xf32> to vector<256x8xf32>
    %c2_64 = arith.constant 2 : index
    %c1_65 = arith.constant 1 : index
    %c0_66 = arith.constant 0 : index
    %44 = vector.load %arg7[%c2_64, %c1_65, %c0_66] : memref<18x18x8xf32, #tpu.memory_space<vmem>>, vector<16x16x8xf32>
    %45 = vector.shape_cast %44 : vector<16x16x8xf32> to vector<256x8xf32>
    %c2_67 = arith.constant 2 : index
    %c2_68 = arith.constant 2 : index
    %c0_69 = arith.constant 0 : index
    %46 = vector.load %arg7[%c2_67, %c2_68, %c0_69] : memref<18x18x8xf32, #tpu.memory_space<vmem>>, vector<16x16x8xf32>
    %47 = vector.shape_cast %46 : vector<16x16x8xf32> to vector<256x8xf32>
    %c0_70 = arith.constant 0 : index
    %c0_71 = arith.constant 0 : index
    %c0_72 = arith.constant 0 : index
    %48 = vector.load %arg8[%c0_70, %c0_71, %c0_72] : memref<20x20x8xf32, #tpu.memory_space<vmem>>, vector<16x16x8xf32>
    %49 = vector.shape_cast %48 : vector<16x16x8xf32> to vector<256x8xf32>
    %c0_73 = arith.constant 0 : index
    %c2_74 = arith.constant 2 : index
    %c0_75 = arith.constant 0 : index
    %50 = vector.load %arg8[%c0_73, %c2_74, %c0_75] : memref<20x20x8xf32, #tpu.memory_space<vmem>>, vector<16x16x8xf32>
    %51 = vector.shape_cast %50 : vector<16x16x8xf32> to vector<256x8xf32>
    %c0_76 = arith.constant 0 : index
    %c4 = arith.constant 4 : index
    %c0_77 = arith.constant 0 : index
    %52 = vector.load %arg8[%c0_76, %c4, %c0_77] : memref<20x20x8xf32, #tpu.memory_space<vmem>>, vector<16x16x8xf32>
    %53 = vector.shape_cast %52 : vector<16x16x8xf32> to vector<256x8xf32>
    %c2_78 = arith.constant 2 : index
    %c0_79 = arith.constant 0 : index
    %c0_80 = arith.constant 0 : index
    %54 = vector.load %arg8[%c2_78, %c0_79, %c0_80] : memref<20x20x8xf32, #tpu.memory_space<vmem>>, vector<16x16x8xf32>
    %55 = vector.shape_cast %54 : vector<16x16x8xf32> to vector<256x8xf32>
    %c2_81 = arith.constant 2 : index
    %c2_82 = arith.constant 2 : index
    %c0_83 = arith.constant 0 : index
    %56 = vector.load %arg8[%c2_81, %c2_82, %c0_83] : memref<20x20x8xf32, #tpu.memory_space<vmem>>, vector<16x16x8xf32>
    %57 = vector.shape_cast %56 : vector<16x16x8xf32> to vector<256x8xf32>
    %c2_84 = arith.constant 2 : index
    %c4_85 = arith.constant 4 : index
    %c0_86 = arith.constant 0 : index
    %58 = vector.load %arg8[%c2_84, %c4_85, %c0_86] : memref<20x20x8xf32, #tpu.memory_space<vmem>>, vector<16x16x8xf32>
    %59 = vector.shape_cast %58 : vector<16x16x8xf32> to vector<256x8xf32>
    %c4_87 = arith.constant 4 : index
    %c0_88 = arith.constant 0 : index
    %c0_89 = arith.constant 0 : index
    %60 = vector.load %arg8[%c4_87, %c0_88, %c0_89] : memref<20x20x8xf32, #tpu.memory_space<vmem>>, vector<16x16x8xf32>
    %61 = vector.shape_cast %60 : vector<16x16x8xf32> to vector<256x8xf32>
    %c4_90 = arith.constant 4 : index
    %c2_91 = arith.constant 2 : index
    %c0_92 = arith.constant 0 : index
    %62 = vector.load %arg8[%c4_90, %c2_91, %c0_92] : memref<20x20x8xf32, #tpu.memory_space<vmem>>, vector<16x16x8xf32>
    %63 = vector.shape_cast %62 : vector<16x16x8xf32> to vector<256x8xf32>
    %c4_93 = arith.constant 4 : index
    %c4_94 = arith.constant 4 : index
    %c0_95 = arith.constant 0 : index
    %64 = vector.load %arg8[%c4_93, %c4_94, %c0_95] : memref<20x20x8xf32, #tpu.memory_space<vmem>>, vector<16x16x8xf32>
    %65 = vector.shape_cast %64 : vector<16x16x8xf32> to vector<256x8xf32>
    %66 = tpu.concatenate %31, %33, %35, %37, %39, %41, %43, %45, %47, %49, %51, %53, %55, %57, %59, %61 in 1 : vector<256x8xf32>, vector<256x8xf32>, vector<256x8xf32>, vector<256x8xf32>, vector<256x8xf32>, vector<256x8xf32>, vector<256x8xf32>, vector<256x8xf32>, vector<256x8xf32>, vector<256x8xf32>, vector<256x8xf32>, vector<256x8xf32>, vector<256x8xf32>, vector<256x8xf32>, vector<256x8xf32>, vector<256x8xf32> -> vector<256x128xf32>
    %67 = tpu.concatenate %63, %65, %5 in 1 : vector<256x8xf32>, vector<256x8xf32>, vector<256x24xf32> -> vector<256x40xf32>
    %68 = tpu.concatenate %66, %67 in 1 : vector<256x128xf32>, vector<256x40xf32> -> vector<256x168xf32>
    %69 = arith.truncf %68 : vector<256x168xf32> to vector<256x168xbf16>
    %c0_96 = arith.constant 0 : index
    %c0_97 = arith.constant 0 : index
    %70 = vector.load %arg4[%c0_96, %c0_97] : memref<168x32xbf16, #tpu.memory_space<vmem>>, vector<168x32xbf16>
    %cst_98 = arith.constant dense<0.000000e+00> : vector<256x32xf32>
    %71 = tpu.matmul %69, %70, %cst_98 {dimension_numbers = #tpu.dot_dimension_numbers<[1], [0], [0], [1], [0, 0, 1, 1], [], []>} : vector<256x168xbf16>, vector<168x32xbf16>, vector<256x32xf32> -> vector<256x32xf32>
    %72 = vector.shape_cast %71 : vector<256x32xf32> to vector<16x16x32xf32>
    %73 = arith.truncf %72 : vector<16x16x32xf32> to vector<16x16x32xbf16>
    %c0_99 = arith.constant 0 : index
    %c0_100 = arith.constant 0 : index
    %c0_101 = arith.constant 0 : index
    %c0_102 = arith.constant 0 : index
    %74 = vector.load %arg5[%c0_99, %c0_100, %c0_101, %c0_102] : memref<1x16x16x32xbf16, #tpu.memory_space<vmem>>, vector<1x16x16x32xbf16>
    %75 = vector.shape_cast %74 : vector<1x16x16x32xbf16> to vector<16x16x32xbf16>
    %76 = vector.shape_cast %73 : vector<16x16x32xbf16> to vector<1x16x16x32xbf16>
    tpu.vector_store %arg5[%c0_99, %c0_100, %c0_101, %c0_102], %76 {strides = array<i32>} : memref<1x16x16x32xbf16, #tpu.memory_space<vmem>>, vector<1x16x16x32xbf16>,
    %cst_103 = arith.constant dense<0.000000e+00> : vector<32xf32>
    %77 = vector.multi_reduction <add>, %71, %cst_103 [0] : vector<256x32xf32> to vector<32xf32>
    %78 = vector.shape_cast %77 : vector<32xf32> to vector<1x32xf32>
    %79 = arith.mulf %71, %71 : vector<256x32xf32>
    %cst_104 = arith.constant dense<0.000000e+00> : vector<32xf32>
    %80 = vector.multi_reduction <add>, %79, %cst_104 [0] : vector<256x32xf32> to vector<32xf32>
    %81 = vector.shape_cast %80 : vector<32xf32> to vector<1x32xf32>
    %82 = tpu.concatenate %78, %81 in 0 : vector<1x32xf32>, vector<1x32xf32> -> vector<2x32xf32>
    %c0_105 = arith.constant 0 : index
    %c0_106 = arith.constant 0 : index
    %c0_107 = arith.constant 0 : index
    %83 = vector.load %arg6[%c0_105, %c0_106, %c0_107] : memref<1x2x32xf32, #tpu.memory_space<vmem>>, vector<1x2x32xf32>
    %84 = vector.shape_cast %83 : vector<1x2x32xf32> to vector<2x32xf32>
    %85 = vector.shape_cast %82 : vector<2x32xf32> to vector<1x2x32xf32>
    tpu.vector_store %arg6[%c0_105, %c0_106, %c0_107], %85 {strides = array<i32>} : memref<1x2x32xf32, #tpu.memory_space<vmem>>, vector<1x2x32xf32>,
    return
  }
  func.func @transform_0(%arg0: i32) -> (i32, i32, i32, i32) {
    %c0_i32 = arith.constant 0 : i32
    %c0_i32_0 = arith.constant 0 : i32
    %c0_i32_1 = arith.constant 0 : i32
    %c0_i32_2 = arith.constant 0 : i32
    return %arg0, %c0_i32, %c0_i32_0, %c0_i32_1 : i32, i32, i32, i32
  }
  func.func @transform_1(%arg0: i32) -> (i32, i32, i32, i32) {
    %c0_i32 = arith.constant 0 : i32
    %c0_i32_0 = arith.constant 0 : i32
    %c0_i32_1 = arith.constant 0 : i32
    %c0_i32_2 = arith.constant 0 : i32
    return %arg0, %c0_i32, %c0_i32_0, %c0_i32_1 : i32, i32, i32, i32
  }
  func.func @transform_2(%arg0: i32) -> (i32, i32) {
    %c0_i32 = arith.constant 0 : i32
    %c0_i32_0 = arith.constant 0 : i32
    %c0_i32_1 = arith.constant 0 : i32
    return %c0_i32, %c0_i32_0 : i32, i32
  }
  func.func @transform_3(%arg0: i32) -> (i32, i32) {
    %c0_i32 = arith.constant 0 : i32
    %c0_i32_0 = arith.constant 0 : i32
    %c0_i32_1 = arith.constant 0 : i32
    return %c0_i32, %c0_i32_0 : i32, i32
  }
  func.func @transform_4(%arg0: i32) -> (i32, i32, i32, i32) {
    %c0_i32 = arith.constant 0 : i32
    %c0_i32_0 = arith.constant 0 : i32
    %c0_i32_1 = arith.constant 0 : i32
    %c0_i32_2 = arith.constant 0 : i32
    return %arg0, %c0_i32, %c0_i32_0, %c0_i32_1 : i32, i32, i32, i32
  }
  func.func @transform_5(%arg0: i32) -> (i32, i32, i32) {
    %c0_i32 = arith.constant 0 : i32
    %c0_i32_0 = arith.constant 0 : i32
    %c0_i32_1 = arith.constant 0 : i32
    return %arg0, %c0_i32, %c0_i32_0 : i32, i32, i32
  }
}

module attributes {stable_mosaic.version = 11 : i64} {
  func.func @_stage2_kernel(%arg0: i32, %arg1: memref<1x16x16x32xbf16, #tpu.memory_space<vmem>>, %arg2: memref<3x32xf32, #tpu.memory_space<vmem>>, %arg3: memref<144x16xbf16, #tpu.memory_space<vmem>>, %arg4: memref<1x16x16x16xbf16, #tpu.memory_space<vmem>>, %arg5: memref<1x2x16xf32, #tpu.memory_space<vmem>>, %arg6: memref<18x18x16xf32, #tpu.memory_space<vmem>>) attributes {dimension_semantics = [#tpu.dimension_semantics<parallel>], iteration_bounds = array<i64: 2>, scalar_prefetch = 0 : i64, scratch_operands = 1 : i64, tpu.core_type = #tpu.core_type<tc>, window_params = [{transform_indices = @transform_0, window_bounds = array<i64: 1, 16, 16, 32>}, {pipeline_mode = #tpu.pipeline_mode<synchronous>, transform_indices = @transform_1, window_bounds = array<i64: 3, 32>}, {pipeline_mode = #tpu.pipeline_mode<synchronous>, transform_indices = @transform_2, window_bounds = array<i64: 144, 16>}, {transform_indices = @transform_3, window_bounds = array<i64: 1, 16, 16, 16>}, {transform_indices = @transform_4, window_bounds = array<i64: 1, 2, 16>}]} {
    %c0 = arith.constant 0 : index
    %c0_0 = arith.constant 0 : index
    %0 = vector.load %arg2[%c0, %c0_0] : memref<3x32xf32, #tpu.memory_space<vmem>>, vector<3x32xf32>
    %c0_1 = arith.constant 0 : index
    %c0_2 = arith.constant 0 : index
    %c0_3 = arith.constant 0 : index
    %c0_4 = arith.constant 0 : index
    %1 = vector.load %arg1[%c0_1, %c0_2, %c0_3, %c0_4] : memref<1x16x16x32xbf16, #tpu.memory_space<vmem>>, vector<1x16x16x32xbf16>
    %2 = vector.shape_cast %1 : vector<1x16x16x32xbf16> to vector<16x16x32xbf16>
    %3 = arith.extf %2 : vector<16x16x32xbf16> to vector<16x16x32xf32>
    %4 = vector.extract_strided_slice %0 {offsets = [0, 0], sizes = [1, 32], strides = [1, 1]} : vector<3x32xf32> to vector<1x32xf32>
    %5 = vector.shape_cast %4 : vector<1x32xf32> to vector<1x1x32xf32>
    %6 = vector.extract_strided_slice %0 {offsets = [1, 0], sizes = [1, 32], strides = [1, 1]} : vector<3x32xf32> to vector<1x32xf32>
    %7 = vector.shape_cast %6 : vector<1x32xf32> to vector<1x1x32xf32>
    %8 = vector.extract_strided_slice %0 {offsets = [2, 0], sizes = [1, 16], strides = [1, 1]} : vector<3x32xf32> to vector<1x16xf32>
    %9 = vector.shape_cast %8 : vector<1x16xf32> to vector<1x1x16xf32>
    %10 = vector.broadcast %5 : vector<1x1x32xf32> to vector<16x16x32xf32>
    %11 = arith.mulf %3, %10 : vector<16x16x32xf32>
    %12 = vector.broadcast %7 : vector<1x1x32xf32> to vector<16x16x32xf32>
    %13 = arith.addf %11, %12 : vector<16x16x32xf32>
    %14 = vector.extract_strided_slice %13 {offsets = [0, 0, 0], sizes = [16, 16, 16], strides = [1, 1, 1]} : vector<16x16x32xf32> to vector<16x16x16xf32>
    %15 = vector.extract_strided_slice %13 {offsets = [0, 0, 16], sizes = [16, 16, 16], strides = [1, 1, 1]} : vector<16x16x32xf32> to vector<16x16x16xf32>
    %16 = arith.addf %14, %15 : vector<16x16x16xf32>
    %cst = arith.constant 0.000000e+00 : f32
    %17 = vector.broadcast %cst : f32 to vector<16x16x16xf32>
    %18 = arith.cmpf oge, %16, %17 : vector<16x16x16xf32>
    %19 = vector.broadcast %9 : vector<1x1x16xf32> to vector<16x16x16xf32>
    %20 = arith.mulf %19, %16 : vector<16x16x16xf32>
    %21 = arith.select %18, %16, %20 : vector<16x16x16xi1>, vector<16x16x16xf32>
    %cst_5 = arith.constant 0.000000e+00 : f32
    %22 = vector.broadcast %cst_5 : f32 to vector<1x18x16xf32>
    %c0_6 = arith.constant 0 : index
    %c0_7 = arith.constant 0 : index
    %c0_8 = arith.constant 0 : index
    %23 = vector.load %arg6[%c0_6, %c0_7, %c0_8] : memref<18x18x16xf32, #tpu.memory_space<vmem>>, vector<1x18x16xf32>
    tpu.vector_store %arg6[%c0_6, %c0_7, %c0_8], %22 {strides = array<i32>} : memref<18x18x16xf32, #tpu.memory_space<vmem>>, vector<1x18x16xf32>,
    %cst_9 = arith.constant 0.000000e+00 : f32
    %24 = vector.broadcast %cst_9 : f32 to vector<1x18x16xf32>
    %c17 = arith.constant 17 : index
    %c0_10 = arith.constant 0 : index
    %c0_11 = arith.constant 0 : index
    %25 = vector.load %arg6[%c17, %c0_10, %c0_11] : memref<18x18x16xf32, #tpu.memory_space<vmem>>, vector<1x18x16xf32>
    tpu.vector_store %arg6[%c17, %c0_10, %c0_11], %24 {strides = array<i32>} : memref<18x18x16xf32, #tpu.memory_space<vmem>>, vector<1x18x16xf32>,
    %cst_12 = arith.constant 0.000000e+00 : f32
    %26 = vector.broadcast %cst_12 : f32 to vector<18x1x16xf32>
    %c0_13 = arith.constant 0 : index
    %c0_14 = arith.constant 0 : index
    %c0_15 = arith.constant 0 : index
    %27 = vector.load %arg6[%c0_13, %c0_14, %c0_15] : memref<18x18x16xf32, #tpu.memory_space<vmem>>, vector<18x1x16xf32>
    tpu.vector_store %arg6[%c0_13, %c0_14, %c0_15], %26 {strides = array<i32>} : memref<18x18x16xf32, #tpu.memory_space<vmem>>, vector<18x1x16xf32>,
    %cst_16 = arith.constant 0.000000e+00 : f32
    %28 = vector.broadcast %cst_16 : f32 to vector<18x1x16xf32>
    %c0_17 = arith.constant 0 : index
    %c17_18 = arith.constant 17 : index
    %c0_19 = arith.constant 0 : index
    %29 = vector.load %arg6[%c0_17, %c17_18, %c0_19] : memref<18x18x16xf32, #tpu.memory_space<vmem>>, vector<18x1x16xf32>
    tpu.vector_store %arg6[%c0_17, %c17_18, %c0_19], %28 {strides = array<i32>} : memref<18x18x16xf32, #tpu.memory_space<vmem>>, vector<18x1x16xf32>,
    %c1 = arith.constant 1 : index
    %c1_20 = arith.constant 1 : index
    %c0_21 = arith.constant 0 : index
    %30 = vector.load %arg6[%c1, %c1_20, %c0_21] : memref<18x18x16xf32, #tpu.memory_space<vmem>>, vector<16x16x16xf32>
    tpu.vector_store %arg6[%c1, %c1_20, %c0_21], %21 {strides = array<i32>} : memref<18x18x16xf32, #tpu.memory_space<vmem>>, vector<16x16x16xf32>,
    %c0_22 = arith.constant 0 : index
    %c0_23 = arith.constant 0 : index
    %c0_24 = arith.constant 0 : index
    %31 = vector.load %arg6[%c0_22, %c0_23, %c0_24] : memref<18x18x16xf32, #tpu.memory_space<vmem>>, vector<16x16x16xf32>
    %32 = vector.shape_cast %31 : vector<16x16x16xf32> to vector<256x16xf32>
    %c0_25 = arith.constant 0 : index
    %c1_26 = arith.constant 1 : index
    %c0_27 = arith.constant 0 : index
    %33 = vector.load %arg6[%c0_25, %c1_26, %c0_27] : memref<18x18x16xf32, #tpu.memory_space<vmem>>, vector<16x16x16xf32>
    %34 = vector.shape_cast %33 : vector<16x16x16xf32> to vector<256x16xf32>
    %c0_28 = arith.constant 0 : index
    %c2 = arith.constant 2 : index
    %c0_29 = arith.constant 0 : index
    %35 = vector.load %arg6[%c0_28, %c2, %c0_29] : memref<18x18x16xf32, #tpu.memory_space<vmem>>, vector<16x16x16xf32>
    %36 = vector.shape_cast %35 : vector<16x16x16xf32> to vector<256x16xf32>
    %c1_30 = arith.constant 1 : index
    %c0_31 = arith.constant 0 : index
    %c0_32 = arith.constant 0 : index
    %37 = vector.load %arg6[%c1_30, %c0_31, %c0_32] : memref<18x18x16xf32, #tpu.memory_space<vmem>>, vector<16x16x16xf32>
    %38 = vector.shape_cast %37 : vector<16x16x16xf32> to vector<256x16xf32>
    %c1_33 = arith.constant 1 : index
    %c1_34 = arith.constant 1 : index
    %c0_35 = arith.constant 0 : index
    %39 = vector.load %arg6[%c1_33, %c1_34, %c0_35] : memref<18x18x16xf32, #tpu.memory_space<vmem>>, vector<16x16x16xf32>
    %40 = vector.shape_cast %39 : vector<16x16x16xf32> to vector<256x16xf32>
    %c1_36 = arith.constant 1 : index
    %c2_37 = arith.constant 2 : index
    %c0_38 = arith.constant 0 : index
    %41 = vector.load %arg6[%c1_36, %c2_37, %c0_38] : memref<18x18x16xf32, #tpu.memory_space<vmem>>, vector<16x16x16xf32>
    %42 = vector.shape_cast %41 : vector<16x16x16xf32> to vector<256x16xf32>
    %c2_39 = arith.constant 2 : index
    %c0_40 = arith.constant 0 : index
    %c0_41 = arith.constant 0 : index
    %43 = vector.load %arg6[%c2_39, %c0_40, %c0_41] : memref<18x18x16xf32, #tpu.memory_space<vmem>>, vector<16x16x16xf32>
    %44 = vector.shape_cast %43 : vector<16x16x16xf32> to vector<256x16xf32>
    %c2_42 = arith.constant 2 : index
    %c1_43 = arith.constant 1 : index
    %c0_44 = arith.constant 0 : index
    %45 = vector.load %arg6[%c2_42, %c1_43, %c0_44] : memref<18x18x16xf32, #tpu.memory_space<vmem>>, vector<16x16x16xf32>
    %46 = vector.shape_cast %45 : vector<16x16x16xf32> to vector<256x16xf32>
    %c2_45 = arith.constant 2 : index
    %c2_46 = arith.constant 2 : index
    %c0_47 = arith.constant 0 : index
    %47 = vector.load %arg6[%c2_45, %c2_46, %c0_47] : memref<18x18x16xf32, #tpu.memory_space<vmem>>, vector<16x16x16xf32>
    %48 = vector.shape_cast %47 : vector<16x16x16xf32> to vector<256x16xf32>
    %49 = tpu.concatenate %32, %34, %36, %38, %40, %42, %44, %46, %48 in 1 : vector<256x16xf32>, vector<256x16xf32>, vector<256x16xf32>, vector<256x16xf32>, vector<256x16xf32>, vector<256x16xf32>, vector<256x16xf32>, vector<256x16xf32>, vector<256x16xf32> -> vector<256x144xf32>
    %50 = arith.truncf %49 : vector<256x144xf32> to vector<256x144xbf16>
    %c0_48 = arith.constant 0 : index
    %c0_49 = arith.constant 0 : index
    %51 = vector.load %arg3[%c0_48, %c0_49] : memref<144x16xbf16, #tpu.memory_space<vmem>>, vector<144x16xbf16>
    %cst_50 = arith.constant dense<0.000000e+00> : vector<256x16xf32>
    %52 = tpu.matmul %50, %51, %cst_50 {dimension_numbers = #tpu.dot_dimension_numbers<[1], [0], [0], [1], [0, 0, 1, 1], [], []>} : vector<256x144xbf16>, vector<144x16xbf16>, vector<256x16xf32> -> vector<256x16xf32>
    %53 = vector.shape_cast %52 : vector<256x16xf32> to vector<16x16x16xf32>
    %54 = arith.truncf %53 : vector<16x16x16xf32> to vector<16x16x16xbf16>
    %c0_51 = arith.constant 0 : index
    %c0_52 = arith.constant 0 : index
    %c0_53 = arith.constant 0 : index
    %c0_54 = arith.constant 0 : index
    %55 = vector.load %arg4[%c0_51, %c0_52, %c0_53, %c0_54] : memref<1x16x16x16xbf16, #tpu.memory_space<vmem>>, vector<1x16x16x16xbf16>
    %56 = vector.shape_cast %55 : vector<1x16x16x16xbf16> to vector<16x16x16xbf16>
    %57 = vector.shape_cast %54 : vector<16x16x16xbf16> to vector<1x16x16x16xbf16>
    tpu.vector_store %arg4[%c0_51, %c0_52, %c0_53, %c0_54], %57 {strides = array<i32>} : memref<1x16x16x16xbf16, #tpu.memory_space<vmem>>, vector<1x16x16x16xbf16>,
    %cst_55 = arith.constant dense<0.000000e+00> : vector<16xf32>
    %58 = vector.multi_reduction <add>, %52, %cst_55 [0] : vector<256x16xf32> to vector<16xf32>
    %59 = vector.shape_cast %58 : vector<16xf32> to vector<1x16xf32>
    %60 = arith.mulf %52, %52 : vector<256x16xf32>
    %cst_56 = arith.constant dense<0.000000e+00> : vector<16xf32>
    %61 = vector.multi_reduction <add>, %60, %cst_56 [0] : vector<256x16xf32> to vector<16xf32>
    %62 = vector.shape_cast %61 : vector<16xf32> to vector<1x16xf32>
    %63 = tpu.concatenate %59, %62 in 0 : vector<1x16xf32>, vector<1x16xf32> -> vector<2x16xf32>
    %c0_57 = arith.constant 0 : index
    %c0_58 = arith.constant 0 : index
    %c0_59 = arith.constant 0 : index
    %64 = vector.load %arg5[%c0_57, %c0_58, %c0_59] : memref<1x2x16xf32, #tpu.memory_space<vmem>>, vector<1x2x16xf32>
    %65 = vector.shape_cast %64 : vector<1x2x16xf32> to vector<2x16xf32>
    %66 = vector.shape_cast %63 : vector<2x16xf32> to vector<1x2x16xf32>
    tpu.vector_store %arg5[%c0_57, %c0_58, %c0_59], %66 {strides = array<i32>} : memref<1x2x16xf32, #tpu.memory_space<vmem>>, vector<1x2x16xf32>,
    return
  }
  func.func @transform_0(%arg0: i32) -> (i32, i32, i32, i32) {
    %c0_i32 = arith.constant 0 : i32
    %c0_i32_0 = arith.constant 0 : i32
    %c0_i32_1 = arith.constant 0 : i32
    %c0_i32_2 = arith.constant 0 : i32
    return %arg0, %c0_i32, %c0_i32_0, %c0_i32_1 : i32, i32, i32, i32
  }
  func.func @transform_1(%arg0: i32) -> (i32, i32) {
    %c0_i32 = arith.constant 0 : i32
    %c0_i32_0 = arith.constant 0 : i32
    %c0_i32_1 = arith.constant 0 : i32
    return %c0_i32, %c0_i32_0 : i32, i32
  }
  func.func @transform_2(%arg0: i32) -> (i32, i32) {
    %c0_i32 = arith.constant 0 : i32
    %c0_i32_0 = arith.constant 0 : i32
    %c0_i32_1 = arith.constant 0 : i32
    return %c0_i32, %c0_i32_0 : i32, i32
  }
  func.func @transform_3(%arg0: i32) -> (i32, i32, i32, i32) {
    %c0_i32 = arith.constant 0 : i32
    %c0_i32_0 = arith.constant 0 : i32
    %c0_i32_1 = arith.constant 0 : i32
    %c0_i32_2 = arith.constant 0 : i32
    return %arg0, %c0_i32, %c0_i32_0, %c0_i32_1 : i32, i32, i32, i32
  }
  func.func @transform_4(%arg0: i32) -> (i32, i32, i32) {
    %c0_i32 = arith.constant 0 : i32
    %c0_i32_0 = arith.constant 0 : i32
    %c0_i32_1 = arith.constant 0 : i32
    return %arg0, %c0_i32, %c0_i32_0 : i32, i32, i32
  }
}

</mosaic_0001>

<bundles_post_ra>
// kernel: conbine_feature_forward.3
= control target key start
LH: loop header
LB: loop body
LE: loop exit
PB: predicated region body
PF: predicated region fallthrough
CT: control target
= control target key end

     0   :  { %s3526_s15 = smov 0   ;;  %s5159_s0 = inlined_call_operand.vmem [shape: bf16[2,16,16,32], index: 0, kind: input, shape index: {}]   ;;  %s5160_s1 = inlined_call_operand.vmem [shape: f32[3,32], index: 1, kind: input, shape index: {}]   ;;  %s5161_s2 = inlined_call_operand.vmem [shape: bf16[144,16], index: 2, kind: input, shape index: {}]   ;;  %s5162_s3 = inlined_call_operand.vmem [shape: bf16[2,16,16,16], index: 3, kind: output, shape index: {0}]   ;;  %s5163_s4 = inlined_call_operand.vmem [shape: f32[2,2,16], index: 4, kind: output, shape index: {1}]  }
   0x1 LB: > { %s2746_s16 = sadd.s32 4294967295, %s3491_s15   ;;  %p2750_p0 = scmp.ge.s32.totalorder %s3491_s15, 1  ;;  %s3491_s15 = sphi %s3526_s15, %s15_s15  }
   0x2   : > { %p165_p1 = scmp.lt.s32.totalorder %s3491_s15, 3 }
   0x4   : > { %p166_p2 = pnand %p2750_p0, %p165_p1 }
   0x6   : > { %169 = sbr.rel (%p166_p2) target bundleno = 772 (0x304), region = 32 }
   0xb   : > { %p195_p3 = scmp.lt.s32.totalorder %s2746_s16, 1  ;;  %v3539_v0 = vld [vmem:[%s5160_s1] sm:$0x7]  ;;  %s3493_s23 = smov 112   ;;  %vm598_vm0 = vcmask 130048   ;;  %vm601_vm1 = vcmask 123904  }
   0xc   : > { %v3550_v1 = vperm.slane %v3539_v0, 0  ;;  %v3556_v6 = vperm.slane %v3539_v0, 1  ;;  %s3495_s24 = smov 16   ;;  %vm607_vm2 = vcmask 122880   ;;  %s3496_s25 = smov 32  }
   0xd   : > { %s5201_s16 = smov (!%p195_p3, %s2746_s16), 1  ;;  %s3497_s28 = smov 48  }
   0xe   : > { %s2810_s19 = sshll.u32 %s5201_s16, 7  ;;  %s3498_s29 = smov 64  }
   0xf   : > { %s3547_s22 = scalar_lea.vmem %s5159_s0, %s2810_s19  ;;  %s3499_s30 = smov 80  }
  0x10   : > { %v2886_v2 = vld [vmem:[%s3547_s22 + $0x10] sm:$0xff]   ;;  %v2885_v3 = vld [vmem:[%s3547_s22 + $0x8] sm:$0xff]   ;;  %v2822_v4 = vld [vmem:[%s3547_s22] sm:$0xff]   ;;  %s3500_s5 = smov 96   ;;  %s4898_s27 = scalar_lea.vmem %s5162_s3, %s2810_s19 }
  0x11   : > { %v2831_v5 = vunpack.c.l.bf16 %v2886_v2  ;;  %v2827_v7 = vunpack.c.l.bf16 %v2885_v3  ;;  %v2823_v8 = vunpack.c.l.bf16 %v2822_v4  ;;  %v2832_v9 = vunpack.c.h.bf16 %v2886_v2  ;;  %v2887_v21 = vld [vmem:[%s3547_s22 + $0x18] sm:$0xff]   ;;  %v2888_v22 = vld [vmem:[%s3547_s22 + $0x20] sm:$0xff]   ;;  %v2889_v32 = vld [vmem:[%s3547_s22 + $0x28] sm:$0xff]   ;;  %s2755_s19 = sshll.u32 %s5201_s16, 1 }
  0x12   : > { %v2828_v11 = vunpack.c.h.bf16 %v2885_v3  ;;  %v2824_v13 = vunpack.c.h.bf16 %v2822_v4  ;;  %v2836_v25 = vunpack.c.h.bf16 %v2887_v21  ;;  %v2839_v26 = vunpack.c.l.bf16 %v2888_v22  ;;  %v2890_v42 = vld [vmem:[%s3547_s22 + $0x30] sm:$0xff]   ;;  %v2891_v43 = vld [vmem:[%s3547_s22 + $0x38] sm:$0xff]   ;;  %v2892_v53 = vld [vmem:[%s3547_s22 + $0x40] sm:$0xff]  }
  0x13   : > { %v280_v10 = vmul.f32 %v2831_v5, %v3550_v1  ;;  %v278_v12 = vmul.f32 %v2827_v7, %v3550_v1  ;;  %v276_v14 = vmul.f32 %v2823_v8, %v3550_v1  ;;  %v281_v18 = vmul.f32 %v2832_v9, %v3550_v1  ;;  %v2893_v63 = vld [vmem:[%s3547_s22 + $0x48] sm:$0xff]   ;;  %v2894_v2 = vld [vmem:[%s3547_s22 + $0x50] sm:$0xff]  }
  0x14   : > { %v279_v19 = vmul.f32 %v2828_v11, %v3550_v1  ;;  %v277_v20 = vmul.f32 %v2824_v13, %v3550_v1  ;;  %v2835_v28 = vunpack.c.l.bf16 %v2887_v21  ;;  %v283_v29 = vmul.f32 %v2836_v25, %v3550_v1  ;;  %v2895_v13 = vld [vmem:[%s3547_s22 + $0x58] sm:$0xff]  }
  0x15   : > { %v3562_v15 = vadd.f32 %v3556_v6, %v280_v10  ;;  %v3565_v16 = vadd.f32 %v3556_v6, %v278_v12  ;;  %v3568_v17 = vadd.f32 %v3556_v6, %v276_v14  ;;  %v3582_v23 = vadd.f32 %v3556_v6, %v281_v18 }
  0x16   : > { %v3585_v24 = vadd.f32 %v3556_v6, %v279_v19  ;;  %v3588_v27 = vadd.f32 %v3556_v6, %v277_v20  ;;  %v284_v30 = vmul.f32 %v2839_v26, %v3550_v1  ;;  %v282_v31 = vmul.f32 %v2835_v28, %v3550_v1 }
  0x17   : > { %381 = vrot.lane.b32.xlu2 %v3562_v15, %s3493_s23  ;;  %377 = vrot.lane.b32.xlu1 %v3565_v16, %s3493_s23  ;;  %v3601_v33 = vadd.f32 %v3556_v6, %v283_v29  ;;  %v2843_v34 = vunpack.c.l.bf16 %v2889_v32  ;;  %v2844_v36 = vunpack.c.h.bf16 %v2889_v32  ;;  %v2840_v38 = vunpack.c.h.bf16 %v2888_v22  ;;  %v2896_v29 = vld [vmem:[%s3547_s22 + $0x60] sm:$0xff]  }
  0x18   : > { %373 = vrot.lane.b32.xlu0 %v3568_v17, %s3493_s23  ;;  %v3604_v35 = vadd.f32 %v3556_v6, %v284_v30  ;;  %v3607_v37 = vadd.f32 %v3556_v6, %v282_v31  ;;  %v2848_v45 = vunpack.c.h.bf16 %v2890_v42  ;;  %v2851_v47 = vunpack.c.l.bf16 %v2891_v43  ;;  %v2897_v30 = vld [vmem:[%s3547_s22 + $0x68] sm:$0xff]  }
  0x19   : > { %v286_v39 = vmul.f32 %v2843_v34, %v3550_v1  ;;  %v287_v40 = vmul.f32 %v2844_v36, %v3550_v1  ;;  %v285_v41 = vmul.f32 %v2840_v38, %v3550_v1  ;;  %v2847_v49 = vunpack.c.l.bf16 %v2890_v42 }
  0x1a   : > { %v289_v50 = vmul.f32 %v2848_v45, %v3550_v1  ;;  %v290_v51 = vmul.f32 %v2851_v47, %v3550_v1  ;;  %v2855_v55 = vunpack.c.l.bf16 %v2892_v53  ;;  %v2856_v57 = vunpack.c.h.bf16 %v2892_v53 }
  0x1b   : > { %v3621_v44 = vadd.f32 %v3556_v6, %v286_v39  ;;  %v3624_v46 = vadd.f32 %v3556_v6, %v287_v40  ;;  %v3627_v48 = vadd.f32 %v3556_v6, %v285_v41  ;;  %v288_v52 = vmul.f32 %v2847_v49, %v3550_v1 }
  0x1c   : > { %v3640_v54 = vadd.f32 %v3556_v6, %v289_v50  ;;  %v3643_v56 = vadd.f32 %v3556_v6, %v290_v51  ;;  %v2852_v59 = vunpack.c.h.bf16 %v2891_v43  ;;  %v292_v60 = vmul.f32 %v2855_v55, %v3550_v1  ;;  %v2898_v43 = vld [vmem:[%s3547_s22 + $0x70] sm:$0xff]  }
  0x1d   : > { %v3646_v58 = vadd.f32 %v3556_v6, %v288_v52  ;;  %v293_v61 = vmul.f32 %v2856_v57, %v3550_v1  ;;  %v2860_v4 = vunpack.c.h.bf16 %v2893_v63  ;;  %v2863_v7 = vunpack.c.l.bf16 %v2894_v2 }
  0x1e   : > { %v291_v62 = vmul.f32 %v2852_v59, %v3550_v1  ;;  %v3660_v3 = vadd.f32 %v3556_v6, %v292_v60  ;;  %v2859_v9 = vunpack.c.l.bf16 %v2893_v63  ;;  %v2867_v18 = vunpack.c.l.bf16 %v2895_v13 }
  0x1f   : > { %383 = vrot.lane.b32.xlu2 %v3582_v23, %s3493_s23  ;;  %379 = vrot.lane.b32.xlu1 %v3585_v24, %s3493_s23  ;;  %v3663_v5 = vadd.f32 %v3556_v6, %v293_v61  ;;  %v295_v10 = vmul.f32 %v2860_v4, %v3550_v1  ;;  %v296_v11 = vmul.f32 %v2863_v7, %v3550_v1  ;;  %v2868_v20 = vunpack.c.h.bf16 %v2895_v13  ;;  %v2899_v7 = vld [vmem:[%s3547_s22 + $0x78] sm:$0xff]  }
  0x20   : > { %375 = vrot.lane.b32.xlu0 %v3588_v27, %s3493_s23  ;;  %v3666_v8 = vadd.f32 %v3556_v6, %v291_v62  ;;  %v294_v12 = vmul.f32 %v2859_v9, %v3550_v1  ;;  %v2864_v22 = vunpack.c.h.bf16 %v2894_v2  ;;  %v298_v25 = vmul.f32 %v2867_v18, %v3550_v1 }
  0x21   : > { %v3679_v14 = vadd.f32 %v3556_v6, %v295_v10  ;;  %v3682_v19 = vadd.f32 %v3556_v6, %v296_v11  ;;  %v299_v26 = vmul.f32 %v2868_v20, %v3550_v1  ;;  %v2872_v32 = vunpack.c.h.bf16 %v2896_v29 }
  0x22   : > { %v3685_v21 = vadd.f32 %v3556_v6, %v294_v12  ;;  %v297_v28 = vmul.f32 %v2864_v22, %v3550_v1  ;;  %v3699_v31 = vadd.f32 %v3556_v6, %v298_v25  ;;  %v2875_v36 = vunpack.c.l.bf16 %v2897_v30 }
  0x23   : > { %v3702_v34 = vadd.f32 %v3556_v6, %v299_v26  ;;  %v2871_v39 = vunpack.c.l.bf16 %v2896_v29  ;;  %v301_v40 = vmul.f32 %v2872_v32, %v3550_v1  ;;  %v2879_v47 = vunpack.c.l.bf16 %v2898_v43 }
  0x24   : > { %v3705_v38 = vadd.f32 %v3556_v6, %v297_v28  ;;  %v302_v41 = vmul.f32 %v2875_v36, %v3550_v1  ;;  %v2880_v50 = vunpack.c.h.bf16 %v2898_v43  ;;  %v2876_v52 = vunpack.c.h.bf16 %v2897_v30 }
  0x25   : > { %v300_v42 = vmul.f32 %v2871_v39, %v3550_v1  ;;  %v3718_v45 = vadd.f32 %v3556_v6, %v301_v40  ;;  %v304_v53 = vmul.f32 %v2879_v47, %v3550_v1  ;;  %v3494_v59 = vmov 0.0  }
  0x26   : > { %v3721_v49 = vadd.f32 %v3556_v6, %v302_v41  ;;  %v305_v55 = vmul.f32 %v2880_v50, %v3550_v1  ;;  %v303_v57 = vmul.f32 %v2876_v52, %v3550_v1  ;;  %599 = vst.msk [vmem:[#allocation2] sm:$0xff] %vm598_vm0, %v3494_v59  ;;  %v2883_v9 = vunpack.c.l.bf16 %v2899_v7 }
  0x27   : > { %387 = vrot.lane.b32.xlu1 %v3601_v33, %s3493_s23  ;;  %389 = vrot.lane.b32.xlu2 %v3604_v35, %s3493_s23  ;;  %v3724_v51 = vadd.f32 %v3556_v6, %v300_v42  ;;  %600 = vst.msk [vmem:[#allocation2 + $0x8] sm:$0xff] %vm598_vm0, %v3494_v59  ;;  %v3742_v60 = vadd.f32 %v3556_v6, %v304_v53  ;;  %v3766_v11 = vperm.slane %v3539_v0, 2  ;;  %v2884_v20 = vunpack.c.h.bf16 %v2899_v7 }
  0x28   : > { %385 = vrot.lane.b32.xlu0 %v3607_v37, %s3493_s23  ;;  %602 = vst.msk [vmem:[#allocation2 + $0x10] sm:$0x3] %vm601_vm1, %v3494_v59  ;;  %v3745_v61 = vadd.f32 %v3556_v6, %v305_v55  ;;  %v3750_v62 = vadd.f32 %v3556_v6, %v303_v57  ;;  %v306_v10 = vmul.f32 %v2883_v9, %v3550_v1 }
  0x29   : > { %604 = vst.msk [vmem:[#allocation2 + $0x198] sm:$0xff] %vm598_vm0, %v3494_v59  ;;  %v307_v22 = vmul.f32 %v2884_v20, %v3550_v1 }
  0x2a   : > { %605 = vst.msk [vmem:[#allocation2 + $0x1a0] sm:$0xff] %vm598_vm0, %v3494_v59  ;;  %v3769_v12 = vadd.f32 %v3556_v6, %v306_v10 }
  0x2b   : > { %606 = vst.msk [vmem:[#allocation2 + $0x1a8] sm:$0x3] %vm601_vm1, %v3494_v59  ;;  %v3792_v28 = vadd.f32 %v3556_v6, %v307_v22 }
  0x2c   : > { %626 = vst.msk [vmem:[#allocation2 + $0x11] sm:$0x1] %vm607_vm2, %v3494_v59 }
  0x2d   : > { %608 = vst.msk [vmem:[#allocation2] sm:$0x1] %vm607_vm2, %v3494_v59 }
  0x2e   : > { %v709_v63 = vld [vmem:[#allocation2 + $0x1] sm:$0xff]  ;;  %609 = vst.msk [vmem:[#allocation2 + $0x18] sm:$0x1] %vm607_vm2, %v3494_v59 }
  0x2f   : > { %393 = vrot.lane.b32.xlu1 %v3621_v44, %s3493_s23  ;;  %395 = vrot.lane.b32.xlu2 %v3624_v46, %s3493_s23  ;;  %v710_v2 = vld [vmem:[#allocation2 + $0x9] sm:$0xff]  ;;  %610 = vst.msk [vmem:[#allocation2 + $0x30] sm:$0x1] %vm607_vm2, %v3494_v59 }
  0x30   : > { %391 = vrot.lane.b32.xlu0 %v3627_v48, %s3493_s23  ;;  %v2925_v4 = vpack.i.bf16 %v710_v2, %v709_v63  ;;  %611 = vst.msk [vmem:[#allocation2 + $0x48] sm:$0x1] %vm607_vm2, %v3494_v59  ;;  %v741_v25 = vld [vmem:[#allocation2 + $0x2] sm:$0xff] }
  0x31   : > { %612 = vst.msk [vmem:[#allocation2 + $0x60] sm:$0x1] %vm607_vm2, %v3494_v59 }
  0x32   : > { %613 = vst.msk [vmem:[#allocation2 + $0x78] sm:$0x1] %vm607_vm2, %v3494_v59 }
  0x33   : > { %v742_v26 = vld [vmem:[#allocation2 + $0xa] sm:$0xff]  ;;  %614 = vst.msk [vmem:[#allocation2 + $0x90] sm:$0x1] %vm607_vm2, %v3494_v59 }
  0x34   : > { %v2930_v29 = vpack.i.bf16 %v742_v26, %v741_v25  ;;  %615 = vst.msk [vmem:[#allocation2 + $0xa8] sm:$0x1] %vm607_vm2, %v3494_v59 }
  0x35   : > { %616 = vst.msk [vmem:[#allocation2 + $0xc0] sm:$0x1] %vm607_vm2, %v3494_v59 }
  0x36   : > { %617 = vst.msk [vmem:[#allocation2 + $0xd8] sm:$0x1] %vm607_vm2, %v3494_v59 }
  0x37   : > { %399 = vrot.lane.b32.xlu1 %v3640_v54, %s3493_s23  ;;  %401 = vrot.lane.b32.xlu2 %v3643_v56, %s3493_s23  ;;  %618 = vst.msk [vmem:[#allocation2 + $0xf0] sm:$0x1] %vm607_vm2, %v3494_v59 }
  0x38   : > { %397 = vrot.lane.b32.xlu0 %v3646_v58, %s3493_s23  ;;  %619 = vst.msk [vmem:[#allocation2 + $0x108] sm:$0x1] %vm607_vm2, %v3494_v59 }
  0x39   : > { %620 = vst.msk [vmem:[#allocation2 + $0x120] sm:$0x1] %vm607_vm2, %v3494_v59 }
  0x3a   : > { %621 = vst.msk [vmem:[#allocation2 + $0x138] sm:$0x1] %vm607_vm2, %v3494_v59 }
  0x3b   : > { %622 = vst.msk [vmem:[#allocation2 + $0x150] sm:$0x1] %vm607_vm2, %v3494_v59 }
  0x3c   : > { %623 = vst.msk [vmem:[#allocation2 + $0x168] sm:$0x1] %vm607_vm2, %v3494_v59 }
  0x3d   : > { %624 = vst.msk [vmem:[#allocation2 + $0x180] sm:$0x1] %vm607_vm2, %v3494_v59 }
  0x3e   : > { %625 = vst.msk [vmem:[#allocation2 + $0x198] sm:$0x1] %vm607_vm2, %v3494_v59 }
  0x3f   : > { %405 = vrot.lane.b32.xlu1 %v3660_v3, %s3493_s23  ;;  %407 = vrot.lane.b32.xlu2 %v3663_v5, %s3493_s23  ;;  %627 = vst.msk [vmem:[#allocation2 + $0x29] sm:$0x1] %vm607_vm2, %v3494_v59 }
  0x40   : > { %403 = vrot.lane.b32.xlu0 %v3666_v8, %s3493_s23  ;;  %628 = vst.msk [vmem:[#allocation2 + $0x41] sm:$0x1] %vm607_vm2, %v3494_v59 }
  0x41   : > { %629 = vst.msk [vmem:[#allocation2 + $0x59] sm:$0x1] %vm607_vm2, %v3494_v59 }
  0x42   : > { %630 = vst.msk [vmem:[#allocation2 + $0x71] sm:$0x1] %vm607_vm2, %v3494_v59 }
  0x43   : > { %631 = vst.msk [vmem:[#allocation2 + $0x89] sm:$0x1] %vm607_vm2, %v3494_v59 }
  0x44   : > { %632 = vst.msk [vmem:[#allocation2 + $0xa1] sm:$0x1] %vm607_vm2, %v3494_v59 }
  0x45   : > { %633 = vst.msk [vmem:[#allocation2 + $0xb9] sm:$0x1] %vm607_vm2, %v3494_v59 }
  0x46   : > { %634 = vst.msk [vmem:[#allocation2 + $0xd1] sm:$0x1] %vm607_vm2, %v3494_v59 }
  0x47   : > { %411 = vrot.lane.b32.xlu1 %v3679_v14, %s3493_s23  ;;  %413 = vrot.lane.b32.xlu2 %v3682_v19, %s3493_s23  ;;  %635 = vst.msk [vmem:[#allocation2 + $0xe9] sm:$0x1] %vm607_vm2, %v3494_v59 }
  0x48   : > { %409 = vrot.lane.b32.xlu0 %v3685_v21, %s3493_s23  ;;  %636 = vst.msk [vmem:[#allocation2 + $0x101] sm:$0x1] %vm607_vm2, %v3494_v59 }
  0x49   : > { %637 = vst.msk [vmem:[#allocation2 + $0x119] sm:$0x1] %vm607_vm2, %v3494_v59 }
  0x4a   : > { %638 = vst.msk [vmem:[#allocation2 + $0x131] sm:$0x1] %vm607_vm2, %v3494_v59 }
  0x4b   : > { %639 = vst.msk [vmem:[#allocation2 + $0x149] sm:$0x1] %vm607_vm2, %v3494_v59 }
  0x4c   : > { %640 = vst.msk [vmem:[#allocation2 + $0x161] sm:$0x1] %vm607_vm2, %v3494_v59 }
  0x4d   : > { %641 = vst.msk [vmem:[#allocation2 + $0x179] sm:$0x1] %vm607_vm2, %v3494_v59 }
  0x4e   : > { %642 = vst.msk [vmem:[#allocation2 + $0x191] sm:$0x1] %vm607_vm2, %v3494_v59 }
  0x4f   : > { %417 = vrot.lane.b32.xlu1 %v3699_v31, %s3493_s23  ;;  %419 = vrot.lane.b32.xlu2 %v3702_v34, %s3493_s23  ;;  %643 = vst.msk [vmem:[#allocation2 + $0x1a9] sm:$0x1] %vm607_vm2, %v3494_v59 }
  0x50   : > { %415 = vrot.lane.b32.xlu0 %v3705_v38, %s3493_s23 }
  0x57   : > { %423 = vrot.lane.b32.xlu1 %v3718_v45, %s3493_s23  ;;  %425 = vrot.lane.b32.xlu2 %v3721_v49, %s3493_s23 }
  0x58   : > { %421 = vrot.lane.b32.xlu0 %v3724_v51, %s3493_s23 }
  0x5f   : > { %429 = vrot.lane.b32.xlu1 %v3742_v60, %s3493_s23  ;;  %431 = vrot.lane.b32.xlu2 %v3745_v61, %s3493_s23 }
  0x60   : > { %427 = vrot.lane.b32.xlu0 %v3750_v62, %s3493_s23 }
  0x67   : > { %2926 = vrot.lane.b32.xlu2 %v2925_v4, %s3495_s24  ;;  %435 = vrot.lane.b32.xlu1 %v3792_v28, %s3493_s23 }
  0x68   : > { %433 = vrot.lane.b32.xlu0 %v3769_v12, %s3493_s23 }
  0x70   : > { %2931 = vrot.lane.b32.xlu0 %v2930_v29, %s3496_s25 }
  0x71   : > { %v382_v13 = vpop.permute.xlu2 %381 }
  0x72   : > { %v473_v18 = vadd.f32 %v382_v13, %v3562_v15 }
  0x74   : > { %vm505_vm3 = vcmp.ge.f32.partialorder %v473_v18, 0.0  ;;  %v538_v0 = vmul.f32 %v3766_v11, %v473_v18 }
  0x76   : > { %v570_v15 = vsel %vm505_vm3, %v473_v18, %v538_v0 }
  0x77   : > { %649 = vst.msk [vmem:[#allocation2 + $0x49] sm:$0xff] %vm598_vm0, %v570_v15 }
  0x79   : > { %v384_v30 = vpop.permute.xlu2 %383 }
  0x7a   : > { %v474_v1 = vadd.f32 %v384_v30, %v3582_v23  ;;  %v2820_v23 = vld [vmem:[%s5161_s2 + $0x40] sm:$0xff] }
  0x7b   : > { %2340 = vmatpush.bf16.msra.mxu1 %v2820_v23  ;;  %2908 = vmatpush.bf16.msra.mxu3 %v2820_v23 }
  0x7c   : > { %vm506_vm4 = vcmp.ge.f32.partialorder %v474_v1, 0.0  ;;  %v539_v6 = vmul.f32 %v3766_v11, %v474_v1 }
  0x7e   : > { %v571_v32 = vsel %vm506_vm4, %v474_v1, %v539_v6  ;;  %v715_v40 = vld [vmem:[#allocation2 + $0x49] sm:$0xff] }
  0x7f   : > { %650 = vst.msk [vmem:[#allocation2 + $0x51] sm:$0xff] %vm598_vm0, %v571_v32 }
  0x81   : > { %v390_v36 = vpop.permute.xlu2 %389 }
  0x82   : > { %v477_v39 = vadd.f32 %v390_v36, %v3604_v35 }
  0x84   : > { %vm509_vm5 = vcmp.ge.f32.partialorder %v477_v39, 0.0  ;;  %v542_v41 = vmul.f32 %v3766_v11, %v477_v39 }
  0x86   : > { %v716_v42 = vld [vmem:[#allocation2 + $0x51] sm:$0xff]  ;;  %v574_v43 = vsel %vm509_vm5, %v477_v39, %v542_v41 }
  0x87   : > { %v2945_v35 = vpack.i.bf16 %v716_v42, %v715_v40  ;;  %653 = vst.msk [vmem:[#allocation2 + $0x79] sm:$0xff] %vm598_vm0, %v574_v43 }
  0x89   : > { %2946 = vrot.lane.b32.xlu2 %v2945_v35, %s3495_s24  ;;  %v378_v47 = vpop.permute.xlu1 %377  ;;  %v396_v50 = vpop.permute.xlu2 %395 }
  0x8a   : > { %v471_v52 = vadd.f32 %v378_v47, %v3565_v16  ;;  %v374_v53 = vpop.permute.xlu0 %373  ;;  %v480_v2 = vadd.f32 %v396_v50, %v3624_v46 }
  0x8b   : > { %v469_v55 = vadd.f32 %v374_v53, %v3568_v17 }
  0x8c   : > { %vm503_vm6 = vcmp.ge.f32.partialorder %v471_v52, 0.0  ;;  %v536_v57 = vmul.f32 %v3766_v11, %v471_v52  ;;  %v545_v0 = vmul.f32 %v3766_v11, %v480_v2  ;;  %vm512_vm10 = vcmp.ge.f32.partialorder %v480_v2, 0.0 }
  0x8d   : > { %vm501_vm7 = vcmp.ge.f32.partialorder %v469_v55, 0.0  ;;  %v534_v63 = vmul.f32 %v3766_v11, %v469_v55 }
  0x8e   : > { %v568_v16 = vsel %vm503_vm6, %v471_v52, %v536_v57  ;;  %v577_v15 = vsel %vm512_vm10, %v480_v2, %v545_v0 }
  0x8f   : > { %647 = vst.msk [vmem:[#allocation2 + $0x31] sm:$0xff] %vm598_vm0, %v568_v16  ;;  %v566_v17 = vsel %vm501_vm7, %v469_v55, %v534_v63 }
  0x90   : > { %645 = vst.msk [vmem:[#allocation2 + $0x19] sm:$0xff] %vm598_vm0, %v566_v17 }
  0x91   : > { %v380_v4 = vpop.permute.xlu1 %379  ;;  %v402_v7 = vpop.permute.xlu2 %401  ;;  %656 = vst.msk [vmem:[#allocation2 + $0x99] sm:$0xff] %vm598_vm0, %v577_v15  ;;  %v3926_v15 = vld [vmem:[#allocation2 + $0x4a] sm:$0xff] }
  0x92   : > { %v472_v9 = vadd.f32 %v380_v4, %v3585_v24  ;;  %v376_v10 = vpop.permute.xlu0 %375  ;;  %v483_v13 = vadd.f32 %v402_v7, %v3643_v56 }
  0x93   : > { %v470_v18 = vadd.f32 %v376_v10, %v3588_v27 }
  0x94   : > { %vm504_vm8 = vcmp.ge.f32.partialorder %v472_v9, 0.0  ;;  %v537_v46 = vmul.f32 %v3766_v11, %v472_v9  ;;  %v548_v27 = vmul.f32 %v3766_v11, %v483_v13  ;;  %vm515_vm11 = vcmp.ge.f32.partialorder %v483_v13, 0.0 }
  0x95   : > { %vm502_vm9 = vcmp.ge.f32.partialorder %v470_v18, 0.0  ;;  %v535_v24 = vmul.f32 %v3766_v11, %v470_v18 }
  0x96   : > { %v569_v56 = vsel %vm504_vm8, %v472_v9, %v537_v46  ;;  %v580_v25 = vsel %vm515_vm11, %v483_v13, %v548_v27  ;;  %v713_v32 = vld [vmem:[#allocation2 + $0x31] sm:$0xff] }
  0x97   : > { %648 = vst.msk [vmem:[#allocation2 + $0x39] sm:$0xff] %vm598_vm0, %v569_v56  ;;  %v567_v20 = vsel %vm502_vm9, %v470_v18, %v535_v24  ;;  %v711_v35 = vld [vmem:[#allocation2 + $0x19] sm:$0xff] }
  0x98   : > { %646 = vst.msk [vmem:[#allocation2 + $0x21] sm:$0xff] %vm598_vm0, %v567_v20 }
  0x99   : > { %v388_v22 = vpop.permute.xlu1 %387  ;;  %v408_v26 = vpop.permute.xlu2 %407  ;;  %659 = vst.msk [vmem:[#allocation2 + $0xc1] sm:$0xff] %vm598_vm0, %v580_v25  ;;  %v722_v25 = vld [vmem:[#allocation2 + $0x99] sm:$0xff] }
  0x9a   : > { %v476_v29 = vadd.f32 %v388_v22, %v3601_v33  ;;  %v386_v30 = vpop.permute.xlu0 %385  ;;  %v486_v1 = vadd.f32 %v408_v26, %v3663_v5  ;;  %v3928_v22 = vld [vmem:[#allocation2 + $0x52] sm:$0xff] }
  0x9b   : > { %v475_v6 = vadd.f32 %v386_v30, %v3607_v37 }
  0x9c   : > { %vm508_vm12 = vcmp.ge.f32.partialorder %v476_v29, 0.0  ;;  %v541_v23 = vmul.f32 %v3766_v11, %v476_v29  ;;  %vm518_vm13 = vcmp.ge.f32.partialorder %v486_v1, 0.0  ;;  %v551_v36 = vmul.f32 %v3766_v11, %v486_v1 }
  0x9d   : > { %vm507_vm14 = vcmp.ge.f32.partialorder %v475_v6, 0.0  ;;  %v540_v33 = vmul.f32 %v3766_v11, %v475_v6 }
  0x9e   : > { %v573_v59 = vsel %vm508_vm12, %v476_v29, %v541_v23  ;;  %v3889_v39 = vld [vmem:[#allocation2 + $0x32] sm:$0xff]  ;;  %v3891_v5 = vld [vmem:[#allocation2 + $0x3a] sm:$0xff]  ;;  %v583_v40 = vsel %vm518_vm13, %v486_v1, %v551_v36 }
  0x9f   : > { %v714_v37 = vld [vmem:[#allocation2 + $0x39] sm:$0xff]  ;;  %652 = vst.msk [vmem:[#allocation2 + $0x69] sm:$0xff] %vm598_vm0, %v573_v59  ;;  %v572_v41 = vsel %vm507_vm14, %v475_v6, %v540_v33  ;;  %v2093_v42 = vpack.c.bf16 %v3891_v5, %v3889_v39  ;;  %v712_v47 = vld [vmem:[#allocation2 + $0x21] sm:$0xff]  ;;  %v3015_v50 = vpack.i.bf16 %v3891_v5, %v3889_v39 }
  0xa0   : > { %v3896_v43 = vpack.i.bf16 %v714_v37, %v713_v32  ;;  %651 = vst.msk [vmem:[#allocation2 + $0x61] sm:$0xff] %vm598_vm0, %v572_v41  ;;  %v3901_v52 = vpack.i.bf16 %v712_v47, %v711_v35  ;;  %v719_v23 = vld [vmem:[#allocation2 + $0x79] sm:$0xff] }
  0xa1   : > { %2792 = vmatmul.msk.bf16.vlgmr.msra.gmra.mxu1 %vm598_vm0, %v2093_v42  ;;  %v394_v53 = vpop.permute.xlu1 %393  ;;  %662 = vst.msk [vmem:[#allocation2 + $0xe1] sm:$0xff] %vm598_vm0, %v583_v40  ;;  %v414_v55 = vpop.permute.xlu2 %413 }
  0xa2   : > { %2941 = vrot.lane.b32.xlu1 %v3896_v43, %s3495_s24  ;;  %v479_v57 = vadd.f32 %v394_v53, %v3621_v44  ;;  %2936 = vrot.lane.b32.xlu0 %v3901_v52, %s3495_s24  ;;  %v392_v63 = vpop.permute.xlu0 %391  ;;  %v489_v16 = vadd.f32 %v414_v55, %v3682_v19 }
  0xa3   : > { %v478_v17 = vadd.f32 %v392_v63, %v3627_v48 }
  0xa4   : > { %vm511_vm15 = vcmp.ge.f32.partialorder %v479_v57, 0.0  ;;  %v544_v2 = vmul.f32 %v3766_v11, %v479_v57  ;;  %vm521_vm2 = vcmp.ge.f32.partialorder %v489_v16, 0.0  ;;  %v554_v4 = vmul.f32 %v3766_v11, %v489_v16 }
  0xa5   : > { %vm510_vm3 = vcmp.ge.f32.partialorder %v478_v17, 0.0  ;;  %v543_v7 = vmul.f32 %v3766_v11, %v478_v17 }
  0xa6   : > { %v576_v9 = vsel %vm511_vm15, %v479_v57, %v544_v2  ;;  %v718_v10 = vld [vmem:[#allocation2 + $0x69] sm:$0xff]  ;;  %v586_v44 = vsel %vm521_vm2, %v489_v16, %v554_v4 }
  0xa7   : > { %655 = vst.msk [vmem:[#allocation2 + $0x91] sm:$0xff] %vm598_vm0, %v576_v9  ;;  %v575_v13 = vsel %vm510_vm3, %v478_v17, %v543_v7  ;;  %v717_v18 = vld [vmem:[#allocation2 + $0x61] sm:$0xff] }
  0xa8   : > { %654 = vst.msk [vmem:[#allocation2 + $0x81] sm:$0xff] %vm598_vm0, %v575_v13  ;;  %v3917_v19 = vpack.i.bf16 %v718_v10, %v717_v18  ;;  %v3963_v13 = vld [vmem:[#allocation2 + $0x62] sm:$0xff]  ;;  %v3965_v18 = vld [vmem:[#allocation2 + $0x6a] sm:$0xff] }
  0xa9   : > { %v400_v48 = vpop.permute.xlu1 %399  ;;  %665 = vst.msk [vmem:[#allocation2 + $0x109] sm:$0xff] %vm598_vm0, %v586_v44  ;;  %v420_v46 = vpop.permute.xlu2 %419  ;;  %v728_v44 = vld [vmem:[#allocation2 + $0xe1] sm:$0xff] }
  0xaa   : > { %v482_v0 = vadd.f32 %v400_v48, %v3640_v54  ;;  %2951 = vrot.lane.b32.xlu0 %v3917_v19, %s3495_s24  ;;  %v398_v24 = vpop.permute.xlu0 %397  ;;  %v492_v27 = vadd.f32 %v420_v46, %v3702_v34  ;;  %v2095_v34 = vpack.c.bf16 %v3928_v22, %v3926_v15 }
  0xab   : > { %v481_v56 = vadd.f32 %v398_v24, %v3646_v58 }
  0xac   : > { %vm514_vm4 = vcmp.ge.f32.partialorder %v482_v0, 0.0  ;;  %v547_v20 = vmul.f32 %v3766_v11, %v482_v0  ;;  %vm524_vm5 = vcmp.ge.f32.partialorder %v492_v27, 0.0  ;;  %v557_v26 = vmul.f32 %v3766_v11, %v492_v27 }
  0xad   : > { %vm513_vm6 = vcmp.ge.f32.partialorder %v481_v56, 0.0  ;;  %v546_v54 = vmul.f32 %v3766_v11, %v481_v56 }
  0xae   : > { %v579_v29 = vsel %vm514_vm4, %v482_v0, %v547_v20  ;;  %v721_v30 = vld [vmem:[#allocation2 + $0x91] sm:$0xff]  ;;  %v589_v1 = vsel %vm524_vm5, %v492_v27, %v557_v26  ;;  %v2097_v27 = vpack.c.bf16 %v3965_v18, %v3963_v13 }
  0xaf   : > { %658 = vst.msk [vmem:[#allocation2 + $0xb1] sm:$0xff] %vm598_vm0, %v579_v29  ;;  %v578_v58 = vsel %vm513_vm6, %v481_v56, %v546_v54  ;;  %v3935_v6 = vpack.i.bf16 %v722_v25, %v721_v30  ;;  %v720_v32 = vld [vmem:[#allocation2 + $0x81] sm:$0xff]  ;;  %vm1894_vm6 = vcmask 261120  }
  0xb0   : > { %657 = vst.msk [vmem:[#allocation2 + $0xa9] sm:$0xff] %vm598_vm0, %v578_v58  ;;  %v3938_v36 = vpack.i.bf16 %v720_v32, %v719_v23  ;;  %v725_v56 = vld [vmem:[#allocation2 + $0xc1] sm:$0xff] }
  0xb1   : > { %2793 = vmatmul.msk.bf16.gmra.mxu1 %vm598_vm0, %v2095_v34  ;;  %2961 = vrot.lane.b32.xlu2 %v3935_v6, %s3495_s24  ;;  %v406_v33 = vpop.permute.xlu1 %405  ;;  %668 = vst.msk [vmem:[#allocation2 + $0x129] sm:$0xff] %vm598_vm0, %v589_v1  ;;  %v426_v59 = vpop.permute.xlu2 %425 }
  0xb2   : > { %v485_v37 = vadd.f32 %v406_v33, %v3660_v3  ;;  %2956 = vrot.lane.b32.xlu1 %v3938_v36, %s3495_s24  ;;  %v404_v40 = vpop.permute.xlu0 %403  ;;  %v495_v41 = vadd.f32 %v426_v59, %v3721_v49 }
  0xb3   : > { %v484_v42 = vadd.f32 %v404_v40, %v3666_v8 }
  0xb4   : > { %vm517_vm7 = vcmp.ge.f32.partialorder %v485_v37, 0.0  ;;  %v550_v35 = vmul.f32 %v3766_v11, %v485_v37  ;;  %vm527_vm8 = vcmp.ge.f32.partialorder %v495_v41, 0.0  ;;  %v560_v47 = vmul.f32 %v3766_v11, %v495_v41 }
  0xb5   : > { %vm516_vm9 = vcmp.ge.f32.partialorder %v484_v42, 0.0  ;;  %v549_v53 = vmul.f32 %v3766_v11, %v484_v42 }
  0xb6   : > { %v582_v55 = vsel %vm517_vm7, %v485_v37, %v550_v35  ;;  %v724_v57 = vld [vmem:[#allocation2 + $0xb1] sm:$0xff]  ;;  %v592_v3 = vsel %vm527_vm8, %v495_v41, %v560_v47  ;;  %v3993_v35 = vld [vmem:[#allocation2 + $0x7a] sm:$0xff]  ;;  %v3995_v47 = vld [vmem:[#allocation2 + $0x82] sm:$0xff]  ;;  %vm1927_vm8 = vcmask 392192  }
  0xb7   : > { %661 = vst.msk [vmem:[#allocation2 + $0xd9] sm:$0xff] %vm598_vm0, %v582_v55  ;;  %v581_v63 = vsel %vm516_vm9, %v484_v42, %v549_v53  ;;  %v723_v16 = vld [vmem:[#allocation2 + $0xa9] sm:$0xff]  ;;  %vm1960_vm9 = vcmask 523264  }
  0xb8   : > { %660 = vst.msk [vmem:[#allocation2 + $0xc9] sm:$0xff] %vm598_vm0, %v581_v63  ;;  %v3954_v49 = vpack.i.bf16 %v724_v57, %v723_v16  ;;  %v734_v42 = vld [vmem:[#allocation2 + $0x129] sm:$0xff] }
  0xb9   : > { %v412_v8 = vpop.permute.xlu1 %411  ;;  %671 = vst.msk [vmem:[#allocation2 + $0x151] sm:$0xff] %vm598_vm0, %v592_v3  ;;  %v432_v17 = vpop.permute.xlu2 %431 }
  0xba   : > { %v488_v2 = vadd.f32 %v412_v8, %v3679_v14  ;;  %2966 = vrot.lane.b32.xlu0 %v3954_v49, %s3495_s24  ;;  %v410_v4 = vpop.permute.xlu0 %409  ;;  %v498_v7 = vadd.f32 %v432_v17, %v3745_v61 }
  0xbb   : > { %v487_v9 = vadd.f32 %v410_v4, %v3685_v21 }
  0xbc   : > { %vm520_vm10 = vcmp.ge.f32.partialorder %v488_v2, 0.0  ;;  %v553_v10 = vmul.f32 %v3766_v11, %v488_v2  ;;  %vm530_vm11 = vcmp.ge.f32.partialorder %v498_v7, 0.0  ;;  %v563_v48 = vmul.f32 %v3766_v11, %v498_v7 }
  0xbd   : > { %vm519_vm12 = vcmp.ge.f32.partialorder %v487_v9, 0.0  ;;  %v552_v14 = vmul.f32 %v3766_v11, %v487_v9 }
  0xbe   : > { %v585_v46 = vsel %vm520_vm10, %v488_v2, %v553_v10  ;;  %v727_v0 = vld [vmem:[#allocation2 + $0xd9] sm:$0xff]  ;;  %v595_v24 = vsel %vm530_vm11, %v498_v7, %v563_v48  ;;  %vm1993_vm10 = vcmask 654336   ;;  %vm2026_vm11 = vcmask 785408  }
  0xbf   : > { %664 = vst.msk [vmem:[#allocation2 + $0xf9] sm:$0xff] %vm598_vm0, %v585_v46  ;;  %v584_v21 = vsel %vm519_vm12, %v487_v9, %v552_v14  ;;  %v3970_v61 = vpack.i.bf16 %v728_v44, %v727_v0  ;;  %v726_v20 = vld [vmem:[#allocation2 + $0xc9] sm:$0xff]  ;;  %v4046_v39 = vld [vmem:[#allocation2 + $0xda] sm:$0xff]  ;;  %vm2059_vm12 = vcmask 916480  }
  0xc0   : > { %663 = vst.msk [vmem:[#allocation2 + $0xf1] sm:$0xff] %vm598_vm0, %v584_v21  ;;  %v2970_v25 = vpack.i.bf16 %v726_v20, %v725_v56  ;;  %v942_v56 = vld [vmem:[#allocation2 + $0x92] sm:$0xff] }
  0xc1   : > { %2976 = vrot.lane.b32.xlu2 %v3970_v61, %s3495_s24  ;;  %v418_v26 = vpop.permute.xlu1 %417  ;;  %2794 = vmatmul.msk.bf16.gmra.mxu1 %vm598_vm0, %v2097_v27  ;;  %674 = vst.msk [vmem:[#allocation2 + $0x171] sm:$0xff] %vm598_vm0, %v595_v24 }
  0xc2   : > { %v491_v54 = vadd.f32 %v418_v26, %v3699_v31  ;;  %2971 = vrot.lane.b32.xlu1 %v2970_v25, %s3495_s24  ;;  %v416_v29 = vpop.permute.xlu0 %415  ;;  %v4021_v25 = vld [vmem:[#allocation2 + $0x12a] sm:$0xff] }
  0xc3   : > { %v490_v30 = vadd.f32 %v416_v29, %v3705_v38 }
  0xc4   : > { %vm523_vm13 = vcmp.ge.f32.partialorder %v491_v54, 0.0  ;;  %v556_v1 = vmul.f32 %v3766_v11, %v491_v54 }
  0xc5   : > { %vm522_vm14 = vcmp.ge.f32.partialorder %v490_v30, 0.0  ;;  %v555_v58 = vmul.f32 %v3766_v11, %v490_v30 }
  0xc6   : > { %v588_v34 = vsel %vm523_vm13, %v491_v54, %v556_v1  ;;  %v730_v23 = vld [vmem:[#allocation2 + $0xf9] sm:$0xff]  ;;  %vm2454_vm13 = vcmask 125952  }
  0xc7   : > { %667 = vst.msk [vmem:[#allocation2 + $0x121] sm:$0xff] %vm598_vm0, %v588_v34  ;;  %v587_v32 = vsel %vm522_vm14, %v490_v30, %v555_v58  ;;  %v729_v33 = vld [vmem:[#allocation2 + $0xf1] sm:$0xff]  ;;  %v3020_v34 = vpack.i.bf16 %v3928_v22, %v3926_v15  ;;  %v2927_v15 = vpop.permute.xlu2 %2926  ;;  %vm2657_vm14 = vcmask 1040384  }
  0xc8   : > { %666 = vst.msk [vmem:[#allocation2 + $0x111] sm:$0xff] %vm598_vm0, %v587_v32  ;;  %v3986_v31 = vpack.i.bf16 %v730_v23, %v729_v33  ;;  %v740_v27 = vld [vmem:[#allocation2 + $0x171] sm:$0xff] }
  0xc9   : > { %v424_v59 = vpop.permute.xlu1 %423  ;;  %v737_v30 = vld [vmem:[#allocation2 + $0x151] sm:$0xff] }
  0xca   : > { %v494_v37 = vadd.f32 %v424_v59, %v3718_v45  ;;  %2981 = vrot.lane.b32.xlu0 %v3986_v31, %s3495_s24  ;;  %v422_v38 = vpop.permute.xlu0 %421  ;;  %v731_v45 = vld [vmem:[#allocation2 + $0x109] sm:$0xff]  ;;  %v743_v59 = vld [vmem:[#allocation2 + $0x1a] sm:$0xff] }
  0xcb   : > { %v493_v40 = vadd.f32 %v422_v38, %v3724_v51  ;;  %v2099_v51 = vpack.c.bf16 %v3995_v47, %v3993_v35 }
  0xcc   : > { %vm526_vm15 = vcmp.ge.f32.partialorder %v494_v37, 0.0  ;;  %v559_v41 = vmul.f32 %v3766_v11, %v494_v37 }
  0xcd   : > { %vm525_vm2 = vcmp.ge.f32.partialorder %v493_v40, 0.0  ;;  %v558_v53 = vmul.f32 %v3766_v11, %v493_v40 }
  0xce   : > { %v591_v55 = vsel %vm526_vm15, %v494_v37, %v559_v41  ;;  %v733_v57 = vld [vmem:[#allocation2 + $0x121] sm:$0xff]  ;;  %v2928_v41 = vunpack.i.l.bf16 %v2927_v15 }
  0xcf   : > { %670 = vst.msk [vmem:[#allocation2 + $0x141] sm:$0xff] %vm598_vm0, %v591_v55  ;;  %v590_v3 = vsel %vm525_vm2, %v493_v40, %v558_v53  ;;  %v2990_v63 = vpack.i.bf16 %v734_v42, %v733_v57  ;;  %v4001_v16 = vld [vmem:[#allocation2 + $0x10a] sm:$0xff]  ;;  %v4003_v8 = vld [vmem:[#allocation2 + $0x112] sm:$0xff]  ;;  %v4019_v20 = vld [vmem:[#allocation2 + $0x122] sm:$0xff]  ;;  %v2929_v40 = vunpack.i.h.bf16 %v2927_v15 }
  0xd0   : > { %v732_v17 = vld [vmem:[#allocation2 + $0x111] sm:$0xff]  ;;  %669 = vst.msk [vmem:[#allocation2 + $0x139] sm:$0xff] %vm598_vm0, %v590_v3  ;;  %v2111_v2 = vpack.c.bf16 %v4003_v8, %v4001_v16  ;;  %v2113_v58 = vpack.c.bf16 %v4021_v25, %v4019_v20  ;;  %v744_v37 = vld [vmem:[#allocation2 + $0x22] sm:$0xff] }
  0xd1   : > { %v2985_v4 = vpack.i.bf16 %v732_v17, %v731_v45  ;;  %2991 = vrot.lane.b32.xlu2 %v2990_v63, %s3495_s24  ;;  %v430_v7 = vpop.permute.xlu1 %429  ;;  %2795 = vmatmul.msk.bf16.gmra.mxu1 %vm598_vm0, %v2099_v51  ;;  %v4038_v42 = vpack.i.bf16 %v744_v37, %v743_v59  ;;  %v677_v55 = vld [vmem:[#allocation2] sm:$0xff]  ;;  %v678_v57 = vld [vmem:[#allocation2 + $0x8] sm:$0xff]  ;;  %v945_v45 = vld [vmem:[#allocation2 + $0xb2] sm:$0xff] }
  0xd2   : > { %v497_v9 = vadd.f32 %v430_v7, %v3742_v60  ;;  %2801 = vmatmul.msk.bf16.vlgmr.msra.gmra.mxu3 %vm598_vm0, %v2111_v2  ;;  %v428_v10 = vpop.permute.xlu0 %427  ;;  %v4044_v3 = vld [vmem:[#allocation2 + $0xe2] sm:$0xff]  ;;  %v1863_v5 = vsel %vm598_vm0, %v678_v57, %v2929_v40  ;;  %v4107_v59 = vld [vmem:[#allocation2 + $0x90] sm:$0xff]  ;;  %v4109_v37 = vld [vmem:[#allocation2 + $0x98] sm:$0xff] }
  0xd3   : > { %2986 = vrot.lane.b32.xlu1 %v2985_v4, %s3495_s24  ;;  %v496_v44 = vadd.f32 %v428_v10, %v3750_v62  ;;  %v943_v62 = vld [vmem:[#allocation2 + $0x9a] sm:$0xff]  ;;  %v3030_v10 = vpack.i.bf16 %v3995_v47, %v3993_v35  ;;  %v3025_v35 = vpack.i.bf16 %v3965_v18, %v3963_v13  ;;  %v772_v13 = vld [vmem:[#allocation2 + $0x172] sm:$0xff]  ;;  %v2107_v15 = vpack.c.bf16 %v4044_v3, %v4046_v39 }
  0xd4   : > { %vm529_vm3 = vcmp.ge.f32.partialorder %v497_v9, 0.0  ;;  %v562_v48 = vmul.f32 %v3766_v11, %v497_v9  ;;  %v2101_v29 = vpack.c.bf16 %v943_v62, %v942_v56  ;;  %v3035_v22 = vpack.i.bf16 %v943_v62, %v942_v56  ;;  %v4134_v57 = vld [vmem:[#allocation2 + $0x80] sm:$0xff] }
  0xd5   : > { %vm528_vm4 = vcmp.ge.f32.partialorder %v496_v44, 0.0  ;;  %v561_v14 = vmul.f32 %v3766_v11, %v496_v44  ;;  %v4121_v40 = vpack.i.bf16 %v4109_v37, %v4107_v59 }
  0xd6   : > { %v594_v46 = vsel %vm529_vm3, %v497_v9, %v562_v48  ;;  %v736_v0 = vld [vmem:[#allocation2 + $0x141] sm:$0xff] }
  0xd7   : > { %673 = vst.msk [vmem:[#allocation2 + $0x169] sm:$0xff] %vm598_vm0, %v594_v46  ;;  %v593_v24 = vsel %vm528_vm4, %v496_v44, %v561_v14  ;;  %v735_v21 = vld [vmem:[#allocation2 + $0x139] sm:$0xff]  ;;  %v957_v51 = vld [vmem:[#allocation2 + $0x142] sm:$0xff]  ;;  %v4055_v14 = vpack.i.bf16 %v4044_v3, %v4046_v39 }
  0xd8   : > { %672 = vst.msk [vmem:[#allocation2 + $0x159] sm:$0xff] %vm598_vm0, %v593_v24  ;;  %v2995_v60 = vpack.i.bf16 %v736_v0, %v735_v21  ;;  %v956_v63 = vld [vmem:[#allocation2 + $0x13a] sm:$0xff]  ;;  %v758_v24 = vld [vmem:[#allocation2 + $0xca] sm:$0xff] }
  0xd9   : > { %v436_v17 = vpop.permute.xlu1 %435  ;;  %v2115_v48 = vpack.c.bf16 %v957_v51, %v956_v63  ;;  %5176 = vst [vmem:[#allocation5_spill] sm:$0xff] %v4121_v40  ;;  %v4140_v3 = vld [vmem:[#allocation2 + $0x78] sm:$0xff] }
  0xda   : > { %2996 = vrot.lane.b32.xlu0 %v2995_v60, %s3495_s24  ;;  %v434_v32 = vpop.permute.xlu0 %433  ;;  %v500_v4 = vadd.f32 %v436_v17, %v3792_v28  ;;  %v3065_v60 = vpack.i.bf16 %v4021_v25, %v4019_v20  ;;  %v4148_v39 = vpack.i.bf16 %v4134_v57, %v4140_v3 }
  0xdb   : > { %v499_v33 = vadd.f32 %v434_v32, %v3769_v12  ;;  %v944_v12 = vld [vmem:[#allocation2 + $0xaa] sm:$0xff] }
  0xdc   : > { %v2103_v44 = vpack.c.bf16 %v945_v45, %v944_v12  ;;  %vm532_vm7 = vcmp.ge.f32.partialorder %v500_v4, 0.0  ;;  %v565_v46 = vmul.f32 %v3766_v11, %v500_v4  ;;  %v4103_v32 = vld [vmem:[#allocation2 + $0x30] sm:$0xff] }
  0xdd   : > { %vm531_vm5 = vcmp.ge.f32.partialorder %v499_v33, 0.0  ;;  %v564_v38 = vmul.f32 %v3766_v11, %v499_v33  ;;  %v757_v11 = vld [vmem:[#allocation2 + $0xc2] sm:$0xff] }
  0xde   : > { %v739_v26 = vld [vmem:[#allocation2 + $0x169] sm:$0xff]  ;;  %v597_v47 = vsel %vm532_vm7, %v500_v4, %v565_v46  ;;  %v3045_v21 = vpack.i.bf16 %v758_v24, %v757_v11 }
  0xdf   : > { %v3005_v54 = vpack.i.bf16 %v740_v27, %v739_v26  ;;  %v738_v1 = vld [vmem:[#allocation2 + $0x159] sm:$0xff]  ;;  %v596_v53 = vsel %vm531_vm5, %v499_v33, %v564_v38  ;;  %676 = vst.msk [vmem:[#allocation2 + $0x189] sm:$0xff] %vm598_vm0, %v597_v47  ;;  %v3040_v27 = vpack.i.bf16 %v945_v45, %v944_v12  ;;  %v771_v18 = vld [vmem:[#allocation2 + $0x16a] sm:$0xff] }
  0xe0   : > { %v3000_v23 = vpack.i.bf16 %v738_v1, %v737_v30  ;;  %675 = vst.msk [vmem:[#allocation2 + $0x181] sm:$0xff] %vm598_vm0, %v596_v53  ;;  %v958_v56 = vld [vmem:[#allocation2 + $0x152] sm:$0xff]  ;;  %v959_v62 = vld [vmem:[#allocation2 + $0x15a] sm:$0xff]  ;;  %v3060_v30 = vpack.i.bf16 %v4003_v8, %v4001_v16  ;;  %v3080_v1 = vpack.i.bf16 %v772_v13, %v771_v18 }
  0xe1   : > { %3006 = vrot.lane.b32.xlu2 %v3005_v54, %s3495_s24  ;;  %2796 = vmatmul.msk.bf16.gmra.mxu1 %vm598_vm0, %v2101_v29  ;;  %v4078_v26 = vld [vmem:[#allocation2 + $0xf2] sm:$0xff]  ;;  %v762_v54 = vld [vmem:[#allocation2 + $0xfa] sm:$0xff]  ;;  %v2105_v29 = vpack.c.bf16 %v758_v24, %v757_v11  ;;  %v2117_v20 = vpack.c.bf16 %v959_v62, %v958_v56  ;;  %v3075_v16 = vpack.i.bf16 %v959_v62, %v958_v56  ;;  %v4204_v56 = vld [vmem:[#allocation2 + $0x108] sm:$0xff] }
  0xe2   : > { %2802 = vmatmul.msk.bf16.gmra.mxu3 %vm598_vm0, %v2113_v58  ;;  %3021 = vrot.lane.b32.xlu0 %v3020_v34, %s3496_s25  ;;  %v2932_v2 = vpop.permute.xlu0 %2931  ;;  %v4085_v25 = vpack.i.bf16 %v762_v54, %v4078_v26  ;;  %v4091_v58 = vld [vmem:[#allocation2 + $0x48] sm:$0xff]  ;;  %v4093_v34 = vld [vmem:[#allocation2 + $0x50] sm:$0xff]  ;;  %v4105_v33 = vld [vmem:[#allocation2 + $0x38] sm:$0xff]  ;;  %v2109_v47 = vpack.c.bf16 %v762_v54, %v4078_v26 }
  0xe3   : > { %3001 = vrot.lane.b32.xlu1 %v3000_v23, %s3495_s24  ;;  %v2934_v7 = vunpack.i.h.bf16 %v2932_v2  ;;  %v2933_v9 = vunpack.i.l.bf16 %v2932_v2  ;;  %v4097_v8 = vpack.i.bf16 %v4093_v34, %v4091_v58  ;;  %v3070_v23 = vpack.i.bf16 %v957_v51, %v956_v63  ;;  %v4111_v38 = vld [vmem:[#allocation2 + $0x20] sm:$0xff]  ;;  %v4123_v53 = vld [vmem:[#allocation2 + $0x18] sm:$0xff]  ;;  %v4144_v51 = vld [vmem:[#allocation2 + $0x68] sm:$0xff]  ;;  %v4159_v17 = vpop.permute.xlu2 %2946 }
  0xe4   : > { %v4136_v12 = vld [vmem:[#allocation2 + $0xd8] sm:$0xff]  ;;  %v4138_v45 = vld [vmem:[#allocation2 + $0xe0] sm:$0xff]  ;;  %v4173_v46 = vld [vmem:[#allocation2 + $0xb0] sm:$0xff] }
  0xe5   : > { %v4059_v0 = vsel %vm1894_vm6, %v1863_v5, %v2934_v7  ;;  %v4142_v63 = vld [vmem:[#allocation2 + $0x60] sm:$0xff]  ;;  %v3125_v5 = vpack.i.bf16 %v4138_v45, %v4136_v12  ;;  %v4163_v7 = vld [vmem:[#allocation2 + $0xc8] sm:$0xff]  ;;  %v4206_v62 = vld [vmem:[#allocation2 + $0xf0] sm:$0xff] }
  0xe6   : > { %5174 = vst [vmem:[#allocation3_spill] sm:$0xff] %v4059_v0  ;;  %v963_v4 = vld [vmem:[#allocation2 + $0x18a] sm:$0xff]  ;;  %v4208_v26 = vld [vmem:[#allocation2 + $0xf8] sm:$0xff] }
  0xe7   : > { %v962_v2 = vld [vmem:[#allocation2 + $0x182] sm:$0xff]  ;;  %5180 = vst [vmem:[#allocation9_spill] sm:$0xff] %v4206_v62 }
  0xe8   : > { %5181 = vst [vmem:[#allocation10_spill] sm:$0xff] %v4208_v26 }
  0xe9   : > { %3016 = vrot.lane.b32.xlu2 %v3015_v50, %s3496_s25  ;;  %v1862_v50 = vsel %vm598_vm0, %v677_v55, %v2928_v41  ;;  %v2119_v41 = vpack.c.bf16 %v772_v13, %v771_v18  ;;  %v3085_v55 = vpack.i.bf16 %v4111_v38, %v4123_v53  ;;  %v4200_v13 = vld [vmem:[#allocation2 + $0x168] sm:$0xff]  ;;  %v4202_v18 = vld [vmem:[#allocation2 + $0x170] sm:$0xff] }
  0xea   : > { %3036 = vrot.lane.b32.xlu0 %v3035_v22, %s3496_s25  ;;  %v4062_v28 = vsel %vm1894_vm6, %v1862_v50, %v2933_v9  ;;  %v4117_v22 = vpack.i.bf16 %v4105_v33, %v4103_v32  ;;  %v4156_v50 = vpack.i.bf16 %v4144_v51, %v4142_v63  ;;  %v4165_v9 = vld [vmem:[#allocation2 + $0x120] sm:$0xff] }
  0xeb   : > { %3011 = vrot.lane.b32.xlu1 %v4038_v42, %s3496_s25  ;;  %5175 = vst [vmem:[#allocation4_spill] sm:$0xff] %v4062_v28 }
  0xf1   : > { %3031 = vrot.lane.b32.xlu2 %v3030_v10, %s3496_s25  ;;  %2797 = vmatmul.msk.bf16.gmra.mxu1 %vm598_vm0, %v2103_v44  ;;  %v4167_v10 = vld [vmem:[#allocation2 + $0x128] sm:$0xff]  ;;  %v4169_v44 = vld [vmem:[#allocation2 + $0xc0] sm:$0xff] }
  0xf2   : > { %2803 = vmatmul.msk.bf16.gmra.mxu3 %vm598_vm0, %v2115_v48  ;;  %3051 = vrot.lane.b32.xlu0 %v4055_v14, %s3496_s25  ;;  %v4171_v48 = vld [vmem:[#allocation2 + $0xa8] sm:$0xff]  ;;  %v4178_v11 = vpack.i.bf16 %v4163_v7, %v4169_v44  ;;  %v4182_v24 = vpack.i.bf16 %v4167_v10, %v4165_v9 }
  0xf3   : > { %3026 = vrot.lane.b32.xlu1 %v3025_v35, %s3496_s25  ;;  %v2121_v35 = vpack.c.bf16 %v963_v4, %v962_v2 }
  0xf4   : > { %5177 = vst [vmem:[#allocation6_spill] sm:$0xff] %v4178_v11 }
  0xf5   : > { %5178 = vst [vmem:[#allocation7_spill] sm:$0xff] %v4182_v24 }
  0xf9   : > { %3046 = vrot.lane.b32.xlu2 %v3045_v21, %s3496_s25  ;;  %v4189_v21 = vpack.i.bf16 %v4173_v46, %v4171_v48 }
  0xfa   : > { %3066 = vrot.lane.b32.xlu0 %v3065_v60, %s3496_s25 }
  0xfb   : > { %3041 = vrot.lane.b32.xlu1 %v3040_v27, %s3496_s25  ;;  %5179 = vst [vmem:[#allocation8_spill] sm:$0xff] %v4189_v21  ;;  %v4198_v27 = vld [vmem:[#allocation2 + $0x110] sm:$0xff] }
  0xfc   : > { %v4212_v54 = vpack.i.bf16 %v4198_v27, %v4204_v56 }
 0x101   : > { %2798 = vmatmul.msk.bf16.gmra.mxu1 %vm598_vm0, %v2105_v29  ;;  %3061 = vrot.lane.b32.xlu2 %v3060_v30, %s3496_s25  ;;  %v3155_v29 = vpack.i.bf16 %v4202_v18, %v4200_v13  ;;  %v4220_v30 = vpack.i.bf16 %v4208_v26, %v4206_v62 }
 0x102   : > { %3081 = vrot.lane.b32.xlu0 %v3080_v1, %s3496_s25  ;;  %2804 = vmatmul.msk.bf16.gmra.mxu3 %vm598_vm0, %v2117_v20 }
 0x103   : > { %3056 = vrot.lane.b32.xlu1 %v4085_v25, %s3496_s25 }
 0x109   : > { %3076 = vrot.lane.b32.xlu2 %v3075_v16, %s3496_s25  ;;  %v4229_v16 = vld [vmem:[#allocation2 + $0x158] sm:$0xff] }
 0x10a   : > { %3096 = vrot.lane.b32.xlu0 %v4097_v8, %s3497_s28 }
 0x10b   : > { %3071 = vrot.lane.b32.xlu1 %v3070_v23, %s3496_s25  ;;  %v4194_v60 = vpop.permute.xlu2 %2961  ;;  %v4231_v23 = vld [vmem:[#allocation2 + $0x150] sm:$0xff] }
 0x111   : > { %2799 = vmatmul.msk.bf16.gmra.mxu1 %vm598_vm0, %v2107_v15  ;;  %3091 = vrot.lane.b32.xlu2 %v4117_v22, %s3497_s28  ;;  %v4233_v15 = vld [vmem:[#allocation2 + $0x138] sm:$0xff] }
 0x112   : > { %3111 = vrot.lane.b32.xlu0 %v4121_v40, %s3497_s28  ;;  %2805 = vmatmul.msk.bf16.gmra.mxu3 %vm598_vm0, %v2119_v41  ;;  %5182 = vst [vmem:[#allocation11_spill] sm:$0xff] %v4233_v15  ;;  %v4235_v41 = vld [vmem:[#allocation2 + $0x140] sm:$0xff] }
 0x113   : > { %3086 = vrot.lane.b32.xlu1 %v3085_v55, %s3497_s28  ;;  %5183 = vst [vmem:[#allocation12_spill] sm:$0xff] %v4235_v41  ;;  %v4239_v55 = vpack.i.bf16 %v4229_v16, %v4231_v23 }
 0x114   : > { %v4222_v1 = vpop.permute.xlu0 %2936 }
 0x115   : > { %5184 = vst [vmem:[#allocation13_spill] sm:$0xff] %v4239_v55 }
 0x119   : > { %3106 = vrot.lane.b32.xlu2 %v4148_v39, %s3497_s28 }
 0x11a   : > { %3126 = vrot.lane.b32.xlu0 %v3125_v5, %s3497_s28  ;;  %v4245_v5 = vpack.i.bf16 %v4235_v41, %v4233_v15 }
 0x11b   : > { %3101 = vrot.lane.b32.xlu1 %v4156_v50, %s3497_s28  ;;  %v4225_v20 = vpop.permute.xlu2 %2976 }
 0x11c   : > { %5185 = vst [vmem:[#allocation14_spill] sm:$0xff] %v4245_v5  ;;  %v4253_v4 = vpop.permute.xlu0 %2951 }
 0x121   : > { %2800 = vmatmul.msk.bf16.gmra.mxu1 %vm598_vm0, %v2109_v47  ;;  %3121 = vrot.lane.b32.xlu2 %v4178_v11, %s3497_s28  ;;  %v803_v47 = vld [vmem:[#allocation2 + $0x180] sm:$0xff] }
 0x122   : > { %3141 = vrot.lane.b32.xlu0 %v4182_v24, %s3497_s28  ;;  %2806 = vmatmul.msk.bf16.gmra.mxu3 %vm598_vm0, %v2121_v35  ;;  %v2942_v35 = vpop.permute.xlu1 %2941 }
 0x123   : > { %3116 = vrot.lane.b32.xlu1 %v4189_v21, %s3497_s28  ;;  %v810_v21 = vld [vmem:[#allocation2 + $0x51] sm:$0xff]  ;;  %v2943_v40 = vunpack.i.l.bf16 %v2942_v35 }
 0x129   : > { %3136 = vrot.lane.b32.xlu2 %v4212_v54, %s3497_s28 }
 0x12a   : > { %3156 = vrot.lane.b32.xlu0 %v3155_v29, %s3497_s28  ;;  %v804_v29 = vld [vmem:[#allocation2 + $0x188] sm:$0xff]  ;;  %v2957_v11 = vpop.permute.xlu1 %2956 }
 0x12b   : > { %3131 = vrot.lane.b32.xlu1 %v4220_v30, %s3497_s28  ;;  %v4249_v2 = vpop.permute.xlu2 %2991  ;;  %v3160_v0 = vpack.i.bf16 %v804_v29, %v803_v47  ;;  %v2959_v62 = vunpack.i.h.bf16 %v2957_v11  ;;  %v2958_v26 = vunpack.i.l.bf16 %v2957_v11 }
 0x12c   : > { %v4262_v28 = vpop.permute.xlu0 %2966 }
 0x12d   : > { %v1873_v11 = vsel %vm598_vm0, %v4134_v57, %v2959_v62 }
 0x131   : > { %3151 = vrot.lane.b32.xlu2 %v4239_v55, %s3497_s28  ;;  %v809_v55 = vld [vmem:[#allocation2 + $0x49] sm:$0xff] }
 0x132   : > { %3171 = vrot.lane.b32.xlu0 %v3896_v43, %s3498_s29  ;;  %v3175_v24 = vpack.i.bf16 %v810_v21, %v809_v55  ;;  %v840_v21 = vld [vmem:[#allocation2 + $0x3a] sm:$0xff] }
 0x133   : > { %3146 = vrot.lane.b32.xlu1 %v4245_v5, %s3497_s28  ;;  %v2944_v5 = vunpack.i.h.bf16 %v2942_v35  ;;  %v1866_v35 = vsel %vm598_vm0, %v4103_v32, %v2943_v40 }
 0x134   : > { %v2972_v15 = vpop.permute.xlu1 %2971 }
 0x135   : > { %v1867_v29 = vsel %vm598_vm0, %v4105_v33, %v2944_v5 }
 0x139   : > { %3166 = vrot.lane.b32.xlu2 %v3901_v52, %s3498_s29 }
 0x13a   : > { %3186 = vrot.lane.b32.xlu0 %v3938_v36, %s3498_s29 }
 0x13b   : > { %3161 = vrot.lane.b32.xlu1 %v3160_v0, %s3497_s28  ;;  %v4260_v43 = vpop.permute.xlu2 %3006 }
 0x13c   : > { %v4269_v36 = vpop.permute.xlu0 %2981 }
 0x141   : > { %3181 = vrot.lane.b32.xlu2 %v3917_v19, %s3498_s29  ;;  %v839_v19 = vld [vmem:[#allocation2 + $0x32] sm:$0xff] }
 0x142   : > { %3201 = vrot.lane.b32.xlu0 %v4038_v42, %s3499_s30  ;;  %v3215_v41 = vpack.i.bf16 %v840_v21, %v839_v19  ;;  %v2973_v19 = vunpack.i.l.bf16 %v2972_v15  ;;  %v2949_v21 = vunpack.i.h.bf16 %v4159_v17 }
 0x143   : > { %3176 = vrot.lane.b32.xlu1 %v3175_v24, %s3498_s29  ;;  %v3017_v52 = vpop.permute.xlu2 %3016 }
 0x144   : > { %v3019_v0 = vunpack.i.h.bf16 %v3017_v52  ;;  %v3018_v47 = vunpack.i.l.bf16 %v3017_v52  ;;  %v902_v52 = vld [vmem:[#allocation2 + $0x31] sm:$0xff] }
 0x146   : > { %v4276_v55 = vsel %vm1894_vm6, %v1866_v35, %v3018_v47  ;;  %v4279_v42 = vsel %vm1894_vm6, %v1867_v29, %v3019_v0  ;;  %v903_v47 = vld [vmem:[#allocation2 + $0x39] sm:$0xff]  ;;  %v1872_v0 = vsel %vm598_vm0, %v4140_v3, %v2958_v26  ;;  %v2987_v29 = vpop.permute.xlu1 %2986  ;;  %v2974_v35 = vunpack.i.h.bf16 %v2972_v15 }
 0x147   : > { %v1878_v15 = vsel %vm598_vm0, %v4169_v44, %v2973_v19  ;;  %v2989_v19 = vunpack.i.h.bf16 %v2987_v29 }
 0x149   : > { %3196 = vrot.lane.b32.xlu2 %v3954_v49, %s3498_s29 }
 0x14a   : > { %3216 = vrot.lane.b32.xlu0 %v3215_v41, %s3499_s30 }
 0x14b   : > { %3191 = vrot.lane.b32.xlu1 %v3935_v6, %s3498_s29  ;;  %v3032_v32 = vpop.permute.xlu2 %3031  ;;  %v3210_v6 = vpack.i.bf16 %v903_v47, %v902_v52 }
 0x14c   : > { %v3034_v33 = vunpack.i.h.bf16 %v3032_v32  ;;  %v3033_v40 = vunpack.i.l.bf16 %v3032_v32  ;;  %v4286_v5 = vpop.permute.xlu0 %2996  ;;  %v2948_v32 = vunpack.i.l.bf16 %v4159_v17 }
 0x14e   : > { %v4293_v49 = vsel %vm1894_vm6, %v1872_v0, %v3033_v40  ;;  %v4296_v41 = vsel %vm1894_vm6, %v1873_v11, %v3034_v33  ;;  %v1879_v33 = vsel %vm598_vm0, %v4163_v7, %v2974_v35  ;;  %v1868_v47 = vsel %vm598_vm0, %v4091_v58, %v2948_v32  ;;  %v907_v35 = vld [vmem:[#allocation2 + $0x69] sm:$0xff] }
 0x14f   : > { %v2964_v11 = vunpack.i.h.bf16 %v4194_v60  ;;  %v2988_v58 = vunpack.i.l.bf16 %v2987_v29  ;;  %v2938_v32 = vunpack.i.l.bf16 %v4222_v1 }
 0x151   : > { %3211 = vrot.lane.b32.xlu2 %v3210_v6, %s3493_s23  ;;  %v2963_v6 = vunpack.i.l.bf16 %v4194_v60  ;;  %v1875_v29 = vsel %vm598_vm0, %v4109_v37, %v2964_v11  ;;  %v2979_v11 = vunpack.i.h.bf16 %v4225_v20 }
 0x152   : > { %3231 = vrot.lane.b32.xlu0 %v3970_v61, %s3498_s29  ;;  %v1869_v61 = vsel %vm598_vm0, %v4093_v34, %v2949_v21  ;;  %v906_v34 = vld [vmem:[#allocation2 + $0x61] sm:$0xff]  ;;  %v2939_v21 = vunpack.i.h.bf16 %v4222_v1  ;;  %v1885_v1 = vsel %vm598_vm0, %v4198_v27, %v2989_v19 }
 0x153   : > { %3206 = vrot.lane.b32.xlu1 %v4117_v22, %s3500_s5  ;;  %v3047_v57 = vpop.permute.xlu2 %3046  ;;  %v1874_v60 = vsel %vm598_vm0, %v4107_v59, %v2963_v6  ;;  %v2978_v6 = vunpack.i.l.bf16 %v4225_v20 }
 0x154   : > { %v3049_v3 = vunpack.i.h.bf16 %v3047_v57  ;;  %v3048_v62 = vunpack.i.l.bf16 %v3047_v57  ;;  %v3022_v26 = vpop.permute.xlu0 %3021 }
 0x155   : > { %v3002_v40 = vpop.permute.xlu1 %3001  ;;  %v3024_v52 = vunpack.i.h.bf16 %v3022_v26  ;;  %v3023_v17 = vunpack.i.l.bf16 %v3022_v26  ;;  %v1880_v20 = vsel %vm598_vm0, %v4136_v12, %v2978_v6 }
 0x156   : > { %v4314_v22 = vsel %vm1894_vm6, %v1878_v15, %v3048_v62  ;;  %v4317_v0 = vsel %vm1894_vm6, %v1879_v33, %v3049_v3  ;;  %v3260_v3 = vpack.i.bf16 %v907_v35, %v906_v34  ;;  %v3004_v19 = vunpack.i.h.bf16 %v3002_v40 }
 0x157   : > { %v4320_v44 = vsel %vm1894_vm6, %v1869_v61, %v3024_v52  ;;  %v4323_v7 = vsel %vm1894_vm6, %v1868_v47, %v3023_v17  ;;  %v1865_v61 = vsel %vm598_vm0, %v4111_v38, %v2939_v21  ;;  %v2954_v38 = vunpack.i.h.bf16 %v4253_v4 }
 0x159   : > { %3226 = vrot.lane.b32.xlu2 %v3175_v24, %s3493_s23 }
 0x15a   : > { %3246 = vrot.lane.b32.xlu0 %v3986_v31, %s3493_s23  ;;  %v1884_v31 = vsel %vm598_vm0, %v4204_v56, %v2988_v58  ;;  %v1864_v56 = vsel %vm598_vm0, %v4123_v53, %v2938_v32  ;;  %v3003_v58 = vunpack.i.l.bf16 %v3002_v40  ;;  %v2953_v53 = vunpack.i.l.bf16 %v4253_v4 }
 0x15b   : > { %3221 = vrot.lane.b32.xlu1 %v4097_v8, %s3500_s5  ;;  %v3062_v57 = vpop.permute.xlu2 %3061  ;;  %v1881_v32 = vsel %vm598_vm0, %v4138_v45, %v2979_v11 }
 0x15c   : > { %v3064_v62 = vunpack.i.h.bf16 %v3062_v57  ;;  %v3063_v24 = vunpack.i.l.bf16 %v3062_v57  ;;  %v3037_v26 = vpop.permute.xlu0 %3036 }
 0x15d   : > { %v3012_v15 = vpop.permute.xlu1 %3011  ;;  %v3039_v33 = vunpack.i.h.bf16 %v3037_v26  ;;  %v3038_v8 = vunpack.i.l.bf16 %v3037_v26  ;;  %v841_v26 = vld [vmem:[#allocation2 + $0x4a] sm:$0xff] }
 0x15e   : > { %v4343_v52 = vsel %vm1894_vm6, %v1884_v31, %v3063_v24  ;;  %v4346_v59 = vsel %vm1894_vm6, %v1885_v1, %v3064_v62  ;;  %v3014_v17 = vunpack.i.h.bf16 %v3012_v15  ;;  %v3013_v37 = vunpack.i.l.bf16 %v3012_v15  ;;  %v842_v31 = vld [vmem:[#allocation2 + $0x52] sm:$0xff] }
 0x15f   : > { %v4353_v47 = vsel %vm1894_vm6, %v1875_v29, %v3039_v33  ;;  %v4356_v27 = vsel %vm1894_vm6, %v1874_v60, %v3038_v8  ;;  %v1871_v1 = vsel %vm598_vm0, %v4144_v51, %v2954_v38  ;;  %v3250_v51 = vpack.i.bf16 %v842_v31, %v841_v26 }
 0x160   : > { %v1897_v34 = vsel %vm1894_vm6, %v1864_v56, %v3013_v37  ;;  %v1898_v35 = vsel %vm1894_vm6, %v1865_v61, %v3014_v17  ;;  %v2994_v17 = vunpack.i.h.bf16 %v4249_v2  ;;  %v2993_v37 = vunpack.i.l.bf16 %v4249_v2 }
 0x161   : > { %3241 = vrot.lane.b32.xlu2 %v4220_v30, %s3500_s5  ;;  %v1890_v30 = vsel %vm598_vm0, %v4231_v23, %v3003_v58  ;;  %v1870_v23 = vsel %vm598_vm0, %v4142_v63, %v2953_v53  ;;  %v2969_v63 = vunpack.i.h.bf16 %v4262_v28  ;;  %v2968_v61 = vunpack.i.l.bf16 %v4262_v28 }
 0x162   : > { %3261 = vrot.lane.b32.xlu0 %v3260_v3, %s3493_s23  ;;  %v1891_v3 = vsel %vm598_vm0, %v4229_v16, %v3004_v19  ;;  %v1886_v2 = vsel %vm598_vm0, %v4165_v9, %v2993_v37  ;;  %v857_v37 = vld [vmem:[#allocation2 + $0x10a] sm:$0xff] }
 0x163   : > { %3236 = vrot.lane.b32.xlu1 %v4055_v14, %s3499_s30  ;;  %v3077_v21 = vpop.permute.xlu2 %3076  ;;  %v1876_v9 = vsel %vm598_vm0, %v4171_v48, %v2968_v61  ;;  %v844_v48 = vld [vmem:[#allocation2 + $0x6a] sm:$0xff] }
 0x164   : > { %v3079_v40 = vunpack.i.h.bf16 %v3077_v21  ;;  %v3078_v57 = vunpack.i.l.bf16 %v3077_v21  ;;  %v3052_v60 = vpop.permute.xlu0 %3051 }
 0x165   : > { %v3027_v4 = vpop.permute.xlu1 %3026  ;;  %v3054_v29 = vunpack.i.h.bf16 %v3052_v60  ;;  %v3053_v62 = vunpack.i.l.bf16 %v3052_v60 }
 0x166   : > { %v4378_v14 = vsel %vm1894_vm6, %v1890_v30, %v3078_v57  ;;  %v4381_v12 = vsel %vm1894_vm6, %v1891_v3, %v3079_v40  ;;  %v3029_v24 = vunpack.i.h.bf16 %v3027_v4  ;;  %v3028_v45 = vunpack.i.l.bf16 %v3027_v4  ;;  %v824_v40 = vld [vmem:[#allocation2 + $0xf9] sm:$0xff]  ;;  %v843_v4 = vld [vmem:[#allocation2 + $0x62] sm:$0xff] }
 0x167   : > { %v4388_v16 = vsel %vm1894_vm6, %v1881_v32, %v3054_v29  ;;  %v4391_v15 = vsel %vm1894_vm6, %v1880_v20, %v3053_v62  ;;  %v823_v32 = vld [vmem:[#allocation2 + $0xf1] sm:$0xff]  ;;  %v1877_v57 = vsel %vm598_vm0, %v4173_v46, %v2969_v63  ;;  %v3009_v30 = vunpack.i.h.bf16 %v4260_v43 }
 0x168   : > { %v1903_v33 = vsel %vm1894_vm6, %v1870_v23, %v3028_v45  ;;  %v1904_v8 = vsel %vm1894_vm6, %v1871_v1, %v3029_v24  ;;  %v3008_v3 = vunpack.i.l.bf16 %v4260_v43  ;;  %v3265_v46 = vpack.i.bf16 %v824_v40, %v823_v32 }
 0x169   : > { %3256 = vrot.lane.b32.xlu2 %v4156_v50, %s3500_s5  ;;  %v1887_v50 = vsel %vm598_vm0, %v4167_v10, %v2994_v17  ;;  %v2984_v29 = vunpack.i.h.bf16 %v4269_v36  ;;  %v2983_v62 = vunpack.i.l.bf16 %v4269_v36  ;;  %v3285_v43 = vpack.i.bf16 %v844_v48, %v843_v4  ;;  %v845_v4 = vld [vmem:[#allocation2 + $0x7a] sm:$0xff]  ;;  %v846_v48 = vld [vmem:[#allocation2 + $0x82] sm:$0xff] }
 0x16a   : > { %3276 = vrot.lane.b32.xlu0 %v4212_v54, %s3500_s5  ;;  %v1893_v1 = vsel %vm598_vm0, %v4202_v18, %v3009_v30 }
 0x16b   : > { %3251 = vrot.lane.b32.xlu1 %v3250_v51, %s3499_s30  ;;  %v3092_v56 = vpop.permute.xlu2 %3091  ;;  %v858_v51 = vld [vmem:[#allocation2 + $0x112] sm:$0xff] }
 0x16c   : > { %v3094_v11 = vunpack.i.h.bf16 %v3092_v56  ;;  %v3093_v6 = vunpack.i.l.bf16 %v3092_v56  ;;  %v3067_v19 = vpop.permute.xlu0 %3066 }
 0x16d   : > { %v3042_v58 = vpop.permute.xlu1 %3041  ;;  %v3069_v38 = vunpack.i.h.bf16 %v3067_v19  ;;  %v3068_v54 = vunpack.i.l.bf16 %v3067_v19  ;;  %v5187_v19 = vld [vmem:[#allocation9_spill] sm:$0xff] }
 0x16e   : > { %v4409_v53 = vsel %vm1927_vm8, %v1897_v34, %v3093_v6  ;;  %v4412_v28 = vsel %vm1927_vm8, %v1898_v35, %v3094_v11  ;;  %v3044_v21 = vunpack.i.h.bf16 %v3042_v58  ;;  %v3043_v20 = vunpack.i.l.bf16 %v3042_v58  ;;  %v921_v11 = vld [vmem:[#allocation2 + $0x111] sm:$0xff]  ;;  %v5186_v6 = vld [vmem:[#allocation10_spill] sm:$0xff] }
 0x16f   : > { %v4419_v10 = vsel %vm1894_vm6, %v1887_v50, %v3069_v38  ;;  %v4422_v60 = vsel %vm1894_vm6, %v1886_v2, %v3068_v54  ;;  %v1882_v18 = vsel %vm598_vm0, %v5187_v19, %v2983_v62  ;;  %v3305_v58 = vpack.i.bf16 %v858_v51, %v857_v37  ;;  %v920_v38 = vld [vmem:[#allocation2 + $0x109] sm:$0xff] }
 0x170   : > { %v1909_v34 = vsel %vm1894_vm6, %v1876_v9, %v3043_v20  ;;  %v1910_v35 = vsel %vm1894_vm6, %v1877_v57, %v3044_v21  ;;  %v3280_v54 = vpack.i.bf16 %v921_v11, %v920_v38  ;;  %v2999_v21 = vunpack.i.h.bf16 %v4286_v5  ;;  %v827_v11 = vld [vmem:[#allocation2 + $0x121] sm:$0xff] }
 0x171   : > { %3271 = vrot.lane.b32.xlu2 %v4085_v25, %s3499_s30  ;;  %v1892_v25 = vsel %vm598_vm0, %v4200_v13, %v3008_v3  ;;  %v1883_v13 = vsel %vm598_vm0, %v5186_v6, %v2984_v29  ;;  %v2998_v20 = vunpack.i.l.bf16 %v4286_v5  ;;  %v909_v5 = vld [vmem:[#allocation2 + $0x81] sm:$0xff] }
 0x172   : > { %3291 = vrot.lane.b32.xlu0 %v4148_v39, %s3500_s5 }
 0x173   : > { %3266 = vrot.lane.b32.xlu1 %v3265_v46, %s3498_s29  ;;  %v3107_v24 = vpop.permute.xlu2 %3106 }
 0x174   : > { %v3109_v45 = vunpack.i.h.bf16 %v3107_v24  ;;  %v3108_v26 = vunpack.i.l.bf16 %v3107_v24  ;;  %v3082_v31 = vpop.permute.xlu0 %3081 }
 0x175   : > { %v3057_v23 = vpop.permute.xlu1 %3056  ;;  %v3084_v17 = vunpack.i.h.bf16 %v3082_v31  ;;  %v3083_v39 = vunpack.i.l.bf16 %v3082_v31 }
 0x176   : > { %v4440_v36 = vsel %vm1927_vm8, %v1903_v33, %v3108_v26  ;;  %v4443_v63 = vsel %vm1927_vm8, %v1904_v8, %v3109_v45  ;;  %v3059_v61 = vunpack.i.h.bf16 %v3057_v23  ;;  %v3058_v56 = vunpack.i.l.bf16 %v3057_v23  ;;  %v5188_v26 = vld [vmem:[#allocation12_spill] sm:$0xff] }
 0x177   : > { %v4450_v2 = vsel %vm1894_vm6, %v1893_v1, %v3084_v17  ;;  %v4453_v50 = vsel %vm1894_vm6, %v1892_v25, %v3083_v39  ;;  %v1889_v31 = vsel %vm598_vm0, %v5188_v26, %v2999_v21  ;;  %v3320_v17 = vpack.i.bf16 %v846_v48, %v845_v4  ;;  %v908_v39 = vld [vmem:[#allocation2 + $0x79] sm:$0xff] }
 0x178   : > { %v1915_v33 = vsel %vm1894_vm6, %v1882_v18, %v3058_v56  ;;  %v1916_v8 = vsel %vm1894_vm6, %v1883_v13, %v3059_v61  ;;  %v3295_v37 = vpack.i.bf16 %v909_v5, %v908_v39 }
 0x179   : > { %3286 = vrot.lane.b32.xlu2 %v3285_v43, %s3499_s30  ;;  %v5189_v43 = vld [vmem:[#allocation11_spill] sm:$0xff] }
 0x17a   : > { %3306 = vrot.lane.b32.xlu0 %v3305_v58, %s3499_s30  ;;  %v1888_v25 = vsel %vm598_vm0, %v5189_v43, %v2998_v20  ;;  %v5190_v20 = vld [vmem:[#allocation7_spill] sm:$0xff] }
 0x17b   : > { %3281 = vrot.lane.b32.xlu1 %v3280_v54, %s3493_s23  ;;  %v3122_v32 = vpop.permute.xlu2 %3121  ;;  %v2818_v43 = vld [vmem:[%s5161_s2 + $0x30] sm:$0xff] }
 0x17c   : > { %v3124_v40 = vunpack.i.h.bf16 %v3122_v32  ;;  %v3123_v57 = vunpack.i.l.bf16 %v3122_v32  ;;  %v3097_v9 = vpop.permute.xlu0 %3096 }
 0x17d   : > { %v3072_v30 = vpop.permute.xlu1 %3071  ;;  %v3099_v3 = vunpack.i.h.bf16 %v3097_v9  ;;  %v3098_v46 = vunpack.i.l.bf16 %v3097_v9 }
 0x17e   : > { %v4463_v29 = vsel %vm1927_vm8, %v1909_v34, %v3123_v57  ;;  %v4466_v62 = vsel %vm1927_vm8, %v1910_v35, %v3124_v40  ;;  %v3074_v24 = vunpack.i.h.bf16 %v3072_v30  ;;  %v3073_v45 = vunpack.i.l.bf16 %v3072_v30  ;;  %v910_v57 = vld [vmem:[#allocation2 + $0x91] sm:$0xff]  ;;  %v924_v30 = vld [vmem:[#allocation2 + $0x139] sm:$0xff] }
 0x17f   : > { %v4474_v1 = vsel %vm1927_vm8, %v4279_v42, %v3099_v3  ;;  %v4478_v34 = vsel %vm1927_vm8, %v4276_v55, %v3098_v46  ;;  %v828_v55 = vld [vmem:[#allocation2 + $0x129] sm:$0xff]  ;;  %v925_v3 = vld [vmem:[#allocation2 + $0x141] sm:$0xff] }
 0x180   : > { %v1921_v35 = vsel %vm1894_vm6, %v1888_v25, %v3073_v45  ;;  %v1922_v23 = vsel %vm1894_vm6, %v1889_v31, %v3074_v24  ;;  %v3335_v21 = vpack.i.bf16 %v828_v55, %v827_v11  ;;  %v4524_v31 = vpack.i.bf16 %v925_v3, %v924_v30  ;;  %v5191_v25 = vld [vmem:[#allocation5_spill] sm:$0xff]  ;;  %v860_v11 = vld [vmem:[#allocation2 + $0x12a] sm:$0xff]  ;;  %v847_v30 = vld [vmem:[#allocation2 + $0x92] sm:$0xff] }
 0x181   : > { %3301 = vrot.lane.b32.xlu2 %v3280_v54, %s3498_s29  ;;  %v848_v3 = vld [vmem:[#allocation2 + $0x9a] sm:$0xff] }
 0x182   : > { %3321 = vrot.lane.b32.xlu0 %v3320_v17, %s3499_s30 }
 0x183   : > { %3296 = vrot.lane.b32.xlu1 %v3295_v37, %s3493_s23  ;;  %v3137_v51 = vpop.permute.xlu2 %3136  ;;  %v912_v37 = vld [vmem:[#allocation2 + $0xa9] sm:$0xff] }
 0x184   : > { %v3139_v42 = vunpack.i.h.bf16 %v3137_v51  ;;  %v3138_v61 = vunpack.i.l.bf16 %v3137_v51  ;;  %v3112_v56 = vpop.permute.xlu0 %3111  ;;  %v913_v51 = vld [vmem:[#allocation2 + $0xb1] sm:$0xff] }
 0x185   : > { %v4485_v6 = vpop.permute.xlu1 %3086  ;;  %v3114_v13 = vunpack.i.h.bf16 %v3112_v56  ;;  %v3113_v19 = vunpack.i.l.bf16 %v3112_v56  ;;  %v859_v56 = vld [vmem:[#allocation2 + $0x122] sm:$0xff] }
 0x186   : > { %v4488_v18 = vsel %vm1927_vm8, %v1915_v33, %v3138_v61  ;;  %v4491_v58 = vsel %vm1927_vm8, %v1916_v8, %v3139_v42  ;;  %v2819_v8 = vld [vmem:[%s5161_s2 + $0x38] sm:$0xff] }
 0x187   : > { %v4495_v38 = vsel %vm1927_vm8, %v4296_v41, %v3114_v13  ;;  %v4499_v54 = vsel %vm1927_vm8, %v4293_v49, %v3113_v19  ;;  %v911_v49 = vld [vmem:[#allocation2 + $0x99] sm:$0xff]  ;;  %2244 = vmatpush.bf16.msra.mxu0 %v2819_v8  ;;  %2900 = vmatpush.bf16.msra.mxu2 %v2819_v8  ;;  %v5192_v8 = vld [vmem:[#allocation14_spill] sm:$0xff] }
 0x188   : > { %v3330_v45 = vpack.i.bf16 %v911_v49, %v910_v57 }
 0x189   : > { %3316 = vrot.lane.b32.xlu2 %v3335_v21, %s3493_s23 }
 0x18a   : > { %3336 = vrot.lane.b32.xlu0 %v3335_v21, %s3498_s29 }
 0x18b   : > { %3311 = vrot.lane.b32.xlu1 %v5190_v20, %s3500_s5  ;;  %v3152_v33 = vpop.permute.xlu2 %3151  ;;  %2245 = vmatpush.bf16.msra.mxu0 %v2818_v43  ;;  %v3365_v20 = vpack.i.bf16 %v913_v51, %v912_v37  ;;  %v862_v37 = vld [vmem:[#allocation2 + $0x142] sm:$0xff] }
 0x18c   : > { %v3154_v32 = vunpack.i.h.bf16 %v3152_v33  ;;  %v3153_v41 = vunpack.i.l.bf16 %v3152_v33  ;;  %v4508_v40 = vpop.permute.xlu0 %3126  ;;  %2901 = vmatpush.bf16.msra.mxu2 %v2818_v43  ;;  %v2816_v33 = vld [vmem:[%s5161_s2 + $0x20] sm:$0xff] }
 0x18d   : > { %v3102_v9 = vpop.permute.xlu1 %3101 }
 0x18e   : > { %v4511_v46 = vsel %vm1927_vm8, %v1921_v35, %v3153_v41  ;;  %v4514_v4 = vsel %vm1927_vm8, %v1922_v23, %v3154_v32  ;;  %v3104_v48 = vunpack.i.h.bf16 %v3102_v9  ;;  %v3103_v24 = vunpack.i.l.bf16 %v3102_v9 }
 0x190   : > { %v4518_v5 = vsel %vm1927_vm8, %v4323_v7, %v3103_v24  ;;  %v4522_v26 = vsel %vm1927_vm8, %v4320_v44, %v3104_v48  ;;  %v2817_v44 = vld [vmem:[%s5161_s2 + $0x28] sm:$0xff] }
 0x191   : > { %3331 = vrot.lane.b32.xlu2 %v3330_v45, %s3493_s23  ;;  %2246 = vmatpush.bf16.msra.mxu0 %v2817_v44 }
 0x192   : > { %3351 = vrot.lane.b32.xlu0 %v4524_v31, %s3493_s23  ;;  %2902 = vmatpush.bf16.msra.mxu2 %v2817_v44  ;;  %v3355_v44 = vpack.i.bf16 %v848_v3, %v847_v30  ;;  %v927_v3 = vld [vmem:[#allocation2 + $0x159] sm:$0xff] }
 0x193   : > { %3326 = vrot.lane.b32.xlu1 %v5191_v25, %s3500_s5  ;;  %v4534_v7 = vpop.permute.xlu2 %3166  ;;  %v2814_v25 = vld [vmem:[%s5161_s2 + $0x10] sm:$0xff] }
 0x194   : > { %v3142_v35 = vpop.permute.xlu0 %3141 }
 0x195   : > { %v3117_v23 = vpop.permute.xlu1 %3116  ;;  %v3144_v17 = vunpack.i.h.bf16 %v3142_v35  ;;  %v3143_v39 = vunpack.i.l.bf16 %v3142_v35  ;;  %2247 = vmatpush.bf16.msra.mxu0 %v2816_v33 }
 0x196   : > { %v3119_v42 = vunpack.i.h.bf16 %v3117_v23  ;;  %v3118_v61 = vunpack.i.l.bf16 %v3117_v23  ;;  %2903 = vmatpush.bf16.msra.mxu2 %v2816_v33  ;;  %v2812_v33 = vld [vmem:[%s5161_s2] sm:$0xff] }
 0x197   : > { %v4541_v55 = vsel %vm1927_vm8, %v4346_v59, %v3144_v17  ;;  %v4545_v13 = vsel %vm1927_vm8, %v4343_v52, %v3143_v39  ;;  %v3340_v59 = vpack.i.bf16 %v860_v11, %v859_v56  ;;  %v861_v39 = vld [vmem:[#allocation2 + $0x13a] sm:$0xff] }
 0x198   : > { %v1940_v19 = vsel %vm1927_vm8, %v4356_v27, %v3118_v61  ;;  %v1941_v21 = vsel %vm1927_vm8, %v4353_v47, %v3119_v42  ;;  %v2815_v47 = vld [vmem:[%s5161_s2 + $0x18] sm:$0xff] }
 0x199   : > { %3346 = vrot.lane.b32.xlu2 %v5192_v8, %s3500_s5  ;;  %2248 = vmatpush.bf16.msra.mxu0 %v2815_v47 }
 0x19a   : > { %3366 = vrot.lane.b32.xlu0 %v3365_v20, %s3493_s23  ;;  %2904 = vmatpush.bf16.msra.mxu2 %v2815_v47  ;;  %v3375_v20 = vpack.i.bf16 %v862_v37, %v861_v39  ;;  %v819_v39 = vld [vmem:[#allocation2 + $0xc1] sm:$0xff] }
 0x19b   : > { %3341 = vrot.lane.b32.xlu1 %v3340_v59, %s3499_s30  ;;  %v4558_v52 = vpop.permute.xlu2 %3181 }
 0x19c   : > { %v3157_v27 = vpop.permute.xlu0 %3156 }
 0x19d   : > { %v3132_v32 = vpop.permute.xlu1 %3131  ;;  %v3159_v41 = vunpack.i.h.bf16 %v3157_v27  ;;  %v3158_v57 = vunpack.i.l.bf16 %v3157_v27  ;;  %2249 = vmatpush.bf16.msra.mxu0 %v2814_v25  ;;  %v849_v27 = vld [vmem:[#allocation2 + $0xaa] sm:$0xff] }
 0x19e   : > { %v3134_v49 = vunpack.i.h.bf16 %v3132_v32  ;;  %v3133_v9 = vunpack.i.l.bf16 %v3132_v32  ;;  %2905 = vmatpush.bf16.msra.mxu2 %v2814_v25 }
 0x19f   : > { %v4565_v48 = vsel %vm1927_vm8, %v4381_v12, %v3159_v41  ;;  %v4569_v24 = vsel %vm1927_vm8, %v4378_v14, %v3158_v57  ;;  %v5193_v12 = vld [vmem:[#allocation8_spill] sm:$0xff]  ;;  %v5194_v14 = vld [vmem:[#allocation13_spill] sm:$0xff] }
 0x1a0   : > { %v4573_v45 = vsel %vm1927_vm8, %v4391_v15, %v3133_v9  ;;  %v4577_v43 = vsel %vm1927_vm8, %v4388_v16, %v3134_v49  ;;  %v2813_v16 = vld [vmem:[%s5161_s2 + $0x8] sm:$0xff]  ;;  %v864_v49 = vld [vmem:[#allocation2 + $0x15a] sm:$0xff] }
 0x1a1   : > { %3361 = vrot.lane.b32.xlu2 %v5193_v12, %s3500_s5  ;;  %2250 = vmatpush.bf16.msra.mxu0 %v2813_v16 }
 0x1a2   : > { %3381 = vrot.lane.b32.xlu0 %v5194_v14, %s3500_s5  ;;  %2906 = vmatpush.bf16.msra.mxu2 %v2813_v16  ;;  %v926_v16 = vld [vmem:[#allocation2 + $0x151] sm:$0xff] }
 0x1a3   : > { %3356 = vrot.lane.b32.xlu1 %v3355_v44, %s3499_s30  ;;  %v3197_v15 = vpop.permute.xlu2 %3196 }
 0x1a4   : > { %v3199_v35 = vunpack.i.h.bf16 %v3197_v15  ;;  %v3198_v23 = vunpack.i.l.bf16 %v3197_v15  ;;  %v4590_v17 = vpop.permute.xlu0 %3171 }
 0x1a5   : > { %v3147_v51 = vpop.permute.xlu1 %3146  ;;  %2251 = vmatpush.bf16.msra.mxu0 %v2812_v33 }
 0x1a6   : > { %v4593_v42 = vsel %vm1960_vm9, %v1940_v19, %v3198_v23  ;;  %v4596_v61 = vsel %vm1960_vm9, %v1941_v21, %v3199_v35  ;;  %v3149_v56 = vunpack.i.h.bf16 %v3147_v51  ;;  %v3148_v11 = vunpack.i.l.bf16 %v3147_v51  ;;  %v5195_v21 = vld [vmem:[#allocation6_spill] sm:$0xff]  ;;  %2907 = vmatpush.bf16.msra.mxu2 %v2812_v33 }
 0x1a7   : > { %v3385_v35 = vpack.i.bf16 %v927_v3, %v926_v16  ;;  %v3089_v3 = vunpack.i.h.bf16 %v4485_v6  ;;  %v3169_v16 = vunpack.i.h.bf16 %v4534_v7 }
 0x1a8   : > { %v4603_v8 = vsel %vm1927_vm8, %v4422_v60, %v3148_v11  ;;  %v4607_v19 = vsel %vm1927_vm8, %v4419_v10, %v3149_v56  ;;  %v850_v60 = vld [vmem:[#allocation2 + $0xb2] sm:$0xff]  ;;  %v928_v56 = vld [vmem:[#allocation2 + $0x169] sm:$0xff] }
 0x1a9   : > { %3376 = vrot.lane.b32.xlu2 %v3375_v20, %s3499_s30  ;;  %v863_v10 = vld [vmem:[#allocation2 + $0x152] sm:$0xff]  ;;  %v3390_v12 = vpack.i.bf16 %v850_v60, %v849_v27  ;;  %v4646_v20 = vpop.f32.mrf.mxu1 }
 0x1aa   : > { %3396 = vrot.lane.b32.xlu0 %v5195_v21, %s3500_s5  ;;  %v3410_v15 = vpack.i.bf16 %v864_v49, %v863_v10  ;;  %v929_v11 = vld [vmem:[#allocation2 + $0x171] sm:$0xff]  ;;  %v916_v21 = vld [vmem:[#allocation2 + $0xd9] sm:$0xff]  ;;  %v3088_v10 = vunpack.i.l.bf16 %v4485_v6 }
 0x1ab   : > { %3371 = vrot.lane.b32.xlu1 %v4524_v31, %s3498_s29  ;;  %v4614_v59 = vpop.permute.xlu2 %3211 }
 0x1ac   : > { %v3187_v47 = vpop.permute.xlu0 %3186 }
 0x1ad   : > { %v3162_v32 = vpop.permute.xlu1 %3161  ;;  %v3189_v41 = vunpack.i.h.bf16 %v3187_v47  ;;  %v3188_v57 = vunpack.i.l.bf16 %v3187_v47  ;;  %v917_v47 = vld [vmem:[#allocation2 + $0xe1] sm:$0xff] }
 0x1ae   : > { %v3164_v9 = vunpack.i.h.bf16 %v3162_v32  ;;  %v3163_v30 = vunpack.i.l.bf16 %v3162_v32  ;;  %v896_v32 = vld [vmem:[#allocation2 + $0x168] sm:$0xff] }
 0x1af   : > { %v4618_v25 = vsel %vm1960_vm9, %v4440_v36, %v3188_v57  ;;  %v4622_v31 = vsel %vm1960_vm9, %v4443_v63, %v3189_v41  ;;  %v897_v41 = vld [vmem:[#allocation2 + $0x170] sm:$0xff]  ;;  %v4648_v57 = vpack.i.bf16 %v929_v11, %v928_v56 }
 0x1b0   : > { %v4626_v44 = vsel %vm1927_vm8, %v4453_v50, %v3163_v30  ;;  %v4630_v14 = vsel %vm1927_vm8, %v4450_v2, %v3164_v9  ;;  %v820_v50 = vld [vmem:[#allocation2 + $0xc9] sm:$0xff]  ;;  %v3440_v30 = vpack.i.bf16 %v917_v47, %v916_v21 }
 0x1b1   : > { %5196 = vst [vmem:[#allocation10_spill] sm:$0xff] %v4630_v14  ;;  %3391 = vrot.lane.b32.xlu2 %v3390_v12, %s3499_s30  ;;  %v3425_v37 = vpack.i.bf16 %v820_v50, %v819_v39  ;;  %v3168_v12 = vunpack.i.l.bf16 %v4534_v7  ;;  %v5198_v11 = vld [vmem:[#allocation3_spill] sm:$0xff]  ;;  %v3174_v14 = vunpack.i.h.bf16 %v4590_v17 }
 0x1b2   : > { %3411 = vrot.lane.b32.xlu0 %v3410_v15, %s3499_s30  ;;  %v3415_v15 = vpack.i.bf16 %v897_v41, %v896_v32 }
 0x1b3   : > { %3386 = vrot.lane.b32.xlu1 %v3385_v35, %s3493_s23  ;;  %v4635_v36 = vpop.permute.xlu2 %3226 }
 0x1b4   : > { %v3202_v63 = vpop.permute.xlu0 %3201 }
 0x1b5   : > { %v4637_v23 = vpop.permute.xlu1 %3176  ;;  %v3204_v50 = vunpack.i.h.bf16 %v3202_v63  ;;  %v3203_v39 = vunpack.i.l.bf16 %v3202_v63 }
 0x1b9   : > { %3406 = vrot.lane.b32.xlu2 %v3385_v35, %s3498_s29  ;;  %v884_v35 = vld [vmem:[#allocation2 + $0xd8] sm:$0xff] }
 0x1ba   : > { %3426 = vrot.lane.b32.xlu0 %v3425_v37, %s3498_s29 }
 0x1bb   : > { %3401 = vrot.lane.b32.xlu1 %v3425_v37, %s3493_s23  ;;  %v4642_v2 = vpop.permute.xlu2 %3241  ;;  %v5197_v37 = vld [vmem:[#allocation4_spill] sm:$0xff] }
 0x1bc   : > { %v4644_v51 = vpop.permute.xlu0 %3216  ;;  %v1928_v6 = vsel %vm1927_vm8, %v5197_v37, %v3088_v10  ;;  %v4676_v10 = vpop.f32.mrf.mxu1  ;;  %v3214_v37 = vunpack.i.h.bf16 %v4614_v59 }
 0x1bd   : > { %v3192_v33 = vpop.permute.xlu1 %3191  ;;  %v1961_v7 = vsel %vm1960_vm9, %v1928_v6, %v3168_v12 }
 0x1be   : > { %v3194_v27 = vunpack.i.h.bf16 %v3192_v33  ;;  %v3193_v60 = vunpack.i.l.bf16 %v3192_v33  ;;  %v1929_v33 = vsel %vm1927_vm8, %v5198_v11, %v3089_v3  ;;  %v3213_v3 = vunpack.i.l.bf16 %v4614_v59 }
 0x1bf   : > { %v1962_v63 = vsel %vm1960_vm9, %v1929_v33, %v3169_v16  ;;  %v1994_v12 = vsel %vm1993_vm10, %v1961_v7, %v3203_v39  ;;  %v3173_v59 = vunpack.i.l.bf16 %v4590_v17  ;;  %v866_v7 = vld [vmem:[#allocation2 + $0x172] sm:$0xff] }
 0x1c0   : > { %v4653_v49 = vsel %vm1960_vm9, %v4499_v54, %v3193_v60  ;;  %v4657_v9 = vsel %vm1960_vm9, %v4495_v38, %v3194_v27  ;;  %v885_v54 = vld [vmem:[#allocation2 + $0xe0] sm:$0xff]  ;;  %v899_v60 = vld [vmem:[#allocation2 + $0x188] sm:$0xff] }
 0x1c1   : > { %3421 = vrot.lane.b32.xlu2 %v4648_v57, %s3493_s23  ;;  %v3435_v47 = vpack.i.bf16 %v885_v54, %v884_v35  ;;  %v898_v27 = vld [vmem:[#allocation2 + $0x180] sm:$0xff]  ;;  %v1995_v35 = vsel %vm1993_vm10, %v1962_v63, %v3204_v50  ;;  %v865_v50 = vld [vmem:[#allocation2 + $0x16a] sm:$0xff]  ;;  %v1963_v17 = vsel %vm1960_vm9, %v4409_v53, %v3173_v59 }
 0x1c2   : > { %3441 = vrot.lane.b32.xlu0 %v3440_v30, %s3493_s23  ;;  %v851_v30 = vld [vmem:[#allocation2 + $0xc2] sm:$0xff]  ;;  %v3455_v54 = vpack.i.bf16 %v899_v60, %v898_v27  ;;  %v3219_v27 = vunpack.i.h.bf16 %v4644_v51  ;;  %v3218_v60 = vunpack.i.l.bf16 %v4644_v51  ;;  %v3229_v51 = vunpack.i.h.bf16 %v4635_v36 }
 0x1c3   : > { %3416 = vrot.lane.b32.xlu1 %v3415_v15, %s3500_s5  ;;  %v4666_v38 = vpop.permute.xlu2 %3256  ;;  %v852_v15 = vld [vmem:[#allocation2 + $0xca] sm:$0xff]  ;;  %v835_v59 = vld [vmem:[#allocation2 + $0x181] sm:$0xff] }
 0x1c4   : > { %v4670_v56 = vpop.permute.xlu0 %3231  ;;  %v3430_v11 = vpack.i.bf16 %v852_v15, %v851_v30  ;;  %v867_v30 = vld [vmem:[#allocation2 + $0x182] sm:$0xff]  ;;  %v868_v15 = vld [vmem:[#allocation2 + $0x18a] sm:$0xff] }
 0x1c5   : > { %v3207_v21 = vpop.permute.xlu1 %3206 }
 0x1c6   : > { %v3209_v32 = vunpack.i.h.bf16 %v3207_v21  ;;  %v3208_v41 = vunpack.i.l.bf16 %v3207_v21 }
 0x1c8   : > { %v2027_v6 = vsel %vm2026_vm11, %v1994_v12, %v3208_v41  ;;  %v2028_v16 = vsel %vm2026_vm11, %v1995_v35, %v3209_v32  ;;  %v3450_v41 = vpack.i.bf16 %v866_v7, %v865_v50  ;;  %v3228_v35 = vunpack.i.l.bf16 %v4635_v36 }
 0x1c9   : > { %3436 = vrot.lane.b32.xlu2 %v3435_v47, %s3500_s5  ;;  %v2060_v33 = vsel %vm2059_vm12, %v2027_v6, %v3213_v3  ;;  %v2061_v21 = vsel %vm2059_vm12, %v2028_v16, %v3214_v37  ;;  %v1964_v37 = vsel %vm1960_vm9, %v4412_v28, %v3174_v14  ;;  %v3470_v16 = vpack.i.bf16 %v868_v15, %v867_v30 }
 0x1ca   : > { %3456 = vrot.lane.b32.xlu0 %v3455_v54, %s3500_s5  ;;  %v2092_v39 = vpack.c.bf16 %v2061_v21, %v2060_v33  ;;  %v1996_v54 = vsel %vm1993_vm10, %v1963_v17, %v3218_v60  ;;  %v1997_v6 = vsel %vm1993_vm10, %v1964_v37, %v3219_v27  ;;  %v4705_v21 = vpop.f32.mrf.mxu1  ;;  %v3129_v14 = vunpack.i.h.bf16 %v4508_v40 }
 0x1cb   : > { %3431 = vrot.lane.b32.xlu1 %v3430_v11, %s3499_s30  ;;  %v4693_v47 = vpop.permute.xlu2 %3271  ;;  %v3128_v36 = vunpack.i.l.bf16 %v4508_v40  ;;  %v3234_v7 = vunpack.i.h.bf16 %v4670_v56  ;;  %v3233_v27 = vunpack.i.l.bf16 %v4670_v56  ;;  %v3243_v56 = vunpack.i.l.bf16 %v4642_v2 }
 0x1cc   : > { %2252 = vmatmul.bf16.vlgmr.msra.gmra.mxu0 %v2092_v39  ;;  %v3247_v63 = vpop.permute.xlu0 %3246  ;;  %v836_v39 = vld [vmem:[#allocation2 + $0x189] sm:$0xff]  ;;  %v1945_v40 = vsel %vm1927_vm8, %v4317_v0, %v3129_v14 }
 0x1cd   : > { %v3222_v32 = vpop.permute.xlu1 %3221  ;;  %v3465_v30 = vpack.i.bf16 %v836_v39, %v835_v59  ;;  %v1944_v15 = vsel %vm1927_vm8, %v4314_v22, %v3128_v36  ;;  %v900_v39 = vld [vmem:[#allocation2 + $0x198] sm:$0xff] }
 0x1ce   : > { %v3224_v3 = vunpack.i.h.bf16 %v3222_v32  ;;  %v3223_v12 = vunpack.i.l.bf16 %v3222_v32 }
 0x1d0   : > { %v2029_v11 = vsel %vm2026_vm11, %v1996_v54, %v3223_v12  ;;  %v2030_v33 = vsel %vm2026_vm11, %v1997_v6, %v3224_v3  ;;  %v3244_v3 = vunpack.i.h.bf16 %v4642_v2  ;;  %v1977_v12 = vsel %vm1960_vm9, %v1944_v15, %v3233_v27 }
 0x1d1   : > { %3451 = vrot.lane.b32.xlu2 %v3450_v41, %s3499_s30  ;;  %v2062_v53 = vsel %vm2059_vm12, %v2029_v11, %v3228_v35  ;;  %v2063_v28 = vsel %vm2059_vm12, %v2030_v33, %v3229_v51  ;;  %v3249_v51 = vunpack.i.h.bf16 %v3247_v63  ;;  %v3248_v35 = vunpack.i.l.bf16 %v3247_v63  ;;  %v932_v33 = vld [vmem:[#allocation2 + $0x199] sm:$0xff] }
 0x1d2   : > { %3471 = vrot.lane.b32.xlu0 %v3470_v16, %s3499_s30  ;;  %v2094_v50 = vpack.c.bf16 %v2063_v28, %v2062_v53  ;;  %v3178_v16 = vunpack.i.l.bf16 %v4637_v23  ;;  %v933_v53 = vld [vmem:[#allocation2 + $0x1a1] sm:$0xff]  ;;  %v4735_v28 = vpop.f32.mrf.mxu1  ;;  %v3179_v63 = vunpack.i.h.bf16 %v4637_v23  ;;  %s208_s30 = scalar_lea.vmem %s5163_s4, %s2755_s19 }
 0x1d3   : > { %3446 = vrot.lane.b32.xlu1 %v4648_v57, %s3498_s29  ;;  %v4717_v60 = vpop.permute.xlu2 %3286  ;;  %v1978_v57 = vsel %vm1960_vm9, %v1945_v40, %v3234_v7  ;;  %v901_v7 = vld [vmem:[#allocation2 + $0x1a0] sm:$0xff] }
 0x1d4   : > { %v3262_v32 = vpop.permute.xlu0 %3261  ;;  %v1965_v40 = vsel %vm1960_vm9, %v4478_v34, %v3178_v16  ;;  %v1966_v23 = vsel %vm1960_vm9, %v4474_v1, %v3179_v63 }
 0x1d5   : > { %v3237_v41 = vpop.permute.xlu1 %3236 }
 0x1d6   : > { %v3239_v17 = vunpack.i.h.bf16 %v3237_v41  ;;  %v3238_v37 = vunpack.i.l.bf16 %v3237_v41  ;;  %v3480_v41 = vpack.i.bf16 %v933_v53, %v932_v33  ;;  %v3274_v33 = vunpack.i.h.bf16 %v4693_v47 }
 0x1d7   : > { %v3273_v53 = vunpack.i.l.bf16 %v4693_v47 }
 0x1d8   : > { %v2010_v54 = vsel %vm1993_vm10, %v1977_v12, %v3238_v37  ;;  %v2011_v6 = vsel %vm1993_vm10, %v1978_v57, %v3239_v17  ;;  %v3475_v37 = vpack.i.bf16 %v901_v7, %v900_v39 }
 0x1d9   : > { %3466 = vrot.lane.b32.xlu2 %v3465_v30, %s3498_s29  ;;  %v2043_v22 = vsel %vm2026_vm11, %v2010_v54, %v3243_v56  ;;  %v2044_v0 = vsel %vm2026_vm11, %v2011_v6, %v3244_v3  ;;  %v3264_v3 = vunpack.i.h.bf16 %v3262_v32  ;;  %v3263_v56 = vunpack.i.l.bf16 %v3262_v32 }
 0x1da   : > { %v2076_v2 = vsel %vm2059_vm12, %v2043_v22, %v3248_v35  ;;  %v2077_v11 = vsel %vm2059_vm12, %v2044_v0, %v3249_v51  ;;  %v4755_v6 = vpop.f32.mrf.mxu1 }
 0x1db   : > { %3461 = vrot.lane.b32.xlu1 %v3465_v30, %s3493_s23  ;;  %v2108_v14 = vpack.c.bf16 %v2077_v11, %v2076_v2  ;;  %v4739_v36 = vpop.permute.xlu2 %3301  ;;  %v3259_v30 = vunpack.i.h.bf16 %v4666_v38 }
 0x1dc   : > { %2257 = vmatmul.bf16.gmra.mxu0 %v2094_v50  ;;  %v3277_v59 = vpop.permute.xlu0 %3276  ;;  %v3258_v50 = vunpack.i.l.bf16 %v4666_v38 }
 0x1dd   : > { %v3252_v27 = vpop.permute.xlu1 %3251  ;;  %2292 = vmatmul.bf16.vlgmr.msra.gmra.mxu2 %v2108_v14  ;;  %v3279_v7 = vunpack.i.h.bf16 %v3277_v59 }
 0x1de   : > { %v3254_v15 = vunpack.i.h.bf16 %v3252_v27  ;;  %v3253_v17 = vunpack.i.l.bf16 %v3252_v27  ;;  %v3278_v27 = vunpack.i.l.bf16 %v3277_v59 }
 0x1e0   : > { %v1998_v12 = vsel %vm1993_vm10, %v1965_v40, %v3253_v17  ;;  %v1999_v57 = vsel %vm1993_vm10, %v1966_v23, %v3254_v15 }
 0x1e1   : > { %v2031_v51 = vsel %vm2026_vm11, %v1998_v12, %v3258_v50  ;;  %v2032_v34 = vsel %vm2026_vm11, %v1999_v57, %v3259_v30  ;;  %3481 = vrot.lane.b32.xlu2 %v3480_v41, %s3493_s23  ;;  %v3184_v50 = vunpack.i.h.bf16 %v4558_v52 }
 0x1e2   : > { %v2064_v35 = vsel %vm2059_vm12, %v2031_v51, %v3263_v56  ;;  %v2065_v1 = vsel %vm2059_vm12, %v2032_v34, %v3264_v3  ;;  %v4767_v17 = vpop.f32.mrf.mxu1  ;;  %v3289_v3 = vunpack.i.h.bf16 %v4717_v60  ;;  %v3288_v56 = vunpack.i.l.bf16 %v4717_v60 }
 0x1e3   : > { %3476 = vrot.lane.b32.xlu1 %v3475_v37, %s3500_s5  ;;  %v2096_v38 = vpack.c.bf16 %v2065_v1, %v2064_v35  ;;  %v4757_v22 = vpop.permute.xlu2 %3316  ;;  %v3183_v37 = vunpack.i.l.bf16 %v4558_v52  ;;  %v1968_v35 = vsel %vm1960_vm9, %v4522_v26, %v3184_v50  ;;  %v3304_v26 = vunpack.i.h.bf16 %v4739_v36 }
 0x1e4   : > { %v3292_v54 = vpop.permute.xlu0 %3291  ;;  %v2001_v52 = vsel %vm1993_vm10, %v1968_v35, %v3289_v3 }
 0x1e5   : > { %v3267_v32 = vpop.permute.xlu1 %3266  ;;  %v3294_v12 = vunpack.i.h.bf16 %v3292_v54  ;;  %v3293_v57 = vunpack.i.l.bf16 %v3292_v54  ;;  %v1967_v34 = vsel %vm1960_vm9, %v4518_v5, %v3183_v37 }
 0x1e6   : > { %v3269_v0 = vunpack.i.h.bf16 %v3267_v32  ;;  %v3268_v16 = vunpack.i.l.bf16 %v3267_v32 }
 0x1e7   : > { %v2034_v60 = vsel %vm2026_vm11, %v2001_v52, %v3294_v12 }
 0x1e8   : > { %v1979_v2 = vsel %vm1960_vm9, %v4573_v45, %v3268_v16  ;;  %v1980_v11 = vsel %vm1960_vm9, %v4577_v43, %v3269_v0 }
 0x1e9   : > { %v2012_v14 = vsel %vm1993_vm10, %v1979_v2, %v3273_v53  ;;  %v2013_v39 = vsel %vm1993_vm10, %v1980_v11, %v3274_v33  ;;  %v3303_v33 = vunpack.i.l.bf16 %v4739_v36 }
 0x1ea   : > { %v2045_v45 = vsel %vm2026_vm11, %v2012_v14, %v3278_v27  ;;  %v2046_v43 = vsel %vm2026_vm11, %v2013_v39, %v3279_v7  ;;  %v4789_v11 = vpop.f32.mrf.mxu1 }
 0x1eb   : > { %v4771_v23 = vpop.permute.xlu2 %3331 }
 0x1ec   : > { %2262 = vmatmul.bf16.gmra.mxu0 %v2096_v38  ;;  %v3307_v63 = vpop.permute.xlu0 %3306  ;;  %v2000_v38 = vsel %vm1993_vm10, %v1967_v34, %v3288_v56 }
 0x1ed   : > { %v3282_v41 = vpop.permute.xlu1 %3281  ;;  %v2033_v16 = vsel %vm2026_vm11, %v2000_v38, %v3293_v57  ;;  %v3309_v14 = vunpack.i.h.bf16 %v3307_v63  ;;  %v3308_v39 = vunpack.i.l.bf16 %v3307_v63  ;;  %v3333_v38 = vunpack.i.l.bf16 %v4771_v23 }
 0x1ee   : > { %v3284_v40 = vunpack.i.h.bf16 %v3282_v41  ;;  %v3283_v15 = vunpack.i.l.bf16 %v3282_v41  ;;  %v1981_v41 = vsel %vm1960_vm9, %v4488_v18, %v3303_v33 }
 0x1ef   : > { %v2014_v36 = vsel %vm1993_vm10, %v1981_v41, %v3308_v39 }
 0x1f0   : > { %v2078_v47 = vsel %vm2059_vm12, %v2045_v45, %v3283_v15  ;;  %v2079_v30 = vsel %vm2059_vm12, %v2046_v43, %v3284_v40  ;;  %v1982_v40 = vsel %vm1960_vm9, %v4491_v58, %v3304_v26  ;;  %v3319_v43 = vunpack.i.h.bf16 %v4757_v22 }
 0x1f1   : > { %v2110_v59 = vpack.c.bf16 %v2079_v30, %v2078_v47  ;;  %v3318_v47 = vunpack.i.l.bf16 %v4757_v22  ;;  %v2015_v30 = vsel %vm1993_vm10, %v1982_v40, %v3309_v14 }
 0x1f2   : > { %v4805_v58 = vpop.f32.mrf.mxu1 }
 0x1f3   : > { %2297 = vmatmul.bf16.gmra.mxu2 %v2110_v59  ;;  %v3347_v53 = vpop.permute.xlu2 %3346 }
 0x1f4   : > { %v3322_v51 = vpop.permute.xlu0 %3321 }
 0x1f5   : > { %v3297_v1 = vpop.permute.xlu1 %3296  ;;  %v3324_v3 = vunpack.i.h.bf16 %v3322_v51  ;;  %v3323_v56 = vunpack.i.l.bf16 %v3322_v51 }
 0x1f6   : > { %v3299_v32 = vunpack.i.h.bf16 %v3297_v1  ;;  %v3298_v0 = vunpack.i.l.bf16 %v3297_v1  ;;  %v3334_v1 = vunpack.i.h.bf16 %v4771_v23 }
 0x1f7   : > { %v2002_v52 = vsel %vm1993_vm10, %v4618_v25, %v3323_v56 }
 0x1f8   : > { %v2066_v54 = vsel %vm2059_vm12, %v2033_v16, %v3298_v0  ;;  %v2067_v2 = vsel %vm2059_vm12, %v2034_v60, %v3299_v32  ;;  %v2003_v32 = vsel %vm1993_vm10, %v4622_v31, %v3324_v3  ;;  %v3349_v31 = vunpack.i.h.bf16 %v3347_v53 }
 0x1f9   : > { %v2098_v5 = vpack.c.bf16 %v2067_v2, %v2066_v54 }
 0x1fa   : > { %v4817_v33 = vpop.f32.mrf.mxu1 }
 0x1fb   : > { %v3362_v12 = vpop.permute.xlu2 %3361 }
 0x1fc   : > { %2267 = vmatmul.bf16.gmra.mxu0 %v2098_v5  ;;  %v3337_v7 = vpop.permute.xlu0 %3336 }
 0x1fd   : > { %v3312_v27 = vpop.permute.xlu1 %3311  ;;  %v3339_v2 = vunpack.i.h.bf16 %v3337_v7  ;;  %v3338_v5 = vunpack.i.l.bf16 %v3337_v7 }
 0x1fe   : > { %v3314_v15 = vunpack.i.h.bf16 %v3312_v27  ;;  %v3313_v45 = vunpack.i.l.bf16 %v3312_v27  ;;  %v3348_v27 = vunpack.i.l.bf16 %v3347_v53 }
 0x1ff   : > { %v1983_v41 = vsel %vm1960_vm9, %v4545_v13, %v3338_v5  ;;  %v1984_v40 = vsel %vm1960_vm9, %v4541_v55, %v3339_v2 }
 0x200   : > { %v2047_v63 = vsel %vm2026_vm11, %v2014_v36, %v3313_v45  ;;  %v2048_v50 = vsel %vm2026_vm11, %v2015_v30, %v3314_v15 }
 0x201   : > { %v2080_v37 = vsel %vm2059_vm12, %v2047_v63, %v3318_v47  ;;  %v2081_v18 = vsel %vm2059_vm12, %v2048_v50, %v3319_v43 }
 0x202   : > { %v2112_v59 = vpack.c.bf16 %v2081_v18, %v2080_v37  ;;  %v3364_v18 = vunpack.i.h.bf16 %v3362_v12  ;;  %v4829_v3 = vpop.f32.mrf.mxu1 }
 0x203   : > { %v3377_v25 = vpop.permute.xlu2 %3376 }
 0x204   : > { %2302 = vmatmul.bf16.gmra.mxu2 %v2112_v59  ;;  %v3352_v22 = vpop.permute.xlu0 %3351  ;;  %v3363_v59 = vunpack.i.l.bf16 %v3362_v12  ;;  %v3379_v2 = vunpack.i.h.bf16 %v3377_v25  ;;  %v3378_v5 = vunpack.i.l.bf16 %v3377_v25 }
 0x205   : > { %v3327_v57 = vpop.permute.xlu1 %3326  ;;  %v3354_v15 = vunpack.i.h.bf16 %v3352_v22  ;;  %v3353_v45 = vunpack.i.l.bf16 %v3352_v22 }
 0x206   : > { %v3329_v34 = vunpack.i.h.bf16 %v3327_v57  ;;  %v3328_v35 = vunpack.i.l.bf16 %v3327_v57 }
 0x208   : > { %v2035_v0 = vsel %vm2026_vm11, %v2002_v52, %v3328_v35  ;;  %v2036_v51 = vsel %vm2026_vm11, %v2003_v32, %v3329_v34 }
 0x209   : > { %v2068_v16 = vsel %vm2059_vm12, %v2035_v0, %v3333_v38  ;;  %v2069_v60 = vsel %vm2059_vm12, %v2036_v51, %v3334_v1 }
 0x20a   : > { %v2100_v54 = vpack.c.bf16 %v2069_v60, %v2068_v16 }
 0x20b   : > { %v3392_v56 = vpop.permute.xlu2 %3391 }
 0x20c   : > { %2272 = vmatmul.bf16.gmra.mxu0 %v2100_v54  ;;  %v3367_v26 = vpop.permute.xlu0 %3366  ;;  %v4843_v54 = vpop.f32.mrf.mxu1 }
 0x20d   : > { %v3342_v23 = vpop.permute.xlu1 %3341  ;;  %v3369_v22 = vunpack.i.h.bf16 %v3367_v26  ;;  %v3368_v57 = vunpack.i.l.bf16 %v3367_v26 }
 0x20e   : > { %v3344_v14 = vunpack.i.h.bf16 %v3342_v23  ;;  %v3343_v39 = vunpack.i.l.bf16 %v3342_v23 }
 0x210   : > { %v2016_v7 = vsel %vm1993_vm10, %v1983_v41, %v3343_v39  ;;  %v2017_v43 = vsel %vm1993_vm10, %v1984_v40, %v3344_v14 }
 0x211   : > { %v2049_v47 = vsel %vm2026_vm11, %v2016_v7, %v3348_v27  ;;  %v2050_v36 = vsel %vm2026_vm11, %v2017_v43, %v3349_v31  ;;  %v3394_v43 = vunpack.i.h.bf16 %v3392_v56 }
 0x212   : > { %v2082_v30 = vsel %vm2059_vm12, %v2049_v47, %v3353_v45  ;;  %v2083_v53 = vsel %vm2059_vm12, %v2050_v36, %v3354_v15  ;;  %v3393_v47 = vunpack.i.l.bf16 %v3392_v56 }
 0x213   : > { %v2114_v63 = vpack.c.bf16 %v2083_v53, %v2082_v30  ;;  %v3407_v26 = vpop.permute.xlu2 %3406 }
 0x214   : > { %v3382_v50 = vpop.permute.xlu0 %3381  ;;  %v4851_v53 = vpop.f32.mrf.mxu1 }
 0x215   : > { %v3357_v13 = vpop.permute.xlu1 %3356  ;;  %2307 = vmatmul.bf16.gmra.mxu2 %v2114_v63  ;;  %v3384_v39 = vunpack.i.h.bf16 %v3382_v50  ;;  %v3383_v31 = vunpack.i.l.bf16 %v3382_v50 }
 0x216   : > { %v3359_v37 = vunpack.i.h.bf16 %v3357_v13  ;;  %v3358_v55 = vunpack.i.l.bf16 %v3357_v13  ;;  %v2006_v13 = vsel %vm1993_vm10, %v4593_v42, %v3393_v47 }
 0x218   : > { %v2004_v34 = vsel %vm1993_vm10, %v4653_v49, %v3358_v55  ;;  %v2005_v35 = vsel %vm1993_vm10, %v4657_v9, %v3359_v37  ;;  %v2007_v37 = vsel %vm1993_vm10, %v4596_v61, %v3394_v43 }
 0x219   : > { %v2037_v1 = vsel %vm2026_vm11, %v2004_v34, %v3363_v59  ;;  %v2038_v38 = vsel %vm2026_vm11, %v2005_v35, %v3364_v18  ;;  %v3409_v35 = vunpack.i.h.bf16 %v3407_v26 }
 0x21a   : > { %v2070_v52 = vsel %vm2059_vm12, %v2037_v1, %v3368_v57  ;;  %v2071_v32 = vsel %vm2059_vm12, %v2038_v38, %v3369_v22  ;;  %v3408_v1 = vunpack.i.l.bf16 %v3407_v26 }
 0x21b   : > { %v2102_v12 = vpack.c.bf16 %v2071_v32, %v2070_v52  ;;  %v3422_v63 = vpop.permute.xlu2 %3421 }
 0x21c   : > { %v3397_v60 = vpop.permute.xlu0 %3396  ;;  %v1987_v61 = vsel %vm1960_vm9, %v4511_v46, %v3408_v1 }
 0x21d   : > { %v3372_v0 = vpop.permute.xlu1 %3371  ;;  %2277 = vmatmul.bf16.gmra.mxu0 %v2102_v12  ;;  %v3399_v36 = vunpack.i.h.bf16 %v3397_v60  ;;  %v3398_v30 = vunpack.i.l.bf16 %v3397_v60  ;;  %v4861_v12 = vpop.f32.mrf.mxu1 }
 0x21e   : > { %v3374_v51 = vunpack.i.h.bf16 %v3372_v0  ;;  %v3373_v16 = vunpack.i.l.bf16 %v3372_v0  ;;  %v1988_v0 = vsel %vm1960_vm9, %v4514_v4, %v3409_v35 }
 0x21f   : > { %v2039_v59 = vsel %vm2026_vm11, %v2006_v13, %v3398_v30  ;;  %v2040_v22 = vsel %vm2026_vm11, %v2007_v37, %v3399_v36 }
 0x220   : > { %v1985_v49 = vsel %vm1960_vm9, %v4603_v8, %v3373_v16  ;;  %v1986_v9 = vsel %vm1960_vm9, %v4607_v19, %v3374_v51 }
 0x221   : > { %v2018_v23 = vsel %vm1993_vm10, %v1985_v49, %v3378_v5  ;;  %v2019_v14 = vsel %vm1993_vm10, %v1986_v9, %v3379_v2  ;;  %v3424_v49 = vunpack.i.h.bf16 %v3422_v63  ;;  %v3423_v9 = vunpack.i.l.bf16 %v3422_v63 }
 0x222   : > { %v2051_v15 = vsel %vm2026_vm11, %v2018_v23, %v3383_v31  ;;  %v2052_v8 = vsel %vm2026_vm11, %v2019_v14, %v3384_v39 }
 0x223   : > { %v3437_v51 = vpop.permute.xlu2 %3436 }
 0x224   : > { %v3412_v45 = vpop.permute.xlu0 %3411 }
 0x225   : > { %v3387_v27 = vpop.permute.xlu1 %3386  ;;  %v3414_v52 = vunpack.i.h.bf16 %v3412_v45  ;;  %v3413_v32 = vunpack.i.l.bf16 %v3412_v45  ;;  %v4878_v36 = vpop.f32.mrf.mxu1 }
 0x226   : > { %v3389_v41 = vunpack.i.h.bf16 %v3387_v27  ;;  %v3388_v40 = vunpack.i.l.bf16 %v3387_v27 }
 0x227   : > { %v2020_v2 = vsel %vm1993_vm10, %v1987_v61, %v3413_v32  ;;  %v2021_v5 = vsel %vm1993_vm10, %v1988_v0, %v3414_v52 }
 0x228   : > { %v2084_v19 = vsel %vm2059_vm12, %v2051_v15, %v3388_v40  ;;  %v2085_v7 = vsel %vm2059_vm12, %v2052_v8, %v3389_v41  ;;  %v964_v41 = vld [vmem:[#allocation2 + $0x19a] sm:$0xff]  ;;  %v965_v40 = vld [vmem:[#allocation2 + $0x1a2] sm:$0xff] }
 0x229   : > { %v2116_v25 = vpack.c.bf16 %v2085_v7, %v2084_v19  ;;  %v2123_v8 = vpack.c.bf16 %v965_v40, %v964_v41  ;;  %v3439_v7 = vunpack.i.h.bf16 %v3437_v51 }
 0x22b   : > { %2312 = vmatmul.bf16.gmra.mxu2 %v2116_v25  ;;  %v3438_v25 = vunpack.i.l.bf16 %v3437_v51  ;;  %2807 = vmatmul.msk.bf16.gmra.mxu3 %vm598_vm0, %v2123_v8  ;;  %v3452_v30 = vpop.permute.xlu2 %3451 }
 0x22c   : > { %v3427_v38 = vpop.permute.xlu0 %3426  ;;  %v3454_v32 = vunpack.i.h.bf16 %v3452_v30 }
 0x22d   : > { %v3402_v50 = vpop.permute.xlu1 %3401  ;;  %v3429_v31 = vunpack.i.h.bf16 %v3427_v38  ;;  %v3428_v4 = vunpack.i.l.bf16 %v3427_v38  ;;  %v4890_v52 = vpop.f32.mrf.mxu1 }
 0x22e   : > { %v3404_v55 = vunpack.i.h.bf16 %v3402_v50  ;;  %v3403_v18 = vunpack.i.l.bf16 %v3402_v50 }
 0x22f   : > { %v1975_v43 = vsel %vm1960_vm9, %v4463_v29, %v3428_v4  ;;  %v1976_v47 = vsel %vm1960_vm9, %v4466_v62, %v3429_v31 }
 0x230   : > { %v2072_v56 = vsel %vm2059_vm12, %v2039_v59, %v3403_v18  ;;  %v2073_v57 = vsel %vm2059_vm12, %v2040_v22, %v3404_v55 }
 0x231   : > { %v2104_v34 = vpack.c.bf16 %v2073_v57, %v2072_v56 }
 0x233   : > { %2282 = vmatmul.bf16.gmra.mxu0 %v2104_v34  ;;  %v3467_v61 = vpop.permute.xlu2 %3466 }
 0x234   : > { %v3442_v27 = vpop.permute.xlu0 %3441 }
 0x235   : > { %v3417_v42 = vpop.permute.xlu1 %3416  ;;  %v3444_v63 = vunpack.i.h.bf16 %v3442_v27  ;;  %v3443_v50 = vunpack.i.l.bf16 %v3442_v27 }
 0x236   : > { %v3419_v16 = vunpack.i.h.bf16 %v3417_v42  ;;  %v3418_v60 = vunpack.i.l.bf16 %v3417_v42  ;;  %v3453_v42 = vunpack.i.l.bf16 %v3452_v30  ;;  %v5199_v30 = vld [vmem:[#allocation10_spill] sm:$0xff] }
 0x238   : > { %v2053_v26 = vsel %vm2026_vm11, %v2020_v2, %v3418_v60  ;;  %v2054_v23 = vsel %vm2026_vm11, %v2021_v5, %v3419_v16  ;;  %v3468_v2 = vunpack.i.l.bf16 %v3467_v61 }
 0x239   : > { %v2086_v14 = vsel %vm2059_vm12, %v2053_v26, %v3423_v9  ;;  %v2087_v46 = vsel %vm2059_vm12, %v2054_v23, %v3424_v49 }
 0x23a   : > { %v2118_v39 = vpack.c.bf16 %v2087_v46, %v2086_v14 }
 0x23b   : > { %v3482_v40 = vpop.permute.xlu2 %3481 }
 0x23c   : > { %2317 = vmatmul.bf16.gmra.mxu2 %v2118_v39  ;;  %v3457_v56 = vpop.permute.xlu0 %3456  ;;  %v3469_v39 = vunpack.i.h.bf16 %v3467_v61 }
 0x23d   : > { %v3432_v15 = vpop.permute.xlu1 %3431  ;;  %v3459_v16 = vunpack.i.h.bf16 %v3457_v56  ;;  %v3458_v60 = vunpack.i.l.bf16 %v3457_v56 }
 0x23e   : > { %v3434_v45 = vunpack.i.h.bf16 %v3432_v15  ;;  %v3433_v19 = vunpack.i.l.bf16 %v3432_v15  ;;  %v1991_v15 = vsel %vm1960_vm9, %v4626_v44, %v3468_v2 }
 0x240   : > { %v2008_v13 = vsel %vm1993_vm10, %v1975_v43, %v3433_v19  ;;  %v2009_v37 = vsel %vm1993_vm10, %v1976_v47, %v3434_v45  ;;  %v4911_v19 = vpop.f32.mrf.mxu1 }
 0x241   : > { %v2041_v55 = vsel %vm2026_vm11, %v2008_v13, %v3438_v25  ;;  %v2042_v18 = vsel %vm2026_vm11, %v2009_v37, %v3439_v7  ;;  %v3484_v13 = vunpack.i.h.bf16 %v3482_v40  ;;  %v3483_v37 = vunpack.i.l.bf16 %v3482_v40 }
 0x242   : > { %v2074_v29 = vsel %vm2059_vm12, %v2041_v55, %v3443_v50  ;;  %v2075_v62 = vsel %vm2059_vm12, %v2042_v18, %v3444_v63  ;;  %v1992_v63 = vsel %vm1960_vm9, %v5199_v30, %v3469_v39 }
 0x243   : > { %v2106_v59 = vpack.c.bf16 %v2075_v62, %v2074_v29 }
 0x244   : > { %v3472_v23 = vpop.permute.xlu0 %3471 }
 0x245   : > { %v3447_v22 = vpop.permute.xlu1 %3446  ;;  %2287 = vmatmul.bf16.gmra.mxu0 %v2106_v59  ;;  %v3474_v8 = vunpack.i.h.bf16 %v3472_v23  ;;  %v3473_v45 = vunpack.i.l.bf16 %v3472_v23 }
 0x246   : > { %v3449_v57 = vunpack.i.h.bf16 %v3447_v22  ;;  %v3448_v34 = vunpack.i.l.bf16 %v3447_v22 }
 0x247   : > { %v2024_v62 = vsel %vm1993_vm10, %v1991_v15, %v3473_v45  ;;  %v2025_v59 = vsel %vm1993_vm10, %v1992_v63, %v3474_v8  ;;  %v2387_v45 = vpop.f32.mrf.mxu3 }
 0x248   : > { %v1989_v35 = vsel %vm1960_vm9, %v4569_v24, %v3448_v34  ;;  %v1990_v1 = vsel %vm1960_vm9, %v4565_v48, %v3449_v57 }
 0x249   : > { %v2253_v38 = vpop.f32.mrf.mxu0  ;;  %v2022_v51 = vsel %vm1993_vm10, %v1989_v35, %v3453_v42  ;;  %v2023_v48 = vsel %vm1993_vm10, %v1990_v1, %v3454_v32 }
 0x24a   : > { %v2343_v0 = vadd.f32 %v4646_v20, %v2253_v38  ;;  %v2055_v5 = vsel %vm2026_vm11, %v2022_v51, %v3458_v60  ;;  %v2056_v26 = vsel %vm2026_vm11, %v2023_v48, %v3459_v16  ;;  %v2382_v51 = vpop.f32.mrf.mxu1 }
 0x24c   : > { %v2422_v24 = vpack.c.bf16 %v2343_v0, %v2343_v0  ;;  %v2556_v27 = vmul.f32 %v2343_v0, %v2343_v0  ;;  %v2487_v7 = vsel %vm598_vm0, %v2343_v0, 0.0 }
 0x24d   : > { %v3462_v49 = vpop.permute.xlu1 %3461 }
 0x24e   : > { %2455 = vst.msk [vmem:[%s4898_s27] sm:$0xf] %vm2454_vm13, %v2422_v24  ;;  %v3464_v9 = vunpack.i.h.bf16 %v3462_v49  ;;  %v3463_v20 = vunpack.i.l.bf16 %v3462_v49  ;;  %v2588_v44 = vsel %vm598_vm0, %v2556_v27, 0.0 }
 0x250   : > { %v2088_v14 = vsel %vm2059_vm12, %v2055_v5, %v3463_v20  ;;  %v2089_v46 = vsel %vm2059_vm12, %v2056_v26, %v3464_v9 }
 0x251   : > { %v2255_v31 = vpop.f32.mrf.mxu0  ;;  %v2120_v4 = vpack.c.bf16 %v2089_v46, %v2088_v14 }
 0x252   : > { %v2345_v41 = vadd.f32 %v4676_v10, %v2255_v31  ;;  %v2384_v39 = vpop.f32.mrf.mxu1 }
 0x253   : > { %2322 = vmatmul.bf16.gmra.mxu2 %v2120_v4 }
 0x254   : > { %v2423_v25 = vpack.c.bf16 %v2345_v41, %v2345_v41  ;;  %v2488_v43 = vsel %vm598_vm0, %v2345_v41, 0.0  ;;  %v2557_v47 = vmul.f32 %v2345_v41, %v2345_v41 }
 0x255   : > { %v2489_v10 = vadd.f32 %v2488_v43, %v2487_v7  ;;  %v3477_v50 = vpop.permute.xlu1 %3476 }
 0x256   : > { %2456 = vst.msk [vmem:[%s4898_s27 + $0x4] sm:$0xf] %vm2454_vm13, %v2423_v25  ;;  %v2589_v55 = vsel %vm598_vm0, %v2557_v47, 0.0  ;;  %v3479_v18 = vunpack.i.h.bf16 %v3477_v50  ;;  %v3478_v29 = vunpack.i.l.bf16 %v3477_v50 }
 0x257   : > { %v2590_v22 = vadd.f32 %v2589_v55, %v2588_v44  ;;  %v2389_v44 = vpop.f32.mrf.mxu3 }
 0x258   : > { %v2057_v56 = vsel %vm2026_vm11, %v2024_v62, %v3478_v29  ;;  %v2058_v57 = vsel %vm2026_vm11, %v2025_v59, %v3479_v18 }
 0x259   : > { %v2258_v34 = vpop.f32.mrf.mxu0  ;;  %v2090_v35 = vsel %vm2059_vm12, %v2057_v56, %v3483_v37  ;;  %v2091_v1 = vsel %vm2059_vm12, %v2058_v57, %v3484_v13 }
 0x25a   : > { %v2348_v38 = vadd.f32 %v4705_v21, %v2258_v34  ;;  %v2122_v32 = vpack.c.bf16 %v2091_v1, %v2090_v35 }
 0x25c   : > { %v2424_v42 = vpack.c.bf16 %v2348_v38, %v2348_v38  ;;  %v2490_v61 = vsel %vm598_vm0, %v2348_v38, 0.0  ;;  %v2558_v0 = vmul.f32 %v2348_v38, %v2348_v38 }
 0x25d   : > { %v2491_v24 = vadd.f32 %v2490_v61, %v2489_v10 }
 0x25e   : > { %2457 = vst.msk [vmem:[%s4898_s27 + $0x8] sm:$0xf] %vm2454_vm13, %v2424_v42  ;;  %v2591_v48 = vsel %vm598_vm0, %v2558_v0, 0.0 }
 0x25f   : > { %v2592_v16 = vadd.f32 %v2591_v48, %v2590_v22 }
 0x260   : > { %v2293_v60 = vpop.f32.mrf.mxu2 }
 0x261   : > { %v4932_v49 = vadd.f32 %v2382_v51, %v2293_v60  ;;  %v2260_v9 = vpop.f32.mrf.mxu0 }
 0x262   : > { %v2350_v21 = vadd.f32 %v4735_v28, %v2260_v9 }
 0x263   : > { %v2438_v20 = vpack.c.bf16 %v4932_v49, %v4932_v49  ;;  %2327 = vmatmul.bf16.gmra.mxu2 %v2122_v32  ;;  %v2392_v32 = vpop.f32.mrf.mxu3 }
 0x264   : > { %v2425_v2 = vpack.c.bf16 %v2350_v21, %v2350_v21  ;;  %v2492_v5 = vsel %vm598_vm0, %v2350_v21, 0.0  ;;  %v2559_v26 = vmul.f32 %v2350_v21, %v2350_v21 }
 0x265   : > { %2471 = vst.msk [vmem:[%s4898_s27 + $0x40] sm:$0xf] %vm2454_vm13, %v2438_v20  ;;  %v2493_v23 = vadd.f32 %v2492_v5, %v2491_v24 }
 0x266   : > { %2458 = vst.msk [vmem:[%s4898_s27 + $0xc] sm:$0xf] %vm2454_vm13, %v2425_v2  ;;  %v2593_v14 = vsel %vm598_vm0, %v2559_v26, 0.0 }
 0x267   : > { %v2594_v46 = vadd.f32 %v2593_v14, %v2592_v16 }
 0x268   : > { %v2295_v28 = vpop.f32.mrf.mxu2 }
 0x269   : > { %v4943_v31 = vadd.f32 %v2384_v39, %v2295_v28  ;;  %v2263_v4 = vpop.f32.mrf.mxu0 }
 0x26a   : > { %v2353_v27 = vadd.f32 %v4755_v6, %v2263_v4 }
 0x26b   : > { %v2439_v41 = vpack.c.bf16 %v4943_v31, %v4943_v31  ;;  %v2394_v21 = vpop.f32.mrf.mxu3 }
 0x26c   : > { %v2426_v40 = vpack.c.bf16 %v2353_v27, %v2353_v27  ;;  %v2494_v15 = vsel %vm598_vm0, %v2353_v27, 0.0  ;;  %v2560_v8 = vmul.f32 %v2353_v27, %v2353_v27 }
 0x26d   : > { %2472 = vst.msk [vmem:[%s4898_s27 + $0x44] sm:$0xf] %vm2454_vm13, %v2439_v41  ;;  %v2495_v7 = vadd.f32 %v2494_v15, %v2493_v23 }
 0x26e   : > { %2459 = vst.msk [vmem:[%s4898_s27 + $0x10] sm:$0xf] %vm2454_vm13, %v2426_v40  ;;  %v2595_v25 = vsel %vm598_vm0, %v2560_v8, 0.0 }
 0x26f   : > { %v2596_v43 = vadd.f32 %v2595_v25, %v2594_v46 }
 0x271   : > { %v2265_v47 = vpop.f32.mrf.mxu0 }
 0x272   : > { %v2355_v6 = vadd.f32 %v4767_v17, %v2265_v47 }
 0x273   : > { %v2397_v46 = vpop.f32.mrf.mxu3 }
 0x274   : > { %v2427_v30 = vpack.c.bf16 %v2355_v6, %v2355_v6  ;;  %v2496_v63 = vsel %vm598_vm0, %v2355_v6, 0.0  ;;  %v2561_v10 = vmul.f32 %v2355_v6, %v2355_v6 }
 0x275   : > { %v2497_v50 = vadd.f32 %v2496_v63, %v2495_v7 }
 0x276   : > { %2460 = vst.msk [vmem:[%s4898_s27 + $0x14] sm:$0xf] %vm2454_vm13, %v2427_v30  ;;  %v2597_v13 = vsel %vm598_vm0, %v2561_v10, 0.0  ;;  %v2298_v37 = vpop.f32.mrf.mxu2 }
 0x277   : > { %v2598_v55 = vadd.f32 %v2597_v13, %v2596_v43  ;;  %v4959_v18 = vadd.f32 %v2387_v45, %v2298_v37 }
 0x279   : > { %v2440_v29 = vpack.c.bf16 %v4959_v18, %v4959_v18  ;;  %v2268_v62 = vpop.f32.mrf.mxu0 }
 0x27a   : > { %v2358_v17 = vadd.f32 %v4789_v11, %v2268_v62 }
 0x27b   : > { %2473 = vst.msk [vmem:[%s4898_s27 + $0x48] sm:$0xf] %vm2454_vm13, %v2440_v29  ;;  %v2399_v40 = vpop.f32.mrf.mxu3 }
 0x27c   : > { %v2428_v59 = vpack.c.bf16 %v2358_v17, %v2358_v17  ;;  %v2498_v22 = vsel %vm598_vm0, %v2358_v17, 0.0  ;;  %v2562_v56 = vmul.f32 %v2358_v17, %v2358_v17 }
 0x27d   : > { %v2499_v57 = vadd.f32 %v2498_v22, %v2497_v50 }
 0x27e   : > { %2461 = vst.msk [vmem:[%s4898_s27 + $0x18] sm:$0xf] %vm2454_vm13, %v2428_v59  ;;  %v2599_v34 = vsel %vm598_vm0, %v2562_v56, 0.0  ;;  %v2300_v35 = vpop.f32.mrf.mxu2 }
 0x27f   : > { %v4970_v1 = vadd.f32 %v2599_v34, %v2598_v55  ;;  %v4972_v38 = vadd.f32 %v2389_v44, %v2300_v35 }
 0x281   : > { %v2441_v11 = vpack.c.bf16 %v4972_v38, %v4972_v38  ;;  %v2270_v42 = vpop.f32.mrf.mxu0 }
 0x282   : > { %v2360_v61 = vadd.f32 %v4805_v58, %v2270_v42 }
 0x283   : > { %2474 = vst.msk [vmem:[%s4898_s27 + $0x4c] sm:$0xf] %vm2454_vm13, %v2441_v11  ;;  %v2402_v43 = vpop.f32.mrf.mxu3 }
 0x284   : > { %v2429_v0 = vpack.c.bf16 %v2360_v61, %v2360_v61  ;;  %v2500_v24 = vsel %vm598_vm0, %v2360_v61, 0.0  ;;  %v2563_v55 = vmul.f32 %v2360_v61, %v2360_v61 }
 0x285   : > { %v4980_v51 = vadd.f32 %v2500_v24, %v2499_v57 }
 0x286   : > { %2462 = vst.msk [vmem:[%s4898_s27 + $0x1c] sm:$0xf] %vm2454_vm13, %v2429_v0  ;;  %v2601_v22 = vsel %vm598_vm0, %v2563_v55, 0.0  ;;  %v2572_v55 = vmul.f32 %v4932_v49, %v4932_v49 }
 0x287   : > { %v2303_v48 = vpop.f32.mrf.mxu2 }
 0x288   : > { %v4984_v16 = vadd.f32 %v2392_v32, %v2303_v48 }
 0x289   : > { %v2273_v60 = vpop.f32.mrf.mxu0 }
 0x28a   : > { %v2442_v9 = vpack.c.bf16 %v4984_v16, %v4984_v16  ;;  %v2363_v58 = vadd.f32 %v4817_v33, %v2273_v60 }
 0x28b   : > { %v2404_v50 = vpop.f32.mrf.mxu3 }
 0x28c   : > { %2475 = vst.msk [vmem:[%s4898_s27 + $0x50] sm:$0xf] %vm2454_vm13, %v2442_v9  ;;  %v2430_v20 = vpack.c.bf16 %v2363_v58, %v2363_v58  ;;  %v2564_v17 = vmul.f32 %v2363_v58, %v2363_v58  ;;  %v2502_v56 = vsel %vm598_vm0, %v2363_v58, 0.0 }
 0x28d   : > { %v2503_v42 = vadd.f32 %v2502_v56, %v4980_v51  ;;  %v2573_v56 = vmul.f32 %v4943_v31, %v4943_v31 }
 0x28e   : > { %2463 = vst.msk [vmem:[%s4898_s27 + $0x20] sm:$0xf] %vm2454_vm13, %v2430_v20  ;;  %v2603_v34 = vsel %vm598_vm0, %v2564_v17, 0.0 }
 0x28f   : > { %v2305_v2 = vpop.f32.mrf.mxu2 }
 0x290   : > { %v4993_v5 = vadd.f32 %v2394_v21, %v2305_v2 }
 0x291   : > { %v2275_v26 = vpop.f32.mrf.mxu0 }
 0x292   : > { %v2443_v23 = vpack.c.bf16 %v4993_v5, %v4993_v5  ;;  %v2365_v14 = vadd.f32 %v4829_v3, %v2275_v26 }
 0x293   : > { %v2407_v59 = vpop.f32.mrf.mxu3 }
 0x294   : > { %2476 = vst.msk [vmem:[%s4898_s27 + $0x54] sm:$0xf] %vm2454_vm13, %v2443_v23  ;;  %v2431_v33 = vpack.c.bf16 %v2365_v14, %v2365_v14  ;;  %v2565_v57 = vmul.f32 %v2365_v14, %v2365_v14  ;;  %v2504_v35 = vsel %vm598_vm0, %v2365_v14, 0.0 }
 0x295   : > { %v2505_v9 = vadd.f32 %v2504_v35, %v2503_v42  ;;  %v2619_v35 = vsel %vm598_vm0, %v2572_v55, 0.0 }
 0x296   : > { %2464 = vst.msk [vmem:[%s4898_s27 + $0x24] sm:$0xf] %vm2454_vm13, %v2431_v33  ;;  %v2605_v0 = vsel %vm598_vm0, %v2565_v57, 0.0 }
 0x298   : > { %v2308_v39 = vpop.f32.mrf.mxu2 }
 0x299   : > { %v5002_v28 = vadd.f32 %v2397_v46, %v2308_v39 }
 0x29a   : > { %v2278_v4 = vpop.f32.mrf.mxu0 }
 0x29b   : > { %v2444_v27 = vpack.c.bf16 %v5002_v28, %v5002_v28  ;;  %v2368_v41 = vadd.f32 %v4843_v54, %v2278_v4 }
 0x29d   : > { %2477 = vst.msk [vmem:[%s4898_s27 + $0x58] sm:$0xf] %vm2454_vm13, %v2444_v27  ;;  %v2432_v3 = vpack.c.bf16 %v2368_v41, %v2368_v41  ;;  %v2566_v32 = vmul.f32 %v2368_v41, %v2368_v41  ;;  %v2506_v24 = vsel %vm598_vm0, %v2368_v41, 0.0  ;;  %v2409_v41 = vpop.f32.mrf.mxu3 }
 0x29e   : > { %v2507_v23 = vadd.f32 %v2506_v24, %v2505_v9  ;;  %v2522_v24 = vsel %vm598_vm0, %v4959_v18, 0.0 }
 0x29f   : > { %2465 = vst.msk [vmem:[%s4898_s27 + $0x28] sm:$0xf] %vm2454_vm13, %v2432_v3  ;;  %v2607_v20 = vsel %vm598_vm0, %v2566_v32, 0.0  ;;  %v2520_v32 = vsel %vm598_vm0, %v4943_v31, 0.0  ;;  %v2524_v31 = vsel %vm598_vm0, %v4972_v38, 0.0 }
 0x2a0   : > { %v2310_v15 = vpop.f32.mrf.mxu2 }
 0x2a1   : > { %v5011_v8 = vadd.f32 %v2399_v40, %v2310_v15 }
 0x2a2   : > { %v2280_v45 = vpop.f32.mrf.mxu0 }
 0x2a3   : > { %v2445_v7 = vpack.c.bf16 %v5011_v8, %v5011_v8  ;;  %v2370_v25 = vadd.f32 %v4851_v53, %v2280_v45 }
 0x2a5   : > { %2478 = vst.msk [vmem:[%s4898_s27 + $0x5c] sm:$0xf] %vm2454_vm13, %v2445_v7  ;;  %v2433_v54 = vpack.c.bf16 %v2370_v25, %v2370_v25  ;;  %v2567_v48 = vmul.f32 %v2370_v25, %v2370_v25 }
 0x2a7   : > { %2466 = vst.msk [vmem:[%s4898_s27 + $0x2c] sm:$0xf] %vm2454_vm13, %v2433_v54  ;;  %v2609_v14 = vsel %vm598_vm0, %v2567_v48, 0.0  ;;  %v2575_v48 = vmul.f32 %v4972_v38, %v4972_v38 }
 0x2ae   : > { %v2313_v47 = vpop.f32.mrf.mxu2 }
 0x2af   : > { %v5020_v6 = vadd.f32 %v2402_v43, %v2313_v47 }
 0x2b0   : > { %v2283_v30 = vpop.f32.mrf.mxu0 }
 0x2b1   : > { %v2446_v63 = vpack.c.bf16 %v5020_v6, %v5020_v6  ;;  %v2373_v10 = vadd.f32 %v4861_v12, %v2283_v30 }
 0x2b3   : > { %2479 = vst.msk [vmem:[%s4898_s27 + $0x60] sm:$0xf] %vm2454_vm13, %v2446_v63  ;;  %v2434_v53 = vpack.c.bf16 %v2373_v10, %v2373_v10  ;;  %v2568_v2 = vmul.f32 %v2373_v10, %v2373_v10  ;;  %v2510_v33 = vsel %vm598_vm0, %v2373_v10, 0.0 }
 0x2b5   : > { %2467 = vst.msk [vmem:[%s4898_s27 + $0x30] sm:$0xf] %vm2454_vm13, %v2434_v53  ;;  %v2611_v3 = vsel %vm598_vm0, %v2568_v2, 0.0 }
 0x2b6   : > { %v2315_v13 = vpop.f32.mrf.mxu2 }
 0x2b7   : > { %v5029_v37 = vadd.f32 %v2404_v50, %v2315_v13 }
 0x2b8   : > { %v2285_v44 = vpop.f32.mrf.mxu0 }
 0x2b9   : > { %v2447_v29 = vpack.c.bf16 %v5029_v37, %v5029_v37  ;;  %v2375_v62 = vadd.f32 %v4878_v36, %v2285_v44  ;;  %v2602_v36 = vadd.f32 %v2601_v22, %v4970_v1  ;;  %v2508_v1 = vsel %vm598_vm0, %v2370_v25, 0.0 }
 0x2ba   : > { %v2509_v27 = vadd.f32 %v2508_v1, %v2507_v23  ;;  %v2518_v22 = vsel %vm598_vm0, %v4932_v49, 0.0 }
 0x2bb   : > { %2480 = vst.msk [vmem:[%s4898_s27 + $0x64] sm:$0xf] %vm2454_vm13, %v2447_v29  ;;  %v2435_v12 = vpack.c.bf16 %v2375_v62, %v2375_v62  ;;  %v2604_v60 = vadd.f32 %v2603_v34, %v2602_v36  ;;  %v2569_v46 = vmul.f32 %v2375_v62, %v2375_v62  ;;  %v2512_v40 = vsel %vm598_vm0, %v2375_v62, 0.0  ;;  %v2412_v36 = vpop.f32.mrf.mxu3 }
 0x2bc   : > { %v2511_v7 = vadd.f32 %v2510_v33, %v2509_v27 }
 0x2bd   : > { %2468 = vst.msk [vmem:[%s4898_s27 + $0x34] sm:$0xf] %vm2454_vm13, %v2435_v12  ;;  %v2606_v26 = vadd.f32 %v2605_v0, %v2604_v60  ;;  %v2613_v54 = vsel %vm598_vm0, %v2569_v46, 0.0  ;;  %v2621_v0 = vsel %vm598_vm0, %v2573_v56, 0.0  ;;  %v2528_v46 = vsel %vm598_vm0, %v4993_v5, 0.0 }
 0x2be   : > { %v2513_v30 = vadd.f32 %v2512_v40, %v2511_v7  ;;  %v2579_v40 = vmul.f32 %v5011_v8, %v5011_v8  ;;  %v2532_v7 = vsel %vm598_vm0, %v5011_v8, 0.0 }
 0x2bf   : > { %v2318_v11 = vpop.f32.mrf.mxu2  ;;  %v2608_v4 = vadd.f32 %v2607_v20, %v2606_v26  ;;  %v2577_v26 = vmul.f32 %v4993_v5, %v4993_v5 }
 0x2c0   : > { %v5044_v61 = vadd.f32 %v2407_v59, %v2318_v11  ;;  %v2574_v11 = vmul.f32 %v4959_v18, %v4959_v18  ;;  %v2526_v18 = vsel %vm598_vm0, %v4984_v16, 0.0 }
 0x2c1   : > { %v2610_v45 = vadd.f32 %v2609_v14, %v2608_v4 }
 0x2c2   : > { %v2448_v58 = vpack.c.bf16 %v5044_v61, %v5044_v61  ;;  %v2288_v21 = vpop.f32.mrf.mxu0  ;;  %v2582_v55 = vmul.f32 %v5044_v61, %v5044_v61 }
 0x2c3   : > { %v2378_v51 = vadd.f32 %v4890_v52, %v2288_v21  ;;  %v2612_v47 = vadd.f32 %v2611_v3, %v2610_v45  ;;  %v2576_v21 = vmul.f32 %v4984_v16, %v4984_v16  ;;  %v2629_v3 = vsel %vm598_vm0, %v2577_v26, 0.0 }
 0x2c4   : > { %2481 = vst.msk [vmem:[%s4898_s27 + $0x68] sm:$0xf] %vm2454_vm13, %v2448_v58  ;;  %v2623_v58 = vsel %vm598_vm0, %v2574_v11, 0.0  ;;  %v2530_v16 = vsel %vm598_vm0, %v5002_v28, 0.0 }
 0x2c5   : > { %v2436_v39 = vpack.c.bf16 %v2378_v51, %v2378_v51  ;;  %v2570_v52 = vmul.f32 %v2378_v51, %v2378_v51  ;;  %v2514_v43 = vsel %vm598_vm0, %v2378_v51, 0.0  ;;  %v2614_v13 = vadd.f32 %v2613_v54, %v2612_v47 }
 0x2c6   : > { %v2515_v44 = vadd.f32 %v2514_v43, %v2513_v30  ;;  %v2625_v51 = vsel %vm598_vm0, %v2575_v48, 0.0  ;;  %v2627_v38 = vsel %vm598_vm0, %v2576_v21, 0.0  ;;  %v2580_v54 = vmul.f32 %v5020_v6, %v5020_v6 }
 0x2c7   : > { %2469 = vst.msk [vmem:[%s4898_s27 + $0x38] sm:$0xf] %vm2454_vm13, %v2436_v39  ;;  %v2320_v15 = vpop.f32.mrf.mxu2  ;;  %v2615_v50 = vsel %vm598_vm0, %v2570_v52, 0.0  ;;  %v2578_v39 = vmul.f32 %v5002_v28, %v5002_v28  ;;  %v2414_v52 = vpop.f32.mrf.mxu3  ;;  %v2633_v28 = vsel %vm598_vm0, %v2579_v40, 0.0 }
 0x2c8   : > { %v5061_v25 = vadd.f32 %v2409_v41, %v2320_v15  ;;  %v2616_v12 = vadd.f32 %v2615_v50, %v2614_v13  ;;  %v2635_v8 = vsel %vm598_vm0, %v2580_v54, 0.0 }
 0x2c9   : > { %v2631_v5 = vsel %vm598_vm0, %v2578_v39, 0.0 }
 0x2ca   : > { %v2449_v63 = vpack.c.bf16 %v5061_v25, %v5061_v25  ;;  %v2290_v10 = vpop.f32.mrf.mxu0 }
 0x2cb   : > { %v2380_v53 = vadd.f32 %v4911_v19, %v2290_v10  ;;  %v2581_v10 = vmul.f32 %v5029_v37, %v5029_v37 }
 0x2cc   : > { %2482 = vst.msk [vmem:[%s4898_s27 + $0x6c] sm:$0xf] %vm2454_vm13, %v2449_v63  ;;  %v2534_v63 = vsel %vm598_vm0, %v5020_v6, 0.0  ;;  %v2538_v6 = vsel %vm598_vm0, %v5044_v61, 0.0 }
 0x2cd   : > { %v2437_v29 = vpack.c.bf16 %v2380_v53, %v2380_v53  ;;  %v2516_v62 = vsel %vm598_vm0, %v2380_v53, 0.0  ;;  %v2571_v17 = vmul.f32 %v2380_v53, %v2380_v53 }
 0x2ce   : > { %v2517_v59 = vadd.f32 %v2516_v62, %v2515_v44  ;;  %v2536_v44 = vsel %vm598_vm0, %v5029_v37, 0.0  ;;  %v2639_v37 = vsel %vm598_vm0, %v2582_v55, 0.0 }
 0x2cf   : > { %2470 = vst.msk [vmem:[%s4898_s27 + $0x3c] sm:$0xf] %vm2454_vm13, %v2437_v29  ;;  %v2617_v19 = vsel %vm598_vm0, %v2571_v17, 0.0 }
 0x2d0   : > { %v2519_v57 = vadd.f32 %v2518_v22, %v2517_v59  ;;  %v2618_v34 = vadd.f32 %v2617_v19, %v2616_v12  ;;  %v2637_v12 = vsel %vm598_vm0, %v2581_v10, 0.0  ;;  %v2583_v59 = vmul.f32 %v5061_v25, %v5061_v25  ;;  %v2417_v19 = vpop.f32.mrf.mxu3 }
 0x2d2   : > { %v2521_v42 = vadd.f32 %v2520_v32, %v2519_v57  ;;  %v2620_v49 = vadd.f32 %v2619_v35, %v2618_v34  ;;  %v2540_v57 = vsel %vm598_vm0, %v5061_v25, 0.0  ;;  %v2641_v61 = vsel %vm598_vm0, %v2583_v59, 0.0 }
 0x2d4   : > { %v2523_v60 = vadd.f32 %v2522_v24, %v2521_v42  ;;  %v2622_v9 = vadd.f32 %v2621_v0, %v2620_v49 }
 0x2d6   : > { %v2525_v20 = vadd.f32 %v2524_v31, %v2523_v60  ;;  %v2624_v1 = vadd.f32 %v2623_v58, %v2622_v9  ;;  %v2323_v2 = vpop.f32.mrf.mxu2 }
 0x2d7   : > { %v2413_v23 = vadd.f32 %v2412_v36, %v2323_v2 }
 0x2d8   : > { %v2527_v14 = vadd.f32 %v2526_v18, %v2525_v20  ;;  %v2626_v33 = vadd.f32 %v2625_v51, %v2624_v1  ;;  %v2419_v1 = vpop.f32.mrf.mxu3 }
 0x2d9   : > { %v2450_v4 = vpack.c.bf16 %v2413_v23, %v2413_v23  ;;  %v2584_v34 = vmul.f32 %v2413_v23, %v2413_v23  ;;  %v2542_v36 = vsel %vm598_vm0, %v2413_v23, 0.0 }
 0x2da   : > { %v2529_v27 = vadd.f32 %v2528_v46, %v2527_v14  ;;  %v2628_v41 = vadd.f32 %v2627_v38, %v2626_v33 }
 0x2db   : > { %2483 = vst.msk [vmem:[%s4898_s27 + $0x70] sm:$0xf] %vm2454_vm13, %v2450_v4  ;;  %v2643_v24 = vsel %vm598_vm0, %v2584_v34, 0.0 }
 0x2dc   : > { %v2630_v15 = vadd.f32 %v2629_v3, %v2628_v41  ;;  %v2531_v45 = vadd.f32 %v2530_v16, %v2529_v27 }
 0x2de   : > { %v2533_v43 = vadd.f32 %v2532_v7, %v2531_v45  ;;  %v2632_v47 = vadd.f32 %v2631_v5, %v2630_v15  ;;  %v2325_v30 = vpop.f32.mrf.mxu2 }
 0x2df   : > { %v2415_v50 = vadd.f32 %v2414_v52, %v2325_v30 }
 0x2e0   : > { %v2535_v53 = vadd.f32 %v2534_v63, %v2533_v43  ;;  %v2634_v13 = vadd.f32 %v2633_v28, %v2632_v47 }
 0x2e1   : > { %v2451_v29 = vpack.c.bf16 %v2415_v50, %v2415_v50  ;;  %v2585_v48 = vmul.f32 %v2415_v50, %v2415_v50  ;;  %v2544_v58 = vsel %vm598_vm0, %v2415_v50, 0.0 }
 0x2e2   : > { %v2537_v62 = vadd.f32 %v2536_v44, %v2535_v53  ;;  %v2636_v17 = vadd.f32 %v2635_v8, %v2634_v13 }
 0x2e3   : > { %2484 = vst.msk [vmem:[%s4898_s27 + $0x74] sm:$0xf] %vm2454_vm13, %v2451_v29  ;;  %v2645_v31 = vsel %vm598_vm0, %v2585_v48, 0.0 }
 0x2e4   : > { %v2539_v22 = vadd.f32 %v2538_v6, %v2537_v62  ;;  %v2638_v56 = vadd.f32 %v2637_v12, %v2636_v17 }
 0x2e6   : > { %v2541_v35 = vadd.f32 %v2540_v57, %v2539_v22  ;;  %v2640_v32 = vadd.f32 %v2639_v37, %v2638_v56  ;;  %v2328_v11 = vpop.f32.mrf.mxu2 }
 0x2e7   : > { %v2418_v42 = vadd.f32 %v2417_v19, %v2328_v11 }
 0x2e8   : > { %v2543_v49 = vadd.f32 %v2542_v36, %v2541_v35  ;;  %v2642_v0 = vadd.f32 %v2641_v61, %v2640_v32 }
 0x2e9   : > { %v2452_v60 = vpack.c.bf16 %v2418_v42, %v2418_v42  ;;  %v2586_v21 = vmul.f32 %v2418_v42, %v2418_v42  ;;  %v2546_v51 = vsel %vm598_vm0, %v2418_v42, 0.0 }
 0x2ea   : > { %v2644_v9 = vadd.f32 %v2643_v24, %v2642_v0  ;;  %v2545_v25 = vadd.f32 %v2544_v58, %v2543_v49 }
 0x2eb   : > { %2485 = vst.msk [vmem:[%s4898_s27 + $0x78] sm:$0xf] %vm2454_vm13, %v2452_v60  ;;  %v2647_v23 = vsel %vm598_vm0, %v2586_v21, 0.0 }
 0x2ec   : > { %v2646_v20 = vadd.f32 %v2645_v31, %v2644_v9  ;;  %v2547_v26 = vadd.f32 %v2546_v51, %v2545_v25 }
 0x2ee   : > { %v2330_v2 = vpop.f32.mrf.mxu2  ;;  %v2648_v46 = vadd.f32 %v2647_v23, %v2646_v20 }
 0x2ef   : > { %v2420_v18 = vadd.f32 %v2419_v1, %v2330_v2 }
 0x2f1   : > { %v2453_v14 = vpack.c.bf16 %v2420_v18, %v2420_v18  ;;  %v2548_v33 = vsel %vm598_vm0, %v2420_v18, 0.0  ;;  %v2587_v38 = vmul.f32 %v2420_v18, %v2420_v18 }
 0x2f2   : > { %v2549_v39 = vadd.f32 %v2548_v33, %v2547_v26 }
 0x2f3   : > { %2486 = vst.msk [vmem:[%s4898_s27 + $0x7c] sm:$0xf] %vm2454_vm13, %v2453_v14  ;;  %v2649_v4 = vsel %vm598_vm0, %v2587_v38, 0.0 }
 0x2f4   : > { %v2550_v27 = vrot.slane %v2549_v39, 4  ;;  %v2650_v41 = vadd.f32 %v2649_v4, %v2648_v46 }
 0x2f6   : > { %v2551_v3 = vadd.f32 %v2550_v27, %v2549_v39  ;;  %v2651_v16 = vrot.slane %v2650_v41, 4 }
 0x2f8   : > { %v2552_v40 = vrot.slane %v2551_v3, 2  ;;  %v2652_v52 = vadd.f32 %v2651_v16, %v2650_v41 }
 0x2fa   : > { %v2553_v15 = vadd.f32 %v2552_v40, %v2551_v3  ;;  %v2653_v45 = vrot.slane %v2652_v52, 2 }
 0x2fc   : > { %v2554_v5 = vrot.slane %v2553_v15, 1  ;;  %v2654_v7 = vadd.f32 %v2653_v45, %v2652_v52 }
 0x2fe   : > { %v2655_v54 = vrot.slane %v2654_v7, 1  ;;  %v2555_v43 = vadd.f32 %v2554_v5, %v2553_v15 }
 0x300   : > { %v2656_v47 = vadd.f32 %v2655_v54, %v2654_v7 }
 0x302   : > { %v2658_v30 = vsel %vm2657_vm14, %v2555_v43, %v2656_v47 }
 0x303   : > { %2659 = vst.msk [vmem:[%s208_s30] sm:$0x3] %vm601_vm1, %v2658_v30 }
 0x304 PF: > { %s15_s15 = sadd.s32 1, %s3491_s15  }
 0x305   : > { %p12_p4 = scmp.ge.s32.totalorder %s15_s15, 4  }
 0x307   :  { %14 = sbr.rel (!%p12_p4) target bundleno = 1 (0x1), region = 77 }

// kernel: conbine_feature_forward.2
= control target key start
LH: loop header
LB: loop body
LE: loop exit
PB: predicated region body
PF: predicated region fallthrough
CT: control target
= control target key end

     0   :  { %11 = vsyncpa [#allocation5], 0  ;;  %s9627_s0 = inlined_call_operand.hbm [shape: f32[2,16,16,32], index: 0, kind: input, shape index: {}]   ;;  %s9628_s1 = inlined_call_operand.hbm [shape: f32[2,16,16,24], index: 1, kind: input, shape index: {}]   ;;  %s9629_s2 = inlined_call_operand.vmem [shape: bf16[32,16], index: 2, kind: input, shape index: {}]   ;;  %s9630_s3 = inlined_call_operand.vmem [shape: bf16[168,32], index: 3, kind: input, shape index: {}]   ;;  %s9631_s4 = inlined_call_operand.vmem [shape: bf16[2,16,16,32], index: 4, kind: output, shape index: {0}]   ;;  %s9632_s5 = inlined_call_operand.vmem [shape: f32[2,2,32], index: 5, kind: output, shape index: {1}]  }
   0x1   :  { %13 = vsyncpa [#allocation5 + $0x1], 0 }
   0x2   :  { %14 = vsyncpa [#allocation7], 0 }
   0x3   :  { %16 = vsyncpa [#allocation7 + $0x1], 0  ;;  %s6571_s18 = smov 0   ;;  %s6573_s19 = smov 0  }
   0x4   :  { %s6575_s20 = smov 0   ;;  %s6577_s21 = smov 0  }
   0x5 LB: > { %s6590_s22 = sadd.s32 4294967295, %s6521_s21   ;;  %s6593_s23 = sadd.s32 1, %s6521_s21   ;;  %s6521_s21 = sphi %s6577_s21, %s10030_s21   ;;  %s6517_s20 = sphi %s6575_s20, %s10029_s20   ;;  %s6513_s19 = sphi %s6573_s19, %s10028_s19   ;;  %s6509_s18 = sphi %s6571_s18, %s10027_s18  }
   0x6   : > { %s26_s24 = ssub.s32 %s6521_s21, %s6593_s23  ;;  %s29_s25 = sadd.s32 1, %s6517_s20 }
   0x7   : > { %p27_p0 = scmp.eq.s32.totalorder %s26_s24, 0  ;;  %p36_p1 = scmp.ne.s32.totalorder %s6517_s20, %s6513_s19 }
   0x8   : > { %p37_p2 = scmp.eq.s32.totalorder %s6521_s21, 0  ;;  %p42_p3 = scmp.ne.s32.totalorder %s6513_s19, %s6509_s18 }
   0x9   : > { %s6603_s26 = scalar_select %p27_p0, %s6517_s20, %s29_s25  }
   0xa   : > { %p6605_p4 = por %p37_p2, %p36_p1  ;;  %p43_p5 = scmp.eq.s32.totalorder %s6590_s22, 0 }
   0xb   : > { %p4982_p6 = scmp.lt.s32.totalorder %s6521_s21, 2  ;;  %s6616_s29 = sand.u32 1, %s6517_s20  }
   0xc   : > { %p6611_p7 = por %p43_p5, %p42_p3  ;;  %s4849_s30 = sshll.u32 %s6616_s29, 8 }
   0xd   : > { %s4943_s6 = sshll.u32 %s6521_s21, 8  ;;  %s196_s10 = scalar_lea.vmem [#allocation4], %s4849_s30 }
   0xe   : > { %s201_s9 = scalar_lea.hbm %s9627_s0, %s4943_s6  ;;  %s204_s11 = sshll.u32 %s196_s10, 4  ;;  %s205_s11 = int_to_ptr.vmem [resolvable:$true] %s204_s11 }
   0xf   : > { %s202_s12 = sshll.u32 %s201_s9, 4  ;;  %p6629_p8 = pnand %p4982_p6, %p6605_p4  ;;  %s203_s12 = int_to_ptr.hbm [resolvable:$true] %s202_s12 }
  0x10   : > { %p4855_p9 = scmp.ge.s32.totalorder %s6521_s21, 1  ;;  %s193_s14 = scalar_lea.sflag [#allocation5], %s6616_s29 }
  0x11   : > { %s6423_s15 = sshra.s32 %s203_s12, 4  ;;  %p6427_p11 = pneg %p6629_p8  ;;  %s6424_s15 = int_to_ptr.hbm [resolvable:$true] %s6423_s15 }
  0x12   : > { %s6425_s16 = scalar_lea.hbm %s6424_s15, 256  ;;  %s6430_s24 = scalar_lea.hbm %s9627_s0, 512 }
  0x13   : > { %p6426_p10 = scmp.ne.s32.totalorder %s6424_s15, %s6425_s16  ;;  %p6431_p0 = scmp.lt.s32.totalorder %s6424_s15, %s9627_s0 }
  0x14   : > { %p6432_p1 = scmp.lt.s32.totalorder %s6430_s24, %s6425_s16 }
  0x15   : > { %p6428_p12 = pnand %p6427_p11, %p6426_p10 }
  0x16   : > { %p6433_p2 = por %p6432_p1, %p6431_p0 }
  0x17   : > { %p6429_p13 = pneg %p6428_p12 }
  0x19   : > { %p6434_p3 = pnand %p6433_p2, %p6429_p13 }
  0x1b   : > { %6437 = shalt.err (!%p6434_p3)
}
  0x1c   : > { %s6523_s7 = smov 128   ;;  %s6524_s8 = smov 8  }
  0x1d   : > { %4978 = dma.hbm_to_vmem [thread:$0]  (!%p6629_p8), %s203_s12, 4096, %s205_s11, %s193_s14, %s6523_s7, %s6523_s7, %s6524_s8  }
  0x1e   : > { %p234_p4 = scmp.lt.s32.totalorder %s6521_s21, 3  ;;  %s223_s15 = scalar_lea.hbm %s9628_s1, %s4943_s6 }
  0x1f   : > { %s224_s17 = sshll.u32 %s223_s15, 4  ;;  %s218_s18 = scalar_lea.vmem [#allocation6], %s4849_s30  ;;  %s225_s17 = int_to_ptr.hbm [resolvable:$true] %s224_s17 }
  0x20   : > { %p6656_p5 = pnand %p4855_p9, %p234_p4  ;;  %s226_s24 = sshll.u32 %s218_s18, 4  ;;  %s227_s24 = int_to_ptr.vmem [resolvable:$true] %s226_s24 }
  0x21   : > { %s215_s25 = scalar_lea.sflag [#allocation7], %s6616_s29  ;;  %s6453_s27 = sshra.s32 %s225_s17, 4  ;;  %s6454_s27 = int_to_ptr.hbm [resolvable:$true] %s6453_s27 }
  0x22   : > { %s6455_s11 = scalar_lea.hbm %s6454_s27, 256  ;;  %s6460_s12 = scalar_lea.hbm %s9628_s1, 512 }
  0x23   : > { %p6456_p6 = scmp.ne.s32.totalorder %s6454_s27, %s6455_s11  ;;  %p6461_p9 = scmp.lt.s32.totalorder %s6454_s27, %s9628_s1 }
  0x24   : > { %p6462_p13 = scmp.lt.s32.totalorder %s6460_s12, %s6455_s11 }
  0x25   : > { %p6458_p10 = pnand %p6456_p6, %p6427_p11 }
  0x26   : > { %p6463_p0 = por %p6462_p13, %p6461_p9 }
  0x27   : > { %p6459_p12 = pneg %p6458_p10 }
  0x29   : > { %p6464_p1 = pnand %p6463_p0, %p6459_p12 }
  0x2b   : > { %6467 = shalt.err (!%p6464_p1)
}
  0x2c   : > { %4981 = dma.hbm_to_vmem [thread:$0]  (!%p6629_p8), %s225_s17, 4096, %s227_s24, %s215_s25, %s6523_s7, %s6523_s7, %s6524_s8  }
  0x2d   : > { %238 = sbr.rel (%p6656_p5) target bundleno = 1316 (0x524), region = 36 }
  0x32   : > { %s240_s29 = sand.u32 1, %s6513_s19  }
  0x33   : > { %s4856_s30 = sshll.u32 %s240_s29, 8  ;;  %s241_s10 = scalar_lea.sflag [#allocation5], %s240_s29 }
  0x34   : > { %s6677_s15 = scalar_lea.vmem [#allocation4], %s4856_s30 }
  0x35   : > { %6500 = dma.done.wait (%p6611_p7), %s241_s10, 4096  }
  0x36   : > { %6502 = vsyncadd (%p6611_p7), %s241_s10, 4294963200  ;;  %s251_s18 = scalar_lea.sflag [#allocation7], %s240_s29  ;;  %s6683_s27 = scalar_lea.vmem [#allocation6], %s4856_s30 }
  0x37   : > { %6504 = dma.done.wait (%p6611_p7), %s251_s18, 4096  }
  0x38   : > { %6506 = vsyncadd (%p6611_p7), %s251_s18, 4294963200  ;;  %v4947_v0 = vld [vmem:[%s9629_s2 + $0x8] sm:$0xff]  ;;  %v4946_v1 = vld [vmem:[%s9629_s2] sm:$0xff]  ;;  %vm397_vm0 = vcmask 261120   ;;  %vm535_vm1 = vcmask 64512   ;;  %vm538_vm2 = vcmask 58368  }
  0x39   : > { %v301_v2 = vld [vmem:[%s6677_s15] sm:$0xff]  ;;  %452 = vmatpush.bf16.msra.mxu0 %v4947_v0  ;;  %4958 = vmatpush.bf16.msra.mxu3 %v4947_v0  ;;  %v302_v3 = vld [vmem:[%s6677_s15 + $0x8] sm:$0xff]  ;;  %v327_v4 = vld [vmem:[%s6677_s15 + $0xd0] sm:$0xff]  ;;  %v9633_v14 = vmov 0.0   ;;  %vm544_vm3 = vcmask 57344   ;;  %s6526_s28 = smov 16  }
  0x3a   : > { %v328_v5 = vld [vmem:[%s6677_s15 + $0xd8] sm:$0xff]  ;;  %v365_v6 = vpack.c.bf16 %v302_v3, %v301_v2  ;;  %v303_v8 = vld [vmem:[%s6677_s15 + $0x10] sm:$0xff]  ;;  %v329_v10 = vld [vmem:[%s6677_s15 + $0xe0] sm:$0xff]  ;;  %536 = vst.msk [vmem:[#allocation2] sm:$0xff] %vm535_vm1, %v9633_v14  ;;  %s6527_s17 = smov 8   ;;  %s6528_s24 = smov 48  }
  0x3b   : > { %v378_v7 = vpack.c.bf16 %v328_v5, %v327_v4  ;;  %v304_v9 = vld [vmem:[%s6677_s15 + $0x18] sm:$0xff]  ;;  %v330_v11 = vld [vmem:[%s6677_s15 + $0xe8] sm:$0xff]  ;;  %537 = vst.msk [vmem:[#allocation2 + $0x8] sm:$0xff] %vm535_vm1, %v9633_v14  ;;  %v305_v15 = vld [vmem:[%s6677_s15 + $0x20] sm:$0xff]  ;;  %s6529_s25 = smov 120   ;;  %s6530_s11 = smov 32  }
  0x3c   : > { %v366_v12 = vpack.c.bf16 %v304_v9, %v303_v8  ;;  %v379_v13 = vpack.c.bf16 %v330_v11, %v329_v10  ;;  %539 = vst.msk [vmem:[#allocation2 + $0x10] sm:$0x3] %vm538_vm2, %v9633_v14  ;;  %v306_v16 = vld [vmem:[%s6677_s15 + $0x28] sm:$0xff]  ;;  %v331_v17 = vld [vmem:[%s6677_s15 + $0xf0] sm:$0xff]  ;;  %v332_v18 = vld [vmem:[%s6677_s15 + $0xf8] sm:$0xff]  ;;  %s6531_s21 = smov 40  }
  0x3d   : > { %453 = vmatpush.bf16.msra.mxu0 %v4946_v1  ;;  %4959 = vmatpush.bf16.msra.mxu3 %v4946_v1  ;;  %563 = vst.msk [vmem:[#allocation2 + $0x11] sm:$0x1] %vm544_vm3, %v9633_v14  ;;  %v367_v21 = vpack.c.bf16 %v306_v16, %v305_v15  ;;  %v380_v22 = vpack.c.bf16 %v332_v18, %v331_v17  ;;  %v307_v24 = vld [vmem:[%s6677_s15 + $0x30] sm:$0xff]  ;;  %v308_v25 = vld [vmem:[%s6677_s15 + $0x38] sm:$0xff]  ;;  %v309_v30 = vld [vmem:[%s6677_s15 + $0x40] sm:$0xff]  ;;  %s6532_s6 = smov 24  }
  0x3e   : > { %545 = vst.msk [vmem:[#allocation2] sm:$0x1] %vm544_vm3, %v9633_v14  ;;  %v368_v26 = vpack.c.bf16 %v308_v25, %v307_v24  ;;  %v310_v31 = vld [vmem:[%s6677_s15 + $0x48] sm:$0xff]  ;;  %v311_v36 = vld [vmem:[%s6677_s15 + $0x50] sm:$0xff]  ;;  %v312_v37 = vld [vmem:[%s6677_s15 + $0x58] sm:$0xff]  ;;  %s6533_s12 = smov 56  }
  0x3f   : > { %541 = vst.msk [vmem:[#allocation2 + $0x198] sm:$0xff] %vm535_vm1, %v9633_v14  ;;  %v369_v33 = vpack.c.bf16 %v310_v31, %v309_v30  ;;  %v370_v38 = vpack.c.bf16 %v312_v37, %v311_v36  ;;  %v313_v42 = vld [vmem:[%s6677_s15 + $0x60] sm:$0xff]  ;;  %v314_v43 = vld [vmem:[%s6677_s15 + $0x68] sm:$0xff]  ;;  %v316_v8 = vld [vmem:[%s6677_s15 + $0x78] sm:$0xff]  ;;  %s6534_s14 = smov 64   ;;  %s6535_s9 = smov 72  }
  0x40   : > { %4869 = vmatmul.msk.bf16.vlgmr.msra.gmra.mxu0 %vm397_vm0, %v365_v6  ;;  %4882 = vmatmul.msk.bf16.vlgmr.msra.gmra.mxu3 %vm397_vm0, %v378_v7  ;;  %542 = vst.msk [vmem:[#allocation2 + $0x1a0] sm:$0xff] %vm535_vm1, %v9633_v14  ;;  %v371_v44 = vpack.c.bf16 %v314_v43, %v313_v42  ;;  %v315_v7 = vld [vmem:[%s6677_s15 + $0x70] sm:$0xff]  ;;  %vm583_vm4 = vcmask 60416   ;;  %vm3359_vm5 = vcmask 130048   ;;  %vm3392_vm6 = vcmask 195584   ;;  %s6536_s29 = smov 80  }
  0x41   : > { %543 = vst.msk [vmem:[#allocation2 + $0x1a8] sm:$0x3] %vm538_vm2, %v9633_v14  ;;  %v372_v9 = vpack.c.bf16 %v316_v8, %v315_v7  ;;  %vm3457_vm7 = vcmask 326656   ;;  %vm3490_vm8 = vcmask 392192   ;;  %vm3523_vm9 = vcmask 457728   ;;  %s6537_s30 = smov 88  }
  0x42   : > { %v893_v19 = vld [vmem:[#allocation2 + $0x2] sm:$0xff]  ;;  %546 = vst.msk [vmem:[#allocation2 + $0x18] sm:$0x1] %vm544_vm3, %v9633_v14  ;;  %vm3556_vm10 = vcmask 523264   ;;  %vm3589_vm11 = vcmask 588800   ;;  %s6538_s10 = smov 96  }
  0x43   : > { %547 = vst.msk [vmem:[#allocation2 + $0x30] sm:$0x1] %vm544_vm3, %v9633_v14  ;;  %v861_v27 = vld [vmem:[#allocation2 + $0x1] sm:$0xff]  ;;  %v862_v28 = vld [vmem:[#allocation2 + $0x9] sm:$0xff]  ;;  %vm3622_vm12 = vcmask 654336   ;;  %vm3655_vm13 = vcmask 719872  }
  0x44   : > { %v894_v20 = vld [vmem:[#allocation2 + $0xa] sm:$0xff]  ;;  %548 = vst.msk [vmem:[#allocation2 + $0x48] sm:$0x1] %vm544_vm3, %v9633_v14  ;;  %v5033_v29 = vpack.i.bf16 %v862_v28, %v861_v27  ;;  %s6540_s18 = smov 112   ;;  %vm3688_vm14 = vcmask 785408   ;;  %vm3721_vm15 = vcmask 850944  }
  0x45   : > { %v5038_v23 = vpack.i.bf16 %v894_v20, %v893_v19  ;;  %549 = vst.msk [vmem:[#allocation2 + $0x60] sm:$0x1] %vm544_vm3, %v9633_v14  ;;  %v317_v19 = vld [vmem:[%s6677_s15 + $0x80] sm:$0xff]  ;;  %v318_v20 = vld [vmem:[%s6677_s15 + $0x88] sm:$0xff]  ;;  %p291_p7 = scmp.lt.s32.totalorder %s6590_s22, 1 }
  0x46   : > { %550 = vst.msk [vmem:[#allocation2 + $0x78] sm:$0x1] %vm544_vm3, %v9633_v14  ;;  %5034 = vrot.lane.b32.xlu2 %v5033_v29, %s6527_s17 }
  0x47   : > { %5039 = vrot.lane.b32.xlu0 %v5038_v23, %s6526_s28  ;;  %551 = vst.msk [vmem:[#allocation2 + $0x90] sm:$0x1] %vm544_vm3, %v9633_v14  ;;  %v1053_v32 = vld [vmem:[#allocation2 + $0x1a0] sm:$0xff]  ;;  %s10032_s22 = smov (!%p291_p7, %s6590_s22), 1 }
  0x48   : > { %552 = vst.msk [vmem:[#allocation2 + $0xa8] sm:$0x1] %vm544_vm3, %v9633_v14 }
  0x49   : > { %553 = vst.msk [vmem:[#allocation2 + $0xc0] sm:$0x1] %vm544_vm3, %v9633_v14 }
  0x4a   : > { %554 = vst.msk [vmem:[#allocation2 + $0xd8] sm:$0x1] %vm544_vm3, %v9633_v14 }
  0x4b   : > { %555 = vst.msk [vmem:[#allocation2 + $0xf0] sm:$0x1] %vm544_vm3, %v9633_v14 }
  0x4c   : > { %556 = vst.msk [vmem:[#allocation2 + $0x108] sm:$0x1] %vm544_vm3, %v9633_v14 }
  0x4d   : > { %557 = vst.msk [vmem:[#allocation2 + $0x120] sm:$0x1] %vm544_vm3, %v9633_v14 }
  0x4e   : > { %558 = vst.msk [vmem:[#allocation2 + $0x138] sm:$0x1] %vm544_vm3, %v9633_v14 }
  0x4f   : > { %559 = vst.msk [vmem:[#allocation2 + $0x150] sm:$0x1] %vm544_vm3, %v9633_v14 }
  0x50   : > { %4870 = vmatmul.msk.bf16.gmra.mxu0 %vm397_vm0, %v366_v12  ;;  %4883 = vmatmul.msk.bf16.gmra.mxu3 %vm397_vm0, %v379_v13  ;;  %560 = vst.msk [vmem:[#allocation2 + $0x168] sm:$0x1] %vm544_vm3, %v9633_v14 }
  0x51   : > { %561 = vst.msk [vmem:[#allocation2 + $0x180] sm:$0x1] %vm544_vm3, %v9633_v14 }
  0x52   : > { %564 = vst.msk [vmem:[#allocation2 + $0x29] sm:$0x1] %vm544_vm3, %v9633_v14 }
  0x53   : > { %565 = vst.msk [vmem:[#allocation2 + $0x41] sm:$0x1] %vm544_vm3, %v9633_v14 }
  0x54   : > { %566 = vst.msk [vmem:[#allocation2 + $0x59] sm:$0x1] %vm544_vm3, %v9633_v14 }
  0x55   : > { %567 = vst.msk [vmem:[#allocation2 + $0x71] sm:$0x1] %vm544_vm3, %v9633_v14 }
  0x56   : > { %568 = vst.msk [vmem:[#allocation2 + $0x89] sm:$0x1] %vm544_vm3, %v9633_v14 }
  0x57   : > { %569 = vst.msk [vmem:[#allocation2 + $0xa1] sm:$0x1] %vm544_vm3, %v9633_v14 }
  0x58   : > { %570 = vst.msk [vmem:[#allocation2 + $0xb9] sm:$0x1] %vm544_vm3, %v9633_v14 }
  0x59   : > { %571 = vst.msk [vmem:[#allocation2 + $0xd1] sm:$0x1] %vm544_vm3, %v9633_v14 }
  0x5a   : > { %572 = vst.msk [vmem:[#allocation2 + $0xe9] sm:$0x1] %vm544_vm3, %v9633_v14 }
  0x5b   : > { %573 = vst.msk [vmem:[#allocation2 + $0x101] sm:$0x1] %vm544_vm3, %v9633_v14 }
  0x5c   : > { %574 = vst.msk [vmem:[#allocation2 + $0x119] sm:$0x1] %vm544_vm3, %v9633_v14 }
  0x5d   : > { %575 = vst.msk [vmem:[#allocation2 + $0x131] sm:$0x1] %vm544_vm3, %v9633_v14 }
  0x5e   : > { %576 = vst.msk [vmem:[#allocation2 + $0x149] sm:$0x1] %vm544_vm3, %v9633_v14 }
  0x5f   : > { %577 = vst.msk [vmem:[#allocation2 + $0x161] sm:$0x1] %vm544_vm3, %v9633_v14 }
  0x60   : > { %4871 = vmatmul.msk.bf16.gmra.mxu0 %vm397_vm0, %v367_v21  ;;  %4884 = vmatmul.msk.bf16.gmra.mxu3 %vm397_vm0, %v380_v22  ;;  %578 = vst.msk [vmem:[#allocation2 + $0x179] sm:$0x1] %vm544_vm3, %v9633_v14  ;;  %v373_v21 = vpack.c.bf16 %v318_v20, %v317_v19 }
  0x61   : > { %579 = vst.msk [vmem:[#allocation2 + $0x191] sm:$0x1] %vm544_vm3, %v9633_v14 }
  0x62   : > { %581 = vst.msk [vmem:[#allocation3] sm:$0xff] %vm535_vm1, %v9633_v14 }
  0x63   : > { %582 = vst.msk [vmem:[#allocation3 + $0x8] sm:$0xff] %vm535_vm1, %v9633_v14 }
  0x64   : > { %585 = vst.msk [vmem:[#allocation3 + $0x18] sm:$0xff] %vm535_vm1, %v9633_v14 }
  0x65   : > { %586 = vst.msk [vmem:[#allocation3 + $0x20] sm:$0xff] %vm535_vm1, %v9633_v14 }
  0x66   : > { %589 = vst.msk [vmem:[#allocation3 + $0x1b0] sm:$0xff] %vm535_vm1, %v9633_v14 }
  0x67   : > { %590 = vst.msk [vmem:[#allocation3 + $0x1b8] sm:$0xff] %vm535_vm1, %v9633_v14 }
  0x68   : > { %592 = vst.msk [vmem:[#allocation3 + $0x1c8] sm:$0xff] %vm535_vm1, %v9633_v14 }
  0x69   : > { %593 = vst.msk [vmem:[#allocation3 + $0x1d0] sm:$0xff] %vm535_vm1, %v9633_v14 }
  0x6a   : > { %597 = vst.msk [vmem:[#allocation3 + $0x30] sm:$0x3] %vm538_vm2, %v9633_v14 }
  0x6b   : > { %598 = vst.msk [vmem:[#allocation3 + $0x48] sm:$0x3] %vm538_vm2, %v9633_v14 }
  0x6c   : > { %599 = vst.msk [vmem:[#allocation3 + $0x60] sm:$0x3] %vm538_vm2, %v9633_v14 }
  0x6d   : > { %600 = vst.msk [vmem:[#allocation3 + $0x78] sm:$0x3] %vm538_vm2, %v9633_v14 }
  0x6e   : > { %601 = vst.msk [vmem:[#allocation3 + $0x90] sm:$0x3] %vm538_vm2, %v9633_v14 }
  0x6f   : > { %602 = vst.msk [vmem:[#allocation3 + $0xa8] sm:$0x3] %vm538_vm2, %v9633_v14 }
  0x70   : > { %4872 = vmatmul.msk.bf16.gmra.mxu0 %vm397_vm0, %v368_v26  ;;  %603 = vst.msk [vmem:[#allocation3 + $0xc0] sm:$0x3] %vm538_vm2, %v9633_v14 }
  0x71   : > { %604 = vst.msk [vmem:[#allocation3 + $0xd8] sm:$0x3] %vm538_vm2, %v9633_v14 }
  0x72   : > { %605 = vst.msk [vmem:[#allocation3 + $0xf0] sm:$0x3] %vm538_vm2, %v9633_v14 }
  0x73   : > { %606 = vst.msk [vmem:[#allocation3 + $0x108] sm:$0x3] %vm538_vm2, %v9633_v14 }
  0x74   : > { %607 = vst.msk [vmem:[#allocation3 + $0x120] sm:$0x3] %vm538_vm2, %v9633_v14 }
  0x75   : > { %608 = vst.msk [vmem:[#allocation3 + $0x138] sm:$0x3] %vm538_vm2, %v9633_v14 }
  0x76   : > { %609 = vst.msk [vmem:[#allocation3 + $0x150] sm:$0x3] %vm538_vm2, %v9633_v14 }
  0x77   : > { %610 = vst.msk [vmem:[#allocation3 + $0x168] sm:$0x3] %vm538_vm2, %v9633_v14 }
  0x78   : > { %611 = vst.msk [vmem:[#allocation3 + $0x180] sm:$0x3] %vm538_vm2, %v9633_v14 }
  0x79   : > { %612 = vst.msk [vmem:[#allocation3 + $0x198] sm:$0x3] %vm538_vm2, %v9633_v14 }
  0x7a   : > { %617 = vst.msk [vmem:[#allocation3 + $0x42] sm:$0x3] %vm538_vm2, %v9633_v14 }
  0x7b   : > { %618 = vst.msk [vmem:[#allocation3 + $0x5a] sm:$0x3] %vm538_vm2, %v9633_v14 }
  0x7c   : > { %619 = vst.msk [vmem:[#allocation3 + $0x72] sm:$0x3] %vm538_vm2, %v9633_v14 }
  0x7d   : > { %620 = vst.msk [vmem:[#allocation3 + $0x8a] sm:$0x3] %vm538_vm2, %v9633_v14 }
  0x7e   : > { %621 = vst.msk [vmem:[#allocation3 + $0xa2] sm:$0x3] %vm538_vm2, %v9633_v14 }
  0x7f   : > { %622 = vst.msk [vmem:[#allocation3 + $0xba] sm:$0x3] %vm538_vm2, %v9633_v14 }
  0x80   : > { %623 = vst.msk [vmem:[#allocation3 + $0xd2] sm:$0x3] %vm538_vm2, %v9633_v14  ;;  %4873 = vmatmul.msk.bf16.gmra.mxu0 %vm397_vm0, %v369_v33  ;;  %v320_v33 = vld [vmem:[%s6677_s15 + $0x98] sm:$0xff] }
  0x81   : > { %624 = vst.msk [vmem:[#allocation3 + $0xea] sm:$0x3] %vm538_vm2, %v9633_v14 }
  0x82   : > { %625 = vst.msk [vmem:[#allocation3 + $0x102] sm:$0x3] %vm538_vm2, %v9633_v14 }
  0x83   : > { %626 = vst.msk [vmem:[#allocation3 + $0x11a] sm:$0x3] %vm538_vm2, %v9633_v14 }
  0x84   : > { %627 = vst.msk [vmem:[#allocation3 + $0x132] sm:$0x3] %vm538_vm2, %v9633_v14 }
  0x85   : > { %628 = vst.msk [vmem:[#allocation3 + $0x14a] sm:$0x3] %vm538_vm2, %v9633_v14 }
  0x86   : > { %629 = vst.msk [vmem:[#allocation3 + $0x162] sm:$0x3] %vm538_vm2, %v9633_v14 }
  0x87   : > { %630 = vst.msk [vmem:[#allocation3 + $0x17a] sm:$0x3] %vm538_vm2, %v9633_v14 }
  0x88   : > { %631 = vst.msk [vmem:[#allocation3 + $0x192] sm:$0x3] %vm538_vm2, %v9633_v14 }
  0x89   : > { %632 = vst.msk [vmem:[#allocation3 + $0x1aa] sm:$0x3] %vm538_vm2, %v9633_v14 }
  0x8a   : > { %562 = vst.msk [vmem:[#allocation2 + $0x198] sm:$0x1] %vm544_vm3, %v9633_v14 }
  0x8b   : > { %580 = vst.msk [vmem:[#allocation2 + $0x1a9] sm:$0x1] %vm544_vm3, %v9633_v14  ;;  %vm3754_vm3 = vcmask 916480  }
  0x8c   : > { %595 = vst.msk [vmem:[#allocation3] sm:$0x3] %vm538_vm2, %v9633_v14 }
  0x8d   : > { %596 = vst.msk [vmem:[#allocation3 + $0x18] sm:$0x3] %vm538_vm2, %v9633_v14 }
  0x8e   : > { %613 = vst.msk [vmem:[#allocation3 + $0x1b0] sm:$0x3] %vm538_vm2, %v9633_v14 }
  0x8f   : > { %614 = vst.msk [vmem:[#allocation3 + $0x1c8] sm:$0x3] %vm538_vm2, %v9633_v14 }
  0x90   : > { %4874 = vmatmul.msk.bf16.gmra.mxu0 %vm397_vm0, %v370_v38 }
  0x91   : > { %v1052_v34 = vld [vmem:[#allocation2 + $0x198] sm:$0xff] }
  0x92   : > { %v5043_v35 = vpack.i.bf16 %v1053_v32, %v1052_v34  ;;  %v319_v32 = vld [vmem:[%s6677_s15 + $0x90] sm:$0xff] }
  0x93   : > { %v374_v34 = vpack.c.bf16 %v320_v33, %v319_v32 }
  0x94   : > { %5044 = vrot.lane.b32.xlu1 %v5043_v35, %s6528_s24 }
  0xa0   : > { %4875 = vmatmul.msk.bf16.gmra.mxu0 %vm397_vm0, %v371_v44 }
  0xb0   : > { %4876 = vmatmul.msk.bf16.gmra.mxu0 %vm397_vm0, %v372_v9 }
  0xbd   : > { %v455_v39 = vpop.f32.mrf.mxu0 }
  0xbe   : > { %636 = vst.msk [vmem:[#allocation2 + $0x19] sm:$0xff] %vm535_vm1, %v455_v39  ;;  %700 = vrot.lane.b32.xlu0 %v455_v39, %s6529_s25 }
  0xc0   : > { %4877 = vmatmul.msk.bf16.gmra.mxu0 %vm397_vm0, %v373_v21 }
  0xc3   : > { %v520_v40 = vpop.f32.mrf.mxu3 }
  0xc4   : > { %662 = vst.msk [vmem:[#allocation2 + $0x151] sm:$0xff] %vm535_vm1, %v520_v40  ;;  %752 = vrot.lane.b32.xlu2 %v520_v40, %s6529_s25 }
  0xc5   : > { %v457_v41 = vpop.f32.mrf.mxu0  ;;  %v957_v47 = vld [vmem:[#allocation2 + $0x19] sm:$0xff] }
  0xc6   : > { %637 = vst.msk [vmem:[#allocation2 + $0x21] sm:$0xff] %vm535_vm1, %v457_v41  ;;  %702 = vrot.lane.b32.xlu0 %v457_v41, %s6529_s25  ;;  %v925_v61 = vld [vmem:[#allocation2 + $0x18] sm:$0xff]  ;;  %v6966_v41 = vpop.permute.xlu2 %5034 }
  0xcb   : > { %v522_v45 = vpop.f32.mrf.mxu3  ;;  %v951_v59 = vld [vmem:[#allocation2 + $0x150] sm:$0xff] }
  0xcc   : > { %663 = vst.msk [vmem:[#allocation2 + $0x159] sm:$0xff] %vm535_vm1, %v522_v45  ;;  %v983_v2 = vld [vmem:[#allocation2 + $0x151] sm:$0xff] }
  0xcd   : > { %v460_v46 = vpop.f32.mrf.mxu0  ;;  %v958_v48 = vld [vmem:[#allocation2 + $0x21] sm:$0xff] }
  0xce   : > { %638 = vst.msk [vmem:[#allocation2 + $0x31] sm:$0xff] %vm535_vm1, %v460_v46  ;;  %754 = vrot.lane.b32.xlu0 %v522_v45, %s6529_s25  ;;  %704 = vrot.lane.b32.xlu1 %v460_v46, %s6529_s25  ;;  %v5063_v49 = vpack.i.bf16 %v958_v48, %v957_v47  ;;  %v895_v50 = vld [vmem:[#allocation2 + $0x1a] sm:$0xff]  ;;  %v896_v51 = vld [vmem:[#allocation2 + $0x22] sm:$0xff] }
  0xcf   : > { %v5053_v55 = vpack.i.bf16 %v896_v51, %v895_v50  ;;  %v926_v58 = vld [vmem:[#allocation2 + $0x20] sm:$0xff]  ;;  %v6979_v50 = vpop.permute.xlu0 %5039  ;;  %v321_v51 = vld [vmem:[%s6677_s15 + $0xa0] sm:$0xff] }
  0xd0   : > { %5064 = vrot.lane.b32.xlu2 %v5063_v49, %s6530_s11  ;;  %v5058_v63 = vpack.i.bf16 %v926_v58, %v925_v61  ;;  %4878 = vmatmul.msk.bf16.gmra.mxu0 %vm397_vm0, %v374_v34 }
  0xd3   : > { %v921_v52 = vld [vmem:[#allocation2 + $0x152] sm:$0xff]  ;;  %v922_v53 = vld [vmem:[#allocation2 + $0x15a] sm:$0xff]  ;;  %v525_v54 = vpop.f32.mrf.mxu3 }
  0xd4   : > { %v5078_v56 = vpack.i.bf16 %v922_v53, %v921_v52  ;;  %664 = vst.msk [vmem:[#allocation2 + $0x169] sm:$0xff] %vm535_vm1, %v525_v54  ;;  %v952_v60 = vld [vmem:[#allocation2 + $0x158] sm:$0xff] }
  0xd5   : > { %v6912_v57 = vpop.f32.mrf.mxu0  ;;  %v5083_v0 = vpack.i.bf16 %v952_v60, %v951_v59  ;;  %v984_v3 = vld [vmem:[#allocation2 + $0x159] sm:$0xff]  ;;  %v959_v11 = vld [vmem:[#allocation2 + $0x31] sm:$0xff] }
  0xd6   : > { %639 = vst.msk [vmem:[#allocation2 + $0x39] sm:$0xff] %vm535_vm1, %v6912_v57  ;;  %5049 = vrot.lane.b32.xlu0 %v5063_v49, %s6527_s17  ;;  %5054 = vrot.lane.b32.xlu1 %v5053_v55, %s6526_s28  ;;  %v5088_v5 = vpack.i.bf16 %v984_v3, %v983_v2  ;;  %v927_v27 = vld [vmem:[#allocation2 + $0x30] sm:$0xff]  ;;  %v322_v52 = vld [vmem:[%s6677_s15 + $0xa8] sm:$0xff]  ;;  %v323_v2 = vld [vmem:[%s6677_s15 + $0xb0] sm:$0xff] }
  0xd7   : > { %v375_v53 = vpack.c.bf16 %v322_v52, %v321_v51  ;;  %v324_v3 = vld [vmem:[%s6677_s15 + $0xb8] sm:$0xff] }
  0xd8   : > { %5079 = vrot.lane.b32.xlu2 %v5078_v56, %s6526_s28 }
  0xdb   : > { %v527_v62 = vpop.f32.mrf.mxu3  ;;  %v953_v29 = vld [vmem:[#allocation2 + $0x168] sm:$0xff] }
  0xdc   : > { %665 = vst.msk [vmem:[#allocation2 + $0x171] sm:$0xff] %vm535_vm1, %v527_v62  ;;  %v891_v35 = vld [vmem:[#allocation2 + $0x169] sm:$0xff] }
  0xdd   : > { %v465_v1 = vpop.f32.mrf.mxu0  ;;  %v960_v10 = vld [vmem:[#allocation2 + $0x39] sm:$0xff] }
  0xde   : > { %5069 = vrot.lane.b32.xlu0 %v5053_v55, %s6531_s21  ;;  %5059 = vrot.lane.b32.xlu1 %v5058_v63, %s6532_s6  ;;  %640 = vst.msk [vmem:[#allocation2 + $0x49] sm:$0xff] %vm535_vm1, %v465_v1  ;;  %v5118_v13 = vpack.i.bf16 %v960_v10, %v959_v11  ;;  %v897_v16 = vld [vmem:[#allocation2 + $0x32] sm:$0xff]  ;;  %v898_v17 = vld [vmem:[#allocation2 + $0x3a] sm:$0xff] }
  0xdf   : > { %v5108_v18 = vpack.i.bf16 %v898_v17, %v897_v16  ;;  %v928_v25 = vld [vmem:[#allocation2 + $0x38] sm:$0xff] }
  0xe0   : > { %5084 = vrot.lane.b32.xlu2 %v5083_v0, %s6532_s6  ;;  %v5113_v28 = vpack.i.bf16 %v928_v25, %v927_v27  ;;  %4879 = vmatmul.msk.bf16.gmra.mxu0 %vm397_vm0, %v375_v53 }
  0xe3   : > { %v530_v4 = vpop.f32.mrf.mxu3  ;;  %v923_v23 = vld [vmem:[#allocation2 + $0x16a] sm:$0xff]  ;;  %v924_v24 = vld [vmem:[#allocation2 + $0x172] sm:$0xff] }
  0xe4   : > { %666 = vst.msk [vmem:[#allocation2 + $0x181] sm:$0xff] %vm535_vm1, %v530_v4  ;;  %v5143_v26 = vpack.i.bf16 %v924_v24, %v923_v23  ;;  %v954_v30 = vld [vmem:[#allocation2 + $0x170] sm:$0xff]  ;;  %v326_v24 = vld [vmem:[%s6677_s15 + $0xc8] sm:$0xff] }
  0xe5   : > { %v6925_v6 = vpop.f32.mrf.mxu0  ;;  %v5148_v31 = vpack.i.bf16 %v954_v30, %v953_v29  ;;  %v892_v36 = vld [vmem:[#allocation2 + $0x171] sm:$0xff]  ;;  %v929_v42 = vld [vmem:[#allocation2 + $0x48] sm:$0xff] }
  0xe6   : > { %5089 = vrot.lane.b32.xlu0 %v5088_v5, %s6530_s11  ;;  %756 = vrot.lane.b32.xlu1 %v525_v54, %s6529_s25  ;;  %641 = vst.msk [vmem:[#allocation2 + $0x51] sm:$0xff] %vm535_vm1, %v6925_v6  ;;  %v5138_v37 = vpack.i.bf16 %v892_v36, %v891_v35  ;;  %v1056_v46 = vld [vmem:[#allocation2 + $0x49] sm:$0xff] }
  0xe7   : > { %v325_v23 = vld [vmem:[%s6677_s15 + $0xc0] sm:$0xff]  ;;  %s6539_s15 = smov 104  }
  0xe8   : > { %758 = vrot.lane.b32.xlu2 %v527_v62, %s6529_s25  ;;  %v377_v25 = vpack.c.bf16 %v326_v24, %v325_v23 }
  0xeb   : > { %v6935_v12 = vpop.f32.mrf.mxu3  ;;  %v1050_v60 = vld [vmem:[#allocation2 + $0x180] sm:$0xff] }
  0xec   : > { %667 = vst.msk [vmem:[#allocation2 + $0x189] sm:$0xff] %vm535_vm1, %v6935_v12  ;;  %v987_v17 = vld [vmem:[#allocation2 + $0x181] sm:$0xff] }
  0xed   : > { %v470_v15 = vpop.f32.mrf.mxu0  ;;  %v899_v38 = vld [vmem:[#allocation2 + $0x4a] sm:$0xff]  ;;  %v900_v39 = vld [vmem:[#allocation2 + $0x52] sm:$0xff] }
  0xee   : > { %5074 = vrot.lane.b32.xlu1 %v5088_v5, %s6527_s17  ;;  %5119 = vrot.lane.b32.xlu0 %v5118_v13, %s6530_s11  ;;  %642 = vst.msk [vmem:[#allocation2 + $0x61] sm:$0xff] %vm535_vm1, %v470_v15  ;;  %v5173_v40 = vpack.i.bf16 %v900_v39, %v899_v38  ;;  %v930_v43 = vld [vmem:[#allocation2 + $0x50] sm:$0xff] }
  0xef   : > { %v5178_v44 = vpack.i.bf16 %v930_v43, %v929_v42  ;;  %v1057_v47 = vld [vmem:[#allocation2 + $0x51] sm:$0xff] }
  0xf0   : > { %708 = vrot.lane.b32.xlu2 %v465_v1, %s6529_s25  ;;  %v5198_v48 = vpack.i.bf16 %v1057_v47, %v1056_v46 }
  0xf3   : > { %v1019_v54 = vld [vmem:[#allocation2 + $0x182] sm:$0xff]  ;;  %v1020_v55 = vld [vmem:[#allocation2 + $0x18a] sm:$0xff] }
  0xf4   : > { %v1051_v61 = vld [vmem:[#allocation2 + $0x188] sm:$0xff] }
  0xf5   : > { %v6948_v22 = vpop.f32.mrf.mxu0  ;;  %v5218_v63 = vpack.i.bf16 %v1051_v61, %v1050_v60 }
  0xf6   : > { %5094 = vrot.lane.b32.xlu1 %v5078_v56, %s6531_s21  ;;  %760 = vrot.lane.b32.xlu0 %v530_v4, %s6529_s25  ;;  %643 = vst.msk [vmem:[#allocation2 + $0x69] sm:$0xff] %vm535_vm1, %v6948_v22  ;;  %v376_v4 = vpack.c.bf16 %v324_v3, %v323_v2 }
  0xf8   : > { %5109 = vrot.lane.b32.xlu2 %v5108_v18, %s6526_s28  ;;  %4880 = vmatmul.msk.bf16.gmra.mxu0 %vm397_vm0, %v376_v4 }
  0xfd   : > { %v6975_v49 = vpop.f32.mrf.mxu0  ;;  %v870_v7 = vld [vmem:[#allocation2 + $0x69] sm:$0xff] }
  0xfe   : > { %5099 = vrot.lane.b32.xlu1 %v5083_v0, %s6528_s24  ;;  %5144 = vrot.lane.b32.xlu0 %v5143_v26, %s6526_s28  ;;  %644 = vst.msk [vmem:[#allocation2 + $0x79] sm:$0xff] %vm535_vm1, %v6975_v49  ;;  %v1027_v29 = vld [vmem:[#allocation2 + $0x68] sm:$0xff] }
 0x100   : > { %5114 = vrot.lane.b32.xlu2 %v5113_v28, %s6532_s6 }
 0x105   : > { %v6990_v58 = vpop.f32.mrf.mxu0  ;;  %v965_v35 = vld [vmem:[#allocation2 + $0x79] sm:$0xff] }
 0x106   : > { %706 = vrot.lane.b32.xlu1 %v6912_v57, %s6529_s25  ;;  %5149 = vrot.lane.b32.xlu0 %v5148_v31, %s6532_s6  ;;  %v5213_v57 = vpack.i.bf16 %v1020_v55, %v1019_v54  ;;  %645 = vst.msk [vmem:[#allocation2 + $0x81] sm:$0xff] %vm535_vm1, %v6990_v58  ;;  %v7005_v1 = vpop.permute.xlu1 %5044 }
 0x108   : > { %5134 = vrot.lane.b32.xlu2 %v5118_v13, %s6533_s12  ;;  %4881 = vmatmul.msk.bf16.gmra.mxu0 %vm397_vm0, %v377_v25 }
 0x10d   : > { %v7001_v0 = vpop.f32.mrf.mxu0  ;;  %v966_v36 = vld [vmem:[#allocation2 + $0x81] sm:$0xff] }
 0x10e   : > { %5104 = vrot.lane.b32.xlu1 %v5118_v13, %s6527_s17  ;;  %712 = vrot.lane.b32.xlu0 %v470_v15, %s6529_s25  ;;  %646 = vst.msk [vmem:[#allocation2 + $0x91] sm:$0xff] %vm535_vm1, %v7001_v0  ;;  %v995_v13 = vld [vmem:[#allocation2 + $0x62] sm:$0xff]  ;;  %v996_v15 = vld [vmem:[#allocation2 + $0x6a] sm:$0xff]  ;;  %v903_v39 = vld [vmem:[#allocation2 + $0x7a] sm:$0xff]  ;;  %v5273_v43 = vpack.i.bf16 %v966_v36, %v965_v35 }
 0x10f   : > { %v5243_v19 = vpack.i.bf16 %v996_v15, %v995_v13 }
 0x110   : > { %5139 = vrot.lane.b32.xlu2 %v5138_v37, %s6527_s17 }
 0x115   : > { %v7016_v10 = vpop.f32.mrf.mxu0  ;;  %v873_v4 = vld [vmem:[#allocation2 + $0x91] sm:$0xff] }
 0x116   : > { %5124 = vrot.lane.b32.xlu1 %v5108_v18, %s6531_s21  ;;  %5174 = vrot.lane.b32.xlu0 %v5173_v40, %s6526_s28  ;;  %647 = vst.msk [vmem:[#allocation2 + $0x99] sm:$0xff] %vm535_vm1, %v7016_v10  ;;  %v988_v18 = vld [vmem:[#allocation2 + $0x189] sm:$0xff] }
 0x117   : > { %v5208_v20 = vpack.i.bf16 %v988_v18, %v987_v17 }
 0x118   : > { %5159 = vrot.lane.b32.xlu2 %v5143_v26, %s6531_s21 }
 0x11d   : > { %v485_v21 = vpop.f32.mrf.mxu0  ;;  %v905_v53 = vld [vmem:[#allocation2 + $0x92] sm:$0xff]  ;;  %v906_v54 = vld [vmem:[#allocation2 + $0x9a] sm:$0xff] }
 0x11e   : > { %5129 = vrot.lane.b32.xlu1 %v5113_v28, %s6528_s24  ;;  %5179 = vrot.lane.b32.xlu0 %v5178_v44, %s6532_s6  ;;  %v753_v45 = vpop.permute.xlu2 %752  ;;  %648 = vst.msk [vmem:[#allocation2 + $0xa9] sm:$0xff] %vm535_vm1, %v485_v21  ;;  %v1026_v28 = vld [vmem:[#allocation2 + $0x60] sm:$0xff]  ;;  %v936_v2 = vld [vmem:[#allocation2 + $0x98] sm:$0xff] }
 0x11f   : > { %823 = vst.msk [vmem:[#allocation3 + $0x16a] sm:$0xff] %vm535_vm1, %v753_v45  ;;  %v5248_v30 = vpack.i.bf16 %v1027_v29, %v1026_v28 }
 0x120   : > { %5164 = vrot.lane.b32.xlu2 %v5148_v31, %s6528_s24 }
 0x125   : > { %v7049_v34 = vpop.f32.mrf.mxu0 }
 0x126   : > { %5154 = vrot.lane.b32.xlu1 %v5138_v37, %s6530_s11  ;;  %5199 = vrot.lane.b32.xlu0 %v5198_v48, %s6533_s12  ;;  %649 = vst.msk [vmem:[#allocation2 + $0xb1] sm:$0xff] %vm535_vm1, %v7049_v34 }
 0x128   : > { %710 = vrot.lane.b32.xlu2 %v6925_v6, %s6529_s25  ;;  %v869_v6 = vld [vmem:[#allocation2 + $0x61] sm:$0xff] }
 0x129   : > { %v5223_v9 = vpack.i.bf16 %v870_v7, %v869_v6 }
 0x12a   : > { %v6988_v56 = vpop.permute.xlu2 %5064 }
 0x12d   : > { %v7074_v52 = vpop.f32.mrf.mxu0 }
 0x12e   : > { %762 = vrot.lane.b32.xlu1 %v6935_v12, %s6529_s25  ;;  %5214 = vrot.lane.b32.xlu0 %v5213_v57, %s6531_s21  ;;  %650 = vst.msk [vmem:[#allocation2 + $0xc1] sm:$0xff] %vm535_vm1, %v7074_v52 }
 0x130   : > { %v701_v59 = vpop.permute.xlu0 %700  ;;  %5169 = vrot.lane.b32.xlu2 %v5198_v48, %s6527_s17 }
 0x131   : > { %797 = vst.msk [vmem:[#allocation3 + $0x32] sm:$0xff] %vm535_vm1, %v701_v59  ;;  %v5293_v59 = vpack.i.bf16 %v906_v54, %v905_v53 }
 0x132   : > { %v6999_v62 = vpop.permute.xlu2 %5079 }
 0x135   : > { %v492_v60 = vpop.f32.mrf.mxu0 }
 0x136   : > { %5184 = vrot.lane.b32.xlu1 %v5198_v48, %s6530_s11  ;;  %5219 = vrot.lane.b32.xlu0 %v5218_v63, %s6528_s24  ;;  %v933_v48 = vld [vmem:[#allocation2 + $0x78] sm:$0xff]  ;;  %651 = vst.msk [vmem:[#allocation2 + $0xc9] sm:$0xff] %vm535_vm1, %v492_v60 }
 0x138   : > { %v703_v5 = vpop.permute.xlu0 %702  ;;  %5189 = vrot.lane.b32.xlu2 %v5173_v40, %s6531_s21  ;;  %v904_v40 = vld [vmem:[#allocation2 + $0x82] sm:$0xff] }
 0x139   : > { %798 = vst.msk [vmem:[#allocation3 + $0x3a] sm:$0xff] %vm535_vm1, %v703_v5  ;;  %v874_v5 = vld [vmem:[#allocation2 + $0x99] sm:$0xff] }
 0x13a   : > { %v7014_v8 = vpop.permute.xlu2 %5084  ;;  %v7097_v7 = vpack.i.bf16 %v874_v5, %v873_v4 }
 0x13d   : > { %v940_v4 = vld [vmem:[#allocation2 + $0xc8] sm:$0xff] }
 0x13e   : > { %5204 = vrot.lane.b32.xlu1 %v5218_v63, %s6532_s6  ;;  %5224 = vrot.lane.b32.xlu0 %v5223_v9, %s6527_s17 }
 0x140   : > { %v755_v11 = vpop.permute.xlu0 %754  ;;  %v705_v12 = vpop.permute.xlu1 %704  ;;  %5194 = vrot.lane.b32.xlu2 %v5178_v44, %s6528_s24  ;;  %v5263_v44 = vpack.i.bf16 %v904_v40, %v903_v39 }
 0x141   : > { %824 = vst.msk [vmem:[#allocation3 + $0x172] sm:$0xff] %vm535_vm1, %v755_v11  ;;  %v875_v11 = vld [vmem:[#allocation2 + $0xa9] sm:$0xff] }
 0x142   : > { %799 = vst.msk [vmem:[#allocation3 + $0x4a] sm:$0xff] %vm535_vm1, %v705_v12  ;;  %v759_v16 = vpop.permute.xlu2 %758  ;;  %v876_v12 = vld [vmem:[#allocation2 + $0xb1] sm:$0xff] }
 0x143   : > { %826 = vst.msk [vmem:[#allocation3 + $0x18a] sm:$0xff] %vm535_vm1, %v759_v16  ;;  %v5318_v16 = vpack.i.bf16 %v876_v12, %v875_v11 }
 0x146   : > { %714 = vrot.lane.b32.xlu1 %v6948_v22, %s6529_s25  ;;  %5244 = vrot.lane.b32.xlu0 %v5243_v19, %s6531_s21 }
 0x148   : > { %v7032_v26 = vpop.permute.xlu0 %5049  ;;  %v7034_v27 = vpop.permute.xlu1 %5054  ;;  %5209 = vrot.lane.b32.xlu2 %v5208_v20, %s6530_s11  ;;  %v1001_v20 = vld [vmem:[#allocation2 + $0xaa] sm:$0xff] }
 0x14a   : > { %v709_v22 = vpop.permute.xlu2 %708 }
 0x14b   : > { %801 = vst.msk [vmem:[#allocation3 + $0x62] sm:$0xff] %vm535_vm1, %v709_v22  ;;  %v1032_v22 = vld [vmem:[#allocation2 + $0xa8] sm:$0xff] }
 0x14e   : > { %5229 = vrot.lane.b32.xlu1 %v5243_v19, %s6526_s28  ;;  %5249 = vrot.lane.b32.xlu0 %v5248_v30, %s6528_s24 }
 0x150   : > { %v7041_v31 = vpop.permute.xlu0 %5069  ;;  %v7043_v32 = vpop.permute.xlu1 %5059  ;;  %716 = vrot.lane.b32.xlu2 %v6975_v49, %s6529_s25  ;;  %v934_v49 = vld [vmem:[#allocation2 + $0x80] sm:$0xff] }
 0x151   : > { %v5268_v51 = vpack.i.bf16 %v934_v49, %v933_v48 }
 0x152   : > { %v7047_v33 = vpop.permute.xlu2 %5109 }
 0x156   : > { %5234 = vrot.lane.b32.xlu1 %v5248_v30, %s6532_s6  ;;  %718 = vrot.lane.b32.xlu0 %v6990_v58, %s6529_s25  ;;  %v1033_v30 = vld [vmem:[#allocation2 + $0xb0] sm:$0xff] }
 0x157   : > { %v5343_v36 = vpack.i.bf16 %v1033_v30, %v1032_v22 }
 0x158   : > { %v7056_v37 = vpop.permute.xlu0 %5089  ;;  %v757_v38 = vpop.permute.xlu1 %756  ;;  %5239 = vrot.lane.b32.xlu2 %v5223_v9, %s6530_s11 }
 0x159   : > { %825 = vst.msk [vmem:[#allocation3 + $0x182] sm:$0xff] %vm535_vm1, %v757_v38 }
 0x15a   : > { %v7060_v42 = vpop.permute.xlu2 %5114 }
 0x15e   : > { %5254 = vrot.lane.b32.xlu1 %v5223_v9, %s6533_s12  ;;  %5274 = vrot.lane.b32.xlu0 %v5273_v43, %s6530_s11  ;;  %v495_v9 = vpop.f32.mrf.mxu0 }
 0x15f   : > { %652 = vst.msk [vmem:[#allocation2 + $0xd9] sm:$0xff] %vm535_vm1, %v495_v9 }
 0x160   : > { %v7064_v45 = vpop.permute.xlu1 %5074  ;;  %v7066_v46 = vpop.permute.xlu0 %5119  ;;  %5264 = vrot.lane.b32.xlu2 %v5263_v44, %s6526_s28 }
 0x162   : > { %v7069_v47 = vpop.permute.xlu2 %5134 }
 0x166   : > { %720 = vrot.lane.b32.xlu1 %v7001_v0, %s6529_s25  ;;  %724 = vrot.lane.b32.xlu0 %v485_v21, %s6529_s25  ;;  %v935_v0 = vld [vmem:[#allocation2 + $0x90] sm:$0xff]  ;;  %v7109_v17 = vpop.f32.mrf.mxu0  ;;  %v879_v30 = vld [vmem:[#allocation2 + $0xd9] sm:$0xff] }
 0x167   : > { %v5298_v6 = vpack.i.bf16 %v936_v2, %v935_v0  ;;  %653 = vst.msk [vmem:[#allocation2 + $0xe1] sm:$0xff] %vm535_vm1, %v7109_v17  ;;  %v1002_v21 = vld [vmem:[#allocation2 + $0xb2] sm:$0xff]  ;;  %v939_v2 = vld [vmem:[#allocation2 + $0xc0] sm:$0xff] }
 0x168   : > { %v7078_v55 = vpop.permute.xlu1 %5094  ;;  %v761_v57 = vpop.permute.xlu0 %760  ;;  %5269 = vrot.lane.b32.xlu2 %v5268_v51, %s6532_s6  ;;  %v5338_v24 = vpack.i.bf16 %v1002_v21, %v1001_v20  ;;  %v5358_v5 = vpack.i.bf16 %v940_v4, %v939_v2 }
 0x169   : > { %827 = vst.msk [vmem:[#allocation3 + $0x19a] sm:$0xff] %vm535_vm1, %v761_v57 }
 0x16a   : > { %v7082_v58 = vpop.permute.xlu2 %5139 }
 0x16e   : > { %5259 = vrot.lane.b32.xlu1 %v5273_v43, %s6527_s17  ;;  %5294 = vrot.lane.b32.xlu0 %v5293_v59, %s6526_s28  ;;  %v500_v25 = vpop.f32.mrf.mxu0  ;;  %v911_v11 = vld [vmem:[#allocation2 + $0xda] sm:$0xff]  ;;  %v912_v12 = vld [vmem:[#allocation2 + $0xe2] sm:$0xff] }
 0x16f   : > { %654 = vst.msk [vmem:[#allocation2 + $0xf1] sm:$0xff] %vm535_vm1, %v500_v25  ;;  %v5383_v20 = vpack.i.bf16 %v912_v12, %v911_v11 }
 0x170   : > { %v7087_v61 = vpop.permute.xlu1 %5099  ;;  %v7089_v63 = vpop.permute.xlu0 %5144  ;;  %722 = vrot.lane.b32.xlu2 %v7016_v10, %s6529_s25 }
 0x171   : > { %9749 = vst [vmem:[#allocation10_spill] sm:$0xff] %v7087_v61 }
 0x172   : > { %v7093_v3 = vpop.permute.xlu2 %5159 }
 0x176   : > { %5279 = vrot.lane.b32.xlu1 %v5263_v44, %s6531_s21  ;;  %5299 = vrot.lane.b32.xlu0 %v5298_v6, %s6532_s6  ;;  %v7140_v43 = vpop.f32.mrf.mxu0  ;;  %v972_v44 = vld [vmem:[#allocation2 + $0xc9] sm:$0xff] }
 0x177   : > { %655 = vst.msk [vmem:[#allocation2 + $0xf9] sm:$0xff] %vm535_vm1, %v7140_v43 }
 0x178   : > { %v707_v13 = vpop.permute.xlu1 %706  ;;  %v7100_v10 = vpop.permute.xlu0 %5149  ;;  %5289 = vrot.lane.b32.xlu2 %v7097_v7, %s6527_s17 }
 0x179   : > { %800 = vst.msk [vmem:[#allocation3 + $0x52] sm:$0xff] %vm535_vm1, %v707_v13 }
 0x17a   : > { %v7105_v15 = vpop.permute.xlu2 %5164 }
 0x17e   : > { %5284 = vrot.lane.b32.xlu1 %v5268_v51, %s6528_s24  ;;  %5319 = vrot.lane.b32.xlu0 %v5318_v16, %s6527_s17  ;;  %v909_v51 = vld [vmem:[#allocation2 + $0xc2] sm:$0xff]  ;;  %v1039_v14 = vld [vmem:[#allocation2 + $0xf8] sm:$0xff] }
 0x180   : > { %v7113_v18 = vpop.permute.xlu1 %5104  ;;  %v713_v19 = vpop.permute.xlu0 %712  ;;  %5309 = vrot.lane.b32.xlu2 %v5293_v59, %s6531_s21 }
 0x181   : > { %803 = vst.msk [vmem:[#allocation3 + $0x7a] sm:$0xff] %vm535_vm1, %v713_v19 }
 0x182   : > { %v711_v23 = vpop.permute.xlu2 %710 }
 0x183   : > { %802 = vst.msk [vmem:[#allocation3 + $0x6a] sm:$0xff] %vm535_vm1, %v711_v23 }
 0x186   : > { %5304 = vrot.lane.b32.xlu1 %v7097_v7, %s6530_s11  ;;  %5339 = vrot.lane.b32.xlu0 %v5338_v24, %s6531_s21 }
 0x188   : > { %v7122_v28 = vpop.permute.xlu1 %5124  ;;  %v7124_v29 = vpop.permute.xlu0 %5174  ;;  %5314 = vrot.lane.b32.xlu2 %v5298_v6, %s6528_s24 }
 0x189   : > { %v7169_v6 = vpop.f32.mrf.mxu0 }
 0x18a   : > { %v7127_v35 = vpop.permute.xlu2 %5169  ;;  %656 = vst.msk [vmem:[#allocation2 + $0x109] sm:$0xff] %vm535_vm1, %v7169_v6  ;;  %v1190_v61 = vld [vmem:[#allocation3 + $0x64] sm:$0xff] }
 0x18e   : > { %726 = vrot.lane.b32.xlu1 %v7049_v34, %s6529_s25  ;;  %5344 = vrot.lane.b32.xlu0 %v5343_v36, %s6528_s24  ;;  %v971_v34 = vld [vmem:[#allocation2 + $0xc1] sm:$0xff] }
 0x18f   : > { %v7153_v54 = vpack.i.bf16 %v972_v44, %v971_v34 }
 0x190   : > { %v7132_v38 = vpop.permute.xlu1 %5129  ;;  %v7134_v39 = vpop.permute.xlu0 %5179  ;;  %728 = vrot.lane.b32.xlu2 %v7074_v52, %s6529_s25  ;;  %v910_v52 = vld [vmem:[#allocation2 + $0xca] sm:$0xff] }
 0x191   : > { %9750 = vst [vmem:[#allocation11_spill] sm:$0xff] %v7134_v39  ;;  %v7155_v57 = vpack.i.bf16 %v910_v52, %v909_v51  ;;  %v881_v52 = vld [vmem:[#allocation2 + $0xf1] sm:$0xff] }
 0x192   : > { %v7138_v40 = vpop.permute.xlu2 %5189 }
 0x193   : > { %9751 = vst [vmem:[#allocation12_spill] sm:$0xff] %v7138_v40 }
 0x196   : > { %5324 = vrot.lane.b32.xlu1 %v5338_v24, %s6526_s28  ;;  %730 = vrot.lane.b32.xlu0 %v492_v60, %s6529_s25  ;;  %v941_v24 = vld [vmem:[#allocation2 + $0xd8] sm:$0xff] }
 0x198   : > { %v7146_v48 = vpop.permute.xlu1 %5154  ;;  %v7148_v49 = vpop.permute.xlu0 %5199  ;;  %5334 = vrot.lane.b32.xlu2 %v5318_v16, %s6530_s11 }
 0x199   : > { %9752 = vst [vmem:[#allocation13_spill] sm:$0xff] %v7148_v49 }
 0x19a   : > { %v7151_v53 = vpop.permute.xlu2 %5194 }
 0x19b   : > { %9753 = vst [vmem:[#allocation14_spill] sm:$0xff] %v7151_v53 }
 0x19e   : > { %5329 = vrot.lane.b32.xlu1 %v5343_v36, %s6532_s6  ;;  %5364 = vrot.lane.b32.xlu0 %v7153_v54, %s6530_s11  ;;  %v880_v36 = vld [vmem:[#allocation2 + $0xe1] sm:$0xff] }
 0x19f   : > { %v7194_v44 = vpack.i.bf16 %v880_v36, %v879_v30  ;;  %v1008_v30 = vld [vmem:[#allocation2 + $0xfa] sm:$0xff] }
 0x1a0   : > { %v763_v59 = vpop.permute.xlu1 %762  ;;  %v7160_v60 = vpop.permute.xlu0 %5214  ;;  %5354 = vrot.lane.b32.xlu2 %v7155_v57, %s6526_s28 }
 0x1a1   : > { %828 = vst.msk [vmem:[#allocation3 + $0x1a2] sm:$0xff] %vm535_vm1, %v763_v59  ;;  %v882_v59 = vld [vmem:[#allocation2 + $0xf9] sm:$0xff] }
 0x1a2   : > { %v7165_v0 = vpop.permute.xlu2 %5209  ;;  %v7207_v11 = vpack.i.bf16 %v882_v59, %v881_v52 }
 0x1a6   : > { %732 = vrot.lane.b32.xlu1 %v495_v9, %s6529_s25  ;;  %736 = vrot.lane.b32.xlu0 %v500_v25, %s6529_s25  ;;  %v507_v9 = vpop.f32.mrf.mxu0  ;;  %v942_v25 = vld [vmem:[#allocation2 + $0xe0] sm:$0xff] }
 0x1a7   : > { %657 = vst.msk [vmem:[#allocation2 + $0x111] sm:$0xff] %vm535_vm1, %v507_v9  ;;  %v5388_v34 = vpack.i.bf16 %v942_v25, %v941_v24  ;;  %v1007_v25 = vld [vmem:[#allocation2 + $0xf2] sm:$0xff] }
 0x1a8   : > { %v7173_v13 = vpop.permute.xlu1 %5184  ;;  %v7175_v16 = vpop.permute.xlu0 %5219  ;;  %5359 = vrot.lane.b32.xlu2 %v5358_v5, %s6532_s6  ;;  %v7223_v52 = vpack.i.bf16 %v1008_v30, %v1007_v25 }
 0x1a9   : > { %9754 = vst [vmem:[#allocation15_spill] sm:$0xff] %v7173_v13 }
 0x1aa   : > { %v717_v19 = vpop.permute.xlu2 %716 }
 0x1ab   : > { %805 = vst.msk [vmem:[#allocation3 + $0x92] sm:$0xff] %vm535_vm1, %v717_v19 }
 0x1ae   : > { %5349 = vrot.lane.b32.xlu1 %v7153_v54, %s6527_s17  ;;  %5384 = vrot.lane.b32.xlu0 %v5383_v20, %s6526_s28  ;;  %v7196_v51 = vpop.f32.mrf.mxu0 }
 0x1af   : > { %658 = vst.msk [vmem:[#allocation2 + $0x121] sm:$0xff] %vm535_vm1, %v7196_v51 }
 0x1b0   : > { %v7183_v21 = vpop.permute.xlu1 %5204  ;;  %v7185_v23 = vpop.permute.xlu0 %5224  ;;  %734 = vrot.lane.b32.xlu2 %v7109_v17, %s6529_s25 }
 0x1b2   : > { %v7189_v22 = vpop.permute.xlu2 %5239 }
 0x1b6   : > { %5369 = vrot.lane.b32.xlu1 %v7155_v57, %s6531_s21  ;;  %5389 = vrot.lane.b32.xlu0 %v5388_v34, %s6532_s6  ;;  %v7212_v12 = vpop.f32.mrf.mxu0 }
 0x1b7   : > { %659 = vst.msk [vmem:[#allocation2 + $0x129] sm:$0xff] %vm535_vm1, %v7212_v12 }
 0x1b8   : > { %v715_v17 = vpop.permute.xlu1 %714  ;;  %v7200_v2 = vpop.permute.xlu0 %5244  ;;  %5379 = vrot.lane.b32.xlu2 %v7194_v44, %s6527_s17 }
 0x1b9   : > { %804 = vst.msk [vmem:[#allocation3 + $0x82] sm:$0xff] %vm535_vm1, %v715_v17 }
 0x1ba   : > { %v7205_v4 = vpop.permute.xlu2 %5264 }
 0x1bb   : > { %9755 = vst [vmem:[#allocation16_spill] sm:$0xff] %v7205_v4  ;;  %v7520_v4 = vld [vmem:[#allocation3 + $0x174] sm:$0xff] }
 0x1bc   : > { %9819 = vst [vmem:[#allocation79_spill] sm:$0xff] %v7520_v4 }
 0x1be   : > { %5374 = vrot.lane.b32.xlu1 %v5358_v5, %s6528_s24  ;;  %5409 = vrot.lane.b32.xlu0 %v7207_v11, %s6527_s17  ;;  %v515_v5 = vpop.f32.mrf.mxu0 }
 0x1bf   : > { %660 = vst.msk [vmem:[#allocation2 + $0x139] sm:$0xff] %vm535_vm1, %v515_v5 }
 0x1c0   : > { %v7216_v19 = vpop.permute.xlu1 %5229  ;;  %v7218_v24 = vpop.permute.xlu0 %5249  ;;  %5399 = vrot.lane.b32.xlu2 %v5383_v20, %s6531_s21  ;;  %v1038_v20 = vld [vmem:[#allocation2 + $0xf0] sm:$0xff] }
 0x1c1   : > { %9756 = vst [vmem:[#allocation17_spill] sm:$0xff] %v7218_v24  ;;  %v5433_v30 = vpack.i.bf16 %v1039_v14, %v1038_v20  ;;  %v977_v14 = vld [vmem:[#allocation2 + $0x109] sm:$0xff] }
 0x1c2   : > { %v7221_v36 = vpop.permute.xlu2 %5269 }
 0x1c6   : > { %5394 = vrot.lane.b32.xlu1 %v7194_v44, %s6530_s11  ;;  %5429 = vrot.lane.b32.xlu0 %v7223_v52, %s6531_s21 }
 0x1c8   : > { %v7230_v59 = vpop.permute.xlu1 %5234  ;;  %v719_v17 = vpop.permute.xlu0 %718  ;;  %5404 = vrot.lane.b32.xlu2 %v5388_v34, %s6528_s24 }
 0x1c9   : > { %806 = vst.msk [vmem:[#allocation3 + $0x9a] sm:$0xff] %vm535_vm1, %v719_v17  ;;  %v7246_v17 = vpop.f32.mrf.mxu0 }
 0x1ca   : > { %v723_v25 = vpop.permute.xlu2 %722  ;;  %661 = vst.msk [vmem:[#allocation2 + $0x141] sm:$0xff] %vm535_vm1, %v7246_v17 }
 0x1cb   : > { %808 = vst.msk [vmem:[#allocation3 + $0xb2] sm:$0xff] %vm535_vm1, %v723_v25 }
 0x1ce   : > { %738 = vrot.lane.b32.xlu1 %v7140_v43, %s6529_s25  ;;  %5434 = vrot.lane.b32.xlu0 %v5433_v30, %s6528_s24  ;;  %v978_v43 = vld [vmem:[#allocation2 + $0x111] sm:$0xff] }
 0x1cf   : > { %v7259_v49 = vpack.i.bf16 %v978_v43, %v977_v14  ;;  %v918_v14 = vld [vmem:[#allocation2 + $0x12a] sm:$0xff] }
 0x1d0   : > { %v7238_v24 = vpop.permute.xlu1 %5254  ;;  %v7240_v40 = vpop.permute.xlu0 %5274  ;;  %740 = vrot.lane.b32.xlu2 %v7169_v6, %s6529_s25  ;;  %v915_v6 = vld [vmem:[#allocation2 + $0x10a] sm:$0xff] }
 0x1d1   : > { %9757 = vst [vmem:[#allocation18_spill] sm:$0xff] %v7238_v24  ;;  %v916_v24 = vld [vmem:[#allocation2 + $0x112] sm:$0xff] }
 0x1d2   : > { %9758 = vst [vmem:[#allocation19_spill] sm:$0xff] %v7240_v40  ;;  %v7244_v34 = vpop.permute.xlu2 %5289  ;;  %v7261_v53 = vpack.i.bf16 %v916_v24, %v915_v6 }
 0x1d3   : > { %9759 = vst [vmem:[#allocation20_spill] sm:$0xff] %v7244_v34 }
 0x1d6   : > { %5414 = vrot.lane.b32.xlu1 %v7223_v52, %s6526_s28  ;;  %742 = vrot.lane.b32.xlu0 %v507_v9, %s6529_s25 }
 0x1d8   : > { %v721_v20 = vpop.permute.xlu1 %720  ;;  %v725_v25 = vpop.permute.xlu0 %724  ;;  %5424 = vrot.lane.b32.xlu2 %v7207_v11, %s6530_s11 }
 0x1d9   : > { %807 = vst.msk [vmem:[#allocation3 + $0xaa] sm:$0xff] %vm535_vm1, %v721_v20 }
 0x1da   : > { %809 = vst.msk [vmem:[#allocation3 + $0xc2] sm:$0xff] %vm535_vm1, %v725_v25  ;;  %v7257_v13 = vpop.permute.xlu2 %5309  ;;  %v945_v25 = vld [vmem:[#allocation2 + $0x108] sm:$0xff] }
 0x1db   : > { %9760 = vst [vmem:[#allocation21_spill] sm:$0xff] %v7257_v13  ;;  %v946_v13 = vld [vmem:[#allocation2 + $0x110] sm:$0xff] }
 0x1dc   : > { %v5448_v24 = vpack.i.bf16 %v946_v13, %v945_v25  ;;  %v948_v25 = vld [vmem:[#allocation2 + $0x128] sm:$0xff] }
 0x1de   : > { %5419 = vrot.lane.b32.xlu1 %v5433_v30, %s6532_s6  ;;  %5454 = vrot.lane.b32.xlu0 %v7259_v49, %s6530_s11  ;;  %v917_v30 = vld [vmem:[#allocation2 + $0x122] sm:$0xff] }
 0x1e0   : > { %v7266_v9 = vpop.permute.xlu1 %5259  ;;  %v7268_v39 = vpop.permute.xlu0 %5294  ;;  %5444 = vrot.lane.b32.xlu2 %v7261_v53, %s6526_s28 }
 0x1e1   : > { %9761 = vst [vmem:[#allocation22_spill] sm:$0xff] %v7266_v9  ;;  %v7282_v9 = vpack.i.bf16 %v918_v14, %v917_v30  ;;  %v885_v30 = vld [vmem:[#allocation2 + $0x121] sm:$0xff]  ;;  %v886_v14 = vld [vmem:[#allocation2 + $0x129] sm:$0xff] }
 0x1e2   : > { %9762 = vst [vmem:[#allocation23_spill] sm:$0xff] %v7268_v39  ;;  %v7272_v20 = vpop.permute.xlu2 %5314 }
 0x1e3   : > { %9763 = vst [vmem:[#allocation24_spill] sm:$0xff] %v7272_v20 }
 0x1e6   : > { %744 = vrot.lane.b32.xlu1 %v7196_v51, %s6529_s25  ;;  %748 = vrot.lane.b32.xlu0 %v515_v5, %s6529_s25  ;;  %v947_v5 = vld [vmem:[#allocation2 + $0x120] sm:$0xff] }
 0x1e8   : > { %v7277_v43 = vpop.permute.xlu1 %5279  ;;  %v7279_v6 = vpop.permute.xlu0 %5299  ;;  %5449 = vrot.lane.b32.xlu2 %v5448_v24, %s6532_s6 }
 0x1e9   : > { %9764 = vst [vmem:[#allocation25_spill] sm:$0xff] %v7277_v43  ;;  %v887_v43 = vld [vmem:[#allocation2 + $0x139] sm:$0xff] }
 0x1ea   : > { %9765 = vst [vmem:[#allocation26_spill] sm:$0xff] %v7279_v6  ;;  %v729_v39 = vpop.permute.xlu2 %728  ;;  %v5468_v6 = vpack.i.bf16 %v886_v14, %v885_v30  ;;  %v1013_v30 = vld [vmem:[#allocation2 + $0x13a] sm:$0xff]  ;;  %v1014_v14 = vld [vmem:[#allocation2 + $0x142] sm:$0xff] }
 0x1eb   : > { %811 = vst.msk [vmem:[#allocation3 + $0xda] sm:$0xff] %vm535_vm1, %v729_v39  ;;  %v5478_v39 = vpack.i.bf16 %v948_v25, %v947_v5 }
 0x1ee   : > { %5439 = vrot.lane.b32.xlu1 %v7259_v49, %s6527_s17  ;;  %5474 = vrot.lane.b32.xlu0 %v7282_v9, %s6526_s28 }
 0x1f0   : > { %v7289_v13 = vpop.permute.xlu1 %5284  ;;  %v7291_v51 = vpop.permute.xlu0 %5319  ;;  %746 = vrot.lane.b32.xlu2 %v7212_v12, %s6529_s25 }
 0x1f1   : > { %9766 = vst [vmem:[#allocation27_spill] sm:$0xff] %v7289_v13  ;;  %v888_v13 = vld [vmem:[#allocation2 + $0x141] sm:$0xff] }
 0x1f2   : > { %9767 = vst [vmem:[#allocation28_spill] sm:$0xff] %v7291_v51  ;;  %v7295_v20 = vpop.permute.xlu2 %5334 }
 0x1f3   : > { %9768 = vst [vmem:[#allocation29_spill] sm:$0xff] %v7295_v20  ;;  %v7307_v20 = vpack.i.bf16 %v888_v13, %v887_v43  ;;  %v1044_v13 = vld [vmem:[#allocation2 + $0x138] sm:$0xff] }
 0x1f6   : > { %5459 = vrot.lane.b32.xlu1 %v7261_v53, %s6531_s21  ;;  %5479 = vrot.lane.b32.xlu0 %v5478_v39, %s6532_s6 }
 0x1f8   : > { %v7300_v34 = vpop.permute.xlu1 %5304  ;;  %v7302_v51 = vpop.permute.xlu0 %5339  ;;  %5469 = vrot.lane.b32.xlu2 %v5468_v6, %s6527_s17 }
 0x1f9   : > { %9769 = vst [vmem:[#allocation30_spill] sm:$0xff] %v7300_v34 }
 0x1fa   : > { %9770 = vst [vmem:[#allocation31_spill] sm:$0xff] %v7302_v51  ;;  %v7305_v12 = vpop.permute.xlu2 %5354 }
 0x1fb   : > { %9771 = vst [vmem:[#allocation32_spill] sm:$0xff] %v7305_v12  ;;  %v7319_v12 = vpack.i.bf16 %v1014_v14, %v1013_v30  ;;  %v1061_v30 = vld [vmem:[#allocation2 + $0x81] sm:$0xff] }
 0x1fe   : > { %5464 = vrot.lane.b32.xlu1 %v5448_v24, %s6528_s24  ;;  %5504 = vrot.lane.b32.xlu0 %v7307_v20, %s6527_s17 }
 0x200   : > { %v727_v5 = vpop.permute.xlu1 %726  ;;  %v7312_v25 = vpop.permute.xlu0 %5344  ;;  %5489 = vrot.lane.b32.xlu2 %v7282_v9, %s6531_s21 }
 0x201   : > { %9772 = vst [vmem:[#allocation33_spill] sm:$0xff] %v7312_v25 }
 0x202   : > { %810 = vst.msk [vmem:[#allocation3 + $0xca] sm:$0xff] %vm535_vm1, %v727_v5  ;;  %v7317_v51 = vpop.permute.xlu2 %5359  ;;  %v1045_v5 = vld [vmem:[#allocation2 + $0x140] sm:$0xff] }
 0x203   : > { %9773 = vst [vmem:[#allocation34_spill] sm:$0xff] %v7317_v51  ;;  %v1060_v51 = vld [vmem:[#allocation2 + $0x79] sm:$0xff]  ;;  %v5528_v14 = vpack.i.bf16 %v1045_v5, %v1044_v13  ;;  %v1065_v13 = vld [vmem:[#allocation2 + $0xb1] sm:$0xff] }
 0x204   : > { %v5498_v34 = vpack.i.bf16 %v1061_v30, %v1060_v51 }
 0x206   : > { %5484 = vrot.lane.b32.xlu1 %v5468_v6, %s6530_s11  ;;  %5524 = vrot.lane.b32.xlu0 %v7319_v12, %s6531_s21 }
 0x208   : > { %v7324_v24 = vpop.permute.xlu1 %5324  ;;  %v731_v43 = vpop.permute.xlu0 %730  ;;  %5494 = vrot.lane.b32.xlu2 %v5478_v39, %s6528_s24 }
 0x209   : > { %9774 = vst [vmem:[#allocation35_spill] sm:$0xff] %v7324_v24 }
 0x20a   : > { %812 = vst.msk [vmem:[#allocation3 + $0xe2] sm:$0xff] %vm535_vm1, %v731_v43  ;;  %v735_v25 = vpop.permute.xlu2 %734 }
 0x20b   : > { %814 = vst.msk [vmem:[#allocation3 + $0xfa] sm:$0xff] %vm535_vm1, %v735_v25 }
 0x20e   : > { %750 = vrot.lane.b32.xlu1 %v7246_v17, %s6529_s25  ;;  %5529 = vrot.lane.b32.xlu0 %v5528_v14, %s6528_s24 }
 0x210   : > { %v7332_v24 = vpop.permute.xlu1 %5329  ;;  %v7334_v40 = vpop.permute.xlu0 %5364  ;;  %5499 = vrot.lane.b32.xlu2 %v5498_v34, %s6533_s12 }
 0x211   : > { %9775 = vst [vmem:[#allocation36_spill] sm:$0xff] %v7332_v24  ;;  %v7518_v24 = vld [vmem:[#allocation3 + $0x16c] sm:$0xff] }
 0x212   : > { %9776 = vst [vmem:[#allocation37_spill] sm:$0xff] %v7334_v40  ;;  %v7337_v39 = vpop.permute.xlu2 %5379  ;;  %v1154_v40 = vld [vmem:[#allocation3 + $0x32] sm:$0xff] }
 0x213   : > { %9777 = vst [vmem:[#allocation38_spill] sm:$0xff] %v7337_v39 }
 0x214   : > { %9818 = vst [vmem:[#allocation78_spill] sm:$0xff] %v7518_v24 }
 0x216   : > { %5509 = vrot.lane.b32.xlu1 %v7319_v12, %s6526_s28  ;;  %5534 = vrot.lane.b32.xlu0 %v7097_v7, %s6533_s12  ;;  %v1064_v7 = vld [vmem:[#allocation2 + $0xa9] sm:$0xff] }
 0x217   : > { %v5538_v30 = vpack.i.bf16 %v1065_v13, %v1064_v7 }
 0x218   : > { %v733_v25 = vpop.permute.xlu1 %732  ;;  %v737_v43 = vpop.permute.xlu0 %736  ;;  %5519 = vrot.lane.b32.xlu2 %v7307_v20, %s6530_s11 }
 0x219   : > { %813 = vst.msk [vmem:[#allocation3 + $0xf2] sm:$0xff] %vm535_vm1, %v733_v25 }
 0x21a   : > { %815 = vst.msk [vmem:[#allocation3 + $0x10a] sm:$0xff] %vm535_vm1, %v737_v43  ;;  %v7347_v17 = vpop.permute.xlu2 %5399  ;;  %v1081_v43 = vld [vmem:[#allocation2 + $0x171] sm:$0xff] }
 0x21b   : > { %9778 = vst [vmem:[#allocation39_spill] sm:$0xff] %v7347_v17  ;;  %v1079_v17 = vld [vmem:[#allocation2 + $0x159] sm:$0xff] }
 0x21e   : > { %5514 = vrot.lane.b32.xlu1 %v5528_v14, %s6532_s6  ;;  %5549 = vrot.lane.b32.xlu0 %v7194_v44, %s6533_s12  ;;  %v1080_v44 = vld [vmem:[#allocation2 + $0x169] sm:$0xff] }
 0x220   : > { %v7352_v34 = vpop.permute.xlu1 %5349  ;;  %v7354_v51 = vpop.permute.xlu0 %5384  ;;  %5544 = vrot.lane.b32.xlu2 %v7153_v54, %s6533_s12  ;;  %v1078_v54 = vld [vmem:[#allocation2 + $0x151] sm:$0xff] }
 0x221   : > { %9779 = vst [vmem:[#allocation40_spill] sm:$0xff] %v7352_v34 }
 0x222   : > { %9780 = vst [vmem:[#allocation41_spill] sm:$0xff] %v7354_v51  ;;  %v7358_v5 = vpop.permute.xlu2 %5404 }
 0x223   : > { %9781 = vst [vmem:[#allocation42_spill] sm:$0xff] %v7358_v5  ;;  %v5578_v5 = vpack.i.bf16 %v1081_v43, %v1080_v44  ;;  %v1083_v43 = vld [vmem:[#allocation2 + $0x189] sm:$0xff] }
 0x226   : > { %5539 = vrot.lane.b32.xlu1 %v5538_v30, %s6533_s12  ;;  %5564 = vrot.lane.b32.xlu0 %v5468_v6, %s6533_s12  ;;  %v5573_v6 = vpack.i.bf16 %v1079_v17, %v1078_v54  ;;  %v1087_v30 = vld [vmem:[#allocation2 + $0x3a] sm:$0xff] }
 0x227   : > { %v1092_v54 = vld [vmem:[#allocation2 + $0x7a] sm:$0xff] }
 0x228   : > { %v7362_v14 = vpop.permute.xlu1 %5369  ;;  %v7364_v25 = vpop.permute.xlu0 %5389  ;;  %5559 = vrot.lane.b32.xlu2 %v7259_v49, %s6533_s12  ;;  %v1086_v49 = vld [vmem:[#allocation2 + $0x32] sm:$0xff] }
 0x229   : > { %9782 = vst [vmem:[#allocation43_spill] sm:$0xff] %v7362_v14  ;;  %v1085_v14 = vld [vmem:[#allocation2 + $0x1a1] sm:$0xff]  ;;  %v5593_v34 = vpack.i.bf16 %v1087_v30, %v1086_v49 }
 0x22a   : > { %9783 = vst [vmem:[#allocation44_spill] sm:$0xff] %v7364_v25  ;;  %v741_v51 = vpop.permute.xlu2 %740  ;;  %v1084_v25 = vld [vmem:[#allocation2 + $0x199] sm:$0xff]  ;;  %v1090_v49 = vld [vmem:[#allocation2 + $0x62] sm:$0xff] }
 0x22b   : > { %817 = vst.msk [vmem:[#allocation3 + $0x122] sm:$0xff] %vm535_vm1, %v741_v51  ;;  %v5588_v44 = vpack.i.bf16 %v1085_v14, %v1084_v25  ;;  %v1091_v14 = vld [vmem:[#allocation2 + $0x6a] sm:$0xff] }
 0x22e   : > { %5554 = vrot.lane.b32.xlu1 %v7207_v11, %s6533_s12  ;;  %5579 = vrot.lane.b32.xlu0 %v5578_v5, %s6533_s12  ;;  %v1082_v5 = vld [vmem:[#allocation2 + $0x181] sm:$0xff] }
 0x22f   : > { %v5583_v25 = vpack.i.bf16 %v1083_v43, %v1082_v5 }
 0x230   : > { %v7372_v7 = vpop.permute.xlu1 %5374  ;;  %v7374_v13 = vpop.permute.xlu0 %5409  ;;  %5574 = vrot.lane.b32.xlu2 %v5573_v6, %s6533_s12  ;;  %v1093_v6 = vld [vmem:[#allocation2 + $0x82] sm:$0xff] }
 0x231   : > { %9784 = vst [vmem:[#allocation45_spill] sm:$0xff] %v7372_v7  ;;  %v5608_v30 = vpack.i.bf16 %v1093_v6, %v1092_v54  ;;  %v1097_v7 = vld [vmem:[#allocation2 + $0xb2] sm:$0xff] }
 0x232   : > { %9785 = vst [vmem:[#allocation46_spill] sm:$0xff] %v7374_v13  ;;  %v7377_v51 = vpop.permute.xlu2 %5424 }
 0x233   : > { %9786 = vst [vmem:[#allocation47_spill] sm:$0xff] %v7377_v51 }
 0x236   : > { %5569 = vrot.lane.b32.xlu1 %v7307_v20, %s6533_s12  ;;  %5594 = vrot.lane.b32.xlu0 %v5593_v34, %s6534_s14  ;;  %v5603_v20 = vpack.i.bf16 %v1091_v14, %v1090_v49  ;;  %v1094_v49 = vld [vmem:[#allocation2 + $0x92] sm:$0xff]  ;;  %v1095_v14 = vld [vmem:[#allocation2 + $0x9a] sm:$0xff] }
 0x238   : > { %v7382_v11 = vpop.permute.xlu1 %5394  ;;  %v7384_v17 = vpop.permute.xlu0 %5429  ;;  %5589 = vrot.lane.b32.xlu2 %v5588_v44, %s6533_s12  ;;  %v1088_v44 = vld [vmem:[#allocation2 + $0x4a] sm:$0xff] }
 0x239   : > { %9787 = vst [vmem:[#allocation48_spill] sm:$0xff] %v7382_v11 }
 0x23a   : > { %9788 = vst [vmem:[#allocation49_spill] sm:$0xff] %v7384_v17  ;;  %v7387_v13 = vpop.permute.xlu2 %5444  ;;  %v1089_v17 = vld [vmem:[#allocation2 + $0x52] sm:$0xff] }
 0x23b   : > { %9789 = vst [vmem:[#allocation50_spill] sm:$0xff] %v7387_v13  ;;  %v1096_v13 = vld [vmem:[#allocation2 + $0xaa] sm:$0xff]  ;;  %v5598_v5 = vpack.i.bf16 %v1089_v17, %v1088_v44  ;;  %v1100_v17 = vld [vmem:[#allocation2 + $0xda] sm:$0xff] }
 0x23c   : > { %v5618_v43 = vpack.i.bf16 %v1097_v7, %v1096_v13  ;;  %v1110_v13 = vld [vmem:[#allocation2 + $0x152] sm:$0xff] }
 0x23e   : > { %5584 = vrot.lane.b32.xlu1 %v5583_v25, %s6533_s12  ;;  %5609 = vrot.lane.b32.xlu0 %v5608_v30, %s6534_s14  ;;  %v5613_v30 = vpack.i.bf16 %v1095_v14, %v1094_v49 }
 0x240   : > { %v739_v34 = vpop.permute.xlu1 %738  ;;  %v7391_v51 = vpop.permute.xlu0 %5434  ;;  %5604 = vrot.lane.b32.xlu2 %v5603_v20, %s6534_s14  ;;  %v1101_v20 = vld [vmem:[#allocation2 + $0xe2] sm:$0xff] }
 0x241   : > { %9790 = vst [vmem:[#allocation51_spill] sm:$0xff] %v7391_v51  ;;  %v1149_v51 = vld [vmem:[#allocation3 + $0x170] sm:$0xff] }
 0x242   : > { %816 = vst.msk [vmem:[#allocation3 + $0x112] sm:$0xff] %vm535_vm1, %v739_v34  ;;  %v7395_v11 = vpop.permute.xlu2 %5449  ;;  %v1111_v34 = vld [vmem:[#allocation2 + $0x15a] sm:$0xff] }
 0x243   : > { %9791 = vst [vmem:[#allocation52_spill] sm:$0xff] %v7395_v11  ;;  %v1139_v11 = vld [vmem:[#allocation3 + $0xf8] sm:$0xff] }
 0x246   : > { %5599 = vrot.lane.b32.xlu1 %v5598_v5, %s6534_s14  ;;  %5624 = vrot.lane.b32.xlu0 %v7155_v57, %s6534_s14  ;;  %v5628_v5 = vpack.i.bf16 %v1101_v20, %v1100_v17 }
 0x248   : > { %v7400_v54 = vpop.permute.xlu1 %5414  ;;  %v743_v6 = vpop.permute.xlu0 %742  ;;  %5619 = vrot.lane.b32.xlu2 %v5618_v43, %s6534_s14  ;;  %v5653_v43 = vpack.i.bf16 %v1111_v34, %v1110_v13  ;;  %v1115_v13 = vld [vmem:[#allocation2 + $0x18a] sm:$0xff] }
 0x249   : > { %9792 = vst [vmem:[#allocation53_spill] sm:$0xff] %v7400_v54  ;;  %v1187_v54 = vld [vmem:[#allocation3 + $0x3c] sm:$0xff] }
 0x24a   : > { %818 = vst.msk [vmem:[#allocation3 + $0x12a] sm:$0xff] %vm535_vm1, %v743_v6  ;;  %v747_v25 = vpop.permute.xlu2 %746  ;;  %v1117_v6 = vld [vmem:[#allocation2 + $0x1a2] sm:$0xff] }
 0x24b   : > { %820 = vst.msk [vmem:[#allocation3 + $0x142] sm:$0xff] %vm535_vm1, %v747_v25 }
 0x24e   : > { %5614 = vrot.lane.b32.xlu1 %v5613_v30, %s6534_s14  ;;  %5639 = vrot.lane.b32.xlu0 %v7261_v53, %s6534_s14  ;;  %v1116_v53 = vld [vmem:[#allocation2 + $0x19a] sm:$0xff]  ;;  %v1114_v30 = vld [vmem:[#allocation2 + $0x182] sm:$0xff] }
 0x24f   : > { %v5668_v25 = vpack.i.bf16 %v1117_v6, %v1116_v53  ;;  %v5663_v17 = vpack.i.bf16 %v1115_v13, %v1114_v30  ;;  %v1122_v6 = vld [vmem:[#allocation3 + $0x30] sm:$0xff]  ;;  %v1119_v30 = vld [vmem:[#allocation3 + $0x8] sm:$0xff]  ;;  %v9801_v13 = vmov 0.0  }
 0x250   : > { %v7408_v57 = vpop.permute.xlu1 %5419  ;;  %v7410_v7 = vpop.permute.xlu0 %5454  ;;  %5634 = vrot.lane.b32.xlu2 %v7223_v52, %s6534_s14  ;;  %584 = vst.msk [vmem:[#allocation3 + $0x10] sm:$0xf] %vm583_vm4, %v9801_v13 }
 0x251   : > { %9793 = vst [vmem:[#allocation54_spill] sm:$0xff] %v7408_v57  ;;  %v5042_v57 = vunpack.i.h.bf16 %v6979_v50 }
 0x252   : > { %9794 = vst [vmem:[#allocation55_spill] sm:$0xff] %v7410_v7  ;;  %v7414_v44 = vpop.permute.xlu2 %5469  ;;  %v1138_v7 = vld [vmem:[#allocation3 + $0xf0] sm:$0xff] }
 0x253   : > { %9795 = vst [vmem:[#allocation56_spill] sm:$0xff] %v7414_v44 }
 0x254   : > { %587 = vst.msk [vmem:[#allocation3 + $0x28] sm:$0xf] %vm583_vm4, %v9801_v13 }
 0x255   : > { %591 = vst.msk [vmem:[#allocation3 + $0x1c0] sm:$0xf] %vm583_vm4, %v9801_v13 }
 0x256   : > { %5629 = vrot.lane.b32.xlu1 %v5628_v5, %s6534_s14  ;;  %5654 = vrot.lane.b32.xlu0 %v5653_v43, %s6534_s14  ;;  %v1113_v5 = vld [vmem:[#allocation2 + $0x172] sm:$0xff]  ;;  %v1123_v43 = vld [vmem:[#allocation3 + $0x38] sm:$0xff]  ;;  %594 = vst.msk [vmem:[#allocation3 + $0x1d8] sm:$0xf] %vm583_vm4, %v9801_v13  ;;  %vm3787_vm4 = vcmask 982016  }
 0x257   : > { %v7434_v44 = vpack.i.bf16 %v1123_v43, %v1122_v6  ;;  %v1128_v43 = vld [vmem:[#allocation3 + $0x78] sm:$0xff]  ;;  %615 = vst.msk [vmem:[#allocation3 + $0x12] sm:$0x3] %vm538_vm2, %v9801_v13  ;;  %v1126_v6 = vld [vmem:[#allocation3 + $0x60] sm:$0xff] }
 0x258   : > { %v745_v49 = vpop.permute.xlu1 %744  ;;  %v749_v14 = vpop.permute.xlu0 %748  ;;  %5649 = vrot.lane.b32.xlu2 %v7319_v12, %s6534_s14  ;;  %v1112_v12 = vld [vmem:[#allocation2 + $0x16a] sm:$0xff]  ;;  %616 = vst.msk [vmem:[#allocation3 + $0x2a] sm:$0x3] %vm538_vm2, %v9801_v13 }
 0x259   : > { %819 = vst.msk [vmem:[#allocation3 + $0x13a] sm:$0xff] %vm535_vm1, %v745_v49  ;;  %v1120_v49 = vld [vmem:[#allocation3 + $0x18] sm:$0xff] }
 0x25a   : > { %821 = vst.msk [vmem:[#allocation3 + $0x152] sm:$0xff] %vm535_vm1, %v749_v14  ;;  %v7422_v52 = vpop.permute.xlu2 %5489  ;;  %v1121_v14 = vld [vmem:[#allocation3 + $0x20] sm:$0xff] }
 0x25b   : > { %9796 = vst [vmem:[#allocation57_spill] sm:$0xff] %v7422_v52  ;;  %v5658_v52 = vpack.i.bf16 %v1113_v5, %v1112_v12  ;;  %v1129_v12 = vld [vmem:[#allocation3 + $0x80] sm:$0xff] }
 0x25c   : > { %9800 = vst [vmem:[#allocation61_spill] sm:$0xff] %v7434_v44 }
 0x25d   : > { %633 = vst.msk [vmem:[#allocation3 + $0x1c2] sm:$0x3] %vm538_vm2, %v9801_v13 }
 0x25e   : > { %5644 = vrot.lane.b32.xlu1 %v7282_v9, %s6534_s14  ;;  %5669 = vrot.lane.b32.xlu0 %v5668_v25, %s6534_s14  ;;  %v5678_v9 = vpack.i.bf16 %v1121_v14, %v1120_v49  ;;  %v1118_v25 = vld [vmem:[#allocation3] sm:$0xff]  ;;  %v1127_v49 = vld [vmem:[#allocation3 + $0x68] sm:$0xff]  ;;  %v7452_v14 = vpack.i.bf16 %v1129_v12, %v1128_v43  ;;  %634 = vst.msk [vmem:[#allocation3 + $0x1da] sm:$0x3] %vm538_vm2, %v9801_v13  ;;  %v5036_v12 = vunpack.i.l.bf16 %v6966_v41  ;;  %v1125_v43 = vld [vmem:[#allocation3 + $0x50] sm:$0xff]  ;;  %vm4304_vm2 = vcmask 1043456  }
 0x25f   : > { %v5673_v5 = vpack.i.bf16 %v1119_v30, %v1118_v25  ;;  %v1132_v13 = vld [vmem:[#allocation3 + $0xa8] sm:$0xff] }
 0x260   : > { %v7427_v20 = vpop.permute.xlu1 %5439  ;;  %v7429_v34 = vpop.permute.xlu0 %5474  ;;  %5664 = vrot.lane.b32.xlu2 %v5663_v17, %s6534_s14  ;;  %9805 = vst [vmem:[#allocation65_spill] sm:$0xff] %v7452_v14 }
 0x261   : > { %9797 = vst [vmem:[#allocation58_spill] sm:$0xff] %v7427_v20 }
 0x262   : > { %9798 = vst [vmem:[#allocation59_spill] sm:$0xff] %v7429_v34  ;;  %v7432_v53 = vpop.permute.xlu2 %5494  ;;  %v1133_v34 = vld [vmem:[#allocation3 + $0xb0] sm:$0xff] }
 0x263   : > { %9799 = vst [vmem:[#allocation60_spill] sm:$0xff] %v7432_v53 }
 0x266   : > { %5659 = vrot.lane.b32.xlu1 %v5658_v52, %s6534_s14  ;;  %5684 = vrot.lane.b32.xlu0 %v7434_v44, %s6535_s9  ;;  %v5037_v44 = vunpack.i.h.bf16 %v6966_v41 }
 0x268   : > { %v7440_v17 = vpop.permute.xlu1 %5459  ;;  %v7442_v20 = vpop.permute.xlu0 %5479  ;;  %5679 = vrot.lane.b32.xlu2 %v5678_v9, %s6535_s9  ;;  %v7461_v9 = vpack.i.bf16 %v1127_v49, %v1126_v6  ;;  %v1124_v6 = vld [vmem:[#allocation3 + $0x48] sm:$0xff] }
 0x269   : > { %9802 = vst [vmem:[#allocation62_spill] sm:$0xff] %v7440_v17  ;;  %v7476_v53 = vpack.i.bf16 %v1125_v43, %v1124_v6 }
 0x26a   : > { %9803 = vst [vmem:[#allocation63_spill] sm:$0xff] %v7442_v20  ;;  %v7447_v52 = vpop.permute.xlu2 %5499  ;;  %v1135_v20 = vld [vmem:[#allocation3 + $0xc8] sm:$0xff] }
 0x26b   : > { %9804 = vst [vmem:[#allocation64_spill] sm:$0xff] %v7447_v52  ;;  %v1134_v52 = vld [vmem:[#allocation3 + $0xc0] sm:$0xff] }
 0x26c   : > { %9806 = vst [vmem:[#allocation66_spill] sm:$0xff] %v7461_v9 }
 0x26d   : > { %9810 = vst [vmem:[#allocation70_spill] sm:$0xff] %v7476_v53 }
 0x26e   : > { %5674 = vrot.lane.b32.xlu1 %v5673_v5, %s6535_s9  ;;  %5699 = vrot.lane.b32.xlu0 %v7452_v14, %s6535_s9  ;;  %v830_v5 = vld [vmem:[#allocation2 + $0x8] sm:$0xff]  ;;  %v829_v14 = vld [vmem:[#allocation2] sm:$0xff] }
 0x26f   : > { %v3327_v17 = vsel %vm535_vm1, %v829_v14, %v5036_v12  ;;  %v3328_v41 = vsel %vm535_vm1, %v830_v5, %v5037_v44  ;;  %v5061_v14 = vunpack.i.l.bf16 %v7043_v32  ;;  %v1131_v12 = vld [vmem:[#allocation3 + $0x98] sm:$0xff]  ;;  %v5067_v5 = vunpack.i.h.bf16 %v6988_v56 }
 0x270   : > { %v7465_v25 = vpop.permute.xlu1 %5464  ;;  %5694 = vrot.lane.b32.xlu2 %v7461_v9, %s6535_s9  ;;  %v7469_v30 = vpop.permute.xlu0 %5504  ;;  %v7478_v9 = vpack.i.bf16 %v1135_v20, %v1134_v52  ;;  %v5052_v52 = vunpack.i.h.bf16 %v7032_v26  ;;  %v5071_v44 = vunpack.i.l.bf16 %v7041_v31 }
 0x271   : > { %9807 = vst [vmem:[#allocation67_spill] sm:$0xff] %v7465_v25  ;;  %v5041_v25 = vunpack.i.l.bf16 %v6979_v50  ;;  %v3361_v50 = vsel %vm3359_vm5, %v3328_v41, %v5042_v57  ;;  %v1186_v57 = vld [vmem:[#allocation3 + $0x34] sm:$0xff]  ;;  %v5066_v41 = vunpack.i.l.bf16 %v6988_v56 }
 0x272   : > { %9808 = vst [vmem:[#allocation68_spill] sm:$0xff] %v7469_v30  ;;  %v7473_v49 = vpop.permute.xlu2 %5519  ;;  %v1181_v30 = vld [vmem:[#allocation3 + $0x172] sm:$0xff] }
 0x273   : > { %9809 = vst [vmem:[#allocation69_spill] sm:$0xff] %v7473_v49  ;;  %v7487_v49 = vpack.i.bf16 %v1133_v34, %v1132_v13  ;;  %v3360_v43 = vsel %vm3359_vm5, %v3327_v17, %v5041_v25  ;;  %v1141_v34 = vld [vmem:[#allocation3 + $0x110] sm:$0xff]  ;;  %v5062_v25 = vunpack.i.h.bf16 %v7043_v32  ;;  %v5057_v17 = vunpack.i.h.bf16 %v7034_v27 }
 0x274   : > { %9811 = vst [vmem:[#allocation71_spill] sm:$0xff] %v7478_v9  ;;  %v3393_v39 = vsel %vm3392_vm6, %v3360_v43, %v5061_v14  ;;  %v1180_v43 = vld [vmem:[#allocation3 + $0x16a] sm:$0xff] }
 0x275   : > { %9812 = vst [vmem:[#allocation72_spill] sm:$0xff] %v7487_v49  ;;  %v6394_v14 = vld [vmem:[#allocation2 + $0x18] sm:$0xff] }
 0x276   : > { %5689 = vrot.lane.b32.xlu1 %v7476_v53, %s6535_s9  ;;  %5714 = vrot.lane.b32.xlu0 %v7478_v9, %s6535_s9  ;;  %v1155_v9 = vld [vmem:[#allocation3 + $0x3a] sm:$0xff]  ;;  %v1140_v53 = vld [vmem:[#allocation3 + $0x108] sm:$0xff] }
 0x278   : > { %v7490_v6 = vpop.permute.xlu1 %5484  ;;  %5709 = vrot.lane.b32.xlu2 %v7487_v49, %s6535_s9  ;;  %v7494_v20 = vpop.permute.xlu0 %5524  ;;  %v5051_v49 = vunpack.i.l.bf16 %v7032_v26 }
 0x279   : > { %9813 = vst [vmem:[#allocation73_spill] sm:$0xff] %v7490_v6  ;;  %v1130_v6 = vld [vmem:[#allocation3 + $0x90] sm:$0xff] }
 0x27a   : > { %9814 = vst [vmem:[#allocation74_spill] sm:$0xff] %v7494_v20  ;;  %v7503_v13 = vpop.permute.xlu2 %5544  ;;  %v7510_v32 = vpack.i.bf16 %v1131_v12, %v1130_v6  ;;  %v6393_v20 = vld [vmem:[#allocation2 + $0x20] sm:$0xff]  ;;  %v3394_v6 = vsel %vm3392_vm6, %v3361_v50, %v5062_v25  ;;  %v7528_v12 = vpack.i.bf16 %v1139_v11, %v1138_v7  ;;  %v7537_v50 = vpack.i.bf16 %v1187_v54, %v1186_v57 }
 0x27b   : > { %9815 = vst [vmem:[#allocation75_spill] sm:$0xff] %v7503_v13  ;;  %v7512_v13 = vpack.i.bf16 %v1141_v34, %v1140_v53  ;;  %v3330_v26 = vsel %vm535_vm1, %v6393_v20, %v5052_v52  ;;  %v5056_v53 = vunpack.i.l.bf16 %v7034_v27  ;;  %v1148_v20 = vld [vmem:[#allocation3 + $0x168] sm:$0xff]  ;;  %v7530_v52 = vpack.i.bf16 %v1155_v9, %v1154_v40 }
 0x27c   : > { %9816 = vst [vmem:[#allocation76_spill] sm:$0xff] %v7510_v32  ;;  %v3329_v34 = vsel %vm535_vm1, %v6394_v14, %v5051_v49  ;;  %v7533_v56 = vpack.i.bf16 %v1149_v51, %v1148_v20  ;;  %v7535_v27 = vpack.i.bf16 %v1181_v30, %v1180_v43  ;;  %v3363_v25 = vsel %vm3359_vm5, %v3330_v26, %v5057_v17  ;;  %v6395_v14 = vld [vmem:[#allocation2 + $0x158] sm:$0xff] }
 0x27d   : > { %9817 = vst [vmem:[#allocation77_spill] sm:$0xff] %v7512_v13  ;;  %v3425_v11 = vsel %vm397_vm0, %v3393_v39, %v5066_v41  ;;  %v3426_v9 = vsel %vm397_vm0, %v3394_v6, %v5067_v5  ;;  %v5116_v54 = vunpack.i.l.bf16 %v7060_v42  ;;  %v5077_v30 = vunpack.i.h.bf16 %v7064_v45  ;;  %v1137_v39 = vld [vmem:[#allocation3 + $0xe0] sm:$0xff]  ;;  %v1243_v6 = vld [vmem:[#allocation3 + $0x188] sm:$0xff] }
 0x27e   : > { %5704 = vrot.lane.b32.xlu1 %v7510_v32, %s6535_s9  ;;  %5729 = vrot.lane.b32.xlu0 %v7512_v13, %s6535_s9  ;;  %9820 = vst [vmem:[#allocation80_spill] sm:$0xff] %v7528_v12  ;;  %v5076_v49 = vunpack.i.l.bf16 %v7064_v45  ;;  %v3362_v17 = vsel %vm3359_vm5, %v3329_v34, %v5056_v53  ;;  %v5072_v57 = vunpack.i.h.bf16 %v7041_v31  ;;  %v5117_v41 = vunpack.i.h.bf16 %v7060_v42  ;;  %v1242_v5 = vld [vmem:[#allocation3 + $0x180] sm:$0xff]  ;;  %v1136_v53 = vld [vmem:[#allocation3 + $0xd8] sm:$0xff] }
 0x27f   : > { %9821 = vst [vmem:[#allocation81_spill] sm:$0xff] %v7530_v52  ;;  %v5121_v26 = vunpack.i.l.bf16 %v7066_v46  ;;  %v5122_v45 = vunpack.i.h.bf16 %v7066_v46  ;;  %v1144_v34 = vld [vmem:[#allocation3 + $0x138] sm:$0xff]  ;;  %v1145_v31 = vld [vmem:[#allocation3 + $0x140] sm:$0xff]  ;;  %v7570_v13 = vpack.i.bf16 %v1137_v39, %v1136_v53  ;;  %v3395_v43 = vsel %vm3392_vm6, %v3362_v17, %v5116_v54 }
 0x280   : > { %9822 = vst [vmem:[#allocation82_spill] sm:$0xff] %v7533_v56  ;;  %v751_v7 = vpop.permute.xlu1 %750  ;;  %5724 = vrot.lane.b32.xlu2 %v7528_v12, %s6535_s9  ;;  %v7544_v40 = vpop.permute.xlu0 %5529  ;;  %v3356_v46 = vsel %vm535_vm1, %v6395_v14, %v5077_v30  ;;  %v6396_v12 = vld [vmem:[#allocation2 + $0x150] sm:$0xff]  ;;  %v7584_v39 = vpack.i.bf16 %v1243_v6, %v1242_v5  ;;  %v5146_v17 = vunpack.i.l.bf16 %v7089_v63  ;;  %v6398_v14 = vld [vmem:[#allocation2 + $0x168] sm:$0xff] }
 0x281   : > { %9823 = vst [vmem:[#allocation83_spill] sm:$0xff] %v7535_v27  ;;  %v7578_v42 = vsel %vm397_vm0, %v3395_v43, %v5121_v26  ;;  %v9831_v26 = vunpack.i.h.bf16 %v6999_v62  ;;  %v1143_v43 = vld [vmem:[#allocation3 + $0x128] sm:$0xff] }
 0x282   : > { %9824 = vst [vmem:[#allocation84_spill] sm:$0xff] %v7537_v50  ;;  %v7557_v20 = vpop.permute.xlu2 %5559 }
 0x283   : > { %9825 = vst [vmem:[#allocation85_spill] sm:$0xff] %v7544_v40  ;;  %v7568_v40 = vsel %vm3457_vm7, %v3426_v9, %v5072_v57  ;;  %v7582_v9 = vpack.i.bf16 %v1145_v31, %v1144_v34  ;;  %v9830_v57 = vunpack.i.l.bf16 %v6999_v62  ;;  %v3389_v5 = vsel %vm3359_vm5, %v3356_v46, %v9831_v26  ;;  %v1146_v34 = vld [vmem:[#allocation3 + $0x150] sm:$0xff]  ;;  %v1150_v31 = vld [vmem:[#allocation3 + $0x2] sm:$0xff] }
 0x284   : > { %822 = vst.msk [vmem:[#allocation3 + $0x15a] sm:$0xff] %vm535_vm1, %v751_v7  ;;  %v7563_v7 = vsel %vm3457_vm7, %v3425_v11, %v5071_v44  ;;  %v3355_v44 = vsel %vm535_vm1, %v6396_v12, %v5076_v49  ;;  %v5142_v11 = vunpack.i.h.bf16 %v7082_v58  ;;  %v5141_v49 = vunpack.i.l.bf16 %v7082_v58  ;;  %v1151_v46 = vld [vmem:[#allocation3 + $0xa] sm:$0xff]  ;;  %v1142_v12 = vld [vmem:[#allocation3 + $0x120] sm:$0xff] }
 0x285   : > { %9826 = vst [vmem:[#allocation86_spill] sm:$0xff] %v7557_v20  ;;  %v3396_v20 = vsel %vm3392_vm6, %v3363_v25, %v5117_v41  ;;  %v5147_v25 = vunpack.i.h.bf16 %v7089_v63  ;;  %v3388_v41 = vsel %vm3359_vm5, %v3355_v44, %v9830_v57  ;;  %v5152_v62 = vunpack.i.h.bf16 %v7100_v10 }
 0x286   : > { %9827 = vst [vmem:[#allocation87_spill] sm:$0xff] %v7570_v13  ;;  %5719 = vrot.lane.b32.xlu1 %v7570_v13, %s6535_s9  ;;  %v7587_v54 = vsel %vm397_vm0, %v3396_v20, %v5122_v45  ;;  %v6397_v45 = vld [vmem:[#allocation2 + $0x170] sm:$0xff]  ;;  %v5151_v44 = vunpack.i.l.bf16 %v7100_v10  ;;  %v5107_v57 = vunpack.i.h.bf16 %v7113_v18  ;;  %v5106_v26 = vunpack.i.l.bf16 %v7113_v18  ;;  %v1175_v13 = vld [vmem:[#allocation3 + $0x12a] sm:$0xff] }
 0x287   : > { %9828 = vst [vmem:[#allocation88_spill] sm:$0xff] %v7582_v9  ;;  %v3358_v53 = vsel %vm535_vm1, %v6397_v45, %v5142_v11  ;;  %v3357_v63 = vsel %vm535_vm1, %v6398_v14, %v5141_v49  ;;  %v7624_v18 = vpack.i.bf16 %v1143_v43, %v1142_v12  ;;  %v3422_v11 = vsel %vm3392_vm6, %v3389_v5, %v5152_v62  ;;  %v6399_v12 = vld [vmem:[#allocation2 + $0x30] sm:$0xff]  ;;  %v1156_v5 = vld [vmem:[#allocation3 + $0x4a] sm:$0xff] }
 0x288   : > { %9829 = vst [vmem:[#allocation89_spill] sm:$0xff] %v7584_v39  ;;  %5739 = vrot.lane.b32.xlu2 %v7582_v9, %s6535_s9  ;;  %v7602_v20 = vpop.permute.xlu1 %5509  ;;  %v7604_v6 = vpop.permute.xlu0 %5534  ;;  %v3390_v39 = vsel %vm3359_vm5, %v3357_v63, %v5146_v17  ;;  %v3391_v10 = vsel %vm3359_vm5, %v3358_v53, %v5147_v25  ;;  %v1188_v9 = vld [vmem:[#allocation3 + $0x4c] sm:$0xff]  ;;  %v5171_v45 = vunpack.i.l.bf16 %v7127_v35  ;;  %v1153_v17 = vld [vmem:[#allocation3 + $0x22] sm:$0xff]  ;;  %v1189_v63 = vld [vmem:[#allocation3 + $0x54] sm:$0xff]  ;;  %v3421_v25 = vsel %vm3392_vm6, %v3388_v41, %v5151_v44 }
 0x289   : > { %9834 = vst [vmem:[#allocation92_spill] sm:$0xff] %v7624_v18  ;;  %v3331_v43 = vsel %vm535_vm1, %v6399_v12, %v5106_v26  ;;  %v5127_v49 = vunpack.i.h.bf16 %v7122_v28  ;;  %v5126_v14 = vunpack.i.l.bf16 %v7122_v28  ;;  %v5207_v44 = vunpack.i.h.bf16 %v7183_v21 }
 0x28a   : > { %v7613_v51 = vpop.permute.xlu2 %5574  ;;  %v5206_v26 = vunpack.i.l.bf16 %v7183_v21  ;;  %v7648_v53 = vpack.i.bf16 %v1189_v63, %v1188_v9  ;;  %v5172_v62 = vunpack.i.h.bf16 %v7127_v35  ;;  %v9840_v21 = vunpack.i.h.bf16 %v7047_v33 }
 0x28b   : > { %v1147_v58 = vld [vmem:[#allocation3 + $0x158] sm:$0xff]  ;;  %9832 = vst [vmem:[#allocation90_spill] sm:$0xff] %v7613_v51  ;;  %v5132_v9 = vunpack.i.h.bf16 %v7132_v38  ;;  %v5131_v35 = vunpack.i.l.bf16 %v7132_v38  ;;  %v7670_v63 = vsel %vm3457_vm7, %v7578_v42, %v5126_v14  ;;  %v3424_v38 = vsel %vm3392_vm6, %v3391_v10, %v5207_v44  ;;  %v6402_v42 = vld [vmem:[#allocation2 + $0x50] sm:$0xff] }
 0x28c   : > { %v7615_v30 = vpack.i.bf16 %v1147_v58, %v1146_v34  ;;  %v5748_v58 = vpack.i.bf16 %v1151_v46, %v1150_v31  ;;  %v1157_v34 = vld [vmem:[#allocation3 + $0x52] sm:$0xff]  ;;  %v1152_v51 = vld [vmem:[#allocation3 + $0x1a] sm:$0xff]  ;;  %v6400_v31 = vld [vmem:[#allocation2 + $0x38] sm:$0xff]  ;;  %9837 = vst [vmem:[#allocation95_spill] sm:$0xff] %v7648_v53  ;;  %v3334_v14 = vsel %vm535_vm1, %v6402_v42, %v5172_v62  ;;  %v5222_v62 = vunpack.i.h.bf16 %v7175_v16 }
 0x28d   : > { %v3332_v46 = vsel %vm535_vm1, %v6400_v31, %v5107_v57  ;;  %v7639_v41 = vpack.i.bf16 %v1157_v34, %v1156_v5  ;;  %v5758_v31 = vpack.i.bf16 %v1153_v17, %v1152_v51  ;;  %v9838_v34 = vunpack.i.l.bf16 %v7047_v33  ;;  %v1191_v51 = vld [vmem:[#allocation3 + $0x6c] sm:$0xff]  ;;  %9842 = vst [vmem:[#allocation98_spill] sm:$0xff] %v7670_v63 }
 0x28e   : > { %9833 = vst [vmem:[#allocation91_spill] sm:$0xff] %v7615_v30  ;;  %5754 = vrot.lane.b32.xlu0 %v7615_v30, %s6535_s9  ;;  %5734 = vrot.lane.b32.xlu1 %v7624_v18, %s6535_s9  ;;  %v6401_v30 = vld [vmem:[#allocation2 + $0x48] sm:$0xff]  ;;  %v1159_v18 = vld [vmem:[#allocation3 + $0x6a] sm:$0xff]  ;;  %v5157_v17 = vunpack.i.h.bf16 %v7146_v48  ;;  %v7674_v33 = vsel %vm3457_vm7, %v7587_v54, %v5127_v49  ;;  %v5212_v54 = vunpack.i.h.bf16 %v7165_v0  ;;  %v5211_v49 = vunpack.i.l.bf16 %v7165_v0 }
 0x28f   : > { %9835 = vst [vmem:[#allocation93_spill] sm:$0xff] %v7639_v41  ;;  %v3333_v28 = vsel %vm535_vm1, %v6401_v30, %v5171_v45  ;;  %v7655_v5 = vsel %vm3359_vm5, %v3331_v43, %v9838_v34  ;;  %v5156_v30 = vunpack.i.l.bf16 %v7146_v48  ;;  %v5177_v43 = vunpack.i.h.bf16 %v7124_v29  ;;  %v1158_v34 = vld [vmem:[#allocation3 + $0x62] sm:$0xff] }
 0x290   : > { %5749 = vrot.lane.b32.xlu2 %v5748_v58, %s6536_s29  ;;  %v7644_v57 = vpop.permute.xlu1 %5514  ;;  %v7646_v12 = vpop.permute.xlu0 %5549  ;;  %9839 = vst [vmem:[#allocation96_spill] sm:$0xff] %v7655_v5  ;;  %v7660_v58 = vsel %vm3359_vm5, %v3332_v46, %v9840_v21  ;;  %v5176_v46 = vunpack.i.l.bf16 %v7124_v29  ;;  %v3423_v21 = vsel %vm3392_vm6, %v3390_v39, %v5206_v26  ;;  %v7681_v48 = vpack.i.bf16 %v1159_v18, %v1158_v34 }
 0x291   : > { %9836 = vst [vmem:[#allocation94_spill] sm:$0xff] %v7644_v57  ;;  %v7683_v5 = vpack.i.bf16 %v1191_v51, %v1190_v61  ;;  %v3492_v10 = vsel %vm3490_vm8, %v7568_v40, %v5132_v9  ;;  %v3491_v39 = vsel %vm3490_vm8, %v7563_v7, %v5131_v35  ;;  %v3454_v18 = vsel %vm397_vm0, %v3422_v11, %v5157_v17  ;;  %v1173_v57 = vld [vmem:[#allocation3 + $0x112] sm:$0xff] }
 0x292   : > { %9841 = vst [vmem:[#allocation97_spill] sm:$0xff] %v7660_v58  ;;  %v7666_v45 = vpop.permute.xlu2 %5589  ;;  %v3366_v29 = vsel %vm3359_vm5, %v3333_v28, %v5176_v46  ;;  %v3453_v61 = vsel %vm397_vm0, %v3421_v25, %v5156_v30  ;;  %v5221_v44 = vunpack.i.l.bf16 %v7175_v16  ;;  %v3455_v0 = vsel %vm397_vm0, %v3423_v21, %v5211_v49 }
 0x293   : > { %9843 = vst [vmem:[#allocation99_spill] sm:$0xff] %v7674_v33  ;;  %v3456_v26 = vsel %vm397_vm0, %v3424_v38, %v5212_v54  ;;  %v5217_v40 = vunpack.i.h.bf16 %v7160_v60  ;;  %v5227_v7 = vunpack.i.h.bf16 %v7185_v23  ;;  %v5226_v11 = vunpack.i.l.bf16 %v7185_v23  ;;  %v1163_v54 = vld [vmem:[#allocation3 + $0x9a] sm:$0xff] }
 0x294   : > { %9844 = vst [vmem:[#allocation100_spill] sm:$0xff] %v7681_v48  ;;  %v9845_v16 = vunpack.i.l.bf16 %v7093_v3  ;;  %v3367_v9 = vsel %vm3359_vm5, %v3334_v14, %v5177_v43  ;;  %v5236_v35 = vunpack.i.l.bf16 %v7230_v59  ;;  %v9848_v23 = vunpack.i.h.bf16 %v7093_v3  ;;  %v9876_v33 = vld [vmem:[#allocation30_spill] sm:$0xff] }
 0x295   : > { %v5237_v46 = vunpack.i.h.bf16 %v7230_v59  ;;  %v3489_v38 = vsel %vm3457_vm7, %v3456_v26, %v5217_v40  ;;  %v5232_v14 = vunpack.i.h.bf16 %v7216_v19  ;;  %v9850_v3 = vunpack.i.h.bf16 %v7069_v47  ;;  %v6403_v59 = vld [vmem:[#allocation2 + $0x60] sm:$0xff] }
 0x296   : > { %5759 = vrot.lane.b32.xlu0 %v5758_v31, %s6536_s29  ;;  %5744 = vrot.lane.b32.xlu1 %v7533_v56, %s6535_s9  ;;  %v5216_v31 = vunpack.i.l.bf16 %v7160_v60  ;;  %v3486_v51 = vsel %vm3457_vm7, %v3453_v61, %v9845_v16  ;;  %v9846_v60 = vunpack.i.l.bf16 %v7069_v47  ;;  %v3487_v30 = vsel %vm3457_vm7, %v3454_v18, %v9848_v23  ;;  %v6404_v18 = vld [vmem:[#allocation2 + $0x68] sm:$0xff] }
 0x297   : > { %v7730_v43 = vsel %vm3490_vm8, %v3487_v30, %v5222_v62  ;;  %v7733_v42 = vsel %vm3490_vm8, %v3486_v51, %v5221_v44  ;;  %v7739_v49 = vsel %vm3523_vm9, %v3492_v10, %v9850_v3  ;;  %v3336_v61 = vsel %vm535_vm1, %v6404_v18, %v5227_v7  ;;  %v1162_v7 = vld [vmem:[#allocation3 + $0x92] sm:$0xff]  ;;  %v1160_v51 = vld [vmem:[#allocation3 + $0x7a] sm:$0xff]  ;;  %v1193_v3 = vld [vmem:[#allocation3 + $0x84] sm:$0xff] }
 0x298   : > { %5769 = vrot.lane.b32.xlu2 %v7639_v41, %s6536_s29  ;;  %v7707_v25 = vpop.permute.xlu1 %5539  ;;  %v7709_v28 = vpop.permute.xlu0 %5564  ;;  %v7719_v17 = vsel %vm3523_vm9, %v3491_v39, %v9846_v60  ;;  %v3488_v34 = vsel %vm3457_vm7, %v3455_v0, %v5216_v31  ;;  %9851 = vst [vmem:[#allocation103_spill] sm:$0xff] %v7739_v49  ;;  %v3335_v39 = vsel %vm535_vm1, %v6403_v59, %v5226_v11  ;;  %v5242_v62 = vunpack.i.h.bf16 %v7189_v22  ;;  %v1161_v11 = vld [vmem:[#allocation3 + $0x82] sm:$0xff] }
 0x299   : > { %9847 = vst [vmem:[#allocation101_spill] sm:$0xff] %v7719_v17  ;;  %v5231_v0 = vunpack.i.l.bf16 %v7216_v19  ;;  %v5241_v44 = vunpack.i.l.bf16 %v7189_v22  ;;  %v3399_v47 = vsel %vm3392_vm6, %v3366_v29, %v5236_v35  ;;  %v9852_v10 = vunpack.i.l.bf16 %v7005_v1  ;;  %v1169_v41 = vld [vmem:[#allocation3 + $0xe2] sm:$0xff]  ;;  %v1199_v17 = vld [vmem:[#allocation3 + $0xcc] sm:$0xff] }
 0x29a   : > { %v7727_v21 = vpop.permute.xlu2 %5604  ;;  %v9853_v40 = vunpack.i.h.bf16 %v7005_v1  ;;  %v5247_v19 = vunpack.i.h.bf16 %v7200_v2  ;;  %v5272_v16 = vunpack.i.h.bf16 %v7221_v36  ;;  %v3400_v22 = vsel %vm3392_vm6, %v3367_v9, %v5237_v46  ;;  %v9855_v1 = vld [vmem:[#allocation16_spill] sm:$0xff] }
 0x29b   : > { %9849 = vst [vmem:[#allocation102_spill] sm:$0xff] %v7727_v21  ;;  %v7752_v26 = vsel %vm3490_vm8, %v3488_v34, %v9852_v10  ;;  %v7764_v29 = vpack.i.bf16 %v1163_v54, %v1162_v7  ;;  %v5246_v35 = vunpack.i.l.bf16 %v7200_v2  ;;  %v3369_v23 = vsel %vm3359_vm5, %v3336_v61, %v5232_v14  ;;  %v1164_v34 = vld [vmem:[#allocation3 + $0xaa] sm:$0xff] }
 0x29c   : > { %v7757_v31 = vsel %vm3490_vm8, %v3489_v38, %v9853_v40  ;;  %v5271_v30 = vunpack.i.l.bf16 %v7221_v36  ;;  %v1192_v38 = vld [vmem:[#allocation3 + $0x7c] sm:$0xff]  ;;  %v3368_v9 = vsel %vm3359_vm5, %v3335_v39, %v5231_v0  ;;  %v3431_v46 = vsel %vm397_vm0, %v3399_v47, %v5241_v44  ;;  %v9857_v14 = vld [vmem:[#allocation19_spill] sm:$0xff]  ;;  %v9858_v40 = vld [vmem:[#allocation20_spill] sm:$0xff] }
 0x29d   : > { %9854 = vst [vmem:[#allocation104_spill] sm:$0xff] %v7764_v29  ;;  %v7779_v18 = vpack.i.bf16 %v1161_v11, %v1160_v51  ;;  %v3432_v36 = vsel %vm397_vm0, %v3400_v22, %v5242_v62  ;;  %v5277_v61 = vunpack.i.h.bf16 %v9857_v14  ;;  %v5276_v10 = vunpack.i.l.bf16 %v9857_v14  ;;  %v1165_v39 = vld [vmem:[#allocation3 + $0xb2] sm:$0xff]  ;;  %v1195_v44 = vld [vmem:[#allocation3 + $0x9c] sm:$0xff] }
 0x29e   : > { %5774 = vrot.lane.b32.xlu0 %v7681_v48, %s6536_s29  ;;  %5764 = vrot.lane.b32.xlu1 %v7530_v52, %s6536_s29  ;;  %v5291_v7 = vunpack.i.l.bf16 %v9858_v40  ;;  %v1194_v0 = vld [vmem:[#allocation3 + $0x94] sm:$0xff]  ;;  %v3402_v47 = vsel %vm3392_vm6, %v3369_v23, %v5272_v16  ;;  %v5292_v60 = vunpack.i.h.bf16 %v9858_v40  ;;  %v7789_v48 = vpack.i.bf16 %v1165_v39, %v1164_v34  ;;  %v9861_v22 = vld [vmem:[#allocation22_spill] sm:$0xff]  ;;  %v9862_v52 = vld [vmem:[#allocation23_spill] sm:$0xff] }
 0x29f   : > { %9856 = vst [vmem:[#allocation16_spill] sm:$0xff] %v7779_v18  ;;  %v7791_v11 = vpack.i.bf16 %v1193_v3, %v1192_v38  ;;  %v3401_v62 = vsel %vm3392_vm6, %v3368_v9, %v5271_v30  ;;  %v5262_v51 = vunpack.i.h.bf16 %v9861_v22  ;;  %v5261_v14 = vunpack.i.l.bf16 %v9861_v22  ;;  %v1196_v38 = vld [vmem:[#allocation3 + $0xac] sm:$0xff]  ;;  %v6405_v9 = vld [vmem:[#allocation2 + $0x90] sm:$0xff] }
 0x2a0   : > { %5784 = vrot.lane.b32.xlu2 %v7764_v29, %s6536_s29  ;;  %v7775_v54 = vpop.permute.xlu1 %5554  ;;  %v7777_v2 = vpop.permute.xlu0 %5579  ;;  %9859 = vst [vmem:[#allocation19_spill] sm:$0xff] %v7789_v48  ;;  %v3464_v29 = vsel %vm3457_vm7, %v3431_v46, %v5246_v35  ;;  %v5297_v21 = vunpack.i.h.bf16 %v9862_v52  ;;  %v5296_v16 = vunpack.i.l.bf16 %v9862_v52  ;;  %v3465_v23 = vsel %vm3457_vm7, %v3432_v36, %v5247_v19  ;;  %v9863_v46 = vld [vmem:[#allocation25_spill] sm:$0xff]  ;;  %v6406_v22 = vld [vmem:[#allocation2 + $0x98] sm:$0xff]  ;;  %v9866_v36 = vld [vmem:[#allocation26_spill] sm:$0xff] }
 0x2a1   : > { %9860 = vst [vmem:[#allocation20_spill] sm:$0xff] %v7791_v11  ;;  %v7802_v34 = vpack.i.bf16 %v1195_v44, %v1194_v0  ;;  %v3433_v30 = vsel %vm397_vm0, %v3401_v62, %v5276_v10  ;;  %v3434_v3 = vsel %vm397_vm0, %v3402_v47, %v5277_v61  ;;  %v3339_v35 = vsel %vm535_vm1, %v6405_v9, %v5291_v7  ;;  %v1168_v39 = vld [vmem:[#allocation3 + $0xda] sm:$0xff]  ;;  %v6407_v44 = vld [vmem:[#allocation2 + $0x80] sm:$0xff]  ;;  %v6408_v47 = vld [vmem:[#allocation2 + $0x78] sm:$0xff] }
 0x2a2   : > { %v7787_v59 = vpop.permute.xlu2 %5619  ;;  %v5282_v40 = vunpack.i.h.bf16 %v9863_v46  ;;  %v3340_v52 = vsel %vm535_vm1, %v6406_v22, %v5292_v60  ;;  %v9864_v19 = vld [vmem:[#allocation21_spill] sm:$0xff]  ;;  %v7813_v0 = vpack.i.bf16 %v1169_v41, %v1168_v39  ;;  %v3338_v7 = vsel %vm535_vm1, %v6407_v44, %v5262_v51 }
 0x2a3   : > { %v1197_v10 = vld [vmem:[#allocation3 + $0xb4] sm:$0xff]  ;;  %v3337_v62 = vsel %vm535_vm1, %v6408_v47, %v5261_v14  ;;  %v7821_v22 = vsel %vm3359_vm5, %v3340_v52, %v5297_v21  ;;  %v5302_v41 = vunpack.i.h.bf16 %v9866_v36  ;;  %v5301_v39 = vunpack.i.l.bf16 %v9866_v36 }
 0x2a4   : > { %9865 = vst [vmem:[#allocation22_spill] sm:$0xff] %v7813_v0  ;;  %v1170_v9 = vld [vmem:[#allocation3 + $0xf2] sm:$0xff]  ;;  %v7818_v60 = vpack.i.bf16 %v1197_v10, %v1196_v38  ;;  %v3467_v38 = vsel %vm3457_vm7, %v3434_v3, %v5282_v40  ;;  %v9870_v10 = vld [vmem:[#allocation27_spill] sm:$0xff]  ;;  %v9874_v3 = vunpack.i.l.bf16 %v9855_v1 }
 0x2a5   : > { %v9869_v14 = vld [vmem:[#allocation24_spill] sm:$0xff]  ;;  %v5287_v21 = vunpack.i.h.bf16 %v9870_v10  ;;  %v5286_v52 = vunpack.i.l.bf16 %v9870_v10  ;;  %v9875_v10 = vunpack.i.h.bf16 %v9855_v1 }
 0x2a6   : > { %5789 = vrot.lane.b32.xlu0 %v7789_v48, %s6536_s29  ;;  %v5281_v48 = vunpack.i.l.bf16 %v9863_v46  ;;  %5779 = vrot.lane.b32.xlu1 %v7779_v18, %s6536_s29  ;;  %v3372_v46 = vsel %vm3359_vm5, %v3339_v35, %v5296_v16  ;;  %v5317_v44 = vunpack.i.h.bf16 %v9869_v14  ;;  %v1171_v16 = vld [vmem:[#allocation3 + $0xfa] sm:$0xff]  ;;  %v1167_v35 = vld [vmem:[#allocation3 + $0xca] sm:$0xff]  ;;  %v5316_v58 = vunpack.i.l.bf16 %v9869_v14 }
 0x2a7   : > { %v9871_v36 = vld [vmem:[#allocation28_spill] sm:$0xff]  ;;  %v3370_v40 = vsel %vm3359_vm5, %v3337_v62, %v9874_v3  ;;  %v3371_v63 = vsel %vm3359_vm5, %v3338_v7, %v9875_v10  ;;  %v7859_v62 = vsel %vm3490_vm8, %v3465_v23, %v5287_v21  ;;  %v7862_v1 = vsel %vm3490_vm8, %v3464_v29, %v5286_v52  ;;  %v9882_v23 = vld [vmem:[#allocation33_spill] sm:$0xff] }
 0x2a8   : > { %5799 = vrot.lane.b32.xlu2 %v7813_v0, %s6536_s29  ;;  %v7828_v61 = vpop.permute.xlu1 %5569  ;;  %v7830_v51 = vpop.permute.xlu0 %5594  ;;  %v3466_v47 = vsel %vm3457_vm7, %v3433_v30, %v5281_v48  ;;  %v5322_v18 = vunpack.i.h.bf16 %v9871_v36  ;;  %v5321_v0 = vunpack.i.l.bf16 %v9871_v36  ;;  %v5307_v48 = vunpack.i.h.bf16 %v9876_v33  ;;  %v1166_v30 = vld [vmem:[#allocation3 + $0xc2] sm:$0xff]  ;;  %9878 = vst [vmem:[#allocation27_spill] sm:$0xff] %v7859_v62  ;;  %v9880_v3 = vld [vmem:[#allocation36_spill] sm:$0xff] }
 0x2a9   : > { %9867 = vst [vmem:[#allocation23_spill] sm:$0xff] %v7828_v61  ;;  %v7841_v61 = vpack.i.bf16 %v1171_v16, %v1170_v9  ;;  %v3404_v36 = vsel %vm3392_vm6, %v3371_v63, %v5302_v41  ;;  %v3403_v32 = vsel %vm3392_vm6, %v3370_v40, %v5301_v39  ;;  %v5306_v9 = vunpack.i.l.bf16 %v9876_v33  ;;  %v1174_v41 = vld [vmem:[#allocation3 + $0x122] sm:$0xff]  ;;  %v6409_v39 = vld [vmem:[#allocation2 + $0xa8] sm:$0xff] }
 0x2aa   : > { %9868 = vst [vmem:[#allocation25_spill] sm:$0xff] %v7830_v51  ;;  %v7839_v56 = vpop.permute.xlu2 %5634  ;;  %v7856_v14 = vpack.i.bf16 %v1167_v35, %v1166_v30  ;;  %v7865_v7 = vsel %vm3490_vm8, %v3466_v47, %v5316_v58  ;;  %v7868_v63 = vsel %vm3490_vm8, %v3467_v38, %v5317_v44  ;;  %v3341_v33 = vsel %vm535_vm1, %v6409_v39, %v5321_v0  ;;  %v6410_v16 = vld [vmem:[#allocation2 + $0xb0] sm:$0xff]  ;;  %v9883_v44 = vld [vmem:[#allocation35_spill] sm:$0xff]  ;;  %v9884_v0 = vld [vmem:[#allocation29_spill] sm:$0xff] }
 0x2ab   : > { %9872 = vst [vmem:[#allocation21_spill] sm:$0xff] %v7839_v56  ;;  %v3342_v35 = vsel %vm535_vm1, %v6410_v16, %v5322_v18  ;;  %v5331_v40 = vunpack.i.l.bf16 %v9880_v3  ;;  %v7875_v29 = vpack.i.bf16 %v1175_v13, %v1174_v41  ;;  %v3436_v58 = vsel %vm397_vm0, %v3404_v36, %v5307_v48  ;;  %v1176_v47 = vld [vmem:[#allocation3 + $0x13a] sm:$0xff]  ;;  %v9886_v36 = vld [vmem:[#allocation31_spill] sm:$0xff] }
 0x2ac   : > { %9873 = vst [vmem:[#allocation26_spill] sm:$0xff] %v7841_v61  ;;  %v5347_v21 = vunpack.i.h.bf16 %v9882_v23  ;;  %v5326_v38 = vunpack.i.l.bf16 %v9883_v44  ;;  %v5332_v52 = vunpack.i.h.bf16 %v9880_v3  ;;  %v5337_v10 = vunpack.i.h.bf16 %v9884_v0  ;;  %v9887_v3 = vld [vmem:[#allocation32_spill] sm:$0xff] }
 0x2ad   : > { %9877 = vst [vmem:[#allocation24_spill] sm:$0xff] %v7856_v14  ;;  %v5336_v18 = vunpack.i.l.bf16 %v9884_v0  ;;  %v3435_v30 = vsel %vm397_vm0, %v3403_v32, %v5306_v9  ;;  %v5327_v39 = vunpack.i.h.bf16 %v9883_v44  ;;  %v5342_v41 = vunpack.i.h.bf16 %v9886_v36  ;;  %v1177_v0 = vld [vmem:[#allocation3 + $0x142] sm:$0xff] }
 0x2ae   : > { %5804 = vrot.lane.b32.xlu0 %v7841_v61, %s6536_s29  ;;  %9879 = vst [vmem:[#allocation28_spill] sm:$0xff] %v7862_v1  ;;  %5794 = vrot.lane.b32.xlu1 %v7856_v14, %s6536_s29  ;;  %v5341_v16 = vunpack.i.l.bf16 %v9886_v36  ;;  %v9888_v32 = vunpack.i.h.bf16 %v9864_v19  ;;  %v5346_v44 = vunpack.i.l.bf16 %v9882_v23  ;;  %v9891_v36 = vunpack.i.l.bf16 %v9864_v19  ;;  %v1198_v23 = vld [vmem:[#allocation3 + $0xc4] sm:$0xff] }
 0x2af   : > { %9881 = vst [vmem:[#allocation30_spill] sm:$0xff] %v7875_v29  ;;  %v3374_v62 = vsel %vm3359_vm5, %v3341_v33, %v5326_v38  ;;  %v7922_v33 = vld [vmem:[#allocation3 + $0xe4] sm:$0xff] }
 0x2b0   : > { %5814 = vrot.lane.b32.xlu2 %v7875_v29, %s6536_s29  ;;  %v7887_v13 = vpop.permute.xlu1 %5584  ;;  %v7889_v48 = vpop.permute.xlu0 %5609  ;;  %v3469_v9 = vsel %vm3457_vm7, %v3436_v58, %v9888_v32  ;;  %v3405_v29 = vsel %vm3392_vm6, %v3372_v46, %v5331_v40  ;;  %v3468_v61 = vsel %vm3457_vm7, %v3435_v30, %v9891_v36  ;;  %v3406_v58 = vsel %vm3392_vm6, %v7821_v22, %v5332_v52  ;;  %v1172_v32 = vld [vmem:[#allocation3 + $0x10a] sm:$0xff]  ;;  %v9892_v40 = vld [vmem:[#allocation37_spill] sm:$0xff]  ;;  %v9894_v38 = vld [vmem:[#allocation34_spill] sm:$0xff] }
 0x2b1   : > { %9885 = vst [vmem:[#allocation36_spill] sm:$0xff] %v7889_v48  ;;  %v7902_v48 = vpack.i.bf16 %v1177_v0, %v1176_v47  ;;  %v7908_v14 = vsel %vm3490_vm8, %v3469_v9, %v5347_v21  ;;  %v3375_v46 = vsel %vm3359_vm5, %v3342_v35, %v5327_v39  ;;  %v5367_v47 = vunpack.i.h.bf16 %v9892_v40  ;;  %v7920_v21 = vld [vmem:[#allocation3 + $0xdc] sm:$0xff]  ;;  %v1182_v9 = vld [vmem:[#allocation3 + $0x4] sm:$0xff]  ;;  %v1183_v36 = vld [vmem:[#allocation3 + $0xc] sm:$0xff] }
 0x2b2   : > { %v7900_v1 = vpop.permute.xlu2 %5649  ;;  %v5366_v0 = vunpack.i.l.bf16 %v9892_v40  ;;  %v7918_v19 = vpack.i.bf16 %v1173_v57, %v1172_v32  ;;  %v5362_v22 = vunpack.i.h.bf16 %v9894_v38  ;;  %v5361_v52 = vunpack.i.l.bf16 %v9894_v38  ;;  %v9895_v35 = vld [vmem:[#allocation38_spill] sm:$0xff] }
 0x2b3   : > { %9889 = vst [vmem:[#allocation33_spill] sm:$0xff] %v7900_v1  ;;  %v3437_v30 = vsel %vm397_vm0, %v3405_v29, %v5336_v18  ;;  %v5381_v39 = vunpack.i.l.bf16 %v9895_v35  ;;  %v7929_v40 = vsel %vm3490_vm8, %v3468_v61, %v5346_v44  ;;  %v3438_v57 = vsel %vm397_vm0, %v3406_v58, %v5337_v10  ;;  %v9896_v18 = vld [vmem:[#allocation40_spill] sm:$0xff] }
 0x2b4   : > { %9890 = vst [vmem:[#allocation35_spill] sm:$0xff] %v7902_v48  ;;  %v5382_v32 = vunpack.i.h.bf16 %v9895_v35  ;;  %v3407_v38 = vsel %vm3392_vm6, %v3374_v62, %v5361_v52  ;;  %v3408_v29 = vsel %vm3392_vm6, %v3375_v46, %v5362_v22  ;;  %v5352_v1 = vunpack.i.h.bf16 %v9896_v18  ;;  %v6411_v46 = vld [vmem:[#allocation2 + $0xd8] sm:$0xff]  ;;  %v1179_v52 = vld [vmem:[#allocation3 + $0x15a] sm:$0xff] }
 0x2b5   : > { %9893 = vst [vmem:[#allocation29_spill] sm:$0xff] %v7918_v19  ;;  %v3439_v61 = vsel %vm397_vm0, %v3407_v38, %v5366_v0  ;;  %v3440_v10 = vsel %vm397_vm0, %v3408_v29, %v5367_v47  ;;  %v7945_v44 = vsel %vm3457_vm7, %v3437_v30, %v5341_v16  ;;  %v5833_v58 = vpack.i.bf16 %v1183_v36, %v1182_v9  ;;  %v6412_v30 = vld [vmem:[#allocation2 + $0xe0] sm:$0xff]  ;;  %v9899_v38 = vld [vmem:[#allocation39_spill] sm:$0xff]  ;;  %v9900_v9 = vld [vmem:[#allocation41_spill] sm:$0xff] }
 0x2b6   : > { %5819 = vrot.lane.b32.xlu0 %v7902_v48, %s6536_s29  ;;  %5809 = vrot.lane.b32.xlu1 %v7918_v19, %s6536_s29  ;;  %v7935_v48 = vpack.i.bf16 %v1199_v17, %v1198_v23  ;;  %v7953_v23 = vld [vmem:[#allocation3 + $0xf4] sm:$0xff]  ;;  %v3345_v22 = vsel %vm535_vm1, %v6411_v46, %v5381_v39  ;;  %v3471_v0 = vsel %vm3457_vm7, %v3438_v57, %v5342_v41  ;;  %v5587_v47 = vunpack.i.h.bf16 %v7887_v13  ;;  %v7963_v19 = vld [vmem:[#allocation3 + $0xfc] sm:$0xff] }
 0x2b7   : > { %v5586_v16 = vunpack.i.l.bf16 %v7887_v13  ;;  %v3346_v35 = vsel %vm535_vm1, %v6412_v30, %v5382_v32  ;;  %v5351_v49 = vunpack.i.l.bf16 %v9896_v18  ;;  %v5387_v36 = vunpack.i.h.bf16 %v9900_v9  ;;  %v6413_v41 = vld [vmem:[#allocation2 + $0xc8] sm:$0xff]  ;;  %v9901_v30 = vld [vmem:[#allocation43_spill] sm:$0xff] }
 0x2b8   : > { %5829 = vrot.lane.b32.xlu2 %v7535_v27, %s6536_s29  ;;  %v7949_v17 = vpop.permute.xlu1 %5599  ;;  %v7951_v62 = vpop.permute.xlu0 %5624  ;;  %v3344_v57 = vsel %vm535_vm1, %v6413_v41, %v5352_v1  ;;  %v5386_v13 = vunpack.i.l.bf16 %v9900_v9  ;;  %v1178_v46 = vld [vmem:[#allocation3 + $0x152] sm:$0xff]  ;;  %v5371_v29 = vunpack.i.l.bf16 %v9901_v30  ;;  %v5372_v39 = vunpack.i.h.bf16 %v9901_v30 }
 0x2b9   : > { %9897 = vst [vmem:[#allocation31_spill] sm:$0xff] %v7949_v17  ;;  %v3553_v1 = vsel %vm3523_vm9, %v7730_v43, %v5587_v47  ;;  %v3552_v9 = vsel %vm3523_vm9, %v7733_v42, %v5586_v16  ;;  %v6414_v41 = vld [vmem:[#allocation2 + $0xc0] sm:$0xff]  ;;  %v7981_v51 = vsel %vm3359_vm5, %v3346_v35, %v5387_v36  ;;  %v9905_v47 = vld [vmem:[#allocation42_spill] sm:$0xff]  ;;  %v9907_v30 = vld [vmem:[#allocation45_spill] sm:$0xff] }
 0x2ba   : > { %9898 = vst [vmem:[#allocation32_spill] sm:$0xff] %v7951_v62  ;;  %v5665_v27 = vpop.permute.xlu2 %5664  ;;  %v7972_v62 = vpack.i.bf16 %v1179_v52, %v1178_v46  ;;  %v3343_v32 = vsel %vm535_vm1, %v6414_v41, %v5351_v49  ;;  %v7992_v43 = vsel %vm3359_vm5, %v3345_v22, %v5386_v13  ;;  %v5407_v42 = vunpack.i.h.bf16 %v9905_v47  ;;  %v9906_v16 = vld [vmem:[#allocation44_spill] sm:$0xff]  ;;  %v1184_v35 = vld [vmem:[#allocation3 + $0x1c] sm:$0xff]  ;;  %v1185_v36 = vld [vmem:[#allocation3 + $0x24] sm:$0xff] }
 0x2bb   : > { %v5667_v17 = vunpack.i.h.bf16 %v5665_v27  ;;  %v5666_v18 = vunpack.i.l.bf16 %v5665_v27  ;;  %v5392_v52 = vunpack.i.h.bf16 %v9906_v16  ;;  %v5391_v49 = vunpack.i.l.bf16 %v9906_v16 }
 0x2bc   : > { %9902 = vst [vmem:[#allocation37_spill] sm:$0xff] %v7972_v62  ;;  %v3472_v46 = vsel %vm3457_vm7, %v3439_v61, %v5371_v29  ;;  %v5406_v41 = vunpack.i.l.bf16 %v9905_v47  ;;  %v3473_v16 = vsel %vm3457_vm7, %v3440_v10, %v5372_v39  ;;  %v9910_v61 = vld [vmem:[#allocation48_spill] sm:$0xff]  ;;  %v9914_v39 = vld [vmem:[#allocation53_spill] sm:$0xff] }
 0x2bd   : > { %v7984_v27 = vsel %vm3556_vm10, %v3552_v9, %v5666_v18  ;;  %v5377_v18 = vunpack.i.h.bf16 %v9907_v30  ;;  %v5396_v29 = vunpack.i.l.bf16 %v9910_v61  ;;  %v5397_v56 = vunpack.i.h.bf16 %v9910_v61 }
 0x2be   : > { %5834 = vrot.lane.b32.xlu0 %v5833_v58, %s6537_s30  ;;  %9903 = vst [vmem:[#allocation34_spill] sm:$0xff] %v7984_v27  ;;  %v7987_v58 = vsel %vm3556_vm10, %v3553_v1, %v5667_v17  ;;  %5824 = vrot.lane.b32.xlu1 %v7972_v62, %s6536_s29  ;;  %v5376_v17 = vunpack.i.l.bf16 %v9907_v30  ;;  %v9908_v1 = vld [vmem:[#allocation46_spill] sm:$0xff]  ;;  %v9911_v27 = vunpack.i.l.bf16 %v9887_v3  ;;  %v8024_v4 = vsel %vm3490_vm8, %v3472_v46, %v5406_v41  ;;  %v9918_v41 = vld [vmem:[#allocation51_spill] sm:$0xff] }
 0x2bf   : > { %9904 = vst [vmem:[#allocation38_spill] sm:$0xff] %v7987_v58  ;;  %v5411_v9 = vunpack.i.l.bf16 %v9908_v1  ;;  %v5412_v62 = vunpack.i.h.bf16 %v9908_v1  ;;  %v9912_v58 = vunpack.i.h.bf16 %v9887_v3  ;;  %v5416_v1 = vunpack.i.l.bf16 %v9914_v39 }
 0x2c0   : > { %5844 = vrot.lane.b32.xlu2 %v7537_v50, %s6537_s30  ;;  %v8003_v22 = vpop.permute.xlu1 %5614  ;;  %v8005_v13 = vpop.permute.xlu0 %5639  ;;  %v3376_v30 = vsel %vm3359_vm5, %v3343_v32, %v9911_v27  ;;  %v8027_v32 = vsel %vm3490_vm8, %v3471_v0, %v5377_v18  ;;  %v8031_v3 = vsel %vm3490_vm8, %v7945_v44, %v5376_v17  ;;  %v5417_v46 = vunpack.i.h.bf16 %v9914_v39  ;;  %v6417_v0 = vld [vmem:[#allocation2 + $0x138] sm:$0xff] }
 0x2c1   : > { %9909 = vst [vmem:[#allocation40_spill] sm:$0xff] %v8005_v13  ;;  %v3377_v50 = vsel %vm3359_vm5, %v3344_v57, %v9912_v58  ;;  %v5838_v13 = vpack.i.bf16 %v1185_v36, %v1184_v35  ;;  %v3409_v10 = vsel %vm3392_vm6, %v3376_v30, %v5391_v49  ;;  %v6415_v57 = vld [vmem:[#allocation2 + $0xf0] sm:$0xff]  ;;  %v8035_v58 = vsel %vm3490_vm8, %v3473_v16, %v5407_v42  ;;  %v9916_v49 = vld [vmem:[#allocation47_spill] sm:$0xff]  ;;  %v9917_v42 = vld [vmem:[#allocation68_spill] sm:$0xff] }
 0x2c2   : > { %v8018_v24 = vpop.permute.xlu2 %5679  ;;  %v3410_v47 = vsel %vm3392_vm6, %v3377_v50, %v5392_v52  ;;  %9915 = vst [vmem:[#allocation41_spill] sm:$0xff] %v8031_v3  ;;  %v3347_v27 = vsel %vm535_vm1, %v6415_v57, %v5411_v9  ;;  %v6416_v50 = vld [vmem:[#allocation2 + $0xf8] sm:$0xff]  ;;  %v8043_v36 = vsel %vm397_vm0, %v3409_v10, %v5396_v29  ;;  %v5507_v18 = vunpack.i.h.bf16 %v9917_v42  ;;  %v6418_v16 = vld [vmem:[#allocation2 + $0x140] sm:$0xff] }
 0x2c3   : > { %9913 = vst [vmem:[#allocation39_spill] sm:$0xff] %v8018_v24  ;;  %v3348_v52 = vsel %vm535_vm1, %v6416_v50, %v5412_v62  ;;  %v8046_v44 = vsel %vm397_vm0, %v3410_v47, %v5397_v56  ;;  %v5506_v17 = vunpack.i.l.bf16 %v9917_v42  ;;  %v8052_v9 = vld [vmem:[#allocation3 + $0x10c] sm:$0xff]  ;;  %v8054_v62 = vld [vmem:[#allocation3 + $0x114] sm:$0xff]  ;;  %v3380_v61 = vsel %vm3359_vm5, %v3347_v27, %v5416_v1 }
 0x2c4   : > { %v5512_v29 = vunpack.i.h.bf16 %v7602_v20  ;;  %v5511_v56 = vunpack.i.l.bf16 %v7602_v20  ;;  %v9919_v47 = vld [vmem:[#allocation52_spill] sm:$0xff]  ;;  %v5537_v39 = vunpack.i.h.bf16 %v7604_v6  ;;  %v5617_v27 = vunpack.i.h.bf16 %v8003_v22  ;;  %v9921_v24 = vld [vmem:[#allocation55_spill] sm:$0xff] }
 0x2c5   : > { %v5451_v10 = vunpack.i.l.bf16 %v9919_v47  ;;  %v5452_v1 = vunpack.i.h.bf16 %v9919_v47  ;;  %v5616_v20 = vunpack.i.l.bf16 %v8003_v22  ;;  %v5888_v42 = vpack.i.bf16 %v8054_v62, %v8052_v9 }
 0x2c6   : > { %5849 = vrot.lane.b32.xlu0 %v7648_v53, %s6537_s30  ;;  %5839 = vrot.lane.b32.xlu1 %v5838_v13, %s6537_s30  ;;  %v5536_v13 = vunpack.i.l.bf16 %v7604_v6  ;;  %v3381_v35 = vsel %vm3359_vm5, %v3348_v52, %v5417_v46  ;;  %v3353_v30 = vsel %vm535_vm1, %v6417_v0, %v5506_v17  ;;  %v3354_v53 = vsel %vm535_vm1, %v6418_v16, %v5507_v18 }
 0x2c7   : > { %v3413_v6 = vsel %vm3392_vm6, %v3380_v61, %v5451_v10  ;;  %v5457_v47 = vunpack.i.h.bf16 %v9921_v24  ;;  %v3386_v22 = vsel %vm3359_vm5, %v3353_v30, %v5511_v56  ;;  %v3387_v3 = vsel %vm3359_vm5, %v3354_v53, %v5512_v29 }
 0x2c8   : > { %5859 = vrot.lane.b32.xlu2 %v7791_v11, %s6537_s30  ;;  %v8066_v57 = vpop.permute.xlu1 %5629  ;;  %v8068_v50 = vpop.permute.xlu0 %5654  ;;  %v3533_v52 = vsel %vm3523_vm9, %v7868_v63, %v5537_v39  ;;  %v3532_v46 = vsel %vm3523_vm9, %v7865_v7, %v5536_v13  ;;  %v3414_v18 = vsel %vm3392_vm6, %v3381_v35, %v5452_v1  ;;  %v5592_v53 = vunpack.i.h.bf16 %v7666_v45 }
 0x2c9   : > { %9920 = vst [vmem:[#allocation43_spill] sm:$0xff] %v8068_v50  ;;  %v5456_v50 = vunpack.i.l.bf16 %v9921_v24  ;;  %v3565_v17 = vsel %vm3556_vm10, %v3532_v46, %v5616_v20  ;;  %v3566_v24 = vsel %vm3556_vm10, %v3533_v52, %v5617_v27  ;;  %v5591_v16 = vunpack.i.l.bf16 %v7666_v45 }
 0x2ca   : > { %v5695_v11 = vpop.permute.xlu2 %5694  ;;  %v9923_v56 = vunpack.i.l.bf16 %v7014_v8  ;;  %v9924_v10 = vunpack.i.h.bf16 %v7014_v8  ;;  %v3446_v13 = vsel %vm397_vm0, %v3414_v18, %v5457_v47  ;;  %v5552_v1 = vunpack.i.h.bf16 %v7646_v12 }
 0x2cb   : > { %v5697_v61 = vunpack.i.h.bf16 %v5695_v11  ;;  %v5696_v0 = vunpack.i.l.bf16 %v5695_v11  ;;  %v9922_v11 = vld [vmem:[#allocation54_spill] sm:$0xff]  ;;  %v3445_v39 = vsel %vm397_vm0, %v3413_v6, %v5456_v50  ;;  %v5551_v27 = vunpack.i.l.bf16 %v7646_v12 }
 0x2cc   : > { %v5422_v35 = vunpack.i.h.bf16 %v9922_v11  ;;  %v5421_v29 = vunpack.i.l.bf16 %v9922_v11  ;;  %v3419_v30 = vsel %vm3392_vm6, %v3386_v22, %v9923_v56  ;;  %v3420_v45 = vsel %vm3392_vm6, %v3387_v3, %v9924_v10 }
 0x2cd   : > { %v8095_v63 = vsel %vm3589_vm11, %v3565_v17, %v5696_v0  ;;  %v8098_v7 = vsel %vm3589_vm11, %v3566_v24, %v5697_v61  ;;  %v5632_v22 = vunpack.i.h.bf16 %v8066_v57  ;;  %v5631_v8 = vunpack.i.l.bf16 %v8066_v57  ;;  %v9927_v17 = vld [vmem:[#allocation62_spill] sm:$0xff] }
 0x2ce   : > { %5864 = vrot.lane.b32.xlu0 %v7802_v34, %s6537_s30  ;;  %5854 = vrot.lane.b32.xlu1 %v7683_v5, %s6537_s30  ;;  %v9925_v50 = vunpack.i.l.bf16 %v7056_v37  ;;  %v9926_v47 = vunpack.i.h.bf16 %v7056_v37  ;;  %v3555_v61 = vsel %vm3523_vm9, %v7757_v31, %v5592_v53  ;;  %v3554_v0 = vsel %vm3523_vm9, %v7752_v26, %v5591_v16 }
 0x2cf   : > { %v5462_v24 = vunpack.i.h.bf16 %v9927_v17  ;;  %v5461_v57 = vunpack.i.l.bf16 %v9927_v17  ;;  %v3539_v37 = vsel %vm3523_vm9, %v8035_v58, %v5552_v1  ;;  %v3538_v31 = vsel %vm3523_vm9, %v8024_v4, %v5551_v27 }
 0x2d0   : > { %5874 = vrot.lane.b32.xlu2 %v7935_v48, %s6537_s30  ;;  %v8116_v20 = vpop.permute.xlu1 %5644  ;;  %v5670_v52 = vpop.permute.xlu0 %5669  ;;  %v3451_v6 = vsel %vm397_vm0, %v3419_v30, %v9925_v50  ;;  %v3452_v12 = vsel %vm397_vm0, %v3420_v45, %v9926_v47  ;;  %v9928_v26 = vpack.i.bf16 %v7922_v33, %v7920_v21  ;;  %v9929_v16 = vunpack.i.l.bf16 %v7078_v55  ;;  %v1207_v47 = vld [vmem:[#allocation3 + $0x12c] sm:$0xff] }
 0x2d1   : > { %v5672_v46 = vunpack.i.h.bf16 %v5670_v52  ;;  %v5671_v3 = vunpack.i.l.bf16 %v5670_v52  ;;  %v9930_v52 = vunpack.i.h.bf16 %v7078_v55  ;;  %v3571_v58 = vsel %vm3556_vm10, %v3538_v31, %v5631_v8  ;;  %v9931_v55 = vld [vmem:[#allocation60_spill] sm:$0xff] }
 0x2d2   : > { %v5710_v18 = vpop.permute.xlu2 %5709  ;;  %v3484_v45 = vsel %vm3457_vm7, %v3451_v6, %v9929_v16  ;;  %v3572_v1 = vsel %vm3556_vm10, %v3539_v37, %v5632_v22  ;;  %v5582_v4 = vunpack.i.h.bf16 %v7777_v2  ;;  %v5581_v27 = vunpack.i.l.bf16 %v7777_v2  ;;  %v1206_v6 = vld [vmem:[#allocation3 + $0x124] sm:$0xff] }
 0x2d3   : > { %v8133_v56 = vsel %vm3556_vm10, %v3555_v61, %v5672_v46  ;;  %v8136_v30 = vsel %vm3556_vm10, %v3554_v0, %v5671_v3  ;;  %v5712_v53 = vunpack.i.h.bf16 %v5710_v18  ;;  %v5711_v10 = vunpack.i.l.bf16 %v5710_v18 }
 0x2d4   : > { %v3485_v46 = vsel %vm3457_vm7, %v3452_v12, %v9930_v52  ;;  %v5497_v33 = vunpack.i.h.bf16 %v9931_v55  ;;  %v5496_v50 = vunpack.i.l.bf16 %v9931_v55  ;;  %v3479_v8 = vsel %vm3457_vm7, %v3446_v13, %v5462_v24  ;;  %v1210_v24 = vld [vmem:[#allocation3 + $0x154] sm:$0xff] }
 0x2d5   : > { %v8157_v3 = vsel %vm3589_vm11, %v3571_v58, %v5711_v10  ;;  %v8160_v21 = vsel %vm3589_vm11, %v3572_v1, %v5712_v53  ;;  %v3478_v22 = vsel %vm3457_vm7, %v3445_v39, %v5461_v57  ;;  %v5567_v2 = vunpack.i.h.bf16 %v7709_v28  ;;  %v1211_v57 = vld [vmem:[#allocation3 + $0x15c] sm:$0xff] }
 0x2d6   : > { %5879 = vrot.lane.b32.xlu0 %v9928_v26, %s6537_s30  ;;  %5869 = vrot.lane.b32.xlu1 %v7818_v60, %s6537_s30  ;;  %v5566_v12 = vunpack.i.l.bf16 %v7709_v28  ;;  %v9932_v61 = vunpack.i.l.bf16 %v7105_v15  ;;  %v9933_v18 = vunpack.i.h.bf16 %v7105_v15  ;;  %v5647_v28 = vunpack.i.h.bf16 %v8116_v20 }
 0x2d7   : > { %v5646_v37 = vunpack.i.l.bf16 %v8116_v20  ;;  %v3511_v15 = vsel %vm3490_vm8, %v3478_v22, %v5496_v50  ;;  %v5893_v9 = vpack.i.bf16 %v1207_v47, %v1206_v6  ;;  %v3512_v62 = vsel %vm3490_vm8, %v3479_v8, %v5497_v33 }
 0x2d8   : > { %v3517_v0 = vsel %vm3490_vm8, %v3484_v45, %v9932_v61  ;;  %v3518_v17 = vsel %vm3490_vm8, %v3485_v46, %v9933_v18  ;;  %5889 = vrot.lane.b32.xlu2 %v5888_v42, %s6537_s30  ;;  %v5660_v39 = vpop.permute.xlu1 %5659  ;;  %v8180_v13 = vpop.permute.xlu0 %5684  ;;  %v5903_v52 = vpack.i.bf16 %v1211_v57, %v1210_v24  ;;  %v3545_v46 = vsel %vm3523_vm9, %v3512_v62, %v5567_v2  ;;  %v9940_v57 = vld [vmem:[#allocation56_spill] sm:$0xff] }
 0x2d9   : > { %v5662_v31 = vunpack.i.h.bf16 %v5660_v39  ;;  %v5661_v53 = vunpack.i.l.bf16 %v5660_v39  ;;  %v3550_v10 = vsel %vm3523_vm9, %v3517_v0, %v5581_v27  ;;  %v3551_v26 = vsel %vm3523_vm9, %v3518_v17, %v5582_v4 }
 0x2da   : > { %v5725_v16 = vpop.permute.xlu2 %5724  ;;  %v3544_v20 = vsel %vm3523_vm9, %v3511_v15, %v5566_v12  ;;  %v5542_v27 = vunpack.i.h.bf16 %v7707_v25  ;;  %v5541_v4 = vunpack.i.l.bf16 %v7707_v25  ;;  %v3578_v33 = vsel %vm3556_vm10, %v3545_v46, %v5647_v28  ;;  %v9935_v25 = vld [vmem:[#allocation49_spill] sm:$0xff] }
 0x2db   : > { %v3583_v42 = vsel %vm3556_vm10, %v3550_v10, %v5661_v53  ;;  %v3584_v45 = vsel %vm3556_vm10, %v3551_v26, %v5662_v31  ;;  %v5727_v58 = vunpack.i.h.bf16 %v5725_v16  ;;  %v5726_v1 = vunpack.i.l.bf16 %v5725_v16  ;;  %v1208_v28 = vld [vmem:[#allocation3 + $0x13c] sm:$0xff]  ;;  %v1209_v16 = vld [vmem:[#allocation3 + $0x144] sm:$0xff] }
 0x2dc   : > { %v3577_v55 = vsel %vm3556_vm10, %v3544_v20, %v5646_v37  ;;  %v5622_v50 = vunpack.i.h.bf16 %v7787_v59  ;;  %v5621_v8 = vunpack.i.l.bf16 %v7787_v59  ;;  %v9934_v47 = vpack.i.bf16 %v7963_v19, %v7953_v23  ;;  %v9942_v20 = vld [vmem:[#allocation79_spill] sm:$0xff] }
 0x2dd   : > { %v8200_v22 = vsel %vm3589_vm11, %v3577_v55, %v5726_v1  ;;  %v8203_v6 = vsel %vm3589_vm11, %v3578_v33, %v5727_v58  ;;  %v5432_v2 = vunpack.i.h.bf16 %v9935_v25  ;;  %v5431_v12 = vunpack.i.l.bf16 %v9935_v25  ;;  %v9943_v58 = vld [vmem:[#allocation78_spill] sm:$0xff] }
 0x2de   : > { %5894 = vrot.lane.b32.xlu0 %v5893_v9, %s6537_s30  ;;  %5884 = vrot.lane.b32.xlu1 %v9934_v47, %s6537_s30  ;;  %v9936_v61 = vunpack.i.l.bf16 %v9899_v38  ;;  %v9937_v0 = vunpack.i.h.bf16 %v9899_v38  ;;  %v9938_v17 = vunpack.i.h.bf16 %v9918_v41  ;;  %v9939_v19 = vunpack.i.l.bf16 %v9918_v41  ;;  %v9941_v9 = vld [vmem:[#allocation59_spill] sm:$0xff]  ;;  %v9947_v47 = vld [vmem:[#allocation21_spill] sm:$0xff] }
 0x2df   : > { %v3412_v24 = vsel %vm3392_vm6, %v7981_v51, %v5422_v35  ;;  %v3535_v37 = vsel %vm3523_vm9, %v7908_v14, %v5542_v27  ;;  %v3534_v41 = vsel %vm3523_vm9, %v7929_v40, %v5541_v4  ;;  %v3411_v51 = vsel %vm3392_vm6, %v7992_v43, %v5421_v29 }
 0x2e0   : > { %v3474_v59 = vsel %vm3457_vm7, %v8043_v36, %v9936_v61  ;;  %v3475_v18 = vsel %vm3457_vm7, %v8046_v44, %v9937_v0  ;;  %v5472_v36 = vunpack.i.h.bf16 %v9940_v57  ;;  %5904 = vrot.lane.b32.xlu2 %v5903_v52, %s6537_s30  ;;  %v8231_v38 = vpop.permute.xlu1 %5674  ;;  %v5700_v44 = vpop.permute.xlu0 %5699  ;;  %v5471_v35 = vunpack.i.l.bf16 %v9940_v57 }
 0x2e1   : > { %v3508_v39 = vsel %vm3490_vm8, %v3475_v18, %v9938_v17  ;;  %v3507_v23 = vsel %vm3490_vm8, %v3474_v59, %v9939_v19  ;;  %v5702_v31 = vunpack.i.h.bf16 %v5700_v44  ;;  %v5701_v53 = vunpack.i.l.bf16 %v5700_v44 }
 0x2e2   : > { %v3567_v15 = vsel %vm3556_vm10, %v3534_v41, %v5621_v8  ;;  %v3568_v10 = vsel %vm3556_vm10, %v3535_v37, %v5622_v50  ;;  %v5740_v26 = vpop.permute.xlu2 %5739  ;;  %v5477_v14 = vunpack.i.h.bf16 %v9941_v9  ;;  %v8251_v11 = vpack.i.bf16 %v1209_v16, %v1208_v28  ;;  %v6419_v50 = vld [vmem:[#allocation2 + $0x128] sm:$0xff]  ;;  %v9950_v41 = vld [vmem:[#allocation70_spill] sm:$0xff] }
 0x2e3   : > { %v8246_v62 = vsel %vm3589_vm11, %v3568_v10, %v5702_v31  ;;  %v8249_v40 = vsel %vm3589_vm11, %v3567_v15, %v5701_v53  ;;  %v5557_v43 = vunpack.i.h.bf16 %v7775_v54  ;;  %v5556_v29 = vunpack.i.l.bf16 %v7775_v54  ;;  %v9949_v28 = vld [vmem:[#allocation25_spill] sm:$0xff] }
 0x2e4   : > { %v5742_v52 = vunpack.i.h.bf16 %v5740_v26  ;;  %v5741_v46 = vunpack.i.l.bf16 %v5740_v26  ;;  %v9944_v1 = vpack.i.bf16 %v9942_v20, %v9943_v58  ;;  %v9945_v27 = vunpack.i.l.bf16 %v9916_v49  ;;  %v9951_v26 = vld [vmem:[#allocation75_spill] sm:$0xff]  ;;  %v9953_v20 = vld [vmem:[#allocation101_spill] sm:$0xff] }
 0x2e5   : > { %v9946_v55 = vunpack.i.h.bf16 %v9916_v49  ;;  %v3352_v54 = vsel %vm535_vm1, %v6419_v50, %v5472_v36  ;;  %v5476_v8 = vunpack.i.l.bf16 %v9941_v9  ;;  %v5637_v61 = vunpack.i.h.bf16 %v9947_v47  ;;  %v6420_v49 = vld [vmem:[#allocation2 + $0x120] sm:$0xff]  ;;  %v9955_v50 = vld [vmem:[#allocation27_spill] sm:$0xff] }
 0x2e6   : > { %5909 = vrot.lane.b32.xlu0 %v9944_v1, %s6537_s30  ;;  %v8262_v4 = vsel %vm397_vm0, %v3411_v51, %v9945_v27  ;;  %v5636_v59 = vunpack.i.l.bf16 %v9947_v47  ;;  %v8274_v0 = vsel %vm3589_vm11, %v3583_v42, %v5741_v46  ;;  %v8277_v18 = vsel %vm3589_vm11, %v3584_v45, %v5742_v52  ;;  %5899 = vrot.lane.b32.xlu1 %v8251_v11, %s6537_s30 }
 0x2e7   : > { %v8267_v33 = vsel %vm397_vm0, %v3412_v24, %v9946_v55  ;;  %v3351_v17 = vsel %vm535_vm1, %v6420_v49, %v5471_v35  ;;  %v3385_v19 = vsel %vm3359_vm5, %v3352_v54, %v5477_v14  ;;  %v9948_v24 = vld [vmem:[#allocation64_spill] sm:$0xff]  ;;  %v3541_v44 = vsel %vm3523_vm9, %v3508_v39, %v5557_v43  ;;  %v9954_v55 = vld [vmem:[#allocation66_spill] sm:$0xff] }
 0x2e8   : > { %v5502_v57 = vunpack.i.h.bf16 %v9948_v24  ;;  %v5501_v36 = vunpack.i.l.bf16 %v9948_v24  ;;  %v3540_v42 = vsel %vm3523_vm9, %v3507_v23, %v5556_v29  ;;  %v5597_v37 = vunpack.i.h.bf16 %v9949_v28  ;;  %5919 = vrot.lane.b32.xlu2 %v9950_v41, %s6538_s10  ;;  %v5690_v31 = vpop.permute.xlu1 %5689  ;;  %v5715_v53 = vpop.permute.xlu0 %5714  ;;  %v9957_v49 = vld [vmem:[#allocation32_spill] sm:$0xff] }
 0x2e9   : > { %v5596_v45 = vunpack.i.l.bf16 %v9949_v28  ;;  %v5677_v51 = vunpack.i.h.bf16 %v8231_v38  ;;  %v5676_v35 = vunpack.i.l.bf16 %v8231_v38  ;;  %v5717_v15 = vunpack.i.h.bf16 %v5715_v53  ;;  %v9952_v38 = vld [vmem:[#allocation103_spill] sm:$0xff]  ;;  %v9958_v28 = vld [vmem:[#allocation61_spill] sm:$0xff] }
 0x2ea   : > { %v5716_v10 = vunpack.i.l.bf16 %v5715_v53  ;;  %v3384_v39 = vsel %vm3359_vm5, %v3351_v17, %v5476_v8  ;;  %v5547_v23 = vunpack.i.h.bf16 %v9951_v26  ;;  %v3573_v16 = vsel %vm3556_vm10, %v3540_v42, %v5636_v59  ;;  %v5750_v14 = vpop.permute.xlu2 %5749  ;;  %v9956_v8 = vld [vmem:[#allocation28_spill] sm:$0xff] }
 0x2eb   : > { %v3574_v9 = vsel %vm3556_vm10, %v3541_v44, %v5637_v61  ;;  %v5546_v43 = vunpack.i.l.bf16 %v9951_v26  ;;  %v3558_v46 = vsel %vm3556_vm10, %v9952_v38, %v5597_v37  ;;  %v3557_v58 = vsel %vm3556_vm10, %v9953_v20, %v5596_v45  ;;  %v9960_v45 = vld [vmem:[#allocation94_spill] sm:$0xff] }
 0x2ec   : > { %v8299_v29 = vsel %vm3589_vm11, %v3574_v9, %v5717_v15  ;;  %v8302_v52 = vsel %vm3589_vm11, %v3573_v16, %v5716_v10  ;;  %v5752_v1 = vunpack.i.h.bf16 %v5750_v14  ;;  %v5751_v27 = vunpack.i.l.bf16 %v5750_v14  ;;  %v9962_v10 = vld [vmem:[#allocation36_spill] sm:$0xff] }
 0x2ed   : > { %v3531_v54 = vsel %vm3523_vm9, %v9955_v50, %v5502_v57  ;;  %v3530_v47 = vsel %vm3523_vm9, %v9956_v8, %v5501_v36  ;;  %v3590_v61 = vsel %vm3589_vm11, %v3557_v58, %v5676_v35  ;;  %v3591_v59 = vsel %vm3589_vm11, %v3558_v46, %v5677_v51  ;;  %v9959_v57 = vld [vmem:[#allocation67_spill] sm:$0xff]  ;;  %v9961_v35 = vld [vmem:[#allocation41_spill] sm:$0xff]  ;;  %v9963_v9 = vld [vmem:[#allocation76_spill] sm:$0xff] }
 0x2ee   : > { %5924 = vrot.lane.b32.xlu0 %v9954_v55, %s6538_s10  ;;  %v5627_v17 = vunpack.i.h.bf16 %v9957_v49  ;;  %v5626_v24 = vunpack.i.l.bf16 %v9957_v49  ;;  %v8319_v44 = vsel %vm3622_vm12, %v3590_v61, %v5751_v27  ;;  %v8322_v42 = vsel %vm3622_vm12, %v3591_v59, %v5752_v1  ;;  %5914 = vrot.lane.b32.xlu1 %v9958_v28, %s6538_s10  ;;  %v9964_v1 = vld [vmem:[#allocation69_spill] sm:$0xff] }
 0x2ef   : > { %v5467_v37 = vunpack.i.h.bf16 %v9959_v57  ;;  %v5466_v36 = vunpack.i.l.bf16 %v9959_v57  ;;  %v5517_v41 = vunpack.i.h.bf16 %v9960_v45  ;;  %v5516_v53 = vunpack.i.l.bf16 %v9960_v45  ;;  %v9965_v45 = vld [vmem:[#allocation72_spill] sm:$0xff] }
 0x2f0   : > { %v3537_v51 = vsel %vm3523_vm9, %v8027_v32, %v5547_v23  ;;  %v3536_v15 = vsel %vm3523_vm9, %v9961_v35, %v5546_v43  ;;  %v5612_v26 = vunpack.i.h.bf16 %v9962_v10  ;;  %v5611_v16 = vunpack.i.l.bf16 %v9962_v10  ;;  %5934 = vrot.lane.b32.xlu2 %v9963_v9, %s6538_s10  ;;  %v5705_v14 = vpop.permute.xlu1 %5704  ;;  %v9968_v10 = vld [vmem:[#allocation65_spill] sm:$0xff] }
 0x2f1   : > { %v5692_v38 = vunpack.i.h.bf16 %v5690_v31  ;;  %v5691_v46 = vunpack.i.l.bf16 %v5690_v31  ;;  %v5707_v20 = vunpack.i.h.bf16 %v5705_v14  ;;  %v5706_v58 = vunpack.i.l.bf16 %v5705_v14 }
 0x2f2   : > { %v5522_v27 = vunpack.i.h.bf16 %v9964_v1  ;;  %v5521_v55 = vunpack.i.l.bf16 %v9964_v1  ;;  %v3570_v32 = vsel %vm3556_vm10, %v3537_v51, %v5627_v17  ;;  %v3569_v23 = vsel %vm3556_vm10, %v3536_v15, %v5626_v24  ;;  %v5770_v43 = vpop.permute.xlu2 %5769  ;;  %v9966_v17 = vld [vmem:[#allocation86_spill] sm:$0xff] }
 0x2f3   : > { %v3418_v50 = vsel %vm3392_vm6, %v3385_v19, %v5517_v41  ;;  %v3417_v8 = vsel %vm3392_vm6, %v3384_v39, %v5516_v53  ;;  %v3602_v61 = vsel %vm3589_vm11, %v3569_v23, %v5706_v58  ;;  %v3603_v59 = vsel %vm3589_vm11, %v3570_v32, %v5707_v20  ;;  %v9967_v41 = vld [vmem:[#allocation40_spill] sm:$0xff]  ;;  %v9969_v20 = vld [vmem:[#allocation74_spill] sm:$0xff]  ;;  %v9970_v32 = vld [vmem:[#allocation87_spill] sm:$0xff] }
 0x2f4   : > { %v3564_v31 = vsel %vm3556_vm10, %v3531_v54, %v5612_v26  ;;  %v3563_v49 = vsel %vm3556_vm10, %v3530_v47, %v5611_v16  ;;  %v5772_v28 = vunpack.i.h.bf16 %v5770_v43  ;;  %v5771_v57 = vunpack.i.l.bf16 %v5770_v43  ;;  %v8356_v54 = vpop.permute.xlu0 %5729 }
 0x2f5   : > { %v5562_v24 = vunpack.i.h.bf16 %v9966_v17  ;;  %v5561_v51 = vunpack.i.l.bf16 %v9966_v17  ;;  %v3596_v19 = vsel %vm3589_vm11, %v3563_v49, %v5691_v46  ;;  %v3597_v39 = vsel %vm3589_vm11, %v3564_v31, %v5692_v38  ;;  %v9971_v49 = vld [vmem:[#allocation11_spill] sm:$0xff] }
 0x2f6   : > { %5939 = vrot.lane.b32.xlu0 %v9965_v45, %s6538_s10  ;;  %v5642_v53 = vunpack.i.h.bf16 %v9967_v41  ;;  %v5641_v35 = vunpack.i.l.bf16 %v9967_v41  ;;  %v8359_v47 = vsel %vm3622_vm12, %v3596_v19, %v5771_v57  ;;  %v8362_v15 = vsel %vm3622_vm12, %v3597_v39, %v5772_v28  ;;  %5929 = vrot.lane.b32.xlu1 %v9968_v10, %s6538_s10  ;;  %v9972_v45 = vld [vmem:[#allocation14_spill] sm:$0xff] }
 0x2f7   : > { %v3476_v26 = vsel %vm3457_vm7, %v8262_v4, %v5431_v12  ;;  %v3477_v16 = vsel %vm3457_vm7, %v8267_v33, %v5432_v2  ;;  %v3450_v9 = vsel %vm397_vm0, %v3418_v50, %v5522_v27  ;;  %v3449_v14 = vsel %vm397_vm0, %v3417_v8, %v5521_v55  ;;  %v9974_v19 = vld [vmem:[#allocation10_spill] sm:$0xff] }
 0x2f8   : > { %v3510_v38 = vsel %vm3490_vm8, %v3477_v16, %v5467_v37  ;;  %v3509_v46 = vsel %vm3490_vm8, %v3476_v26, %v5466_v36  ;;  %v5527_v58 = vunpack.i.h.bf16 %v9969_v20  ;;  %v5526_v1 = vunpack.i.l.bf16 %v9969_v20  ;;  %5949 = vrot.lane.b32.xlu2 %v9970_v32, %s6538_s10  ;;  %v5720_v12 = vpop.permute.xlu1 %5719  ;;  %v9977_v16 = vld [vmem:[#allocation90_spill] sm:$0xff]  ;;  %v9980_v32 = vld [vmem:[#allocation13_spill] sm:$0xff] }
 0x2f9   : > { %v3543_v25 = vsel %vm3523_vm9, %v3510_v38, %v5562_v24  ;;  %v3542_v2 = vsel %vm3523_vm9, %v3509_v46, %v5561_v51  ;;  %v5722_v4 = vunpack.i.h.bf16 %v5720_v12  ;;  %v5721_v33 = vunpack.i.l.bf16 %v5720_v12  ;;  %v9973_v51 = vld [vmem:[#allocation80_spill] sm:$0xff]  ;;  %v9978_v38 = vld [vmem:[#allocation43_spill] sm:$0xff] }
 0x2fa   : > { %v3482_v27 = vsel %vm3457_vm7, %v3449_v14, %v5526_v1  ;;  %v3483_v37 = vsel %vm3457_vm7, %v3450_v9, %v5527_v58  ;;  %v3576_v36 = vsel %vm3556_vm10, %v3543_v25, %v5642_v53  ;;  %v3575_v55 = vsel %vm3556_vm10, %v3542_v2, %v5641_v35  ;;  %v5785_v23 = vpop.permute.xlu2 %5784  ;;  %v9979_v1 = vld [vmem:[#allocation71_spill] sm:$0xff] }
 0x2fb   : > { %v3608_v43 = vsel %vm3589_vm11, %v3575_v55, %v5721_v33  ;;  %v3609_v50 = vsel %vm3589_vm11, %v3576_v36, %v5722_v4  ;;  %v5787_v8 = vunpack.i.h.bf16 %v5785_v23  ;;  %v5786_v31 = vunpack.i.l.bf16 %v5785_v23  ;;  %v9982_v33 = vld [vmem:[#allocation98_spill] sm:$0xff]  ;;  %v9983_v55 = vld [vmem:[#allocation92_spill] sm:$0xff] }
 0x2fc   : > { %v5182_v28 = vunpack.i.h.bf16 %v9971_v49  ;;  %v5181_v57 = vunpack.i.l.bf16 %v9971_v49  ;;  %v5197_v17 = vunpack.i.h.bf16 %v9972_v45  ;;  %v5196_v24 = vunpack.i.l.bf16 %v9972_v45  ;;  %v9985_v49 = vld [vmem:[#allocation34_spill] sm:$0xff] }
 0x2fd   : > { %v9975_v39 = vunpack.i.l.bf16 %v9974_v19  ;;  %v9976_v53 = vunpack.i.h.bf16 %v9974_v19  ;;  %v8403_v10 = vsel %vm3622_vm12, %v3602_v61, %v5786_v31  ;;  %v8406_v26 = vsel %vm3622_vm12, %v3603_v59, %v5787_v8  ;;  %v9981_v59 = vld [vmem:[#allocation99_spill] sm:$0xff]  ;;  %v9984_v8 = vld [vmem:[#allocation38_spill] sm:$0xff] }
 0x2fe   : > { %5954 = vrot.lane.b32.xlu0 %v9973_v51, %s6538_s10  ;;  %v5577_v9 = vunpack.i.h.bf16 %v9977_v16  ;;  %v5576_v14 = vunpack.i.l.bf16 %v9977_v16  ;;  %v5657_v46 = vunpack.i.h.bf16 %v9978_v38  ;;  %v5656_v20 = vunpack.i.l.bf16 %v9978_v38  ;;  %5944 = vrot.lane.b32.xlu1 %v9979_v1, %s6538_s10  ;;  %v9986_v19 = vld [vmem:[#allocation31_spill] sm:$0xff] }
 0x2ff   : > { %v3515_v41 = vsel %vm3490_vm8, %v3482_v27, %v9975_v39  ;;  %v3516_v35 = vsel %vm3490_vm8, %v3483_v37, %v9976_v53  ;;  %v5202_v12 = vunpack.i.h.bf16 %v9980_v32  ;;  %v5201_v61 = vunpack.i.l.bf16 %v9980_v32 }
 0x300   : > { %v5755_v58 = vpop.permute.xlu0 %5754  ;;  %v3494_v4 = vsel %vm3490_vm8, %v9981_v59, %v5197_v17  ;;  %v3493_v27 = vsel %vm3490_vm8, %v9982_v33, %v5196_v24  ;;  %v3548_v37 = vsel %vm3523_vm9, %v3515_v41, %v5576_v14  ;;  %v3549_v36 = vsel %vm3523_vm9, %v3516_v35, %v5577_v9  ;;  %5964 = vrot.lane.b32.xlu2 %v9983_v55, %s6538_s10  ;;  %v5735_v23 = vpop.permute.xlu1 %5734  ;;  %v9989_v33 = vld [vmem:[#allocation88_spill] sm:$0xff] }
 0x301   : > { %v5757_v25 = vunpack.i.h.bf16 %v5755_v58  ;;  %v5756_v2 = vunpack.i.l.bf16 %v5755_v58  ;;  %v5737_v17 = vunpack.i.h.bf16 %v5735_v23  ;;  %v5736_v51 = vunpack.i.l.bf16 %v5735_v23  ;;  %v9987_v58 = vld [vmem:[#allocation15_spill] sm:$0xff] }
 0x302   : > { %v5602_v24 = vunpack.i.h.bf16 %v9986_v19  ;;  %v5601_v39 = vunpack.i.l.bf16 %v9986_v19  ;;  %v3581_v41 = vsel %vm3556_vm10, %v3548_v37, %v5656_v20  ;;  %v3582_v53 = vsel %vm3556_vm10, %v3549_v36, %v5657_v46  ;;  %v5800_v35 = vpop.permute.xlu2 %5799  ;;  %v9990_v20 = vld [vmem:[#allocation97_spill] sm:$0xff]  ;;  %v9991_v37 = vld [vmem:[#allocation96_spill] sm:$0xff] }
 0x303   : > { %v8426_v31 = vsel %vm3589_vm11, %v9984_v8, %v5757_v25  ;;  %v8430_v45 = vsel %vm3589_vm11, %v9985_v49, %v5756_v2  ;;  %v3614_v16 = vsel %vm3589_vm11, %v3581_v41, %v5736_v51  ;;  %v3615_v9 = vsel %vm3589_vm11, %v3582_v53, %v5737_v17  ;;  %v9988_v25 = vld [vmem:[#allocation39_spill] sm:$0xff]  ;;  %v9992_v8 = vld [vmem:[#allocation12_spill] sm:$0xff] }
 0x304   : > { %v5802_v14 = vunpack.i.h.bf16 %v5800_v35  ;;  %v5801_v38 = vunpack.i.l.bf16 %v5800_v35  ;;  %v5187_v1 = vunpack.i.h.bf16 %v9987_v58  ;;  %v5186_v32 = vunpack.i.l.bf16 %v9987_v58 }
 0x305   : > { %v5682_v2 = vunpack.i.h.bf16 %v9988_v25  ;;  %v5681_v59 = vunpack.i.l.bf16 %v9988_v25  ;;  %v3398_v46 = vsel %vm3392_vm6, %v9990_v20, %v5182_v28  ;;  %v3397_v36 = vsel %vm3392_vm6, %v9991_v37, %v5181_v57  ;;  %v9993_v28 = vld [vmem:[#allocation77_spill] sm:$0xff] }
 0x306   : > { %5969 = vrot.lane.b32.xlu0 %v9989_v33, %s6538_s10  ;;  %v8449_v55 = vsel %vm3622_vm12, %v3608_v43, %v5801_v38  ;;  %v8452_v23 = vsel %vm3622_vm12, %v3609_v50, %v5802_v14  ;;  %v5192_v49 = vunpack.i.h.bf16 %v9992_v8  ;;  %v5191_v17 = vunpack.i.l.bf16 %v9992_v8  ;;  %5959 = vrot.lane.b32.xlu1 %v9993_v28, %s6538_s10  ;;  %v9995_v25 = vld [vmem:[#allocation17_spill] sm:$0xff]  ;;  %v9996_v33 = vld [vmem:[#allocation18_spill] sm:$0xff] }
 0x307   : > { %v3526_v51 = vsel %vm3523_vm9, %v3493_v27, %v5201_v61  ;;  %v3527_v19 = vsel %vm3523_vm9, %v3494_v4, %v5202_v12  ;;  %v3429_v50 = vsel %vm397_vm0, %v3397_v36, %v5186_v32  ;;  %v3430_v14 = vsel %vm397_vm0, %v3398_v46, %v5187_v1  ;;  %v9994_v12 = vld [vmem:[#allocation82_spill] sm:$0xff]  ;;  %v9998_v28 = vld [vmem:[#allocation89_spill] sm:$0xff] }
 0x308   : > { %v5760_v41 = vpop.permute.xlu0 %5759  ;;  %v3560_v57 = vsel %vm3556_vm10, %v3527_v19, %v5602_v24  ;;  %v3559_v43 = vsel %vm3556_vm10, %v3526_v51, %v5601_v39  ;;  %5979 = vrot.lane.b32.xlu2 %v9994_v12, %s6538_s10  ;;  %v5745_v4 = vpop.permute.xlu1 %5744  ;;  %v5252_v32 = vunpack.i.h.bf16 %v9995_v25  ;;  %v5251_v1 = vunpack.i.l.bf16 %v9995_v25  ;;  %v9997_v51 = vld [vmem:[#allocation102_spill] sm:$0xff] }
 0x309   : > { %v5762_v53 = vunpack.i.h.bf16 %v5760_v41  ;;  %v5761_v35 = vunpack.i.l.bf16 %v5760_v41  ;;  %v3592_v38 = vsel %vm3589_vm11, %v3559_v43, %v5681_v59  ;;  %v3593_v61 = vsel %vm3589_vm11, %v3560_v57, %v5682_v2 }
 0x30a   : > { %v5747_v39 = vunpack.i.h.bf16 %v5745_v4  ;;  %v5746_v58 = vunpack.i.l.bf16 %v5745_v4  ;;  %v5257_v59 = vunpack.i.h.bf16 %v9996_v33  ;;  %v5256_v2 = vunpack.i.l.bf16 %v9996_v33  ;;  %v5815_v20 = vpop.permute.xlu2 %5814  ;;  %v9999_v4 = vld [vmem:[#allocation91_spill] sm:$0xff]  ;;  %v1245_v33 = vld [vmem:[#allocation3 + $0x1a0] sm:$0xff] }
 0x30b   : > { %v8469_v27 = vsel %vm3622_vm12, %v3593_v61, %v5762_v53  ;;  %v8472_v24 = vsel %vm3622_vm12, %v3592_v38, %v5761_v35  ;;  %v5817_v36 = vunpack.i.h.bf16 %v5815_v20  ;;  %v5816_v8 = vunpack.i.l.bf16 %v5815_v20 }
 0x30c   : > { %v3620_v46 = vsel %vm3589_vm11, %v8136_v30, %v5746_v58  ;;  %v3621_v37 = vsel %vm3589_vm11, %v8133_v56, %v5747_v39  ;;  %v5607_v19 = vunpack.i.h.bf16 %v9997_v51  ;;  %v5606_v41 = vunpack.i.l.bf16 %v9997_v51  ;;  %v10000_v39 = vld [vmem:[#allocation81_spill] sm:$0xff] }
 0x30d   : > { %v3462_v57 = vsel %vm3457_vm7, %v3429_v50, %v5191_v17  ;;  %v3463_v43 = vsel %vm3457_vm7, %v3430_v14, %v5192_v49  ;;  %v8489_v53 = vsel %vm3622_vm12, %v3614_v16, %v5816_v8  ;;  %v8492_v30 = vsel %vm3622_vm12, %v3615_v9, %v5817_v36 }
 0x30e   : > { %5984 = vrot.lane.b32.xlu0 %v9998_v28, %s6538_s10  ;;  %v3496_v56 = vsel %vm3490_vm8, %v3463_v43, %v5252_v32  ;;  %v3495_v35 = vsel %vm3490_vm8, %v3462_v57, %v5251_v1  ;;  %v5687_v38 = vunpack.i.h.bf16 %v8180_v13  ;;  %v5686_v61 = vunpack.i.l.bf16 %v8180_v13  ;;  %5974 = vrot.lane.b32.xlu1 %v9999_v4, %s6538_s10 }
 0x30f   : > { %v3528_v49 = vsel %vm3523_vm9, %v3495_v35, %v5256_v2  ;;  %v3529_v16 = vsel %vm3523_vm9, %v3496_v56, %v5257_v59 }
 0x310   : > { %v5775_v12 = vpop.permute.xlu0 %5774  ;;  %v3562_v9 = vsel %vm3556_vm10, %v3529_v16, %v5607_v19  ;;  %v3561_v14 = vsel %vm3556_vm10, %v3528_v49, %v5606_v41  ;;  %5994 = vrot.lane.b32.xlu2 %v10000_v39, %s6539_s15  ;;  %v5765_v58 = vpop.permute.xlu1 %5764  ;;  %v10001_v41 = vld [vmem:[#allocation58_spill] sm:$0xff]  ;;  %v6422_v39 = vld [vmem:[#allocation2 + $0x108] sm:$0xff] }
 0x311   : > { %v5777_v17 = vunpack.i.h.bf16 %v5775_v12  ;;  %v5776_v50 = vunpack.i.l.bf16 %v5775_v12  ;;  %v5767_v32 = vunpack.i.h.bf16 %v5765_v58  ;;  %v5766_v1 = vunpack.i.l.bf16 %v5765_v58  ;;  %v6421_v49 = vld [vmem:[#allocation2 + $0x110] sm:$0xff] }
 0x312   : > { %v3595_v59 = vsel %vm3589_vm11, %v3562_v9, %v5687_v38  ;;  %v3594_v2 = vsel %vm3589_vm11, %v3561_v14, %v5686_v61  ;;  %v5830_v20 = vpop.permute.xlu2 %5829  ;;  %v5442_v57 = vunpack.i.h.bf16 %v10001_v41  ;;  %v5441_v38 = vunpack.i.l.bf16 %v10001_v41  ;;  %v10006_v41 = vld [vmem:[#allocation73_spill] sm:$0xff] }
 0x313   : > { %v8508_v13 = vsel %vm3622_vm12, %v8095_v63, %v5776_v50  ;;  %v8512_v25 = vsel %vm3622_vm12, %v8098_v7, %v5777_v17  ;;  %v3627_v36 = vsel %vm3622_vm12, %v3594_v2, %v5766_v1  ;;  %v3628_v8 = vsel %vm3622_vm12, %v3595_v59, %v5767_v32  ;;  %v1244_v63 = vld [vmem:[#allocation3 + $0x198] sm:$0xff]  ;;  %v10003_v17 = vld [vmem:[#allocation16_spill] sm:$0xff]  ;;  %v10004_v32 = vld [vmem:[#allocation63_spill] sm:$0xff] }
 0x314   : > { %v5832_v51 = vunpack.i.h.bf16 %v5830_v20  ;;  %v5831_v19 = vunpack.i.l.bf16 %v5830_v20  ;;  %v10002_v7 = vld [vmem:[#allocation93_spill] sm:$0xff]  ;;  %v8521_v43 = vpack.i.bf16 %v1245_v33, %v1244_v63  ;;  %v3350_v16 = vsel %vm535_vm1, %v6421_v49, %v5442_v57  ;;  %v10008_v49 = vld [vmem:[#allocation100_spill] sm:$0xff] }
 0x315   : > { %v3349_v58 = vsel %vm535_vm1, %v6422_v39, %v5441_v38  ;;  %v5482_v1 = vunpack.i.h.bf16 %v10004_v32  ;;  %v5481_v33 = vunpack.i.l.bf16 %v10004_v32  ;;  %v5487_v57 = vunpack.i.h.bf16 %v10006_v41  ;;  %v10007_v38 = vld [vmem:[#allocation104_spill] sm:$0xff]  ;;  %v10009_v39 = vld [vmem:[#allocation57_spill] sm:$0xff] }
 0x316   : > { %5999 = vrot.lane.b32.xlu0 %v10002_v7, %s6539_s15  ;;  %v8524_v56 = vsel %vm3622_vm12, %v3620_v46, %v5831_v19  ;;  %v8527_v35 = vsel %vm3622_vm12, %v3621_v37, %v5832_v51  ;;  %5989 = vrot.lane.b32.xlu1 %v8521_v43, %s6538_s10  ;;  %v10005_v51 = vld [vmem:[#allocation50_spill] sm:$0xff]  ;;  %v5486_v7 = vunpack.i.l.bf16 %v10006_v41  ;;  %v5491_v32 = vunpack.i.l.bf16 %v10009_v39  ;;  %v10012_v41 = vld [vmem:[#allocation23_spill] sm:$0xff] }
 0x317   : > { %v5447_v19 = vunpack.i.h.bf16 %v10005_v51  ;;  %v5446_v63 = vunpack.i.l.bf16 %v10005_v51  ;;  %v10011_v51 = vld [vmem:[#allocation85_spill] sm:$0xff] }
 0x318   : > { %v5790_v61 = vpop.permute.xlu0 %5789  ;;  %6009 = vrot.lane.b32.xlu2 %v10003_v17, %s6539_s15  ;;  %v5780_v50 = vpop.permute.xlu1 %5779 }
 0x319   : > { %v5792_v12 = vunpack.i.h.bf16 %v5790_v61  ;;  %v5791_v4 = vunpack.i.l.bf16 %v5790_v61  ;;  %v5782_v9 = vunpack.i.h.bf16 %v5780_v50  ;;  %v5781_v14 = vunpack.i.l.bf16 %v5780_v50 }
 0x31a   : > { %v5845_v59 = vpop.permute.xlu2 %5844 }
 0x31b   : > { %v8537_v46 = vsel %vm3622_vm12, %v8157_v3, %v5791_v4  ;;  %v8541_v37 = vsel %vm3622_vm12, %v8160_v21, %v5792_v12  ;;  %v3633_v2 = vsel %vm3622_vm12, %v8249_v40, %v5781_v14  ;;  %v3634_v3 = vsel %vm3622_vm12, %v8246_v62, %v5782_v9 }
 0x31c   : > { %v5847_v20 = vunpack.i.h.bf16 %v5845_v59  ;;  %v5846_v21 = vunpack.i.l.bf16 %v5845_v59  ;;  %v3382_v62 = vsel %vm3359_vm5, %v3349_v58, %v5446_v63  ;;  %v3383_v12 = vsel %vm3359_vm5, %v3350_v16, %v5447_v19  ;;  %v10010_v16 = vld [vmem:[#allocation24_spill] sm:$0xff] }
 0x31d   : > { %v3416_v17 = vsel %vm3392_vm6, %v3383_v12, %v5482_v1  ;;  %v3415_v50 = vsel %vm3392_vm6, %v3382_v62, %v5481_v33  ;;  %v5532_v19 = vunpack.i.h.bf16 %v10011_v51  ;;  %v5531_v63 = vunpack.i.l.bf16 %v10011_v51  ;;  %v10015_v51 = vld [vmem:[#allocation19_spill] sm:$0xff] }
 0x31e   : > { %6014 = vrot.lane.b32.xlu0 %v10007_v38, %s6539_s15  ;;  %v8557_v61 = vsel %vm3655_vm13, %v3627_v36, %v5846_v21  ;;  %v8560_v40 = vsel %vm3655_vm13, %v3628_v8, %v5847_v20  ;;  %6004 = vrot.lane.b32.xlu1 %v10008_v49, %s6539_s15  ;;  %v5492_v36 = vunpack.i.h.bf16 %v10009_v39  ;;  %v3447_v8 = vsel %vm397_vm0, %v3415_v50, %v5486_v7  ;;  %v10014_v50 = vld [vmem:[#allocation22_spill] sm:$0xff] }
 0x31f   : > { %v3448_v58 = vsel %vm397_vm0, %v3416_v17, %v5487_v57  ;;  %v5572_v57 = vunpack.i.h.bf16 %v10012_v41  ;;  %v5571_v7 = vunpack.i.l.bf16 %v10012_v41  ;;  %vm4518_vm6 = vcmask 257024  }
 0x320   : > { %v5805_v4 = vpop.permute.xlu0 %5804  ;;  %6024 = vrot.lane.b32.xlu2 %v10010_v16, %s6539_s15  ;;  %v5795_v59 = vpop.permute.xlu1 %5794 }
 0x321   : > { %v5807_v9 = vunpack.i.h.bf16 %v5805_v4  ;;  %v5806_v14 = vunpack.i.l.bf16 %v5805_v4  ;;  %v5797_v33 = vunpack.i.h.bf16 %v5795_v59  ;;  %v5796_v21 = vunpack.i.l.bf16 %v5795_v59  ;;  %v10013_v4 = vld [vmem:[#allocation33_spill] sm:$0xff] }
 0x322   : > { %v5860_v38 = vpop.permute.xlu2 %5859  ;;  %v5652_v49 = vunpack.i.h.bf16 %v10013_v4  ;;  %v5651_v17 = vunpack.i.l.bf16 %v10013_v4  ;;  %v5732_v59 = vunpack.i.h.bf16 %v8356_v54 }
 0x323   : > { %v8576_v20 = vsel %vm3622_vm12, %v8200_v22, %v5806_v14  ;;  %v8580_v1 = vsel %vm3622_vm12, %v8203_v6, %v5807_v9  ;;  %v3639_v62 = vsel %vm3622_vm12, %v8302_v52, %v5796_v21  ;;  %v3640_v22 = vsel %vm3622_vm12, %v8299_v29, %v5797_v33 }
 0x324   : > { %v5862_v12 = vunpack.i.h.bf16 %v5860_v38  ;;  %v5861_v6 = vunpack.i.l.bf16 %v5860_v38  ;;  %v3480_v9 = vsel %vm3457_vm7, %v3447_v8, %v5491_v32  ;;  %v3481_v14 = vsel %vm3457_vm7, %v3448_v58, %v5492_v36 }
 0x325   : > { %v3514_v29 = vsel %vm3490_vm8, %v3481_v14, %v5532_v19  ;;  %v3513_v16 = vsel %vm3490_vm8, %v3480_v9, %v5531_v63  ;;  %v5731_v33 = vunpack.i.l.bf16 %v8356_v54  ;;  %v10016_v19 = vld [vmem:[#allocation29_spill] sm:$0xff] }
 0x326   : > { %6029 = vrot.lane.b32.xlu0 %v10014_v50, %s6539_s15  ;;  %v8597_v39 = vsel %vm3655_vm13, %v3633_v2, %v5861_v6  ;;  %v8600_v52 = vsel %vm3655_vm13, %v3634_v3, %v5862_v12  ;;  %6019 = vrot.lane.b32.xlu1 %v10015_v51, %s6539_s15  ;;  %v3546_v36 = vsel %vm3523_vm9, %v3513_v16, %v5571_v7 }
 0x327   : > { %v3547_v2 = vsel %vm3523_vm9, %v3514_v29, %v5572_v57  ;;  %v3579_v3 = vsel %vm3556_vm10, %v3546_v36, %v5651_v17  ;;  %v10018_v29 = vld [vmem:[#allocation26_spill] sm:$0xff] }
 0x328   : > { %v5820_v21 = vpop.permute.xlu0 %5819  ;;  %v3580_v58 = vsel %vm3556_vm10, %v3547_v2, %v5652_v49  ;;  %6039 = vrot.lane.b32.xlu2 %v10016_v19, %s6539_s15  ;;  %v5810_v63 = vpop.permute.xlu1 %5809  ;;  %v3612_v38 = vsel %vm3589_vm11, %v3579_v3, %v5731_v33  ;;  %v10019_v33 = vld [vmem:[#allocation37_spill] sm:$0xff]  ;;  %v335_v19 = vld [vmem:[%s6683_s27 + $0x10] sm:$0xff] }
 0x329   : > { %v5822_v32 = vunpack.i.h.bf16 %v5820_v21  ;;  %v5821_v8 = vunpack.i.l.bf16 %v5820_v21  ;;  %v5812_v7 = vunpack.i.h.bf16 %v5810_v63  ;;  %v5811_v57 = vunpack.i.l.bf16 %v5810_v63  ;;  %v336_v63 = vld [vmem:[%s6683_s27 + $0x18] sm:$0xff] }
 0x32a   : > { %v3613_v12 = vsel %vm3589_vm11, %v3580_v58, %v5732_v59  ;;  %v5875_v6 = vpop.permute.xlu2 %5874 }
 0x32b   : > { %v8616_v54 = vsel %vm3622_vm12, %v8274_v0, %v5821_v8  ;;  %v8620_v41 = vsel %vm3622_vm12, %v8277_v18, %v5822_v32  ;;  %v3645_v4 = vsel %vm3622_vm12, %v3612_v38, %v5811_v57  ;;  %v3646_v49 = vsel %vm3622_vm12, %v3613_v12, %v5812_v7  ;;  %v10017_v0 = vld [vmem:[#allocation30_spill] sm:$0xff]  ;;  %v10020_v57 = vld [vmem:[#allocation35_spill] sm:$0xff] }
 0x32c   : > { %v5877_v17 = vunpack.i.h.bf16 %v5875_v6  ;;  %v5876_v50 = vunpack.i.l.bf16 %v5875_v6  ;;  %v334_v12 = vld [vmem:[%s6683_s27 + $0x8] sm:$0xff]  ;;  %v10021_v6 = vld [vmem:[#allocation20_spill] sm:$0xff] }
 0x32e   : > { %6044 = vrot.lane.b32.xlu0 %v10017_v0, %s6539_s15  ;;  %v8629_v9 = vsel %vm3655_vm13, %v3639_v62, %v5876_v50  ;;  %v8632_v18 = vsel %vm3655_vm13, %v3640_v22, %v5877_v17  ;;  %6034 = vrot.lane.b32.xlu1 %v10018_v29, %s6539_s15  ;;  %v6073_v50 = vpack.i.bf16 %v336_v63, %v335_v19 }
 0x330   : > { %v5835_v14 = vpop.permute.xlu0 %5834  ;;  %6054 = vrot.lane.b32.xlu2 %v10019_v33, %s6539_s15  ;;  %v5825_v21 = vpop.permute.xlu1 %5824 }
 0x331   : > { %v5837_v16 = vunpack.i.h.bf16 %v5835_v14  ;;  %v5836_v59 = vunpack.i.l.bf16 %v5835_v14  ;;  %v5827_v22 = vunpack.i.h.bf16 %v5825_v21  ;;  %v5826_v36 = vunpack.i.l.bf16 %v5825_v21 }
 0x332   : > { %v5890_v2 = vpop.permute.xlu2 %5889 }
 0x333   : > { %v8640_v51 = vsel %vm3655_vm13, %v8319_v44, %v5836_v59  ;;  %v8644_v62 = vsel %vm3655_vm13, %v8322_v42, %v5837_v16  ;;  %v3651_v32 = vsel %vm3622_vm12, %v8430_v45, %v5826_v36  ;;  %v3652_v8 = vsel %vm3622_vm12, %v8426_v31, %v5827_v22  ;;  %v333_v31 = vld [vmem:[%s6683_s27] sm:$0xff] }
 0x334   : > { %v5892_v3 = vunpack.i.h.bf16 %v5890_v2  ;;  %v5891_v58 = vunpack.i.l.bf16 %v5890_v2  ;;  %v6063_v16 = vpack.i.bf16 %v334_v12, %v333_v31 }
 0x336   : > { %6059 = vrot.lane.b32.xlu0 %v7683_v5, %s6527_s17  ;;  %v8653_v44 = vsel %vm3655_vm13, %v3645_v4, %v5891_v58  ;;  %v8656_v42 = vsel %vm3655_vm13, %v3646_v49, %v5892_v3  ;;  %6049 = vrot.lane.b32.xlu1 %v10020_v57, %s6539_s15  ;;  %v1312_v3 = vld [vmem:[#allocation3 + $0x68] sm:$0xff]  ;;  %v337_v57 = vld [vmem:[%s6683_s27 + $0x20] sm:$0xff] }
 0x338   : > { %v5850_v7 = vpop.permute.xlu0 %5849  ;;  %6069 = vrot.lane.b32.xlu2 %v10021_v6, %s6527_s17  ;;  %v5840_v17 = vpop.permute.xlu1 %5839 }
 0x339   : > { %v5852_v45 = vunpack.i.h.bf16 %v5850_v7  ;;  %v5851_v38 = vunpack.i.l.bf16 %v5850_v7  ;;  %v5842_v0 = vunpack.i.h.bf16 %v5840_v17  ;;  %v5841_v14 = vunpack.i.l.bf16 %v5840_v17  ;;  %v1311_v7 = vld [vmem:[#allocation3 + $0x60] sm:$0xff] }
 0x33a   : > { %v5905_v29 = vpop.permute.xlu2 %5904  ;;  %v6088_v31 = vpack.i.bf16 %v1312_v3, %v1311_v7 }
 0x33b   : > { %v8668_v4 = vsel %vm3655_vm13, %v8359_v47, %v5851_v38  ;;  %v8672_v49 = vsel %vm3655_vm13, %v8362_v15, %v5852_v45  ;;  %v3658_v59 = vsel %vm3655_vm13, %v8472_v24, %v5841_v14  ;;  %v3659_v33 = vsel %vm3655_vm13, %v8469_v27, %v5842_v0  ;;  %v10022_v27 = vld [vmem:[#allocation84_spill] sm:$0xff]  ;;  %v338_v45 = vld [vmem:[%s6683_s27 + $0x28] sm:$0xff] }
 0x33c   : > { %v5907_v21 = vunpack.i.h.bf16 %v5905_v29  ;;  %v5906_v22 = vunpack.i.l.bf16 %v5905_v29  ;;  %v10023_v29 = vld [vmem:[#allocation83_spill] sm:$0xff] }
 0x33e   : > { %6074 = vrot.lane.b32.xlu0 %v6073_v50, %s6526_s28  ;;  %v8680_v47 = vsel %vm3655_vm13, %v3651_v32, %v5906_v22  ;;  %v8683_v15 = vsel %vm3655_vm13, %v3652_v8, %v5907_v21  ;;  %6064 = vrot.lane.b32.xlu1 %v6063_v16, %s6526_s28 }
 0x340   : > { %v5865_v36 = vpop.permute.xlu0 %5864  ;;  %6084 = vrot.lane.b32.xlu2 %v10022_v27, %s6540_s18  ;;  %v5855_v58 = vpop.permute.xlu1 %5854 }
 0x341   : > { %v5867_v2 = vunpack.i.h.bf16 %v5865_v36  ;;  %v5866_v24 = vunpack.i.l.bf16 %v5865_v36  ;;  %v5857_v8 = vunpack.i.h.bf16 %v5855_v58  ;;  %v5856_v63 = vunpack.i.l.bf16 %v5855_v58  ;;  %v10024_v58 = vld [vmem:[#allocation95_spill] sm:$0xff] }
 0x342   : > { %v5920_v38 = vpop.permute.xlu2 %5919 }
 0x343   : > { %v8690_v19 = vsel %vm3655_vm13, %v8403_v10, %v5866_v24  ;;  %v8694_v32 = vsel %vm3655_vm13, %v8406_v26, %v5867_v2  ;;  %v3664_v12 = vsel %vm3655_vm13, %v8508_v13, %v5856_v63  ;;  %v3665_v6 = vsel %vm3655_vm13, %v8512_v25, %v5857_v8  ;;  %v339_v8 = vld [vmem:[%s6683_s27 + $0x30] sm:$0xff]  ;;  %v340_v63 = vld [vmem:[%s6683_s27 + $0x38] sm:$0xff] }
 0x344   : > { %v5922_v10 = vunpack.i.h.bf16 %v5920_v38  ;;  %v5921_v17 = vunpack.i.l.bf16 %v5920_v38  ;;  %v6098_v26 = vpack.i.bf16 %v338_v45, %v337_v57  ;;  %v6118_v45 = vpack.i.bf16 %v340_v63, %v339_v8 }
 0x346   : > { %6089 = vrot.lane.b32.xlu0 %v6088_v31, %s6529_s25  ;;  %v8704_v50 = vsel %vm3688_vm14, %v3658_v59, %v5921_v17  ;;  %v8707_v0 = vsel %vm3688_vm14, %v3659_v33, %v5922_v10  ;;  %6079 = vrot.lane.b32.xlu1 %v10023_v29, %s6539_s15  ;;  %v1314_v10 = vld [vmem:[#allocation3 + $0x80] sm:$0xff]  ;;  %v1313_v29 = vld [vmem:[#allocation3 + $0x78] sm:$0xff] }
 0x348   : > { %v5880_v14 = vpop.permute.xlu0 %5879  ;;  %6099 = vrot.lane.b32.xlu2 %v6098_v26, %s6526_s28  ;;  %v5870_v25 = vpop.permute.xlu1 %5869 }
 0x349   : > { %v5882_v16 = vunpack.i.h.bf16 %v5880_v14  ;;  %v5881_v13 = vunpack.i.l.bf16 %v5880_v14  ;;  %v5872_v33 = vunpack.i.h.bf16 %v5870_v25  ;;  %v5871_v22 = vunpack.i.l.bf16 %v5870_v25  ;;  %v1315_v25 = vld [vmem:[#allocation3 + $0x90] sm:$0xff] }
 0x34a   : > { %v5935_v36 = vpop.permute.xlu2 %5934 }
 0x34b   : > { %v8714_v21 = vsel %vm3655_vm13, %v8449_v55, %v5881_v13  ;;  %v8718_v59 = vsel %vm3655_vm13, %v8452_v23, %v5882_v16  ;;  %v3670_v2 = vsel %vm3655_vm13, %v8537_v46, %v5871_v22  ;;  %v3671_v24 = vsel %vm3655_vm13, %v8541_v37, %v5872_v33  ;;  %v1316_v16 = vld [vmem:[#allocation3 + $0x98] sm:$0xff] }
 0x34c   : > { %v5937_v3 = vunpack.i.h.bf16 %v5935_v36  ;;  %v5936_v27 = vunpack.i.l.bf16 %v5935_v36 }
 0x34e   : > { %6104 = vrot.lane.b32.xlu0 %v10024_v58, %s6540_s18  ;;  %v8727_v55 = vsel %vm3688_vm14, %v3664_v12, %v5936_v27  ;;  %v8730_v23 = vsel %vm3688_vm14, %v3665_v6, %v5937_v3  ;;  %6094 = vrot.lane.b32.xlu1 %v7802_v34, %s6527_s17 }
 0x350   : > { %v5895_v7 = vpop.permute.xlu0 %5894  ;;  %6114 = vrot.lane.b32.xlu2 %v7818_v60, %s6527_s17  ;;  %v5885_v37 = vpop.permute.xlu1 %5884 }
 0x351   : > { %v5897_v46 = vunpack.i.h.bf16 %v5895_v7  ;;  %v5896_v57 = vunpack.i.l.bf16 %v5895_v7  ;;  %v5887_v12 = vunpack.i.h.bf16 %v5885_v37  ;;  %v5886_v6 = vunpack.i.l.bf16 %v5885_v37 }
 0x352   : > { %v5950_v17 = vpop.permute.xlu2 %5949 }
 0x353   : > { %v8740_v38 = vsel %vm3655_vm13, %v8489_v53, %v5896_v57  ;;  %v8744_v31 = vsel %vm3655_vm13, %v8492_v30, %v5897_v46  ;;  %v3676_v34 = vsel %vm3655_vm13, %v8576_v20, %v5886_v6  ;;  %v3677_v60 = vsel %vm3655_vm13, %v8580_v1, %v5887_v12  ;;  %v1284_v57 = vld [vmem:[#allocation3 + $0x7c] sm:$0xff] }
 0x354   : > { %v5952_v26 = vunpack.i.h.bf16 %v5950_v17  ;;  %v5951_v14 = vunpack.i.l.bf16 %v5950_v17  ;;  %v6108_v53 = vpack.i.bf16 %v1314_v10, %v1313_v29  ;;  %v6128_v20 = vpack.i.bf16 %v1316_v16, %v1315_v25  ;;  %v1318_v10 = vld [vmem:[#allocation3 + $0xb0] sm:$0xff]  ;;  %v341_v17 = vld [vmem:[%s6683_s27 + $0x40] sm:$0xff]  ;;  %v344_v16 = vld [vmem:[%s6683_s27 + $0x58] sm:$0xff] }
 0x355   : > { %v343_v29 = vld [vmem:[%s6683_s27 + $0x50] sm:$0xff] }
 0x356   : > { %6119 = vrot.lane.b32.xlu0 %v6118_v45, %s6526_s28  ;;  %v8752_v30 = vsel %vm3688_vm14, %v3670_v2, %v5951_v14  ;;  %v8755_v13 = vsel %vm3688_vm14, %v3671_v24, %v5952_v26  ;;  %6109 = vrot.lane.b32.xlu1 %v6108_v53, %s6529_s25  ;;  %v1317_v45 = vld [vmem:[#allocation3 + $0xa8] sm:$0xff] }
 0x357   : > { %v342_v26 = vld [vmem:[%s6683_s27 + $0x48] sm:$0xff]  ;;  %v6148_v25 = vpack.i.bf16 %v1318_v10, %v1317_v45 }
 0x358   : > { %v5910_v33 = vpop.permute.xlu0 %5909  ;;  %6129 = vrot.lane.b32.xlu2 %v6128_v20, %s6529_s25  ;;  %v5900_v36 = vpop.permute.xlu1 %5899 }
 0x359   : > { %v5912_v22 = vunpack.i.h.bf16 %v5910_v33  ;;  %v5911_v1 = vunpack.i.l.bf16 %v5910_v33  ;;  %v5902_v24 = vunpack.i.h.bf16 %v5900_v36  ;;  %v5901_v27 = vunpack.i.l.bf16 %v5900_v36 }
 0x35a   : > { %v5965_v58 = vpop.permute.xlu2 %5964  ;;  %v6138_v33 = vpack.i.bf16 %v342_v26, %v341_v17 }
 0x35b   : > { %v8761_v3 = vsel %vm3655_vm13, %v8524_v56, %v5911_v1  ;;  %v8765_v2 = vsel %vm3655_vm13, %v8527_v35, %v5912_v22  ;;  %v3682_v8 = vsel %vm3655_vm13, %v8616_v54, %v5901_v27  ;;  %v3683_v63 = vsel %vm3655_vm13, %v8620_v41, %v5902_v24  ;;  %v1285_v56 = vld [vmem:[#allocation3 + $0x84] sm:$0xff] }
 0x35c   : > { %v5967_v7 = vunpack.i.h.bf16 %v5965_v58  ;;  %v5966_v46 = vunpack.i.l.bf16 %v5965_v58  ;;  %v6143_v41 = vpack.i.bf16 %v1285_v56, %v1284_v57  ;;  %v1386_v56 = vld [vmem:[#allocation3 + $0xe4] sm:$0xff] }
 0x35e   : > { %6134 = vrot.lane.b32.xlu0 %v7935_v48, %s6527_s17  ;;  %v8774_v35 = vsel %vm3688_vm14, %v3676_v34, %v5966_v46  ;;  %v8777_v37 = vsel %vm3688_vm14, %v3677_v60, %v5967_v7  ;;  %6124 = vrot.lane.b32.xlu1 %v7683_v5, %s6540_s18 }
 0x360   : > { %v5925_v54 = vpop.permute.xlu0 %5924  ;;  %6144 = vrot.lane.b32.xlu2 %v6143_v41, %s6540_s18  ;;  %v5915_v48 = vpop.permute.xlu1 %5914 }
 0x361   : > { %v5927_v12 = vunpack.i.h.bf16 %v5925_v54  ;;  %v5926_v6 = vunpack.i.l.bf16 %v5925_v54  ;;  %v5917_v14 = vunpack.i.h.bf16 %v5915_v48  ;;  %v5916_v5 = vunpack.i.l.bf16 %v5915_v48  ;;  %v1334_v48 = vld [vmem:[#allocation3 + $0x170] sm:$0xff] }
 0x362   : > { %v5980_v53 = vpop.permute.xlu2 %5979 }
 0x363   : > { %v8786_v34 = vsel %vm3688_vm14, %v8557_v61, %v5926_v6  ;;  %v8790_v60 = vsel %vm3688_vm14, %v8560_v40, %v5927_v12  ;;  %v8796_v20 = vsel %vm3688_vm14, %v8640_v51, %v5916_v5  ;;  %v8800_v22 = vsel %vm3688_vm14, %v8644_v62, %v5917_v14  ;;  %v1286_v12 = vld [vmem:[#allocation3 + $0x94] sm:$0xff]  ;;  %v1287_v6 = vld [vmem:[#allocation3 + $0x9c] sm:$0xff] }
 0x364   : > { %v5982_v61 = vunpack.i.h.bf16 %v5980_v53  ;;  %v5981_v1 = vunpack.i.l.bf16 %v5980_v53  ;;  %v6158_v40 = vpack.i.bf16 %v344_v16, %v343_v29  ;;  %v6173_v10 = vpack.i.bf16 %v1287_v6, %v1286_v12  ;;  %v1319_v16 = vld [vmem:[#allocation3 + $0xc0] sm:$0xff] }
 0x365   : > { %v345_v53 = vld [vmem:[%s6683_s27 + $0x60] sm:$0xff] }
 0x366   : > { %6149 = vrot.lane.b32.xlu0 %v6148_v25, %s6529_s25  ;;  %v8804_v36 = vsel %vm3688_vm14, %v3682_v8, %v5981_v1  ;;  %v8807_v24 = vsel %vm3688_vm14, %v3683_v63, %v5982_v61  ;;  %6139 = vrot.lane.b32.xlu1 %v6138_v33, %s6526_s28  ;;  %v1385_v63 = vld [vmem:[#allocation3 + $0xdc] sm:$0xff]  ;;  %v346_v25 = vld [vmem:[%s6683_s27 + $0x68] sm:$0xff] }
 0x368   : > { %v5940_v27 = vpop.permute.xlu0 %5939  ;;  %6159 = vrot.lane.b32.xlu2 %v6158_v40, %s6526_s28  ;;  %v5930_v62 = vpop.permute.xlu1 %5929 }
 0x369   : > { %v5942_v51 = vunpack.i.h.bf16 %v5940_v27  ;;  %v5941_v58 = vunpack.i.l.bf16 %v5940_v27  ;;  %v5932_v8 = vunpack.i.h.bf16 %v5930_v62  ;;  %v5931_v57 = vunpack.i.l.bf16 %v5930_v62 }
 0x36a   : > { %v8819_v54 = vpop.permute.xlu2 %5994 }
 0x36b   : > { %v8813_v7 = vsel %vm3688_vm14, %v8597_v39, %v5941_v58  ;;  %v8817_v46 = vsel %vm3688_vm14, %v8600_v52, %v5942_v51  ;;  %v3695_v41 = vsel %vm3688_vm14, %v8668_v4, %v5931_v57  ;;  %v3696_v45 = vsel %vm3688_vm14, %v8672_v49, %v5932_v8  ;;  %v1320_v4 = vld [vmem:[#allocation3 + $0xc8] sm:$0xff] }
 0x36c   : > { %v8827_v39 = vpack.i.bf16 %v1386_v56, %v1385_v63  ;;  %v6178_v61 = vpack.i.bf16 %v1320_v4, %v1319_v16  ;;  %v1333_v51 = vld [vmem:[#allocation3 + $0x168] sm:$0xff]  ;;  %v6188_v58 = vpack.i.bf16 %v346_v25, %v345_v53  ;;  %v1303_v56 = vld [vmem:[#allocation3 + $0x15c] sm:$0xff] }
 0x36d   : > { %v4955_v16 = vld [vmem:[%s9630_s3 + $0x38] sm:$0xff] }
 0x36e   : > { %6164 = vrot.lane.b32.xlu0 %v8251_v11, %s6540_s18  ;;  %6154 = vrot.lane.b32.xlu1 %v8827_v39, %s6527_s17 }
 0x36f   : > { %4308 = vmatpush.bf16.msra.mxu1 %v4955_v16  ;;  %4960 = vmatpush.bf16.msrb.mxu3 %v4955_v16  ;;  %v1305_v16 = vld [vmem:[#allocation3 + $0x174] sm:$0xff] }
 0x370   : > { %v5955_v52 = vpop.permute.xlu0 %5954  ;;  %6174 = vrot.lane.b32.xlu2 %v6173_v10, %s6540_s18  ;;  %v5945_v49 = vpop.permute.xlu1 %5944  ;;  %v1387_v10 = vld [vmem:[#allocation3 + $0xf4] sm:$0xff] }
 0x371   : > { %v5957_v17 = vunpack.i.h.bf16 %v5955_v52  ;;  %v5956_v26 = vunpack.i.l.bf16 %v5955_v52  ;;  %v5947_v5 = vunpack.i.h.bf16 %v5945_v49  ;;  %v5946_v29 = vunpack.i.l.bf16 %v5945_v49 }
 0x372   : > { %v6010_v33 = vpop.permute.xlu2 %6009 }
 0x373   : > { %v8834_v14 = vsel %vm3688_vm14, %v8629_v9, %v5956_v26  ;;  %v8838_v11 = vsel %vm3688_vm14, %v8632_v18, %v5957_v17  ;;  %v3701_v1 = vsel %vm3688_vm14, %v8690_v19, %v5946_v29  ;;  %v3702_v40 = vsel %vm3688_vm14, %v8694_v32, %v5947_v5  ;;  %v1302_v32 = vld [vmem:[#allocation3 + $0x154] sm:$0xff]  ;;  %v1288_v29 = vld [vmem:[#allocation3 + $0xac] sm:$0xff] }
 0x374   : > { %v6012_v27 = vunpack.i.h.bf16 %v6010_v33  ;;  %v6011_v9 = vunpack.i.l.bf16 %v6010_v33  ;;  %v6168_v18 = vpack.i.bf16 %v1334_v48, %v1333_v51  ;;  %v8863_v26 = vpack.i.bf16 %v1303_v56, %v1302_v32  ;;  %v1321_v51 = vld [vmem:[#allocation3 + $0xd8] sm:$0xff]  ;;  %v4954_v32 = vld [vmem:[%s9630_s3 + $0x30] sm:$0xff] }
 0x375   : > { %4309 = vmatpush.bf16.msra.mxu1 %v4954_v32  ;;  %4961 = vmatpush.bf16.msrb.mxu3 %v4954_v32  ;;  %v1291_v32 = vld [vmem:[#allocation3 + $0xcc] sm:$0xff] }
 0x376   : > { %6179 = vrot.lane.b32.xlu0 %v6178_v61, %s6529_s25  ;;  %v8848_v62 = vsel %vm3721_vm15, %v3695_v41, %v6011_v9  ;;  %v8851_v8 = vsel %vm3721_vm15, %v3696_v45, %v6012_v27  ;;  %6169 = vrot.lane.b32.xlu1 %v6168_v18, %s6529_s25  ;;  %v1322_v9 = vld [vmem:[#allocation3 + $0xe0] sm:$0xff] }
 0x378   : > { %v5970_v57 = vpop.permute.xlu0 %5969  ;;  %6189 = vrot.lane.b32.xlu2 %v6188_v58, %s6526_s28  ;;  %v5960_v12 = vpop.permute.xlu1 %5959 }
 0x379   : > { %v5972_v19 = vunpack.i.h.bf16 %v5970_v57  ;;  %v5971_v63 = vunpack.i.l.bf16 %v5970_v57  ;;  %v5962_v45 = vunpack.i.h.bf16 %v5960_v12  ;;  %v5961_v52 = vunpack.i.l.bf16 %v5960_v12 }
 0x37a   : > { %v6025_v17 = vpop.permute.xlu2 %6024  ;;  %v6208_v12 = vpack.i.bf16 %v1322_v9, %v1321_v51  ;;  %v4192_v9 = vld [vmem:[%s9630_s3 + $0x50] sm:$0xf] }
 0x37b   : > { %v8857_v6 = vsel %vm3688_vm14, %v8653_v44, %v5971_v63  ;;  %v8861_v41 = vsel %vm3688_vm14, %v8656_v42, %v5972_v19  ;;  %v3707_v4 = vsel %vm3688_vm14, %v8714_v21, %v5961_v52  ;;  %v3708_v49 = vsel %vm3688_vm14, %v8718_v59, %v5962_v45  ;;  %v1388_v44 = vld [vmem:[#allocation3 + $0xfc] sm:$0xff]  ;;  %v1289_v59 = vld [vmem:[#allocation3 + $0xb4] sm:$0xff] }
 0x37c   : > { %v6027_v48 = vunpack.i.h.bf16 %v6025_v17  ;;  %v6026_v5 = vunpack.i.l.bf16 %v6025_v17  ;;  %v8871_v42 = vpack.i.bf16 %v1388_v44, %v1387_v10  ;;  %v6203_v33 = vpack.i.bf16 %v1289_v59, %v1288_v29  ;;  %v347_v19 = vld [vmem:[%s6683_s27 + $0x70] sm:$0xff]  ;;  %v348_v63 = vld [vmem:[%s6683_s27 + $0x78] sm:$0xff] }
 0x37d   : > { %v4953_v17 = vld [vmem:[%s9630_s3 + $0x28] sm:$0xff]  ;;  %v1304_v29 = vld [vmem:[#allocation3 + $0x16c] sm:$0xff] }
 0x37e   : > { %6194 = vrot.lane.b32.xlu0 %v8863_v26, %s6540_s18  ;;  %v8877_v53 = vsel %vm3721_vm15, %v3701_v1, %v6026_v5  ;;  %v8880_v21 = vsel %vm3721_vm15, %v3702_v40, %v6027_v48  ;;  %6184 = vrot.lane.b32.xlu1 %v8871_v42, %s6527_s17  ;;  %v8929_v51 = vpack.i.bf16 %v1305_v16, %v1304_v29  ;;  %v4950_v29 = vld [vmem:[%s9630_s3 + $0x10] sm:$0xff] }
 0x37f   : > { %4310 = vmatpush.bf16.msra.mxu1 %v4953_v17  ;;  %4962 = vmatpush.bf16.msrb.mxu3 %v4953_v17  ;;  %v1323_v17 = vld [vmem:[#allocation3 + $0xf0] sm:$0xff] }
 0x380   : > { %v5985_v25 = vpop.permute.xlu0 %5984  ;;  %6204 = vrot.lane.b32.xlu2 %v6203_v33, %s6540_s18  ;;  %v5975_v1 = vpop.permute.xlu1 %5974 }
 0x381   : > { %v5987_v61 = vunpack.i.h.bf16 %v5985_v25  ;;  %v5986_v27 = vunpack.i.l.bf16 %v5985_v25  ;;  %v5977_v58 = vunpack.i.h.bf16 %v5975_v1  ;;  %v5976_v57 = vunpack.i.l.bf16 %v5975_v1  ;;  %v1389_v25 = vld [vmem:[#allocation3 + $0x10c] sm:$0xff] }
 0x382   : > { %v6040_v56 = vpop.permute.xlu2 %6039 }
 0x383   : > { %v8887_v40 = vsel %vm3688_vm14, %v8680_v47, %v5986_v27  ;;  %v8891_v18 = vsel %vm3688_vm14, %v8683_v15, %v5987_v61  ;;  %v3713_v45 = vsel %vm3688_vm14, %v8740_v38, %v5976_v57  ;;  %v3714_v47 = vsel %vm3688_vm14, %v8744_v31, %v5977_v58  ;;  %v1390_v61 = vld [vmem:[#allocation3 + $0x114] sm:$0xff] }
 0x384   : > { %v6042_v52 = vunpack.i.h.bf16 %v6040_v56  ;;  %v6041_v10 = vunpack.i.l.bf16 %v6040_v56  ;;  %v6218_v15 = vpack.i.bf16 %v348_v63, %v347_v19  ;;  %v4952_v27 = vld [vmem:[%s9630_s3 + $0x20] sm:$0xff]  ;;  %v1290_v63 = vld [vmem:[#allocation3 + $0xc4] sm:$0xff]  ;;  %v8941_v56 = vpack.i.bf16 %v1390_v61, %v1389_v25 }
 0x385   : > { %4311 = vmatpush.bf16.msra.mxu1 %v4952_v27  ;;  %4963 = vmatpush.bf16.msrb.mxu3 %v4952_v27  ;;  %v349_v61 = vld [vmem:[%s6683_s27 + $0x80] sm:$0xff]  ;;  %v350_v27 = vld [vmem:[%s6683_s27 + $0x88] sm:$0xff] }
 0x386   : > { %6209 = vrot.lane.b32.xlu0 %v6208_v12, %s6529_s25  ;;  %v8907_v48 = vsel %vm3721_vm15, %v3707_v4, %v6041_v10  ;;  %v8910_v5 = vsel %vm3721_vm15, %v3708_v49, %v6042_v52  ;;  %6199 = vrot.lane.b32.xlu1 %v9998_v28, %s6529_s25 }
 0x388   : > { %v6000_v38 = vpop.permute.xlu0 %5999  ;;  %6219 = vrot.lane.b32.xlu2 %v6218_v15, %s6526_s28  ;;  %v5990_v59 = vpop.permute.xlu1 %5989  ;;  %v6233_v15 = vpack.i.bf16 %v1291_v32, %v1290_v63  ;;  %v1274_v32 = vld [vmem:[#allocation3 + $0x182] sm:$0xff] }
 0x389   : > { %v6002_v31 = vunpack.i.h.bf16 %v6000_v38  ;;  %v6001_v44 = vunpack.i.l.bf16 %v6000_v38  ;;  %v5992_v33 = vunpack.i.h.bf16 %v5990_v59  ;;  %v5991_v28 = vunpack.i.l.bf16 %v5990_v59 }
 0x38a   : > { %v6055_v1 = vpop.permute.xlu2 %6054 }
 0x38b   : > { %v8917_v4 = vsel %vm3721_vm15, %v8704_v50, %v6001_v44  ;;  %v8921_v49 = vsel %vm3721_vm15, %v8707_v0, %v6002_v31  ;;  %v4234_v50 = vunpack.c.l.b16 %v4192_v9  ;;  %v8933_v58 = vsel %vm3688_vm14, %v8761_v3, %v5991_v28  ;;  %v1324_v44 = vld [vmem:[#allocation3 + $0xf8] sm:$0xff] }
 0x38c   : > { %v8937_v0 = vsel %vm3688_vm14, %v8765_v2, %v5992_v33  ;;  %v6057_v57 = vunpack.i.h.bf16 %v6055_v1  ;;  %v6056_v19 = vunpack.i.l.bf16 %v6055_v1  ;;  %v4951_v2 = vld [vmem:[%s9630_s3 + $0x18] sm:$0xff]  ;;  %v6238_v1 = vpack.i.bf16 %v1324_v44, %v1323_v17 }
 0x38d   : > { %v4245_v12 = vpack.c.b16 %v4234_v50, %v4234_v50  ;;  %4312 = vmatpush.bf16.msra.mxu1 %v4951_v2  ;;  %4964 = vmatpush.bf16.msrb.mxu3 %v4951_v2  ;;  %v1392_v44 = vld [vmem:[#allocation3 + $0x12c] sm:$0xff] }
 0x38e   : > { %6224 = vrot.lane.b32.xlu0 %v8929_v51, %s6540_s18  ;;  %v8944_v52 = vsel %vm3721_vm15, %v3713_v45, %v6056_v19  ;;  %v8947_v3 = vsel %vm3721_vm15, %v3714_v47, %v6057_v57  ;;  %6214 = vrot.lane.b32.xlu1 %v8941_v56, %s6527_s17  ;;  %v4957_v47 = vld [vmem:[%s9630_s3 + $0x48] sm:$0xff] }
 0x38f   : > { %v4306_v38 = vsel %vm4304_vm2, %v4245_v12, 0  ;;  %v4949_v19 = vld [vmem:[%s9630_s3 + $0x8] sm:$0xff]  ;;  %v4948_v12 = vld [vmem:[%s9630_s3] sm:$0xff] }
 0x390   : > { %v6015_v10 = vpop.permute.xlu0 %6014  ;;  %4402 = vmatpush.bf16.msra.mxu2 %v4306_v38  ;;  %6234 = vrot.lane.b32.xlu2 %v6233_v15, %s6540_s18  ;;  %v6005_v16 = vpop.permute.xlu1 %6004  ;;  %v1391_v15 = vld [vmem:[#allocation3 + $0x124] sm:$0xff] }
 0x391   : > { %v6017_v31 = vunpack.i.h.bf16 %v6015_v10  ;;  %v6016_v45 = vunpack.i.l.bf16 %v6015_v10  ;;  %v6007_v33 = vunpack.i.h.bf16 %v6005_v16  ;;  %v6006_v28 = vunpack.i.l.bf16 %v6005_v16  ;;  %4313 = vmatpush.bf16.msra.mxu1 %v4950_v29  ;;  %4965 = vmatpush.bf16.msrb.mxu3 %v4950_v29  ;;  %v1275_v10 = vld [vmem:[#allocation3 + $0x18a] sm:$0xff]  ;;  %v1340_v16 = vld [vmem:[#allocation3 + $0x1b8] sm:$0xff] }
 0x392   : > { %v8971_v9 = vpop.permute.xlu2 %6069  ;;  %v1339_v29 = vld [vmem:[#allocation3 + $0x1b0] sm:$0xff] }
 0x393   : > { %v8963_v59 = vsel %vm3721_vm15, %v8727_v55, %v6016_v45  ;;  %v8967_v25 = vsel %vm3721_vm15, %v8730_v23, %v6017_v31  ;;  %v8975_v50 = vsel %vm3721_vm15, %v8786_v34, %v6006_v28  ;;  %v8979_v57 = vsel %vm3721_vm15, %v8790_v60, %v6007_v33  ;;  %v4956_v55 = vld [vmem:[%s9630_s3 + $0x40] sm:$0xff] }
 0x394   : > { %4403 = vmatpush.bf16.msra.mxu2 %v4957_v47  ;;  %v6248_v23 = vpack.i.bf16 %v350_v27, %v349_v61  ;;  %v6253_v28 = vpack.i.bf16 %v1275_v10, %v1274_v32  ;;  %v6263_v27 = vpack.i.bf16 %v1340_v16, %v1339_v29  ;;  %v1393_v10 = vld [vmem:[#allocation3 + $0x13c] sm:$0xff]  ;;  %v1326_v29 = vld [vmem:[#allocation3 + $0x110] sm:$0xff] }
 0x395   : > { %4314 = vmatpush.bf16.msra.mxu1 %v4949_v19  ;;  %4966 = vmatpush.bf16.msrb.mxu3 %v4949_v19 }
 0x396   : > { %6239 = vrot.lane.b32.xlu0 %v6238_v1, %s6529_s25  ;;  %6229 = vrot.lane.b32.xlu1 %v8521_v43, %s6529_s25 }
 0x398   : > { %v6030_v34 = vpop.permute.xlu0 %6029  ;;  %4404 = vmatpush.bf16.msra.mxu2 %v4956_v55  ;;  %6249 = vrot.lane.b32.xlu2 %v6248_v23, %s6526_s28  ;;  %v6020_v2 = vpop.permute.xlu1 %6019 }
 0x399   : > { %v6032_v60 = vunpack.i.h.bf16 %v6030_v34  ;;  %v6031_v63 = vunpack.i.l.bf16 %v6030_v34  ;;  %v6022_v31 = vunpack.i.h.bf16 %v6020_v2  ;;  %v6021_v45 = vunpack.i.l.bf16 %v6020_v2  ;;  %4315 = vmatpush.bf16.msra.mxu1 %v4948_v12  ;;  %4967 = vmatpush.bf16.msrb.mxu3 %v4948_v12 }
 0x39a   : > { %v9002_v33 = vpop.permute.xlu2 %6084 }
 0x39b   : > { %v8996_v17 = vsel %vm3721_vm15, %v8752_v30, %v6031_v63  ;;  %v9000_v43 = vsel %vm3721_vm15, %v8755_v13, %v6032_v60  ;;  %v9006_v61 = vsel %vm3721_vm15, %v8813_v7, %v6021_v45  ;;  %v9010_v30 = vsel %vm3721_vm15, %v8817_v46, %v6022_v31  ;;  %v1306_v63 = vld [vmem:[#allocation3 + $0x184] sm:$0xff]  ;;  %v351_v31 = vld [vmem:[%s6683_s27 + $0x90] sm:$0xff] }
 0x39c   : > { %v9013_v13 = vpack.i.bf16 %v1392_v44, %v1391_v15  ;;  %v1394_v15 = vld [vmem:[#allocation3 + $0x144] sm:$0xff] }
 0x39d   : > { %4968 = vmatpush.bf16.msra.mxu3 %v4306_v38 }
 0x39e   : > { %6254 = vrot.lane.b32.xlu0 %v6253_v28, %s6539_s15  ;;  %6244 = vrot.lane.b32.xlu1 %v9013_v13, %s6527_s17  ;;  %v1308_v28 = vld [vmem:[#allocation3 + $0x19c] sm:$0xff] }
 0x3a0   : > { %v6045_v1 = vpop.permute.xlu0 %6044  ;;  %6264 = vrot.lane.b32.xlu2 %v6263_v27, %s6529_s25  ;;  %v6035_v7 = vpop.permute.xlu1 %6034  ;;  %v1309_v27 = vld [vmem:[#allocation3 + $0x1a4] sm:$0xff] }
 0x3a1   : > { %v6047_v23 = vunpack.i.h.bf16 %v6045_v1  ;;  %v6046_v19 = vunpack.i.l.bf16 %v6045_v1  ;;  %v6037_v38 = vunpack.i.h.bf16 %v6035_v7  ;;  %v6036_v60 = vunpack.i.l.bf16 %v6035_v7  ;;  %4969 = vmatpush.bf16.msra.mxu3 %v4957_v47  ;;  %v352_v47 = vld [vmem:[%s6683_s27 + $0x98] sm:$0xff] }
 0x3a2   : > { %v9026_v32 = vpop.permute.xlu2 %6099  ;;  %v6283_v44 = vpack.i.bf16 %v352_v47, %v351_v31 }
 0x3a3   : > { %v9020_v46 = vsel %vm3721_vm15, %v8774_v35, %v6046_v19  ;;  %v9024_v34 = vsel %vm3721_vm15, %v8777_v37, %v6047_v23  ;;  %v9030_v12 = vsel %vm3721_vm15, %v8834_v14, %v6036_v60  ;;  %v9034_v2 = vsel %vm3721_vm15, %v8838_v11, %v6037_v38  ;;  %v1307_v35 = vld [vmem:[#allocation3 + $0x18c] sm:$0xff] }
 0x3a4   : > { %10025 = vst [vmem:[#allocation42_spill] sm:$0xff] %v9020_v46  ;;  %v9038_v37 = vpack.i.bf16 %v1307_v35, %v1306_v63  ;;  %v6278_v14 = vpack.i.bf16 %v1394_v15, %v1393_v10  ;;  %v1342_v23 = vld [vmem:[#allocation3 + $0x1d0] sm:$0xff]  ;;  %v9053_v60 = vpack.i.bf16 %v1309_v27, %v1308_v28  ;;  %v1343_v10 = vld [vmem:[#allocation3 + $0x62] sm:$0xff]  ;;  %v5996_v28 = vunpack.i.l.bf16 %v8819_v54  ;;  %v9065_v27 = vld [vmem:[#allocation3 + $0x19a] sm:$0xff] }
 0x3a5   : > { %4970 = vmatpush.bf16.msra.mxu3 %v4956_v55  ;;  %v1341_v55 = vld [vmem:[#allocation3 + $0x1c8] sm:$0xff]  ;;  %v6086_v46 = vunpack.i.l.bf16 %v9002_v33 }
 0x3a6   : > { %6269 = vrot.lane.b32.xlu0 %v8827_v39, %s6540_s18  ;;  %6259 = vrot.lane.b32.xlu1 %v9038_v37, %s6540_s18  ;;  %v1325_v39 = vld [vmem:[#allocation3 + $0x108] sm:$0xff]  ;;  %v6298_v35 = vpack.i.bf16 %v1342_v23, %v1341_v55 }
 0x3a7   : > { %v6273_v1 = vpack.i.bf16 %v1326_v29, %v1325_v39  ;;  %v1344_v15 = vld [vmem:[#allocation3 + $0x6a] sm:$0xff]  ;;  %v5997_v39 = vunpack.i.h.bf16 %v8819_v54 }
 0x3a8   : > { %v6060_v45 = vpop.permute.xlu0 %6059  ;;  %6279 = vrot.lane.b32.xlu2 %v6278_v14, %s6527_s17  ;;  %v9045_v11 = vpop.permute.xlu1 %6049  ;;  %v9057_v14 = vld [vmem:[#allocation3 + $0x1a2] sm:$0xff] }
 0x3a9   : > { %v6062_v19 = vunpack.i.h.bf16 %v6060_v45  ;;  %v6061_v7 = vunpack.i.l.bf16 %v6060_v45  ;;  %v1328_v23 = vld [vmem:[#allocation3 + $0x128] sm:$0xff] }
 0x3aa   : > { %v9047_v16 = vpop.permute.xlu2 %6114 }
 0x3ab   : > { %v4076_v45 = vsel %vm535_vm1, %v1343_v10, %v6061_v7  ;;  %v1327_v10 = vld [vmem:[#allocation3 + $0x120] sm:$0xff] }
 0x3ae   : > { %6284 = vrot.lane.b32.xlu0 %v6283_v44, %s6526_s28  ;;  %6274 = vrot.lane.b32.xlu1 %v6273_v1, %s6529_s25  ;;  %v4077_v44 = vsel %vm535_vm1, %v1344_v15, %v6062_v19  ;;  %v6288_v19 = vpack.i.bf16 %v9057_v14, %v9065_v27  ;;  %v6308_v15 = vpack.i.bf16 %v1328_v23, %v1327_v10 }
 0x3b0   : > { %v9050_v38 = vpop.permute.xlu0 %6074  ;;  %6294 = vrot.lane.b32.xlu2 %v9053_v60, %s6540_s18  ;;  %v6065_v63 = vpop.permute.xlu1 %6064 }
 0x3b1   : > { %v6067_v31 = vunpack.i.h.bf16 %v6065_v63  ;;  %v6066_v47 = vunpack.i.l.bf16 %v6065_v63  ;;  %v6087_v63 = vunpack.i.h.bf16 %v9002_v33  ;;  %v3723_v33 = vsel %vm3721_vm15, %v8800_v22, %v5997_v39 }
 0x3b2   : > { %v9061_v29 = vpop.permute.xlu2 %6129  ;;  %v6077_v10 = vunpack.i.h.bf16 %v9050_v38 }
 0x3b3   : > { %v4108_v1 = vsel %vm3359_vm5, %v4076_v45, %v6066_v47  ;;  %v4109_v55 = vsel %vm3359_vm5, %v4077_v44, %v6067_v31  ;;  %v3722_v31 = vsel %vm3721_vm15, %v8796_v20, %v5996_v28 }
 0x3b4   : > { %v4141_v7 = vpack.c.bf16 %v4109_v55, %v4108_v1  ;;  %v3755_v45 = vsel %vm3754_vm3, %v3722_v31, %v6086_v46  ;;  %v3756_v1 = vsel %vm3754_vm3, %v3723_v33, %v6087_v63  ;;  %v6072_v63 = vunpack.i.h.bf16 %v8971_v9  ;;  %v360_v31 = vld [vmem:[%s6683_s27 + $0xd8] sm:$0xff] }
 0x3b6   : > { %6299 = vrot.lane.b32.xlu0 %v6298_v35, %s6529_s25  ;;  %6289 = vrot.lane.b32.xlu1 %v6288_v19, %s6539_s15  ;;  %s4860_s15 = sshll.u32 %s10032_s22, 1 }
 0x3b7   : > { %4925 = vmatmul.msk.bf16.vlgmr.msra.gmra.mxu2 %vm3457_vm7, %v4141_v7  ;;  %v6071_v7 = vunpack.i.l.bf16 %v8971_v9  ;;  %s299_s14 = scalar_lea.vmem %s9632_s5, %s4860_s15 }
 0x3b8   : > { %v6090_v54 = vpop.permute.xlu0 %6089  ;;  %6309 = vrot.lane.b32.xlu2 %v6308_v15, %s6529_s25  ;;  %v6080_v44 = vpop.permute.xlu1 %6079  ;;  %v359_v15 = vld [vmem:[%s6683_s27 + $0xd0] sm:$0xff] }
 0x3b9   : > { %v6092_v35 = vunpack.i.h.bf16 %v6090_v54  ;;  %v6091_v47 = vunpack.i.l.bf16 %v6090_v54  ;;  %v6082_v55 = vunpack.i.h.bf16 %v6080_v44  ;;  %v6081_v23 = vunpack.i.l.bf16 %v6080_v44 }
 0x3ba   : > { %v9085_v28 = vpop.permute.xlu2 %6144  ;;  %v6076_v54 = vunpack.i.l.bf16 %v9050_v38 }
 0x3bb   : > { %v3788_v19 = vsel %vm3787_vm4, %v3755_v45, %v6091_v47  ;;  %v3789_v20 = vsel %vm3787_vm4, %v3756_v1, %v6092_v35  ;;  %v9089_v39 = vsel %vm3721_vm15, %v8804_v36, %v6081_v23  ;;  %v9093_v46 = vsel %vm3721_vm15, %v8807_v24, %v6082_v55  ;;  %v1345_v36 = vld [vmem:[#allocation3 + $0x7a] sm:$0xff]  ;;  %v1346_v24 = vld [vmem:[#allocation3 + $0x82] sm:$0xff] }
 0x3bc   : > { %v4140_v22 = vpack.c.bf16 %v3789_v20, %v3788_v19  ;;  %v353_v35 = vld [vmem:[%s6683_s27 + $0xa0] sm:$0xff]  ;;  %v354_v47 = vld [vmem:[%s6683_s27 + $0xa8] sm:$0xff]  ;;  %v4079_v9 = vsel %vm535_vm1, %v1346_v24, %v6072_v63  ;;  %v4078_v44 = vsel %vm535_vm1, %v1345_v36, %v6071_v7  ;;  %v6328_v45 = vpack.i.bf16 %v360_v31, %v359_v15  ;;  %v1403_v31 = vld [vmem:[#allocation3 + $0x1b4] sm:$0xff] }
 0x3bd   : > { %v4110_v38 = vsel %vm3359_vm5, %v4078_v44, %v6076_v54  ;;  %v4111_v1 = vsel %vm3359_vm5, %v4079_v9, %v6077_v10  ;;  %v6318_v23 = vpack.i.bf16 %v354_v47, %v353_v35  ;;  %v1330_v19 = vld [vmem:[#allocation3 + $0x140] sm:$0xff] }
 0x3be   : > { %6314 = vrot.lane.b32.xlu0 %v8863_v26, %s6527_s17  ;;  %4316 = vmatmul.bf16.vlgmr.msra.gmra.mxu1 %v4140_v22  ;;  %v4143_v20 = vpack.c.bf16 %v4111_v1, %v4110_v38  ;;  %v1404_v36 = vld [vmem:[#allocation3 + $0x1bc] sm:$0xff]  ;;  %v1347_v38 = vld [vmem:[#allocation3 + $0x92] sm:$0xff] }
 0x3bf   : > { %6304 = vrot.lane.b32.xlu1 %v8871_v42, %s6540_s18  ;;  %v1329_v42 = vld [vmem:[#allocation3 + $0x138] sm:$0xff] }
 0x3c0   : > { %v6105_v33 = vpop.permute.xlu0 %6104  ;;  %6324 = vrot.lane.b32.xlu2 %v9053_v60, %s6527_s17  ;;  %v6095_v26 = vpop.permute.xlu1 %6094  ;;  %v6338_v60 = vpack.i.bf16 %v1330_v19, %v1329_v42  ;;  %v6101_v42 = vunpack.i.l.bf16 %v9026_v32  ;;  %v361_v19 = vld [vmem:[%s6683_s27 + $0xe0] sm:$0xff] }
 0x3c1   : > { %v6107_v22 = vunpack.i.h.bf16 %v6105_v33  ;;  %v6106_v63 = vunpack.i.l.bf16 %v6105_v33  ;;  %v6097_v24 = vunpack.i.h.bf16 %v6095_v26  ;;  %v6096_v35 = vunpack.i.l.bf16 %v6095_v26 }
 0x3c2   : > { %v9113_v55 = vpop.permute.xlu2 %6159  ;;  %v6353_v26 = vpack.i.bf16 %v1404_v36, %v1403_v31 }
 0x3c3   : > { %v3757_v33 = vsel %vm3754_vm3, %v8917_v4, %v6106_v63  ;;  %v3758_v9 = vsel %vm3754_vm3, %v8921_v49, %v6107_v22  ;;  %v1348_v4 = vld [vmem:[#allocation3 + $0x9a] sm:$0xff]  ;;  %v4080_v22 = vsel %vm535_vm1, %v1347_v38, %v6096_v35  ;;  %v6131_v35 = vunpack.i.l.bf16 %v9061_v29 }
 0x3c4   : > { %v4081_v49 = vsel %vm535_vm1, %v1348_v4, %v6097_v24  ;;  %v4112_v31 = vsel %vm3359_vm5, %v4080_v22, %v6101_v42  ;;  %v6132_v24 = vunpack.i.h.bf16 %v9061_v29  ;;  %v1331_v42 = vld [vmem:[#allocation3 + $0x150] sm:$0xff] }
 0x3c6   : > { %6329 = vrot.lane.b32.xlu0 %v6328_v45, %s6526_s28 }
 0x3c7   : > { %6319 = vrot.lane.b32.xlu1 %v6318_v23, %s6526_s28  ;;  %4926 = vmatmul.msk.bf16.gmra.mxu2 %vm3457_vm7, %v4143_v20  ;;  %v6102_v23 = vunpack.i.h.bf16 %v9026_v32  ;;  %v362_v20 = vld [vmem:[%s6683_s27 + $0xe8] sm:$0xff] }
 0x3c8   : > { %v9116_v7 = vpop.permute.xlu0 %6119  ;;  %6339 = vrot.lane.b32.xlu2 %v6338_v60, %s6529_s25  ;;  %v6110_v10 = vpop.permute.xlu1 %6109  ;;  %v356_v60 = vld [vmem:[%s6683_s27 + $0xb8] sm:$0xff] }
 0x3c9   : > { %v6112_v54 = vunpack.i.h.bf16 %v6110_v10  ;;  %v6111_v15 = vunpack.i.l.bf16 %v6110_v10  ;;  %v4113_v36 = vsel %vm3359_vm5, %v4081_v49, %v6102_v23 }
 0x3ca   : > { %v9121_v47 = vpop.permute.xlu2 %6174 }
 0x3cb   : > { %v3790_v44 = vsel %vm3787_vm4, %v3757_v33, %v6111_v15  ;;  %v3791_v45 = vsel %vm3787_vm4, %v3758_v9, %v6112_v54  ;;  %v6358_v54 = vpack.i.bf16 %v362_v20, %v361_v19  ;;  %v6147_v9 = vunpack.i.h.bf16 %v9085_v28 }
 0x3cc   : > { %v4142_v1 = vpack.c.bf16 %v3791_v45, %v3790_v44  ;;  %v1332_v44 = vld [vmem:[#allocation3 + $0x158] sm:$0xff] }
 0x3cd   : > { %v3762_v22 = vsel %vm3754_vm3, %v8851_v8, %v6147_v9  ;;  %v6122_v8 = vunpack.i.h.bf16 %v9116_v7  ;;  %v357_v9 = vld [vmem:[%s6683_s27 + $0xc0] sm:$0xff] }
 0x3ce   : > { %6344 = vrot.lane.b32.xlu0 %v8929_v51, %s6527_s17  ;;  %4321 = vmatmul.bf16.gmra.mxu1 %v4142_v1  ;;  %v355_v51 = vld [vmem:[%s6683_s27 + $0xb0] sm:$0xff]  ;;  %v6146_v1 = vunpack.i.l.bf16 %v9085_v28 }
 0x3cf   : > { %6334 = vrot.lane.b32.xlu1 %v8941_v56, %s6540_s18  ;;  %v6348_v56 = vpack.i.bf16 %v356_v60, %v355_v51 }
 0x3d0   : > { %v9137_v63 = vpop.permute.xlu0 %6134  ;;  %6354 = vrot.lane.b32.xlu2 %v6353_v26, %s6527_s17  ;;  %v6125_v10 = vpop.permute.xlu1 %6124  ;;  %v4145_v26 = vpack.c.bf16 %v4113_v36, %v4112_v31  ;;  %v3761_v49 = vsel %vm3754_vm3, %v8848_v62, %v6146_v1  ;;  %v6116_v62 = vunpack.i.l.bf16 %v9047_v16  ;;  %v363_v31 = vld [vmem:[%s6683_s27 + $0xf0] sm:$0xff]  ;;  %v364_v36 = vld [vmem:[%s6683_s27 + $0xf8] sm:$0xff] }
 0x3d1   : > { %v6127_v32 = vunpack.i.h.bf16 %v6125_v10  ;;  %v6126_v15 = vunpack.i.l.bf16 %v6125_v10 }
 0x3d2   : > { %v9148_v33 = vpop.permute.xlu2 %6189 }
 0x3d3   : > { %v3759_v45 = vsel %vm3754_vm3, %v8975_v50, %v6126_v15  ;;  %v3760_v38 = vsel %vm3754_vm3, %v8979_v57, %v6127_v32  ;;  %v6368_v50 = vpack.i.bf16 %v1332_v44, %v1331_v42  ;;  %v6117_v32 = vunpack.i.h.bf16 %v9047_v16  ;;  %v358_v44 = vld [vmem:[%s6683_s27 + $0xc8] sm:$0xff]  ;;  %v1406_v16 = vld [vmem:[#allocation3 + $0x1d4] sm:$0xff]  ;;  %s4945_s27 = sshll.u32 %s10032_s22, 7 }
 0x3d4   : > { %v3792_v23 = vsel %vm3787_vm4, %v3759_v45, %v6131_v35  ;;  %v3793_v29 = vsel %vm3787_vm4, %v3760_v38, %v6132_v24  ;;  %v6121_v15 = vunpack.i.l.bf16 %v9116_v7  ;;  %v1349_v24 = vld [vmem:[#allocation3 + $0xaa] sm:$0xff]  ;;  %v1350_v35 = vld [vmem:[#allocation3 + $0xb2] sm:$0xff]  ;;  %v6388_v7 = vpack.i.bf16 %v364_v36, %v363_v31 }
 0x3d5   : > { %v4144_v4 = vpack.c.bf16 %v3793_v29, %v3792_v23  ;;  %v1405_v45 = vld [vmem:[#allocation3 + $0x1cc] sm:$0xff]  ;;  %v4083_v38 = vsel %vm535_vm1, %v1350_v35, %v6117_v32 }
 0x3d6   : > { %6359 = vrot.lane.b32.xlu0 %v6358_v54, %s6526_s28  ;;  %v4115_v29 = vsel %vm3359_vm5, %v4083_v38, %v6122_v8 }
 0x3d7   : > { %6349 = vrot.lane.b32.xlu1 %v6348_v56, %s6526_s28  ;;  %4927 = vmatmul.msk.bf16.gmra.mxu2 %vm3457_vm7, %v4145_v26  ;;  %v6383_v26 = vpack.i.bf16 %v1406_v16, %v1405_v45  ;;  %v6136_v45 = vunpack.i.l.bf16 %v9137_v63 }
 0x3d8   : > { %v6150_v19 = vpop.permute.xlu0 %6149  ;;  %6369 = vrot.lane.b32.xlu2 %v6368_v50, %s6529_s25  ;;  %v9162_v28 = vpop.permute.xlu1 %6139  ;;  %v6177_v50 = vunpack.i.h.bf16 %v9121_v47  ;;  %s9359_s25 = scalar_lea.vmem %s9631_s4, %s4945_s27 }
 0x3d9   : > { %v6152_v20 = vunpack.i.h.bf16 %v6150_v19  ;;  %v6151_v57 = vunpack.i.l.bf16 %v6150_v19  ;;  %v6051_v19 = vunpack.i.l.bf16 %v9045_v11  ;;  %v6142_v38 = vunpack.i.h.bf16 %v9162_v28 }
 0x3da   : > { %v9174_v10 = vpop.permute.xlu2 %6204 }
 0x3db   : > { %v9169_v51 = vsel %vm3787_vm4, %v3761_v49, %v6151_v57  ;;  %v9172_v60 = vsel %vm3787_vm4, %v3762_v22, %v6152_v20  ;;  %v6176_v20 = vunpack.i.l.bf16 %v9121_v47 }
 0x3dc   : > { %v4146_v54 = vpack.c.bf16 %v9172_v60, %v9169_v51 }
 0x3dd   : > { %v3763_v47 = vsel %vm3754_vm3, %v8963_v59, %v6176_v20  ;;  %v6137_v59 = vunpack.i.h.bf16 %v9137_v63  ;;  %v6206_v20 = vunpack.i.l.bf16 %v9174_v10 }
 0x3de   : > { %6374 = vrot.lane.b32.xlu0 %v9038_v37, %s6527_s17  ;;  %4326 = vmatmul.bf16.gmra.mxu1 %v4144_v4  ;;  %v4082_v37 = vsel %vm535_vm1, %v1349_v24, %v6116_v62  ;;  %v6052_v4 = vunpack.i.h.bf16 %v9045_v11  ;;  %v3744_v62 = vsel %vm3721_vm15, %v8857_v6, %v6051_v19 }
 0x3df   : > { %6364 = vrot.lane.b32.xlu1 %v9013_v13, %s6540_s18  ;;  %v4114_v23 = vsel %vm3359_vm5, %v4082_v37, %v6121_v15  ;;  %v6378_v13 = vpack.i.bf16 %v358_v44, %v357_v9  ;;  %v3764_v15 = vsel %vm3754_vm3, %v8967_v25, %v6177_v50  ;;  %v6141_v37 = vunpack.i.l.bf16 %v9162_v28 }
 0x3e0   : > { %v6165_v56 = vpop.permute.xlu0 %6164  ;;  %v9192_v1 = vpop.permute.xlu1 %6154  ;;  %6384 = vrot.lane.b32.xlu2 %v6383_v26, %s6527_s17  ;;  %v4147_v57 = vpack.c.bf16 %v4115_v29, %v4114_v23  ;;  %v3745_v11 = vsel %vm3721_vm15, %v8861_v41, %v6052_v4  ;;  %v1351_v26 = vld [vmem:[#allocation3 + $0xc2] sm:$0xff]  ;;  %v1352_v23 = vld [vmem:[#allocation3 + $0xca] sm:$0xff]  ;;  %v6207_v50 = vunpack.i.h.bf16 %v9174_v10 }
 0x3e1   : > { %v6167_v49 = vunpack.i.h.bf16 %v6165_v56  ;;  %v6166_v22 = vunpack.i.l.bf16 %v6165_v56  ;;  %v4085_v29 = vsel %vm535_vm1, %v1352_v23, %v6137_v59  ;;  %v1353_v59 = vld [vmem:[#allocation3 + $0xda] sm:$0xff] }
 0x3e2   : > { %v9196_v42 = vpop.permute.xlu2 %6219  ;;  %v4117_v19 = vsel %vm3359_vm5, %v4085_v29, %v6142_v38 }
 0x3e3   : > { %v3777_v56 = vsel %vm3754_vm3, %v3744_v62, %v6166_v22  ;;  %v3778_v6 = vsel %vm3754_vm3, %v3745_v11, %v6167_v49  ;;  %v3765_v11 = vsel %vm3754_vm3, %v9006_v61, %v6206_v20 }
 0x3e6   : > { %6389 = vrot.lane.b32.xlu0 %v6388_v7, %s6526_s28 }
 0x3e7   : > { %6379 = vrot.lane.b32.xlu1 %v6378_v13, %s6526_s28  ;;  %4928 = vmatmul.msk.bf16.gmra.mxu2 %vm3457_vm7, %v4147_v57  ;;  %v4084_v13 = vsel %vm535_vm1, %v1351_v26, %v6136_v45  ;;  %v1354_v45 = vld [vmem:[#allocation3 + $0xe2] sm:$0xff] }
 0x3e8   : > { %v6180_v51 = vpop.permute.xlu0 %6179  ;;  %v6170_v8 = vpop.permute.xlu1 %6169  ;;  %v4116_v63 = vsel %vm3359_vm5, %v4084_v13, %v6141_v37 }
 0x3e9   : > { %v6182_v60 = vunpack.i.h.bf16 %v6180_v51  ;;  %v6181_v32 = vunpack.i.l.bf16 %v6180_v51  ;;  %v6172_v31 = vunpack.i.h.bf16 %v6170_v8  ;;  %v6171_v36 = vunpack.i.l.bf16 %v6170_v8 }
 0x3ea   : > { %v9222_v25 = vpop.permute.xlu2 %6234  ;;  %v4149_v28 = vpack.c.bf16 %v4117_v19, %v4116_v63  ;;  %v3766_v8 = vsel %vm3754_vm3, %v9010_v30, %v6207_v50 }
 0x3eb   : > { %v3796_v24 = vsel %vm3787_vm4, %v3763_v47, %v6181_v32  ;;  %v3797_v35 = vsel %vm3787_vm4, %v3764_v15, %v6182_v60  ;;  %v3810_v41 = vsel %vm3787_vm4, %v3777_v56, %v6171_v36  ;;  %v3811_v44 = vsel %vm3787_vm4, %v3778_v6, %v6172_v31 }
 0x3ec   : > { %v4148_v9 = vpack.c.bf16 %v3797_v35, %v3796_v24  ;;  %v4162_v16 = vpack.c.bf16 %v3811_v44, %v3810_v41  ;;  %v6157_v32 = vunpack.i.h.bf16 %v9192_v1  ;;  %v6156_v36 = vunpack.i.l.bf16 %v9192_v1 }
 0x3ed   : > { %v6162_v41 = vunpack.i.h.bf16 %v9113_v55  ;;  %v6161_v44 = vunpack.i.l.bf16 %v9113_v55  ;;  %v6237_v26 = vunpack.i.h.bf16 %v9222_v25  ;;  %v6236_v55 = vunpack.i.l.bf16 %v9222_v25 }
 0x3ee   : > { %4331 = vmatmul.bf16.gmra.mxu1 %v4146_v54  ;;  %4371 = vmatmul.bf16.vlgmr.msrb.gmra.mxu3 %v4162_v16  ;;  %v4087_v1 = vsel %vm535_vm1, %v1354_v45, %v6157_v32  ;;  %v4086_v16 = vsel %vm535_vm1, %v1353_v59, %v6156_v36 }
 0x3ef   : > { %v4118_v37 = vsel %vm3359_vm5, %v4086_v16, %v6161_v44 }
 0x3f0   : > { %v6195_v7 = vpop.permute.xlu0 %6194  ;;  %v9228_v4 = vpop.permute.xlu1 %6184 }
 0x3f1   : > { %v6197_v57 = vunpack.i.h.bf16 %v6195_v7  ;;  %v6196_v54 = vunpack.i.l.bf16 %v6195_v7  ;;  %v4119_v7 = vsel %vm3359_vm5, %v4087_v1, %v6162_v41  ;;  %v6187_v50 = vunpack.i.h.bf16 %v9228_v4 }
 0x3f2   : > { %v9234_v49 = vpop.permute.xlu2 %6249  ;;  %v4151_v23 = vpack.c.bf16 %v4119_v7, %v4118_v37 }
 0x3f3   : > { %v3779_v24 = vsel %vm3754_vm3, %v8944_v52, %v6196_v54  ;;  %v3780_v35 = vsel %vm3754_vm3, %v8947_v3, %v6197_v57  ;;  %v3768_v57 = vsel %vm3754_vm3, %v8880_v21, %v6237_v26 }
 0x3f7   : > { %4929 = vmatmul.msk.bf16.gmra.mxu2 %vm3457_vm7, %v4149_v28  ;;  %v3767_v28 = vsel %vm3754_vm3, %v8877_v53, %v6236_v55 }
 0x3f8   : > { %v6210_v22 = vpop.permute.xlu0 %6209  ;;  %v6200_v62 = vpop.permute.xlu1 %6199 }
 0x3f9   : > { %v6212_v51 = vunpack.i.h.bf16 %v6210_v22  ;;  %v6211_v60 = vunpack.i.l.bf16 %v6210_v22  ;;  %v6202_v10 = vunpack.i.h.bf16 %v6200_v62  ;;  %v6201_v47 = vunpack.i.l.bf16 %v6200_v62 }
 0x3fa   : > { %v6265_v3 = vpop.permute.xlu2 %6264 }
 0x3fb   : > { %v3798_v15 = vsel %vm3787_vm4, %v3765_v11, %v6211_v60  ;;  %v3799_v31 = vsel %vm3787_vm4, %v3766_v8, %v6212_v51  ;;  %v3812_v61 = vsel %vm3787_vm4, %v3779_v24, %v6201_v47  ;;  %v3813_v6 = vsel %vm3787_vm4, %v3780_v35, %v6202_v10 }
 0x3fc   : > { %v4150_v56 = vpack.c.bf16 %v3799_v31, %v3798_v15  ;;  %v4164_v30 = vpack.c.bf16 %v3813_v6, %v3812_v61  ;;  %v6186_v60 = vunpack.i.l.bf16 %v9228_v4  ;;  %v6192_v47 = vunpack.i.h.bf16 %v9148_v33  ;;  %v1355_v31 = vld [vmem:[#allocation3 + $0xf2] sm:$0xff]  ;;  %v1356_v4 = vld [vmem:[#allocation3 + $0xfa] sm:$0xff] }
 0x3fd   : > { %v6191_v15 = vunpack.i.l.bf16 %v9148_v33  ;;  %v4089_v36 = vsel %vm535_vm1, %v1356_v4, %v6187_v50  ;;  %v6267_v59 = vunpack.i.h.bf16 %v6265_v3  ;;  %v6266_v45 = vunpack.i.l.bf16 %v6265_v3 }
 0x3fe   : > { %4336 = vmatmul.bf16.gmra.mxu1 %v4148_v9  ;;  %4376 = vmatmul.bf16.gmra.mxu3 %v4164_v30  ;;  %v4088_v24 = vsel %vm535_vm1, %v1355_v31, %v6186_v60  ;;  %v4121_v61 = vsel %vm3359_vm5, %v4089_v36, %v6192_v47 }
 0x3ff   : > { %v4120_v35 = vsel %vm3359_vm5, %v4088_v24, %v6191_v15 }
 0x400   : > { %v6225_v52 = vpop.permute.xlu0 %6224  ;;  %v9255_v38 = vpop.permute.xlu1 %6214  ;;  %v4153_v30 = vpack.c.bf16 %v4121_v61, %v4120_v35 }
 0x401   : > { %v6227_v29 = vunpack.i.h.bf16 %v6225_v52  ;;  %v6226_v13 = vunpack.i.l.bf16 %v6225_v52  ;;  %v6216_v37 = vunpack.i.l.bf16 %v9255_v38 }
 0x402   : > { %v9270_v32 = vpop.permute.xlu2 %6279 }
 0x403   : > { %v3781_v62 = vsel %vm3754_vm3, %v9089_v39, %v6226_v13  ;;  %v3782_v11 = vsel %vm3754_vm3, %v9093_v46, %v6227_v29  ;;  %v6222_v13 = vunpack.i.h.bf16 %v9196_v42 }
 0x407   : > { %4930 = vmatmul.msk.bf16.gmra.mxu2 %vm3457_vm7, %v4151_v23 }
 0x408   : > { %v6240_v63 = vpop.permute.xlu0 %6239  ;;  %v6230_v20 = vpop.permute.xlu1 %6229 }
 0x409   : > { %v6242_v19 = vunpack.i.h.bf16 %v6240_v63  ;;  %v6241_v9 = vunpack.i.l.bf16 %v6240_v63  ;;  %v6232_v54 = vunpack.i.h.bf16 %v6230_v20  ;;  %v6231_v22 = vunpack.i.l.bf16 %v6230_v20 }
 0x40a   : > { %v6295_v6 = vpop.permute.xlu2 %6294  ;;  %v6221_v63 = vunpack.i.l.bf16 %v9196_v42 }
 0x40b   : > { %v3800_v25 = vsel %vm3787_vm4, %v3767_v28, %v6241_v9  ;;  %v3801_v51 = vsel %vm3787_vm4, %v3768_v57, %v6242_v19  ;;  %v3814_v8 = vsel %vm3787_vm4, %v3781_v62, %v6231_v22  ;;  %v3815_v21 = vsel %vm3787_vm4, %v3782_v11, %v6232_v54  ;;  %v1357_v19 = vld [vmem:[#allocation3 + $0x10a] sm:$0xff] }
 0x40c   : > { %v4152_v53 = vpack.c.bf16 %v3801_v51, %v3800_v25  ;;  %v4166_v10 = vpack.c.bf16 %v3815_v21, %v3814_v8  ;;  %v4090_v50 = vsel %vm535_vm1, %v1357_v19, %v6216_v37 }
 0x40d   : > { %v4122_v51 = vsel %vm3359_vm5, %v4090_v50, %v6221_v63 }
 0x40e   : > { %4341 = vmatmul.bf16.gmra.mxu1 %v4150_v56  ;;  %4381 = vmatmul.bf16.gmra.mxu3 %v4166_v10  ;;  %v6217_v56 = vunpack.i.h.bf16 %v9255_v38  ;;  %v1358_v38 = vld [vmem:[#allocation3 + $0x112] sm:$0xff] }
 0x410   : > { %v6255_v39 = vpop.permute.xlu0 %6254  ;;  %v9282_v46 = vpop.permute.xlu1 %6244 }
 0x411   : > { %v6257_v41 = vunpack.i.h.bf16 %v6255_v39  ;;  %v6256_v44 = vunpack.i.l.bf16 %v6255_v39  ;;  %v6297_v39 = vunpack.i.h.bf16 %v6295_v6  ;;  %v6247_v35 = vunpack.i.h.bf16 %v9282_v46 }
 0x413   : > { %v3750_v7 = vsel %vm3721_vm15, %v8887_v40, %v6256_v44  ;;  %v3751_v26 = vsel %vm3721_vm15, %v8891_v18, %v6257_v41  ;;  %v4091_v40 = vsel %vm535_vm1, %v1358_v38, %v6217_v56  ;;  %v6310_v18 = vpop.permute.xlu2 %6309 }
 0x414   : > { %v4123_v42 = vsel %vm3359_vm5, %v4091_v40, %v6222_v13 }
 0x415   : > { %v4155_v21 = vpack.c.bf16 %v4123_v42, %v4122_v51 }
 0x417   : > { %4931 = vmatmul.msk.bf16.gmra.mxu2 %vm3457_vm7, %v4153_v30 }
 0x418   : > { %v6270_v33 = vpop.permute.xlu0 %6269  ;;  %v6260_v1 = vpop.permute.xlu1 %6259 }
 0x419   : > { %v6262_v16 = vunpack.i.h.bf16 %v6260_v1  ;;  %v6261_v52 = vunpack.i.l.bf16 %v6260_v1  ;;  %v6272_v20 = vunpack.i.h.bf16 %v6270_v33  ;;  %v6271_v28 = vunpack.i.l.bf16 %v6270_v33 }
 0x41a   : > { %v6252_v33 = vunpack.i.h.bf16 %v9234_v49 }
 0x41b   : > { %v3783_v55 = vsel %vm3754_vm3, %v3750_v7, %v6261_v52  ;;  %v3784_v23 = vsel %vm3754_vm3, %v3751_v26, %v6262_v16  ;;  %v3769_v60 = vsel %vm3754_vm3, %v8996_v17, %v6271_v28  ;;  %v3770_v62 = vsel %vm3754_vm3, %v9000_v43, %v6272_v20  ;;  %v6325_v47 = vpop.permute.xlu2 %6324 }
 0x41c   : > { %v3816_v29 = vsel %vm3787_vm4, %v3783_v55, %v6266_v45  ;;  %v3817_v3 = vsel %vm3787_vm4, %v3784_v23, %v6267_v59  ;;  %v6296_v17 = vunpack.i.l.bf16 %v6295_v6  ;;  %v6246_v43 = vunpack.i.l.bf16 %v9282_v46  ;;  %v1359_v6 = vld [vmem:[#allocation3 + $0x122] sm:$0xff]  ;;  %v1360_v45 = vld [vmem:[#allocation3 + $0x12a] sm:$0xff] }
 0x41d   : > { %v4168_v9 = vpack.c.bf16 %v3817_v3, %v3816_v29  ;;  %v6251_v59 = vunpack.i.l.bf16 %v9234_v49  ;;  %v6312_v55 = vunpack.i.h.bf16 %v6310_v18  ;;  %v6311_v23 = vunpack.i.l.bf16 %v6310_v18 }
 0x41e   : > { %4346 = vmatmul.bf16.gmra.mxu1 %v4152_v53  ;;  %v4092_v16 = vsel %vm535_vm1, %v1359_v6, %v6246_v43  ;;  %v6326_v50 = vunpack.i.l.bf16 %v6325_v47 }
 0x41f   : > { %4386 = vmatmul.bf16.gmra.mxu3 %v4168_v9  ;;  %v4124_v7 = vsel %vm3359_vm5, %v4092_v16, %v6251_v59  ;;  %v6327_v9 = vunpack.i.h.bf16 %v6325_v47 }
 0x420   : > { %v9301_v57 = vpop.permute.xlu0 %6284  ;;  %v6275_v54 = vpop.permute.xlu1 %6274  ;;  %v4102_v42 = vsel %vm535_vm1, %v9065_v27, %v6326_v50 }
 0x421   : > { %v6277_v22 = vunpack.i.h.bf16 %v6275_v54  ;;  %v6276_v25 = vunpack.i.l.bf16 %v6275_v54  ;;  %v6281_v54 = vunpack.i.l.bf16 %v9270_v32 }
 0x423   : > { %v3802_v11 = vsel %vm3787_vm4, %v3769_v60, %v6276_v25  ;;  %v3803_v8 = vsel %vm3787_vm4, %v3770_v62, %v6277_v22  ;;  %v9331_v29 = vpop.permute.xlu2 %6339  ;;  %v4103_v22 = vsel %vm535_vm1, %v9057_v14, %v6327_v9  ;;  %v6287_v60 = vunpack.i.h.bf16 %v9301_v57  ;;  %v1361_v14 = vld [vmem:[#allocation3 + $0x13a] sm:$0xff] }
 0x424   : > { %v4154_v53 = vpack.c.bf16 %v3803_v8, %v3802_v11  ;;  %v6286_v62 = vunpack.i.l.bf16 %v9301_v57  ;;  %v4094_v57 = vsel %vm535_vm1, %v1361_v14, %v6281_v54  ;;  %v6342_v6 = vunpack.i.h.bf16 %v9331_v29 }
 0x427   : > { %4932 = vmatmul.msk.bf16.gmra.mxu2 %vm3457_vm7, %v4155_v21 }
 0x428   : > { %v6300_v10 = vpop.permute.xlu0 %6299  ;;  %v6290_v15 = vpop.permute.xlu1 %6289 }
 0x429   : > { %v6302_v31 = vunpack.i.h.bf16 %v6300_v10  ;;  %v6301_v4 = vunpack.i.l.bf16 %v6300_v10  ;;  %v6292_v36 = vunpack.i.h.bf16 %v6290_v15  ;;  %v6291_v24 = vunpack.i.l.bf16 %v6290_v15 }
 0x42b   : > { %v3752_v61 = vsel %vm3721_vm15, %v8933_v58, %v6291_v24  ;;  %v3753_v30 = vsel %vm3721_vm15, %v8937_v0, %v6292_v36  ;;  %v4093_v58 = vsel %vm535_vm1, %v1360_v45, %v6247_v35  ;;  %v1371_v45 = vld [vmem:[#allocation3 + $0x1b2] sm:$0xff] }
 0x42c   : > { %v3785_v41 = vsel %vm3754_vm3, %v3752_v61, %v6296_v17  ;;  %v3786_v44 = vsel %vm3754_vm3, %v3753_v30, %v6297_v39  ;;  %v4125_v26 = vsel %vm3359_vm5, %v4093_v58, %v6252_v33  ;;  %v6341_v30 = vunpack.i.l.bf16 %v9331_v29 }
 0x42d   : > { %v3818_v1 = vsel %vm3787_vm4, %v3785_v41, %v6301_v4  ;;  %v3819_v46 = vsel %vm3787_vm4, %v3786_v44, %v6302_v31  ;;  %v4157_v63 = vpack.c.bf16 %v4125_v26, %v4124_v7  ;;  %v4126_v31 = vsel %vm3359_vm5, %v4094_v57, %v6286_v62  ;;  %v1372_v41 = vld [vmem:[#allocation3 + $0x1ba] sm:$0xff] }
 0x42e   : > { %4351 = vmatmul.bf16.gmra.mxu1 %v4154_v53  ;;  %v4170_v52 = vpack.c.bf16 %v3819_v46, %v3818_v1  ;;  %v6355_v53 = vpop.permute.xlu2 %6354 }
 0x42f   : > { %v6357_v24 = vunpack.i.h.bf16 %v6355_v53  ;;  %v6356_v44 = vunpack.i.l.bf16 %v6355_v53 }
 0x430   : > { %v9326_v0 = vpop.permute.xlu0 %6314  ;;  %4391 = vmatmul.bf16.gmra.mxu3 %v4170_v52 }
 0x431   : > { %v6305_v56 = vpop.permute.xlu1 %6304 }
 0x432   : > { %v6307_v37 = vunpack.i.h.bf16 %v6305_v56  ;;  %v6306_v49 = vunpack.i.l.bf16 %v6305_v56 }
 0x434   : > { %v3771_v3 = vsel %vm3754_vm3, %v9030_v12, %v6306_v49  ;;  %v3772_v13 = vsel %vm3754_vm3, %v9034_v2, %v6307_v37  ;;  %v6282_v2 = vunpack.i.h.bf16 %v9270_v32  ;;  %v1362_v32 = vld [vmem:[#allocation3 + $0x142] sm:$0xff]  ;;  %v4105_v49 = vsel %vm535_vm1, %v1372_v41, %v6357_v24 }
 0x435   : > { %v3804_v19 = vsel %vm3787_vm4, %v3771_v3, %v6311_v23  ;;  %v3805_v38 = vsel %vm3787_vm4, %v3772_v13, %v6312_v55  ;;  %v4104_v55 = vsel %vm535_vm1, %v1371_v45, %v6356_v44  ;;  %v1374_v44 = vld [vmem:[#allocation3 + $0x1d2] sm:$0xff] }
 0x436   : > { %v4156_v40 = vpack.c.bf16 %v3805_v38, %v3804_v19  ;;  %v4095_v10 = vsel %vm535_vm1, %v1362_v32, %v6282_v2  ;;  %v6370_v23 = vpop.permute.xlu2 %6369 }
 0x437   : > { %4933 = vmatmul.msk.bf16.gmra.mxu2 %vm3457_vm7, %v4157_v63  ;;  %v4127_v4 = vsel %vm3359_vm5, %v4095_v10, %v6287_v60 }
 0x438   : > { %v6330_v18 = vpop.permute.xlu0 %6329  ;;  %v4159_v61 = vpack.c.bf16 %v4127_v4, %v4126_v31 }
 0x439   : > { %v6332_v20 = vunpack.i.h.bf16 %v6330_v18  ;;  %v6331_v28 = vunpack.i.l.bf16 %v6330_v18  ;;  %v9343_v12 = vpop.permute.xlu1 %6319  ;;  %v6316_v18 = vunpack.i.l.bf16 %v9326_v0 }
 0x43a   : > { %v4406_v51 = vpop.f32.mrf.mxu2  ;;  %v6321_v2 = vunpack.i.l.bf16 %v9343_v12 }
 0x43b   : > { %v4317_v25 = vpop.f32.mrf.mxu1  ;;  %v4135_v8 = vsel %vm3359_vm5, %v4103_v22, %v6332_v20  ;;  %v4134_v21 = vsel %vm3359_vm5, %v4102_v42, %v6331_v28  ;;  %v6317_v28 = vunpack.i.h.bf16 %v9326_v0 }
 0x43c   : > { %v4407_v11 = vadd.f32 %v4406_v51, %v4317_v25  ;;  %v4167_v47 = vpack.c.bf16 %v4135_v8, %v4134_v21  ;;  %v6322_v25 = vunpack.i.h.bf16 %v9343_v12  ;;  %v1363_v51 = vld [vmem:[#allocation3 + $0x152] sm:$0xff]  ;;  %v1364_v21 = vld [vmem:[#allocation3 + $0x15a] sm:$0xff] }
 0x43d   : > { %v4096_v14 = vsel %vm535_vm1, %v1363_v51, %v6316_v18  ;;  %v4097_v32 = vsel %vm535_vm1, %v1364_v21, %v6317_v28  ;;  %v1365_v28 = vld [vmem:[#allocation3 + $0x16a] sm:$0xff] }
 0x43e   : > { %v4486_v27 = vpack.c.bf16 %v4407_v11, %v4407_v11  ;;  %4356 = vmatmul.bf16.gmra.mxu1 %v4156_v40  ;;  %v4620_v33 = vmul.f32 %v4407_v11, %v4407_v11  ;;  %v4551_v1 = vsel %vm397_vm0, %v4407_v11, 0.0  ;;  %v6385_v8 = vpop.permute.xlu2 %6384  ;;  %v4129_v31 = vsel %vm3359_vm5, %v4097_v32, %v6322_v25 }
 0x43f   : > { %v6386_v4 = vunpack.i.l.bf16 %v6385_v8 }
 0x440   : > { %4519 = vst.msk [vmem:[%s9359_s25] sm:$0xf] %vm4518_vm6, %v4486_v27  ;;  %v9365_v15 = vpop.permute.xlu0 %6344  ;;  %4938 = vmatmul.msk.bf16.vlgmr.msra.gmra.mxu3 %vm3457_vm7, %v4167_v47  ;;  %v4652_v29 = vsel %vm397_vm0, %v4620_v33, 0.0  ;;  %v4128_v27 = vsel %vm3359_vm5, %v4096_v14, %v6321_v2  ;;  %v10026_v33 = vld [vmem:[#allocation42_spill] sm:$0xff]  ;;  %v1366_v2 = vld [vmem:[#allocation3 + $0x172] sm:$0xff] }
 0x441   : > { %v6335_v36 = vpop.permute.xlu1 %6334  ;;  %v4161_v41 = vpack.c.bf16 %v4129_v31, %v4128_v27 }
 0x442   : > { %v6337_v39 = vunpack.i.h.bf16 %v6335_v36  ;;  %v6336_v17 = vunpack.i.l.bf16 %v6335_v36  ;;  %v4408_v43 = vpop.f32.mrf.mxu2  ;;  %v6372_v36 = vunpack.i.h.bf16 %v6370_v23 }
 0x443   : > { %v4319_v35 = vpop.f32.mrf.mxu1 }
 0x444   : > { %v4409_v59 = vadd.f32 %v4408_v43, %v4319_v35  ;;  %v3773_v46 = vsel %vm3754_vm3, %v8907_v48, %v6336_v17  ;;  %v3774_v58 = vsel %vm3754_vm3, %v8910_v5, %v6337_v39  ;;  %v1373_v39 = vld [vmem:[#allocation3 + $0x1ca] sm:$0xff]  ;;  %v6371_v17 = vunpack.i.l.bf16 %v6370_v23 }
 0x445   : > { %v3806_v37 = vsel %vm3787_vm4, %v3773_v46, %v6341_v30  ;;  %v3807_v26 = vsel %vm3787_vm4, %v3774_v58, %v6342_v6  ;;  %v6387_v43 = vunpack.i.h.bf16 %v6385_v8  ;;  %v4106_v45 = vsel %vm535_vm1, %v1373_v39, %v6386_v4 }
 0x446   : > { %v4487_v16 = vpack.c.bf16 %v4409_v59, %v4409_v59  ;;  %v4552_v52 = vsel %vm397_vm0, %v4409_v59, 0.0  ;;  %v4621_v56 = vmul.f32 %v4409_v59, %v4409_v59  ;;  %v4158_v3 = vpack.c.bf16 %v3807_v26, %v3806_v37 }
 0x447   : > { %v4553_v7 = vadd.f32 %v4552_v52, %v4551_v1  ;;  %4934 = vmatmul.msk.bf16.gmra.mxu2 %vm3457_vm7, %v4159_v61  ;;  %v4107_v37 = vsel %vm535_vm1, %v1374_v44, %v6387_v43 }
 0x448   : > { %4520 = vst.msk [vmem:[%s9359_s25 + $0x4] sm:$0xf] %vm4518_vm6, %v4487_v16  ;;  %v4653_v48 = vsel %vm397_vm0, %v4621_v56, 0.0  ;;  %v6360_v5 = vpop.permute.xlu0 %6359 }
 0x449   : > { %v4654_v13 = vadd.f32 %v4653_v48, %v4652_v29  ;;  %v6362_v63 = vunpack.i.h.bf16 %v6360_v5  ;;  %v6361_v19 = vunpack.i.l.bf16 %v6360_v5  ;;  %v9387_v38 = vpop.permute.xlu1 %6349 }
 0x44a   : > { %v4411_v9 = vpop.f32.mrf.mxu2 }
 0x44b   : > { %v4136_v40 = vsel %vm3359_vm5, %v4104_v55, %v6361_v19  ;;  %v4137_v50 = vsel %vm3359_vm5, %v4105_v49, %v6362_v63  ;;  %v4322_v20 = vpop.f32.mrf.mxu1 }
 0x44c   : > { %v4412_v54 = vadd.f32 %v4411_v9, %v4322_v20  ;;  %v4169_v22 = vpack.c.bf16 %v4137_v50, %v4136_v40  ;;  %v6352_v9 = vunpack.i.h.bf16 %v9387_v38  ;;  %v6351_v40 = vunpack.i.l.bf16 %v9387_v38 }
 0x44e   : > { %v4488_v42 = vpack.c.bf16 %v4412_v54, %v4412_v54  ;;  %v4554_v60 = vsel %vm397_vm0, %v4412_v54, 0.0  ;;  %v4622_v62 = vmul.f32 %v4412_v54, %v4412_v54  ;;  %4361 = vmatmul.bf16.gmra.mxu1 %v4158_v3  ;;  %v6347_v3 = vunpack.i.h.bf16 %v9365_v15 }
 0x44f   : > { %v4555_v0 = vadd.f32 %v4554_v60, %v4553_v7 }
 0x450   : > { %v9396_v11 = vpop.permute.xlu0 %6374  ;;  %4521 = vst.msk [vmem:[%s9359_s25 + $0x8] sm:$0xf] %vm4518_vm6, %v4488_v42  ;;  %v4655_v53 = vsel %vm397_vm0, %v4622_v62, 0.0  ;;  %4939 = vmatmul.msk.bf16.gmra.mxu3 %vm3457_vm7, %v4169_v22  ;;  %v4099_v22 = vsel %vm535_vm1, %v1366_v2, %v6347_v3 }
 0x451   : > { %v6365_v12 = vpop.permute.xlu1 %6364  ;;  %v4656_v10 = vadd.f32 %v4655_v53, %v4654_v13  ;;  %v6346_v13 = vunpack.i.l.bf16 %v9365_v15  ;;  %v4131_v60 = vsel %vm3359_vm5, %v4099_v22, %v6352_v9  ;;  %v6377_v31 = vunpack.i.h.bf16 %v9396_v11 }
 0x452   : > { %v6367_v57 = vunpack.i.h.bf16 %v6365_v12  ;;  %v4413_v47 = vpop.f32.mrf.mxu2  ;;  %v6366_v24 = vunpack.i.l.bf16 %v6365_v12  ;;  %v6376_v4 = vunpack.i.l.bf16 %v9396_v11 }
 0x453   : > { %v4324_v35 = vpop.f32.mrf.mxu1  ;;  %v4098_v25 = vsel %vm535_vm1, %v1365_v28, %v6346_v13 }
 0x454   : > { %v3776_v61 = vsel %vm3754_vm3, %v9024_v34, %v6367_v57  ;;  %v4414_v30 = vadd.f32 %v4413_v47, %v4324_v35  ;;  %v3775_v59 = vsel %vm3754_vm3, %v10026_v33, %v6366_v24  ;;  %v4130_v42 = vsel %vm3359_vm5, %v4098_v25, %v6351_v40 }
 0x455   : > { %v3809_v6 = vsel %vm3787_vm4, %v3776_v61, %v6372_v36  ;;  %v3808_v1 = vsel %vm3787_vm4, %v3775_v59, %v6371_v17  ;;  %v4163_v21 = vpack.c.bf16 %v4131_v60, %v4130_v42  ;;  %v1367_v61 = vld [vmem:[#allocation3 + $0x182] sm:$0xff] }
 0x456   : > { %v4489_v46 = vpack.c.bf16 %v4414_v30, %v4414_v30  ;;  %v4556_v58 = vsel %vm397_vm0, %v4414_v30, 0.0  ;;  %v4623_v16 = vmul.f32 %v4414_v30, %v4414_v30  ;;  %v4160_v52 = vpack.c.bf16 %v3809_v6, %v3808_v1  ;;  %v1368_v30 = vld [vmem:[#allocation3 + $0x18a] sm:$0xff] }
 0x457   : > { %4935 = vmatmul.msk.bf16.gmra.mxu2 %vm3457_vm7, %v4161_v41  ;;  %v4557_v56 = vadd.f32 %v4556_v58, %v4555_v0  ;;  %v4101_v44 = vsel %vm535_vm1, %v1368_v30, %v6377_v31  ;;  %v4100_v33 = vsel %vm535_vm1, %v1367_v61, %v6376_v4  ;;  %vm4721_vm1 = vcmask 1040384  }
 0x458   : > { %v6390_v34 = vpop.permute.xlu0 %6389  ;;  %4522 = vst.msk [vmem:[%s9359_s25 + $0xc] sm:$0xf] %vm4518_vm6, %v4489_v46  ;;  %v4657_v26 = vsel %vm397_vm0, %v4623_v16, 0.0 }
 0x459   : > { %v6392_v49 = vunpack.i.h.bf16 %v6390_v34  ;;  %v6391_v7 = vunpack.i.l.bf16 %v6390_v34  ;;  %v4658_v55 = vadd.f32 %v4657_v26, %v4656_v10  ;;  %v6380_v57 = vpop.permute.xlu1 %6379 }
 0x45a   : > { %v4416_v23 = vpop.f32.mrf.mxu2  ;;  %v6382_v24 = vunpack.i.h.bf16 %v6380_v57  ;;  %v6381_v39 = vunpack.i.l.bf16 %v6380_v57 }
 0x45b   : > { %v4138_v29 = vsel %vm3359_vm5, %v4106_v45, %v6391_v7  ;;  %v4139_v48 = vsel %vm3359_vm5, %v4107_v37, %v6392_v49  ;;  %v4327_v5 = vpop.f32.mrf.mxu1 }
 0x45c   : > { %v4417_v63 = vadd.f32 %v4416_v23, %v4327_v5  ;;  %v4171_v19 = vpack.c.bf16 %v4139_v48, %v4138_v29  ;;  %v4132_v11 = vsel %vm3359_vm5, %v4100_v33, %v6381_v39  ;;  %v4133_v6 = vsel %vm3359_vm5, %v4101_v44, %v6382_v24 }
 0x45d   : > { %v4165_v16 = vpack.c.bf16 %v4133_v6, %v4132_v11 }
 0x45e   : > { %v4490_v50 = vpack.c.bf16 %v4417_v63, %v4417_v63  ;;  %v4558_v18 = vsel %vm397_vm0, %v4417_v63, 0.0  ;;  %v4624_v20 = vmul.f32 %v4417_v63, %v4417_v63  ;;  %4366 = vmatmul.bf16.gmra.mxu1 %v4160_v52 }
 0x45f   : > { %v4559_v54 = vadd.f32 %v4558_v18, %v4557_v56 }
 0x460   : > { %4523 = vst.msk [vmem:[%s9359_s25 + $0x10] sm:$0xf] %vm4518_vm6, %v4490_v50  ;;  %v4659_v15 = vsel %vm397_vm0, %v4624_v20, 0.0  ;;  %4940 = vmatmul.msk.bf16.gmra.mxu3 %vm3457_vm7, %v4171_v19 }
 0x461   : > { %v4660_v38 = vadd.f32 %v4659_v15, %v4658_v55 }
 0x462   : > { %v4418_v51 = vpop.f32.mrf.mxu2 }
 0x463   : > { %v4329_v62 = vpop.f32.mrf.mxu1 }
 0x464   : > { %v4419_v8 = vadd.f32 %v4418_v51, %v4329_v62 }
 0x466   : > { %v4491_v14 = vpack.c.bf16 %v4419_v8, %v4419_v8  ;;  %v4560_v0 = vsel %vm397_vm0, %v4419_v8, 0.0  ;;  %v4625_v32 = vmul.f32 %v4419_v8, %v4419_v8 }
 0x467   : > { %4936 = vmatmul.msk.bf16.gmra.mxu2 %vm3457_vm7, %v4163_v21  ;;  %v4561_v53 = vadd.f32 %v4560_v0, %v4559_v54 }
 0x468   : > { %4524 = vst.msk [vmem:[%s9359_s25 + $0x14] sm:$0xf] %vm4518_vm6, %v4491_v14  ;;  %v4661_v12 = vsel %vm397_vm0, %v4625_v32, 0.0 }
 0x469   : > { %v4662_v27 = vadd.f32 %v4661_v12, %v4660_v38 }
 0x46a   : > { %v4421_v10 = vpop.f32.mrf.mxu2 }
 0x46b   : > { %v4332_v47 = vpop.f32.mrf.mxu1 }
 0x46c   : > { %v4422_v36 = vadd.f32 %v4421_v10, %v4332_v47 }
 0x46e   : > { %v4492_v17 = vpack.c.bf16 %v4422_v36, %v4422_v36  ;;  %v4562_v35 = vsel %vm397_vm0, %v4422_v36, 0.0  ;;  %v4626_v43 = vmul.f32 %v4422_v36, %v4422_v36 }
 0x46f   : > { %v4563_v41 = vadd.f32 %v4562_v35, %v4561_v53 }
 0x470   : > { %4525 = vst.msk [vmem:[%s9359_s25 + $0x18] sm:$0xf] %vm4518_vm6, %v4492_v17  ;;  %v4663_v59 = vsel %vm397_vm0, %v4626_v43, 0.0 }
 0x471   : > { %v4664_v45 = vadd.f32 %v4663_v59, %v4662_v27  ;;  %v9449_v1 = vpop.f32.mrf.mxu3 }
 0x472   : > { %v4423_v46 = vpop.f32.mrf.mxu2 }
 0x473   : > { %v4334_v58 = vpop.f32.mrf.mxu1 }
 0x474   : > { %v4424_v34 = vadd.f32 %v4423_v46, %v4334_v58 }
 0x476   : > { %v4493_v52 = vpack.c.bf16 %v4424_v34, %v4424_v34  ;;  %v4564_v56 = vsel %vm397_vm0, %v4424_v34, 0.0  ;;  %v4627_v37 = vmul.f32 %v4424_v34, %v4424_v34 }
 0x477   : > { %4937 = vmatmul.msk.bf16.gmra.mxu2 %vm3457_vm7, %v4165_v16  ;;  %v4565_v49 = vadd.f32 %v4564_v56, %v4563_v41 }
 0x478   : > { %4526 = vst.msk [vmem:[%s9359_s25 + $0x1c] sm:$0xf] %vm4518_vm6, %v4493_v52  ;;  %v4665_v7 = vsel %vm397_vm0, %v4627_v37, 0.0 }
 0x479   : > { %v4666_v26 = vadd.f32 %v4665_v7, %v4664_v45  ;;  %v9456_v55 = vpop.f32.mrf.mxu3 }
 0x47a   : > { %v4426_v23 = vpop.f32.mrf.mxu2 }
 0x47b   : > { %v4337_v29 = vpop.f32.mrf.mxu1 }
 0x47c   : > { %v4427_v48 = vadd.f32 %v4426_v23, %v4337_v29 }
 0x47e   : > { %v4494_v5 = vpack.c.bf16 %v4427_v48, %v4427_v48  ;;  %v4566_v3 = vsel %vm397_vm0, %v4427_v48, 0.0  ;;  %v4628_v13 = vmul.f32 %v4427_v48, %v4427_v48 }
 0x47f   : > { %v4567_v63 = vadd.f32 %v4566_v3, %v4565_v49 }
 0x480   : > { %4527 = vst.msk [vmem:[%s9359_s25 + $0x20] sm:$0xf] %vm4518_vm6, %v4494_v5  ;;  %v4667_v19 = vsel %vm397_vm0, %v4628_v13, 0.0 }
 0x481   : > { %v4668_v9 = vadd.f32 %v4667_v19, %v4666_v26  ;;  %v9462_v40 = vpop.f32.mrf.mxu3 }
 0x482   : > { %v4428_v50 = vpop.f32.mrf.mxu2 }
 0x483   : > { %v4339_v18 = vpop.f32.mrf.mxu1 }
 0x484   : > { %v4429_v20 = vadd.f32 %v4428_v50, %v4339_v18 }
 0x486   : > { %v4495_v28 = vpack.c.bf16 %v4429_v20, %v4429_v20  ;;  %v4568_v2 = vsel %vm397_vm0, %v4429_v20, 0.0  ;;  %v4629_v54 = vmul.f32 %v4429_v20, %v4429_v20 }
 0x487   : > { %v4569_v22 = vadd.f32 %v4568_v2, %v4567_v63 }
 0x488   : > { %4528 = vst.msk [vmem:[%s9359_s25 + $0x24] sm:$0xf] %vm4518_vm6, %v4495_v28  ;;  %v4669_v25 = vsel %vm397_vm0, %v4629_v54, 0.0 }
 0x489   : > { %v4670_v15 = vadd.f32 %v4669_v25, %v4668_v9  ;;  %v9468_v38 = vpop.f32.mrf.mxu3 }
 0x48a   : > { %v4431_v51 = vpop.f32.mrf.mxu2 }
 0x48b   : > { %v4342_v42 = vpop.f32.mrf.mxu1 }
 0x48c   : > { %v4432_v60 = vadd.f32 %v4431_v51, %v4342_v42 }
 0x48e   : > { %v4496_v62 = vpack.c.bf16 %v4432_v60, %v4432_v60  ;;  %v4570_v8 = vsel %vm397_vm0, %v4432_v60, 0.0  ;;  %v4630_v21 = vmul.f32 %v4432_v60, %v4432_v60 }
 0x48f   : > { %v4571_v14 = vadd.f32 %v4570_v8, %v4569_v22 }
 0x490   : > { %4529 = vst.msk [vmem:[%s9359_s25 + $0x28] sm:$0xf] %vm4518_vm6, %v4496_v62  ;;  %v4671_v0 = vsel %vm397_vm0, %v4630_v21, 0.0 }
 0x491   : > { %v4672_v32 = vadd.f32 %v4671_v0, %v4670_v15  ;;  %v4382_v53 = vpop.f32.mrf.mxu3 }
 0x492   : > { %v4433_v12 = vpop.f32.mrf.mxu2 }
 0x493   : > { %v4344_v27 = vpop.f32.mrf.mxu1 }
 0x494   : > { %v4434_v10 = vadd.f32 %v4433_v12, %v4344_v27 }
 0x496   : > { %v4497_v57 = vpack.c.bf16 %v4434_v10, %v4434_v10  ;;  %v4572_v47 = vsel %vm397_vm0, %v4434_v10, 0.0  ;;  %v4631_v31 = vmul.f32 %v4434_v10, %v4434_v10 }
 0x497   : > { %v4573_v4 = vadd.f32 %v4572_v47, %v4571_v14 }
 0x498   : > { %4530 = vst.msk [vmem:[%s9359_s25 + $0x2c] sm:$0xf] %vm4518_vm6, %v4497_v57  ;;  %v4673_v36 = vsel %vm397_vm0, %v4631_v31, 0.0 }
 0x499   : > { %v4674_v24 = vadd.f32 %v4673_v36, %v4672_v32  ;;  %v4384_v39 = vpop.f32.mrf.mxu3 }
 0x49a   : > { %v4436_v17 = vpop.f32.mrf.mxu2 }
 0x49b   : > { %v4347_v35 = vpop.f32.mrf.mxu1 }
 0x49c   : > { %v4437_v43 = vadd.f32 %v4436_v17, %v4347_v35 }
 0x49e   : > { %v4498_v61 = vpack.c.bf16 %v4437_v43, %v4437_v43  ;;  %v4574_v30 = vsel %vm397_vm0, %v4437_v43, 0.0  ;;  %v4632_v41 = vmul.f32 %v4437_v43, %v4437_v43 }
 0x49f   : > { %v4575_v44 = vadd.f32 %v4574_v30, %v4573_v4 }
 0x4a0   : > { %4531 = vst.msk [vmem:[%s9359_s25 + $0x30] sm:$0xf] %vm4518_vm6, %v4498_v61  ;;  %v4675_v33 = vsel %vm397_vm0, %v4632_v41, 0.0 }
 0x4a1   : > { %v4676_v59 = vadd.f32 %v4675_v33, %v4674_v24 }
 0x4a2   : > { %v4438_v11 = vpop.f32.mrf.mxu2  ;;  %v4387_v6 = vpop.f32.mrf.mxu3 }
 0x4a3   : > { %v4349_v45 = vpop.f32.mrf.mxu1 }
 0x4a4   : > { %v4439_v46 = vadd.f32 %v4438_v11, %v4349_v45 }
 0x4a6   : > { %v4499_v58 = vpack.c.bf16 %v4439_v46, %v4439_v46  ;;  %v4576_v16 = vsel %vm397_vm0, %v4439_v46, 0.0  ;;  %v4633_v34 = vmul.f32 %v4439_v46, %v4439_v46 }
 0x4a7   : > { %v4577_v52 = vadd.f32 %v4576_v16, %v4575_v44 }
 0x4a8   : > { %4532 = vst.msk [vmem:[%s9359_s25 + $0x34] sm:$0xf] %vm4518_vm6, %v4499_v58  ;;  %v4677_v56 = vsel %vm397_vm0, %v4633_v34, 0.0 }
 0x4a9   : > { %v4678_v37 = vadd.f32 %v4677_v56, %v4676_v59 }
 0x4aa   : > { %v4441_v49 = vpop.f32.mrf.mxu2  ;;  %v4389_v7 = vpop.f32.mrf.mxu3 }
 0x4ab   : > { %v4352_v26 = vpop.f32.mrf.mxu1 }
 0x4ac   : > { %v4442_v23 = vadd.f32 %v4441_v49, %v4352_v26 }
 0x4ae   : > { %v4500_v29 = vpack.c.bf16 %v4442_v23, %v4442_v23  ;;  %v4578_v48 = vsel %vm397_vm0, %v4442_v23, 0.0  ;;  %v4634_v5 = vmul.f32 %v4442_v23, %v4442_v23 }
 0x4af   : > { %v9487_v3 = vadd.f32 %v4578_v48, %v4577_v52 }
 0x4b0   : > { %4533 = vst.msk [vmem:[%s9359_s25 + $0x38] sm:$0xf] %vm4518_vm6, %v4500_v29  ;;  %v4679_v13 = vsel %vm397_vm0, %v4634_v5, 0.0 }
 0x4b1   : > { %v9492_v63 = vadd.f32 %v4679_v13, %v4678_v37 }
 0x4b2   : > { %v4443_v19 = vpop.f32.mrf.mxu2 }
 0x4b3   : > { %v4354_v9 = vpop.f32.mrf.mxu1  ;;  %v4392_v50 = vpop.f32.mrf.mxu3 }
 0x4b4   : > { %v4444_v18 = vadd.f32 %v4443_v19, %v4354_v9 }
 0x4b6   : > { %v4501_v20 = vpack.c.bf16 %v4444_v18, %v4444_v18  ;;  %v4635_v56 = vmul.f32 %v4444_v18, %v4444_v18 }
 0x4b8   : > { %4534 = vst.msk [vmem:[%s9359_s25 + $0x3c] sm:$0xf] %vm4518_vm6, %v4501_v20  ;;  %v4681_v29 = vsel %vm397_vm0, %v4635_v56, 0.0 }
 0x4b9   : > { %v4682_v20 = vadd.f32 %v4681_v29, %v9492_v63 }
 0x4ba   : > { %v4446_v28 = vpop.f32.mrf.mxu2 }
 0x4bb   : > { %v4357_v2 = vpop.f32.mrf.mxu1  ;;  %v4394_v54 = vpop.f32.mrf.mxu3 }
 0x4bc   : > { %v4447_v22 = vadd.f32 %v4446_v28, %v4357_v2 }
 0x4be   : > { %v4502_v25 = vpack.c.bf16 %v4447_v22, %v4447_v22  ;;  %v4636_v26 = vmul.f32 %v4447_v22, %v4447_v22  ;;  %v4582_v48 = vsel %vm397_vm0, %v4447_v22, 0.0 }
 0x4c0   : > { %4535 = vst.msk [vmem:[%s9359_s25 + $0x40] sm:$0xf] %vm4518_vm6, %v4502_v25  ;;  %v4683_v19 = vsel %vm397_vm0, %v4636_v26, 0.0 }
 0x4c2   : > { %v4448_v15 = vpop.f32.mrf.mxu2 }
 0x4c3   : > { %v4359_v51 = vpop.f32.mrf.mxu1  ;;  %v4471_v42 = vpop.f32.mrf.mxu3 }
 0x4c4   : > { %v4449_v60 = vadd.f32 %v4448_v15, %v4359_v51  ;;  %v9498_v62 = vadd.f32 %v4471_v42, %v4382_v53  ;;  %v4684_v15 = vadd.f32 %v4683_v19, %v4682_v20 }
 0x4c6   : > { %v4503_v8 = vpack.c.bf16 %v4449_v60, %v4449_v60  ;;  %v4512_v21 = vpack.c.bf16 %v9498_v62, %v9498_v62  ;;  %v4637_v5 = vmul.f32 %v4449_v60, %v4449_v60  ;;  %v4584_v9 = vsel %vm397_vm0, %v4449_v60, 0.0 }
 0x4c8   : > { %4536 = vst.msk [vmem:[%s9359_s25 + $0x44] sm:$0xf] %vm4518_vm6, %v4503_v8  ;;  %v4685_v2 = vsel %vm397_vm0, %v4637_v5, 0.0 }
 0x4c9   : > { %4545 = vst.msk [vmem:[%s9359_s25 + $0x68] sm:$0xf] %vm4518_vm6, %v4512_v21  ;;  %v4686_v60 = vadd.f32 %v4685_v2, %v4684_v15 }
 0x4ca   : > { %v4451_v14 = vpop.f32.mrf.mxu2 }
 0x4cb   : > { %v4362_v0 = vpop.f32.mrf.mxu1  ;;  %v4473_v32 = vpop.f32.mrf.mxu3 }
 0x4cc   : > { %v4452_v12 = vadd.f32 %v4451_v14, %v4362_v0  ;;  %v9506_v27 = vadd.f32 %v4473_v32, %v4384_v39 }
 0x4ce   : > { %v4504_v10 = vpack.c.bf16 %v4452_v12, %v4452_v12  ;;  %v4513_v53 = vpack.c.bf16 %v9506_v27, %v9506_v27 }
 0x4d0   : > { %4537 = vst.msk [vmem:[%s9359_s25 + $0x48] sm:$0xf] %vm4518_vm6, %v4504_v10 }
 0x4d1   : > { %4546 = vst.msk [vmem:[%s9359_s25 + $0x6c] sm:$0xf] %vm4518_vm6, %v4513_v53 }
 0x4d2   : > { %v4453_v57 = vpop.f32.mrf.mxu2 }
 0x4d3   : > { %v4364_v47 = vpop.f32.mrf.mxu1  ;;  %v4476_v31 = vpop.f32.mrf.mxu3 }
 0x4d4   : > { %v4454_v4 = vadd.f32 %v4453_v57, %v4364_v47  ;;  %v9514_v36 = vadd.f32 %v4476_v31, %v4387_v6 }
 0x4d6   : > { %v4505_v24 = vpack.c.bf16 %v4454_v4, %v4454_v4  ;;  %v4514_v39 = vpack.c.bf16 %v9514_v36, %v9514_v36  ;;  %v4639_v22 = vmul.f32 %v4454_v4, %v4454_v4  ;;  %v4588_v42 = vsel %vm397_vm0, %v4454_v4, 0.0 }
 0x4d7   : > { %v4648_v20 = vmul.f32 %v9514_v36, %v9514_v36 }
 0x4d8   : > { %4538 = vst.msk [vmem:[%s9359_s25 + $0x4c] sm:$0xf] %vm4518_vm6, %v4505_v24  ;;  %v4689_v63 = vsel %vm397_vm0, %v4639_v22, 0.0 }
 0x4d9   : > { %4547 = vst.msk [vmem:[%s9359_s25 + $0x70] sm:$0xf] %vm4518_vm6, %v4514_v39 }
 0x4da   : > { %v4456_v17 = vpop.f32.mrf.mxu2 }
 0x4db   : > { %v4367_v35 = vpop.f32.mrf.mxu1  ;;  %v4478_v43 = vpop.f32.mrf.mxu3 }
 0x4dc   : > { %v4457_v61 = vadd.f32 %v4456_v17, %v4367_v35  ;;  %v9522_v30 = vadd.f32 %v4478_v43, %v4389_v7  ;;  %v4580_v7 = vsel %vm397_vm0, %v4444_v18, 0.0 }
 0x4de   : > { %v4506_v41 = vpack.c.bf16 %v4457_v61, %v4457_v61  ;;  %v4515_v44 = vpack.c.bf16 %v9522_v30, %v9522_v30  ;;  %v4640_v8 = vmul.f32 %v4457_v61, %v4457_v61  ;;  %v4590_v21 = vsel %vm397_vm0, %v4457_v61, 0.0 }
 0x4df   : > { %v4649_v22 = vmul.f32 %v9522_v30, %v9522_v30 }
 0x4e0   : > { %4539 = vst.msk [vmem:[%s9359_s25 + $0x50] sm:$0xf] %vm4518_vm6, %v4506_v41  ;;  %v4691_v10 = vsel %vm397_vm0, %v4640_v8, 0.0 }
 0x4e1   : > { %4548 = vst.msk [vmem:[%s9359_s25 + $0x74] sm:$0xf] %vm4518_vm6, %v4515_v44 }
 0x4e2   : > { %v4458_v33 = vpop.f32.mrf.mxu2 }
 0x4e3   : > { %v4369_v59 = vpop.f32.mrf.mxu1  ;;  %v4481_v11 = vpop.f32.mrf.mxu3 }
 0x4e4   : > { %v4459_v6 = vadd.f32 %v4458_v33, %v4369_v59  ;;  %v9530_v45 = vadd.f32 %v4481_v11, %v4392_v50  ;;  %v4638_v50 = vmul.f32 %v4452_v12, %v4452_v12 }
 0x4e6   : > { %v4507_v46 = vpack.c.bf16 %v4459_v6, %v4459_v6  ;;  %v4516_v58 = vpack.c.bf16 %v9530_v45, %v9530_v45  ;;  %v4687_v51 = vsel %vm397_vm0, %v4638_v50, 0.0  ;;  %v4641_v14 = vmul.f32 %v4459_v6, %v4459_v6 }
 0x4e7   : > { %v4688_v0 = vadd.f32 %v4687_v51, %v4686_v60  ;;  %v4592_v53 = vsel %vm397_vm0, %v4459_v6, 0.0  ;;  %v4650_v51 = vmul.f32 %v9530_v45, %v9530_v45  ;;  %v4709_v60 = vsel %vm397_vm0, %v4649_v22, 0.0 }
 0x4e8   : > { %4540 = vst.msk [vmem:[%s9359_s25 + $0x54] sm:$0xf] %vm4518_vm6, %v4507_v46  ;;  %v4693_v24 = vsel %vm397_vm0, %v4641_v14, 0.0 }
 0x4e9   : > { %4549 = vst.msk [vmem:[%s9359_s25 + $0x78] sm:$0xf] %vm4518_vm6, %v4516_v58  ;;  %v4690_v31 = vadd.f32 %v4689_v63, %v4688_v0  ;;  %v4711_v14 = vsel %vm397_vm0, %v4650_v51, 0.0 }
 0x4ea   : > { %v4461_v16 = vpop.f32.mrf.mxu2 }
 0x4eb   : > { %v4462_v34 = vadd.f32 %v4461_v16, %v9449_v1  ;;  %v4483_v52 = vpop.f32.mrf.mxu3  ;;  %v4581_v1 = vadd.f32 %v4580_v7, %v9487_v3  ;;  %v4692_v43 = vadd.f32 %v4691_v10, %v4690_v31  ;;  %v4646_v7 = vmul.f32 %v9498_v62, %v9498_v62 }
 0x4ec   : > { %v9539_v49 = vadd.f32 %v4483_v52, %v4394_v54  ;;  %v4586_v54 = vsel %vm397_vm0, %v4452_v12, 0.0 }
 0x4ed   : > { %v4508_v37 = vpack.c.bf16 %v4462_v34, %v4462_v34  ;;  %v4583_v28 = vadd.f32 %v4582_v48, %v4581_v1  ;;  %v4642_v57 = vmul.f32 %v4462_v34, %v4462_v34  ;;  %v4594_v39 = vsel %vm397_vm0, %v4462_v34, 0.0 }
 0x4ee   : > { %v4517_v23 = vpack.c.bf16 %v9539_v49, %v9539_v49  ;;  %v4694_v59 = vadd.f32 %v4693_v24, %v4692_v43  ;;  %v4602_v1 = vsel %vm397_vm0, %v9498_v62, 0.0  ;;  %v4703_v50 = vsel %vm397_vm0, %v4646_v7, 0.0 }
 0x4ef   : > { %4541 = vst.msk [vmem:[%s9359_s25 + $0x58] sm:$0xf] %vm4518_vm6, %v4508_v37  ;;  %v4585_v3 = vadd.f32 %v4584_v9, %v4583_v28  ;;  %v4695_v41 = vsel %vm397_vm0, %v4642_v57, 0.0 }
 0x4f0   : > { %4550 = vst.msk [vmem:[%s9359_s25 + $0x7c] sm:$0xf] %vm4518_vm6, %v4517_v23  ;;  %v4696_v46 = vadd.f32 %v4695_v41, %v4694_v59 }
 0x4f2   : > { %v4463_v13 = vpop.f32.mrf.mxu2 }
 0x4f3   : > { %v4464_v18 = vadd.f32 %v4463_v13, %v9456_v55  ;;  %v4587_v55 = vadd.f32 %v4586_v54, %v4585_v3  ;;  %v4647_v13 = vmul.f32 %v9506_v27, %v9506_v27  ;;  %v4606_v54 = vsel %vm397_vm0, %v9514_v36, 0.0 }
 0x4f4   : > { %v4707_v3 = vsel %vm397_vm0, %v4648_v20, 0.0  ;;  %v4610_v36 = vsel %vm397_vm0, %v9530_v45, 0.0 }
 0x4f5   : > { %v4509_v25 = vpack.c.bf16 %v4464_v18, %v4464_v18  ;;  %v4589_v32 = vadd.f32 %v4588_v42, %v4587_v55  ;;  %v4643_v17 = vmul.f32 %v4464_v18, %v4464_v18  ;;  %v4596_v44 = vsel %vm397_vm0, %v4464_v18, 0.0 }
 0x4f6   : > { %v4604_v18 = vsel %vm397_vm0, %v9506_v27, 0.0  ;;  %v4705_v62 = vsel %vm397_vm0, %v4647_v13, 0.0  ;;  %v4608_v27 = vsel %vm397_vm0, %v9522_v30, 0.0  ;;  %v4651_v55 = vmul.f32 %v9539_v49, %v9539_v49 }
 0x4f7   : > { %4542 = vst.msk [vmem:[%s9359_s25 + $0x5c] sm:$0xf] %vm4518_vm6, %v4509_v25  ;;  %v4591_v4 = vadd.f32 %v4590_v21, %v4589_v32  ;;  %v4612_v30 = vsel %vm397_vm0, %v9539_v49, 0.0 }
 0x4f9   : > { %v4593_v61 = vadd.f32 %v4592_v53, %v4591_v4 }
 0x4fa   : > { %v4466_v12 = vpop.f32.mrf.mxu2 }
 0x4fb   : > { %v4467_v47 = vadd.f32 %v4466_v12, %v9462_v40  ;;  %v4595_v11 = vadd.f32 %v4594_v39, %v4593_v61  ;;  %v4697_v40 = vsel %vm397_vm0, %v4643_v17, 0.0  ;;  %v4713_v12 = vsel %vm397_vm0, %v4651_v55, 0.0 }
 0x4fc   : > { %v4698_v56 = vadd.f32 %v4697_v40, %v4696_v46 }
 0x4fd   : > { %v4510_v35 = vpack.c.bf16 %v4467_v47, %v4467_v47  ;;  %v4644_v33 = vmul.f32 %v4467_v47, %v4467_v47  ;;  %v4598_v6 = vsel %vm397_vm0, %v4467_v47, 0.0  ;;  %v4597_v58 = vadd.f32 %v4596_v44, %v4595_v11 }
 0x4ff   : > { %4543 = vst.msk [vmem:[%s9359_s25 + $0x60] sm:$0xf] %vm4518_vm6, %v4510_v35  ;;  %v4699_v34 = vsel %vm397_vm0, %v4644_v33, 0.0  ;;  %v4599_v37 = vadd.f32 %v4598_v6, %v4597_v58 }
 0x500   : > { %v4700_v48 = vadd.f32 %v4699_v34, %v4698_v56 }
 0x502   : > { %v4468_v16 = vpop.f32.mrf.mxu2 }
 0x503   : > { %v4469_v52 = vadd.f32 %v4468_v16, %v9468_v38 }
 0x505   : > { %v4511_v26 = vpack.c.bf16 %v4469_v52, %v4469_v52  ;;  %v4600_v23 = vsel %vm397_vm0, %v4469_v52, 0.0  ;;  %v4645_v29 = vmul.f32 %v4469_v52, %v4469_v52 }
 0x506   : > { %v4601_v5 = vadd.f32 %v4600_v23, %v4599_v37 }
 0x507   : > { %4544 = vst.msk [vmem:[%s9359_s25 + $0x64] sm:$0xf] %vm4518_vm6, %v4511_v26  ;;  %v4701_v38 = vsel %vm397_vm0, %v4645_v29, 0.0  ;;  %vm4723_vm0 = vcmask 254976  }
 0x508   : > { %v4603_v19 = vadd.f32 %v4602_v1, %v4601_v5  ;;  %v4702_v9 = vadd.f32 %v4701_v38, %v4700_v48 }
 0x50a   : > { %v4605_v28 = vadd.f32 %v4604_v18, %v4603_v19  ;;  %v4704_v2 = vadd.f32 %v4703_v50, %v4702_v9 }
 0x50c   : > { %v4607_v25 = vadd.f32 %v4606_v54, %v4605_v28  ;;  %v4706_v15 = vadd.f32 %v4705_v62, %v4704_v2 }
 0x50e   : > { %v4609_v42 = vadd.f32 %v4608_v27, %v4607_v25  ;;  %v4708_v8 = vadd.f32 %v4707_v3, %v4706_v15 }
 0x510   : > { %v4611_v63 = vadd.f32 %v4610_v36, %v4609_v42  ;;  %v4710_v21 = vadd.f32 %v4709_v60, %v4708_v8 }
 0x512   : > { %v4613_v0 = vadd.f32 %v4612_v30, %v4611_v63  ;;  %v4712_v32 = vadd.f32 %v4711_v14, %v4710_v21 }
 0x514   : > { %v4614_v10 = vrot.slane %v4613_v0, 4  ;;  %v4714_v53 = vadd.f32 %v4713_v12, %v4712_v32 }
 0x516   : > { %v4615_v57 = vadd.f32 %v4614_v10, %v4613_v0  ;;  %v4715_v47 = vrot.slane %v4714_v53, 4 }
 0x518   : > { %v4616_v45 = vrot.slane %v4615_v57, 2  ;;  %v4716_v31 = vadd.f32 %v4715_v47, %v4714_v53 }
 0x51a   : > { %v4617_v4 = vadd.f32 %v4616_v45, %v4615_v57  ;;  %v4717_v24 = vrot.slane %v4716_v31, 2 }
 0x51c   : > { %v4618_v39 = vrot.slane %v4617_v4, 1  ;;  %v4718_v17 = vadd.f32 %v4717_v24, %v4716_v31 }
 0x51e   : > { %v4719_v35 = vrot.slane %v4718_v17, 1  ;;  %v4619_v49 = vadd.f32 %v4618_v39, %v4617_v4 }
 0x520   : > { %v4720_v43 = vadd.f32 %v4719_v35, %v4718_v17 }
 0x522   : > { %v4722_v61 = vsel %vm4721_vm1, %v4619_v49, %v4720_v43 }
 0x523   : > { %4724 = vst.msk [vmem:[%s299_s14] sm:$0x3] %vm4723_vm0, %v4722_v61 }
 0x524 PF: > { %p19_p8 = scmp.ge.s32.totalorder %s6593_s23, 4   ;;  %s10027_s18 = smov %s6513_s19 }
 0x525   : > { %s10028_s19 = smov %s6517_s20  ;;  %s10029_s20 = smov %s6603_s26 }
 0x526   : > { %s10030_s21 = smov %s6593_s23  ;;  %21 = sbr.rel (!%p19_p8) target bundleno = 5 (0x5), region = 107 }
 0x52b   :  { %4760 = vsyncpa [#allocation5], 1 }
 0x52c   :  { %4762 = vsyncpa [#allocation5 + $0x1], 1 }
 0x52d   :  { %4763 = vsyncpa [#allocation7], 1 }
 0x52e   :  { %4765 = vsyncpa [#allocation7 + $0x1], 1 }

</bundles_post_ra>
